<compile_context>
chip_gen: v6e
topology: v6e:2x2x1
jax: 0.10.0
libtpu: 0.0.40
codegen_flags: <defaults>
</compile_context>

<pallas_src>
import functools

import numpy as np
import jax
import jax.numpy as jnp
from jax import lax
from jax.experimental import pallas as pl
from jax.experimental.pallas import tpu as pltpu  # noqa: F401  (TPU backend assumed)

# ----- small hyper-parameters consistent with ModelMS2Bert's constructor -----
HIDDEN = 32            # "hidden" (256 in the real model)
META_DIM = 8           # meta embedding width (fixed in the module)
MOD_HIDDEN = 8         # Mod_Embedding_FixFirstK output width (fixed)
MOD_FIX_K = 6          # first k mod features passed through unchanged
MOD_FEATURE_SIZE = 14  # synthetic mod feature size (109 in peptdeep)
AA_VOCAB = 27          # aa_embedding vocab (padding_idx=0)
NHEADS = 8             # BertConfig num_attention_heads
NLAYERS = 2            # hidden_nn transformer layers (4 in the real model)
NUM_NON_MODLOSS = 4    # e.g. b_z1, b_z2, y_z1, y_z2
NUM_MODLOSS = 4        # e.g. b_modloss_z1, ..., y_modloss_z2
MAX_INSTRUMENT = 8     # max_instrument_num in peptdeep
DEC_HIDDEN = 64        # Decoder_Linear hidden width
LN_EPS = 1e-12         # BertConfig layer_norm_eps
MAX_LEN = 200          # PositionalEncoding max_len
NOUT = NUM_NON_MODLOSS + NUM_MODLOSS


# ----------------------------- kernel helpers --------------------------------
def _layer_norm(x, gamma, beta):
    mu = jnp.mean(x, axis=-1, keepdims=True)
    var = jnp.mean((x - mu) ** 2, axis=-1, keepdims=True)
    return (x - mu) * lax.rsqrt(var + LN_EPS) * gamma + beta


def _erf(x):
    # Abramowitz & Stegun 7.1.26 rational approximation (|err| <= 1.5e-7),
    # built only from exp / mul / div / select -- no erf primitive required.
    a1, a2, a3, a4, a5 = (0.254829592, -0.284496736, 1.421413741,
                          -1.453152027, 1.061405429)
    p = 0.3275911
    sign = jnp.where(x >= 0.0, 1.0, -1.0)
    ax = jnp.abs(x)
    t = 1.0 / (1.0 + p * ax)
    poly = ((((a5 * t + a4) * t + a3) * t + a2) * t + a1) * t
    return sign * (1.0 - poly * jnp.exp(-ax * ax))


def _gelu(x):  # exact (erf-based) GELU, matching HF Bert hidden_act="gelu"
    return 0.5 * x * (1.0 + _erf(x * (1.0 / np.sqrt(2.0))))


# ----------------------------- fused forward kernel --------------------------
def _fused_ms2bert_kernel(
    x_ref, hm_ref,
    wqkv_ref, bqkv_ref, wo_ref, bo_ref, ln1g_ref, ln1b_ref,
    wi_ref, bi_ref, wo2_ref, bo2_ref, ln2g_ref, ln2b_ref,
    ow1_ref, ob1_ref, oa_ref, ow2_ref, ob2_ref,
    mw1_ref, mb1_ref, ma_ref, mw2_ref, mb2_ref,
    o_ref, *, b, s, h, nheads, n_hidden_layers):

    bs = b * s
    hm = hm_ref[...]                        # (nheads, 1, h) 0/1 head lane mask

    def bert_layer(x2, l):
        # --- fused QKV projection (1/sqrt(dh) already folded into Q) ---------
        qkv = (jnp.dot(x2, wqkv_ref[l], preferred_element_type=jnp.float32)
               + bqkv_ref[l])                                   # (bs, 3h)
        q3 = qkv[:, :h].reshape(b, s, h)
        k3 = qkv[:, h:2 * h].reshape(b, s, h)
        v3 = qkv[:, 2 * h:].reshape(b, s, h)

        # --- head-batched attention: stack heads onto the batch dim ----------
        # g = b*nheads + h; masking Q (and V) per-head lane group makes the
        # full-H contraction equal the per-head contraction, with ONE batched
        # einsum + ONE softmax instead of a per-head loop.
        qst = (q3[:, None, :, :] * hm).reshape(b * nheads, s, h)
        vst = (v3[:, None, :, :] * hm).reshape(b * nheads, s, h)
        kst = jnp.broadcast_to(k3[:, None, :, :],
                               (b, nheads, s, h)).reshape(b * nheads, s, h)

        sc = jnp.einsum('gqd,gkd->gqk', qst, kst,
                        preferred_element_type=jnp.float32)     # (b*nh, s, s)
        sc = sc - jnp.max(sc, axis=-1, keepdims=True)
        p = jnp.exp(sc)
        p = p * pl.reciprocal(jnp.sum(p, axis=-1, keepdims=True), approx=True)
        ctx_st = jnp.einsum('gqk,gkd->gqd', p, vst,
                            preferred_element_type=jnp.float32)  # (b*nh, s, h)

        # combine heads: lane groups are disjoint, so summing over the head
        # axis reassembles the multi-head context (cheap VPU adds).
        ctx4 = ctx_st.reshape(b, nheads, s, h)
        ctx3 = ctx4[:, 0]
        for hh in range(1, nheads):
            ctx3 = ctx3 + ctx4[:, hh]
        ctx2 = ctx3.reshape(bs, h)

        attn = (jnp.dot(ctx2, wo_ref[l], preferred_element_type=jnp.float32)
                + bo_ref[l])                                    # BertSelfOutput
        h1 = _layer_norm(attn + x2, ln1g_ref[l], ln1b_ref[l])   # residual + LN
        inter = _gelu(jnp.dot(h1, wi_ref[l],
                              preferred_element_type=jnp.float32) + bi_ref[l])
        out = (jnp.dot(inter, wo2_ref[l], preferred_element_type=jnp.float32)
               + bo2_ref[l])                                    # BertOutput
        return _layer_norm(out + h1, ln2g_ref[l], ln2b_ref[l])

    def decoder(x2, w1_r, b1_r, a_r, w2_r, b2_r):
        hh = jnp.dot(x2, w1_r[...], preferred_element_type=jnp.float32) + b1_r[...]
        hh = jnp.maximum(hh, 0.0) + a_r[...] * jnp.minimum(hh, 0.0)   # PReLU
        return jnp.dot(hh, w2_r[...], preferred_element_type=jnp.float32) + b2_r[...]

    x2 = x_ref[...].astype(jnp.float32)     # (bs, h) -- VMEM resident throughout

    # hidden_nn: Hidden_HFace_Transformer (BertEncoder, n_hidden_layers layers)
    hx = x2
    for l in range(n_hidden_layers):
        hx = bert_layer(hx, l)
    hidden_x = hx + x2 * 0.2                # + dropout (identity at inference)

    out_y = decoder(hidden_x, ow1_ref, ob1_ref, oa_ref, ow2_ref, ob2_ref)

    # modloss branch: modloss_nn[0] is one more BERT layer (stacked at index
    # n_hidden_layers) applied to in_x, then residual with hidden_x.
    mx = bert_layer(x2, n_hidden_layers)
    mx = mx + hidden_x
    mod_y = decoder(mx, mw1_ref, mb1_ref, ma_ref, mw2_ref, mb2_ref)

    # single store of the concatenated heads (one contiguous write region)
    o_ref[...] = jnp.concatenate([out_y, mod_y], axis=1).astype(o_ref.dtype)


def fused_ms2bert(in_x2, params, b, s):
    L = params['layers']
    od = params['out_dec']
    md = params['modloss_dec']
    kernel = functools.partial(_fused_ms2bert_kernel, b=b, s=s, h=HIDDEN,
                               nheads=NHEADS, n_hidden_layers=NLAYERS)
    return pl.pallas_call(
        kernel,
        out_shape=jax.ShapeDtypeStruct((b * s, NOUT), jnp.float32),
    )(in_x2, params['head_mask'],
      L['wqkv'], L['bqkv'], L['wo'], L['bo'], L['ln1_g'], L['ln1_b'],
      L['wi'], L['bi'], L['wo2'], L['bo2'], L['ln2_g'], L['ln2_b'],
      od['w1'], od['b1'], od['a'], od['w2'], od['b2'],
      md['w1'], md['b1'], md['a'], md['w2'], md['b2'])


# --------------------------- parameter construction --------------------------
def init_params(key):
    def dense(k, fan_in, fan_out):
        k1, k2 = jax.random.split(k)
        w = jax.random.normal(k1, (fan_in, fan_out), jnp.float32) * 0.02
        b = jax.random.normal(k2, (1, fan_out), jnp.float32) * 0.02
        return w, b

    keys = iter(jax.random.split(key, 64))
    params = {}

    # Input_26AA_Mod_PositionalEncoding(hidden - meta_dim)
    aa_dim = HIDDEN - META_DIM - MOD_HIDDEN
    emb = jax.random.normal(next(keys), (AA_VOCAB, aa_dim), jnp.float32) * 0.02
    params['aa_emb'] = emb.at[0].set(0.0)              # padding_idx=0
    # Mod_Embedding_FixFirstK: Linear(mod_feat-6, 8-6, bias=False)
    params['mod_w'], _ = dense(next(keys), MOD_FEATURE_SIZE - MOD_FIX_K,
                               MOD_HIDDEN - MOD_FIX_K)
    # PositionalEncoding buffer (d = hidden - meta_dim)
    d = HIDDEN - META_DIM
    pos = np.arange(MAX_LEN)[:, None]
    div = np.exp(np.arange(0, d, 2) * (-np.log(10000.0) / d))
    pe = np.zeros((1, MAX_LEN, d), np.float32)
    pe[0, :, 0::2] = np.sin(pos * div)
    pe[0, :, 1::2] = np.cos(pos * div)
    params['pe'] = jnp.asarray(pe)

    # Meta_Embedding(meta_dim): Linear(max_instrument_num+1, meta_dim-1)
    params['meta_w'], params['meta_b'] = dense(next(keys), MAX_INSTRUMENT + 1,
                                               META_DIM - 1)

    # ----- transformer layers: hidden_nn (NLAYERS) + modloss_nn[0] (1) -------
    scale = 1.0 / float(np.sqrt(HIDDEN // NHEADS))

    def bert_layer(k):
        ks = jax.random.split(k, 6)
        wq, bq = dense(ks[0], HIDDEN, HIDDEN)
        wk, bk = dense(ks[1], HIDDEN, HIDDEN)
        wv, bv = dense(ks[2], HIDDEN, HIDDEN)
        wo, bo = dense(ks[3], HIDDEN, HIDDEN)
        wi, bi = dense(ks[4], HIDDEN, 4 * HIDDEN)
        wo2, bo2 = dense(ks[5], 4 * HIDDEN, HIDDEN)
        ones = jnp.ones((1, HIDDEN), jnp.float32)
        zeros = jnp.zeros((1, HIDDEN), jnp.float32)
        # fused QKV weight with the attention score scale folded into Q
        wqkv = jnp.concatenate([wq * scale, wk, wv], axis=1)
        bqkv = jnp.concatenate([bq * scale, bk, bv], axis=1)
        return dict(wqkv=wqkv, bqkv=bqkv, wo=wo, bo=bo,
                    ln1_g=ones, ln1_b=zeros,
                    wi=wi, bi=bi, wo2=wo2, bo2=bo2,
                    ln2_g=ones, ln2_b=zeros)

    layer_list = [bert_layer(next(keys)) for _ in range(NLAYERS + 1)]
    params['layers'] = {k: jnp.stack([lp[k] for lp in layer_list], axis=0)
                        for k in layer_list[0]}

    def decoder(k, nout):
        k1, k2 = jax.random.split(k)
        w1, b1 = dense(k1, HIDDEN, DEC_HIDDEN)
        w2, b2 = dense(k2, DEC_HIDDEN, nout)
        return dict(w1=w1, b1=b1,
                    a=jnp.full((1, 1), 0.25, jnp.float32),   # shared-param PReLU
                    w2=w2, b2=b2)

    params['out_dec'] = decoder(next(keys), NUM_NON_MODLOSS)
    params['modloss_dec'] = decoder(next(keys), NUM_MODLOSS)

    # per-head lane-group mask (nheads, 1, hidden)
    dh = HIDDEN // NHEADS
    hm = (np.arange(HIDDEN)[None, :] // dh ==
          np.arange(NHEADS)[:, None]).astype(np.float32)
    params['head_mask'] = jnp.asarray(hm[:, None, :])
    return params


# -------------------------------- forward ------------------------------------
@jax.jit
def model_ms2_bert_forward(params, aa_indices, mod_x, charges, NCEs,
                           instrument_indices):
    B, S = aa_indices.shape

    # input_nn: Input_26AA_Mod_PositionalEncoding  (plain XLA glue -- tiny)
    mod_fix = mod_x[:, :, :MOD_FIX_K]
    mod_emb = jnp.einsum('bsf,fo->bso', mod_x[:, :, MOD_FIX_K:],
                         params['mod_w'])                       # bias=False
    mod_out = jnp.concatenate([mod_fix, mod_emb], axis=2)       # (B,S,8)
    aa_x = jnp.take(params['aa_emb'], aa_indices, axis=0)       # (B,S,16)
    in_x = jnp.concatenate([aa_x, mod_out], axis=2)             # (B,S,24)
    in_x = in_x + params['pe'][:, :S, :]                        # positional enc.
    # dropout -> identity (inference)

    # meta_nn: Meta_Embedding  (plain XLA glue -- tiny)
    inst_oh = jax.nn.one_hot(instrument_indices, MAX_INSTRUMENT,
                             dtype=jnp.float32)
    meta = (jnp.concatenate([inst_oh, charges], axis=1) @ params['meta_w']
            + params['meta_b'])                                 # (B,7)
    meta = jnp.concatenate([meta, NCEs], axis=1)                # (B,8)
    meta = jnp.broadcast_to(meta[:, None, :], (B, S, META_DIM))
    in_x = jnp.concatenate([in_x, meta], axis=2)                # (B,S,H)

    # single fused Pallas kernel: 2 hidden BERT layers + modloss BERT layer
    # + both Decoder_Linear heads, all VMEM-resident.
    out2 = fused_ms2bert(in_x.reshape(B * S, HIDDEN), params, B, S)  # (B*S, 8)
    out = out2.reshape(B, S, NOUT)
    return out[:, 3:, :]


if __name__ == "__main__":
    key = jax.random.PRNGKey(0)
    kp, k1, k2, k3, k4, k5 = jax.random.split(key, 6)
    params = init_params(kp)

    B, S = 2, 10
    aa_indices = jax.random.randint(k1, (B, S), 0, AA_VOCAB, dtype=jnp.int32)
    mod_x = jax.random.uniform(k2, (B, S, MOD_FEATURE_SIZE), jnp.float32)
    charges = jax.random.uniform(k3, (B, 1), jnp.float32, 1.0, 4.0)
    NCEs = jax.random.uniform(k4, (B, 1), jnp.float32, 0.2, 0.4)
    instrument_indices = jax.random.randint(k5, (B,), 0, MAX_INSTRUMENT,
                                            dtype=jnp.int32)

    out = model_ms2_bert_forward(params, aa_indices, mod_x, charges, NCEs,
                                 instrument_indices)
    out = jax.block_until_ready(out)
    assert out.shape == (B, S - 3, NOUT), out.shape
    assert bool(jnp.all(jnp.isfinite(out)))
    print("KERNEL_OK")
</pallas_src>

<mosaic_0001>
module attributes {stable_mosaic.version = 11 : i64} {
  func.func @_fused_ms2bert_kernel(%arg0: memref<20x32xf32, #tpu.memory_space<vmem>>, %arg1: memref<8x1x32xf32, #tpu.memory_space<vmem>>, %arg2: memref<3x32x96xf32, #tpu.memory_space<vmem>>, %arg3: memref<3x1x96xf32, #tpu.memory_space<vmem>>, %arg4: memref<3x32x32xf32, #tpu.memory_space<vmem>>, %arg5: memref<3x1x32xf32, #tpu.memory_space<vmem>>, %arg6: memref<3x1x32xf32, #tpu.memory_space<vmem>>, %arg7: memref<3x1x32xf32, #tpu.memory_space<vmem>>, %arg8: memref<3x32x128xf32, #tpu.memory_space<vmem>>, %arg9: memref<3x1x128xf32, #tpu.memory_space<vmem>>, %arg10: memref<3x128x32xf32, #tpu.memory_space<vmem>>, %arg11: memref<3x1x32xf32, #tpu.memory_space<vmem>>, %arg12: memref<3x1x32xf32, #tpu.memory_space<vmem>>, %arg13: memref<3x1x32xf32, #tpu.memory_space<vmem>>, %arg14: memref<32x64xf32, #tpu.memory_space<vmem>>, %arg15: memref<1x64xf32, #tpu.memory_space<vmem>>, %arg16: memref<1x1xf32, #tpu.memory_space<vmem>>, %arg17: memref<64x4xf32, #tpu.memory_space<vmem>>, %arg18: memref<1x4xf32, #tpu.memory_space<vmem>>, %arg19: memref<32x64xf32, #tpu.memory_space<vmem>>, %arg20: memref<1x64xf32, #tpu.memory_space<vmem>>, %arg21: memref<1x1xf32, #tpu.memory_space<vmem>>, %arg22: memref<64x4xf32, #tpu.memory_space<vmem>>, %arg23: memref<1x4xf32, #tpu.memory_space<vmem>>, %arg24: memref<20x8xf32, #tpu.memory_space<vmem>>) attributes {dimension_semantics = [], scalar_prefetch = 0 : i64, scratch_operands = 0 : i64, tpu.core_type = #tpu.core_type<tc>} {
    %c0 = arith.constant 0 : index
    %c0_0 = arith.constant 0 : index
    %c0_1 = arith.constant 0 : index
    %0 = vector.load %arg1[%c0, %c0_0, %c0_1] : memref<8x1x32xf32, #tpu.memory_space<vmem>>, vector<8x1x32xf32>
    %c0_2 = arith.constant 0 : index
    %c0_3 = arith.constant 0 : index
    %1 = vector.load %arg0[%c0_2, %c0_3] : memref<20x32xf32, #tpu.memory_space<vmem>>, vector<20x32xf32>
    %c0_4 = arith.constant 0 : index
    %c0_5 = arith.constant 0 : index
    %c0_6 = arith.constant 0 : index
    %2 = vector.load %arg2[%c0_4, %c0_5, %c0_6] : memref<3x32x96xf32, #tpu.memory_space<vmem>>, vector<1x32x96xf32>
    %3 = vector.shape_cast %2 : vector<1x32x96xf32> to vector<32x96xf32>
    %cst = arith.constant dense<0.000000e+00> : vector<20x96xf32>
    %4 = tpu.matmul %1, %3, %cst {dimension_numbers = #tpu.dot_dimension_numbers<[1], [0], [0], [1], [0, 0, 1, 1], [], []>} : vector<20x32xf32>, vector<32x96xf32>, vector<20x96xf32> -> vector<20x96xf32>
    %c0_7 = arith.constant 0 : index
    %c0_8 = arith.constant 0 : index
    %c0_9 = arith.constant 0 : index
    %5 = vector.load %arg3[%c0_7, %c0_8, %c0_9] : memref<3x1x96xf32, #tpu.memory_space<vmem>>, vector<1x1x96xf32>
    %6 = vector.shape_cast %5 : vector<1x1x96xf32> to vector<1x96xf32>
    %7 = vector.broadcast %6 : vector<1x96xf32> to vector<20x96xf32>
    %8 = arith.addf %4, %7 : vector<20x96xf32>
    %9 = vector.extract_strided_slice %8 {offsets = [0, 0], sizes = [20, 32], strides = [1, 1]} : vector<20x96xf32> to vector<20x32xf32>
    %10 = vector.shape_cast %9 : vector<20x32xf32> to vector<2x10x32xf32>
    %11 = vector.extract_strided_slice %8 {offsets = [0, 32], sizes = [20, 32], strides = [1, 1]} : vector<20x96xf32> to vector<20x32xf32>
    %12 = vector.shape_cast %11 : vector<20x32xf32> to vector<2x10x32xf32>
    %13 = vector.extract_strided_slice %8 {offsets = [0, 64], sizes = [20, 32], strides = [1, 1]} : vector<20x96xf32> to vector<20x32xf32>
    %14 = vector.shape_cast %13 : vector<20x32xf32> to vector<2x10x32xf32>
    %15 = vector.shape_cast %10 : vector<2x10x32xf32> to vector<2x1x10x32xf32>
    %16 = vector.shape_cast %0 : vector<8x1x32xf32> to vector<1x8x1x32xf32>
    %17 = vector.broadcast %15 : vector<2x1x10x32xf32> to vector<2x8x10x32xf32>
    %18 = vector.broadcast %16 : vector<1x8x1x32xf32> to vector<2x8x10x32xf32>
    %19 = arith.mulf %17, %18 : vector<2x8x10x32xf32>
    %20 = vector.shape_cast %19 : vector<2x8x10x32xf32> to vector<16x10x32xf32>
    %21 = vector.shape_cast %14 : vector<2x10x32xf32> to vector<2x1x10x32xf32>
    %22 = vector.shape_cast %0 : vector<8x1x32xf32> to vector<1x8x1x32xf32>
    %23 = vector.broadcast %21 : vector<2x1x10x32xf32> to vector<2x8x10x32xf32>
    %24 = vector.broadcast %22 : vector<1x8x1x32xf32> to vector<2x8x10x32xf32>
    %25 = arith.mulf %23, %24 : vector<2x8x10x32xf32>
    %26 = vector.shape_cast %25 : vector<2x8x10x32xf32> to vector<16x10x32xf32>
    %27 = vector.shape_cast %12 : vector<2x10x32xf32> to vector<2x1x10x32xf32>
    %28 = vector.shape_cast %27 : vector<2x1x10x32xf32> to vector<2x1x10x32xf32>
    %29 = vector.broadcast %28 : vector<2x1x10x32xf32> to vector<2x8x10x32xf32>
    %30 = vector.shape_cast %29 : vector<2x8x10x32xf32> to vector<16x10x32xf32>
    "tpu.trace_start"() <{level = 10 : i32, message = "gqd,gkd->gqk"}> : () -> ()
    %cst_10 = arith.constant dense<0.000000e+00> : vector<16x10x10xf32>
    %31 = tpu.matmul %20, %30, %cst_10 {dimension_numbers = #tpu.dot_dimension_numbers<[2], [2], [1], [1], [0, 0, 0, 1, 1, 1], [0], [0]>} : vector<16x10x32xf32>, vector<16x10x32xf32>, vector<16x10x10xf32> -> vector<16x10x10xf32>
    "tpu.trace_stop"() : () -> ()
    %cst_11 = arith.constant dense<0xFF800000> : vector<16x10xf32>
    %32 = vector.multi_reduction <maximumf>, %31, %cst_11 [2] : vector<16x10x10xf32> to vector<16x10xf32>
    %33 = vector.shape_cast %32 : vector<16x10xf32> to vector<16x10x1xf32>
    %34 = vector.broadcast %33 : vector<16x10x1xf32> to vector<16x10x10xf32>
    %35 = arith.subf %31, %34 : vector<16x10x10xf32>
    %36 = math.exp %35 : vector<16x10x10xf32>
    %cst_12 = arith.constant dense<0.000000e+00> : vector<16x10xf32>
    %37 = vector.multi_reduction <add>, %36, %cst_12 [2] : vector<16x10x10xf32> to vector<16x10xf32>
    %38 = vector.shape_cast %37 : vector<16x10xf32> to vector<16x10x1xf32>
    %39 = tpu.reciprocal %38 {approx = true} : vector<16x10x1xf32> -> vector<16x10x1xf32>
    %40 = vector.broadcast %39 : vector<16x10x1xf32> to vector<16x10x10xf32>
    %41 = arith.mulf %36, %40 : vector<16x10x10xf32>
    "tpu.trace_start"() <{level = 10 : i32, message = "gqk,gkd->gqd"}> : () -> ()
    %cst_13 = arith.constant dense<0.000000e+00> : vector<16x10x32xf32>
    %42 = tpu.matmul %41, %26, %cst_13 {dimension_numbers = #tpu.dot_dimension_numbers<[2], [1], [1], [2], [0, 0, 0, 1, 1, 2], [0], [0]>} : vector<16x10x10xf32>, vector<16x10x32xf32>, vector<16x10x32xf32> -> vector<16x10x32xf32>
    "tpu.trace_stop"() : () -> ()
    %43 = vector.shape_cast %42 : vector<16x10x32xf32> to vector<2x8x10x32xf32>
    %44 = vector.extract_strided_slice %43 {offsets = [0, 0, 0, 0], sizes = [2, 1, 10, 32], strides = [1, 1, 1, 1]} : vector<2x8x10x32xf32> to vector<2x1x10x32xf32>
    %45 = vector.shape_cast %44 : vector<2x1x10x32xf32> to vector<2x10x32xf32>
    %46 = vector.extract_strided_slice %43 {offsets = [0, 1, 0, 0], sizes = [2, 1, 10, 32], strides = [1, 1, 1, 1]} : vector<2x8x10x32xf32> to vector<2x1x10x32xf32>
    %47 = vector.shape_cast %46 : vector<2x1x10x32xf32> to vector<2x10x32xf32>
    %48 = arith.addf %45, %47 : vector<2x10x32xf32>
    %49 = vector.extract_strided_slice %43 {offsets = [0, 2, 0, 0], sizes = [2, 1, 10, 32], strides = [1, 1, 1, 1]} : vector<2x8x10x32xf32> to vector<2x1x10x32xf32>
    %50 = vector.shape_cast %49 : vector<2x1x10x32xf32> to vector<2x10x32xf32>
    %51 = arith.addf %48, %50 : vector<2x10x32xf32>
    %52 = vector.extract_strided_slice %43 {offsets = [0, 3, 0, 0], sizes = [2, 1, 10, 32], strides = [1, 1, 1, 1]} : vector<2x8x10x32xf32> to vector<2x1x10x32xf32>
    %53 = vector.shape_cast %52 : vector<2x1x10x32xf32> to vector<2x10x32xf32>
    %54 = arith.addf %51, %53 : vector<2x10x32xf32>
    %55 = vector.extract_strided_slice %43 {offsets = [0, 4, 0, 0], sizes = [2, 1, 10, 32], strides = [1, 1, 1, 1]} : vector<2x8x10x32xf32> to vector<2x1x10x32xf32>
    %56 = vector.shape_cast %55 : vector<2x1x10x32xf32> to vector<2x10x32xf32>
    %57 = arith.addf %54, %56 : vector<2x10x32xf32>
    %58 = vector.extract_strided_slice %43 {offsets = [0, 5, 0, 0], sizes = [2, 1, 10, 32], strides = [1, 1, 1, 1]} : vector<2x8x10x32xf32> to vector<2x1x10x32xf32>
    %59 = vector.shape_cast %58 : vector<2x1x10x32xf32> to vector<2x10x32xf32>
    %60 = arith.addf %57, %59 : vector<2x10x32xf32>
    %61 = vector.extract_strided_slice %43 {offsets = [0, 6, 0, 0], sizes = [2, 1, 10, 32], strides = [1, 1, 1, 1]} : vector<2x8x10x32xf32> to vector<2x1x10x32xf32>
    %62 = vector.shape_cast %61 : vector<2x1x10x32xf32> to vector<2x10x32xf32>
    %63 = arith.addf %60, %62 : vector<2x10x32xf32>
    %64 = vector.extract_strided_slice %43 {offsets = [0, 7, 0, 0], sizes = [2, 1, 10, 32], strides = [1, 1, 1, 1]} : vector<2x8x10x32xf32> to vector<2x1x10x32xf32>
    %65 = vector.shape_cast %64 : vector<2x1x10x32xf32> to vector<2x10x32xf32>
    %66 = arith.addf %63, %65 : vector<2x10x32xf32>
    %67 = vector.shape_cast %66 : vector<2x10x32xf32> to vector<20x32xf32>
    %c0_14 = arith.constant 0 : index
    %c0_15 = arith.constant 0 : index
    %c0_16 = arith.constant 0 : index
    %68 = vector.load %arg4[%c0_14, %c0_15, %c0_16] : memref<3x32x32xf32, #tpu.memory_space<vmem>>, vector<1x32x32xf32>
    %69 = vector.shape_cast %68 : vector<1x32x32xf32> to vector<32x32xf32>
    %cst_17 = arith.constant dense<0.000000e+00> : vector<20x32xf32>
    %70 = tpu.matmul %67, %69, %cst_17 {dimension_numbers = #tpu.dot_dimension_numbers<[1], [0], [0], [1], [0, 0, 1, 1], [], []>} : vector<20x32xf32>, vector<32x32xf32>, vector<20x32xf32> -> vector<20x32xf32>
    %c0_18 = arith.constant 0 : index
    %c0_19 = arith.constant 0 : index
    %c0_20 = arith.constant 0 : index
    %71 = vector.load %arg5[%c0_18, %c0_19, %c0_20] : memref<3x1x32xf32, #tpu.memory_space<vmem>>, vector<1x1x32xf32>
    %72 = vector.shape_cast %71 : vector<1x1x32xf32> to vector<1x32xf32>
    %73 = vector.broadcast %72 : vector<1x32xf32> to vector<20x32xf32>
    %74 = arith.addf %70, %73 : vector<20x32xf32>
    %75 = arith.addf %74, %1 : vector<20x32xf32>
    %c0_21 = arith.constant 0 : index
    %c0_22 = arith.constant 0 : index
    %c0_23 = arith.constant 0 : index
    %76 = vector.load %arg6[%c0_21, %c0_22, %c0_23] : memref<3x1x32xf32, #tpu.memory_space<vmem>>, vector<1x1x32xf32>
    %77 = vector.shape_cast %76 : vector<1x1x32xf32> to vector<1x32xf32>
    %c0_24 = arith.constant 0 : index
    %c0_25 = arith.constant 0 : index
    %c0_26 = arith.constant 0 : index
    %78 = vector.load %arg7[%c0_24, %c0_25, %c0_26] : memref<3x1x32xf32, #tpu.memory_space<vmem>>, vector<1x1x32xf32>
    %79 = vector.shape_cast %78 : vector<1x1x32xf32> to vector<1x32xf32>
    %cst_27 = arith.constant dense<0.000000e+00> : vector<20xf32>
    %80 = vector.multi_reduction <add>, %75, %cst_27 [1] : vector<20x32xf32> to vector<20xf32>
    %81 = vector.shape_cast %80 : vector<20xf32> to vector<20x1xf32>
    %cst_28 = arith.constant 3.200000e+01 : f32
    %82 = vector.broadcast %cst_28 : f32 to vector<20x1xf32>
    %83 = arith.divf %81, %82 : vector<20x1xf32>
    %84 = vector.broadcast %83 : vector<20x1xf32> to vector<20x32xf32>
    %85 = arith.subf %75, %84 : vector<20x32xf32>
    %86 = arith.mulf %85, %85 : vector<20x32xf32>
    %cst_29 = arith.constant dense<0.000000e+00> : vector<20xf32>
    %87 = vector.multi_reduction <add>, %86, %cst_29 [1] : vector<20x32xf32> to vector<20xf32>
    %88 = vector.shape_cast %87 : vector<20xf32> to vector<20x1xf32>
    %cst_30 = arith.constant 3.200000e+01 : f32
    %89 = vector.broadcast %cst_30 : f32 to vector<20x1xf32>
    %90 = arith.divf %88, %89 : vector<20x1xf32>
    %91 = vector.broadcast %83 : vector<20x1xf32> to vector<20x32xf32>
    %92 = arith.subf %75, %91 : vector<20x32xf32>
    %cst_31 = arith.constant 9.99999996E-13 : f32
    %93 = vector.broadcast %cst_31 : f32 to vector<20x1xf32>
    %94 = arith.addf %90, %93 : vector<20x1xf32>
    %95 = math.rsqrt %94 : vector<20x1xf32>
    %96 = vector.broadcast %95 : vector<20x1xf32> to vector<20x32xf32>
    %97 = arith.mulf %92, %96 : vector<20x32xf32>
    %98 = vector.broadcast %77 : vector<1x32xf32> to vector<20x32xf32>
    %99 = arith.mulf %97, %98 : vector<20x32xf32>
    %100 = vector.broadcast %79 : vector<1x32xf32> to vector<20x32xf32>
    %101 = arith.addf %99, %100 : vector<20x32xf32>
    %c0_32 = arith.constant 0 : index
    %c0_33 = arith.constant 0 : index
    %c0_34 = arith.constant 0 : index
    %102 = vector.load %arg8[%c0_32, %c0_33, %c0_34] : memref<3x32x128xf32, #tpu.memory_space<vmem>>, vector<1x32x128xf32>
    %103 = vector.shape_cast %102 : vector<1x32x128xf32> to vector<32x128xf32>
    %cst_35 = arith.constant dense<0.000000e+00> : vector<20x128xf32>
    %104 = tpu.matmul %101, %103, %cst_35 {dimension_numbers = #tpu.dot_dimension_numbers<[1], [0], [0], [1], [0, 0, 1, 1], [], []>} : vector<20x32xf32>, vector<32x128xf32>, vector<20x128xf32> -> vector<20x128xf32>
    %c0_36 = arith.constant 0 : index
    %c0_37 = arith.constant 0 : index
    %c0_38 = arith.constant 0 : index
    %105 = vector.load %arg9[%c0_36, %c0_37, %c0_38] : memref<3x1x128xf32, #tpu.memory_space<vmem>>, vector<1x1x128xf32>
    %106 = vector.shape_cast %105 : vector<1x1x128xf32> to vector<1x128xf32>
    %107 = vector.broadcast %106 : vector<1x128xf32> to vector<20x128xf32>
    %108 = arith.addf %104, %107 : vector<20x128xf32>
    %cst_39 = arith.constant 5.000000e-01 : f32
    %109 = vector.broadcast %cst_39 : f32 to vector<20x128xf32>
    %110 = arith.mulf %109, %108 : vector<20x128xf32>
    %cst_40 = arith.constant 0.707106769 : f32
    %111 = vector.broadcast %cst_40 : f32 to vector<20x128xf32>
    %112 = arith.mulf %108, %111 : vector<20x128xf32>
    %cst_41 = arith.constant 0.000000e+00 : f32
    %113 = vector.broadcast %cst_41 : f32 to vector<20x128xf32>
    %114 = arith.cmpf oge, %112, %113 : vector<20x128xf32>
    %cst_42 = arith.constant 1.000000e+00 : f32
    %cst_43 = arith.constant -1.000000e+00 : f32
    %115 = vector.broadcast %cst_42 : f32 to vector<20x128xf32>
    %116 = vector.broadcast %cst_43 : f32 to vector<20x128xf32>
    %117 = arith.select %114, %115, %116 : vector<20x128xi1>, vector<20x128xf32>
    %118 = math.absf %112 : vector<20x128xf32>
    %cst_44 = arith.constant 0.327591091 : f32
    %119 = vector.broadcast %cst_44 : f32 to vector<20x128xf32>
    %120 = arith.mulf %119, %118 : vector<20x128xf32>
    %cst_45 = arith.constant 1.000000e+00 : f32
    %121 = vector.broadcast %cst_45 : f32 to vector<20x128xf32>
    %122 = arith.addf %121, %120 : vector<20x128xf32>
    %cst_46 = arith.constant 1.000000e+00 : f32
    %123 = vector.broadcast %cst_46 : f32 to vector<20x128xf32>
    %124 = arith.divf %123, %122 : vector<20x128xf32>
    %cst_47 = arith.constant 1.06140542 : f32
    %125 = vector.broadcast %cst_47 : f32 to vector<20x128xf32>
    %126 = arith.mulf %125, %124 : vector<20x128xf32>
    %cst_48 = arith.constant -1.45315206 : f32
    %127 = vector.broadcast %cst_48 : f32 to vector<20x128xf32>
    %128 = arith.addf %126, %127 : vector<20x128xf32>
    %129 = arith.mulf %128, %124 : vector<20x128xf32>
    %cst_49 = arith.constant 1.42141378 : f32
    %130 = vector.broadcast %cst_49 : f32 to vector<20x128xf32>
    %131 = arith.addf %129, %130 : vector<20x128xf32>
    %132 = arith.mulf %131, %124 : vector<20x128xf32>
    %cst_50 = arith.constant -0.284496725 : f32
    %133 = vector.broadcast %cst_50 : f32 to vector<20x128xf32>
    %134 = arith.addf %132, %133 : vector<20x128xf32>
    %135 = arith.mulf %134, %124 : vector<20x128xf32>
    %cst_51 = arith.constant 0.254829586 : f32
    %136 = vector.broadcast %cst_51 : f32 to vector<20x128xf32>
    %137 = arith.addf %135, %136 : vector<20x128xf32>
    %138 = arith.mulf %137, %124 : vector<20x128xf32>
    %cst_52 = arith.constant 0.000000e+00 : f32
    %139 = vector.broadcast %cst_52 : f32 to vector<20x128xf32>
    %140 = arith.subf %139, %118 : vector<20x128xf32>
    %141 = arith.mulf %140, %118 : vector<20x128xf32>
    %142 = math.exp %141 : vector<20x128xf32>
    %143 = arith.mulf %138, %142 : vector<20x128xf32>
    %cst_53 = arith.constant 1.000000e+00 : f32
    %144 = vector.broadcast %cst_53 : f32 to vector<20x128xf32>
    %145 = arith.subf %144, %143 : vector<20x128xf32>
    %146 = arith.mulf %117, %145 : vector<20x128xf32>
    %cst_54 = arith.constant 1.000000e+00 : f32
    %147 = vector.broadcast %cst_54 : f32 to vector<20x128xf32>
    %148 = arith.addf %147, %146 : vector<20x128xf32>
    %149 = arith.mulf %110, %148 : vector<20x128xf32>
    %c0_55 = arith.constant 0 : index
    %c0_56 = arith.constant 0 : index
    %c0_57 = arith.constant 0 : index
    %150 = vector.load %arg10[%c0_55, %c0_56, %c0_57] : memref<3x128x32xf32, #tpu.memory_space<vmem>>, vector<1x128x32xf32>
    %151 = vector.shape_cast %150 : vector<1x128x32xf32> to vector<128x32xf32>
    %cst_58 = arith.constant dense<0.000000e+00> : vector<20x32xf32>
    %152 = tpu.matmul %149, %151, %cst_58 {dimension_numbers = #tpu.dot_dimension_numbers<[1], [0], [0], [1], [0, 0, 1, 1], [], []>} : vector<20x128xf32>, vector<128x32xf32>, vector<20x32xf32> -> vector<20x32xf32>
    %c0_59 = arith.constant 0 : index
    %c0_60 = arith.constant 0 : index
    %c0_61 = arith.constant 0 : index
    %153 = vector.load %arg11[%c0_59, %c0_60, %c0_61] : memref<3x1x32xf32, #tpu.memory_space<vmem>>, vector<1x1x32xf32>
    %154 = vector.shape_cast %153 : vector<1x1x32xf32> to vector<1x32xf32>
    %155 = vector.broadcast %154 : vector<1x32xf32> to vector<20x32xf32>
    %156 = arith.addf %152, %155 : vector<20x32xf32>
    %157 = arith.addf %156, %101 : vector<20x32xf32>
    %c0_62 = arith.constant 0 : index
    %c0_63 = arith.constant 0 : index
    %c0_64 = arith.constant 0 : index
    %158 = vector.load %arg12[%c0_62, %c0_63, %c0_64] : memref<3x1x32xf32, #tpu.memory_space<vmem>>, vector<1x1x32xf32>
    %159 = vector.shape_cast %158 : vector<1x1x32xf32> to vector<1x32xf32>
    %c0_65 = arith.constant 0 : index
    %c0_66 = arith.constant 0 : index
    %c0_67 = arith.constant 0 : index
    %160 = vector.load %arg13[%c0_65, %c0_66, %c0_67] : memref<3x1x32xf32, #tpu.memory_space<vmem>>, vector<1x1x32xf32>
    %161 = vector.shape_cast %160 : vector<1x1x32xf32> to vector<1x32xf32>
    %cst_68 = arith.constant dense<0.000000e+00> : vector<20xf32>
    %162 = vector.multi_reduction <add>, %157, %cst_68 [1] : vector<20x32xf32> to vector<20xf32>
    %163 = vector.shape_cast %162 : vector<20xf32> to vector<20x1xf32>
    %cst_69 = arith.constant 3.200000e+01 : f32
    %164 = vector.broadcast %cst_69 : f32 to vector<20x1xf32>
    %165 = arith.divf %163, %164 : vector<20x1xf32>
    %166 = vector.broadcast %165 : vector<20x1xf32> to vector<20x32xf32>
    %167 = arith.subf %157, %166 : vector<20x32xf32>
    %168 = arith.mulf %167, %167 : vector<20x32xf32>
    %cst_70 = arith.constant dense<0.000000e+00> : vector<20xf32>
    %169 = vector.multi_reduction <add>, %168, %cst_70 [1] : vector<20x32xf32> to vector<20xf32>
    %170 = vector.shape_cast %169 : vector<20xf32> to vector<20x1xf32>
    %cst_71 = arith.constant 3.200000e+01 : f32
    %171 = vector.broadcast %cst_71 : f32 to vector<20x1xf32>
    %172 = arith.divf %170, %171 : vector<20x1xf32>
    %173 = vector.broadcast %165 : vector<20x1xf32> to vector<20x32xf32>
    %174 = arith.subf %157, %173 : vector<20x32xf32>
    %cst_72 = arith.constant 9.99999996E-13 : f32
    %175 = vector.broadcast %cst_72 : f32 to vector<20x1xf32>
    %176 = arith.addf %172, %175 : vector<20x1xf32>
    %177 = math.rsqrt %176 : vector<20x1xf32>
    %178 = vector.broadcast %177 : vector<20x1xf32> to vector<20x32xf32>
    %179 = arith.mulf %174, %178 : vector<20x32xf32>
    %180 = vector.broadcast %159 : vector<1x32xf32> to vector<20x32xf32>
    %181 = arith.mulf %179, %180 : vector<20x32xf32>
    %182 = vector.broadcast %161 : vector<1x32xf32> to vector<20x32xf32>
    %183 = arith.addf %181, %182 : vector<20x32xf32>
    %c1 = arith.constant 1 : index
    %c0_73 = arith.constant 0 : index
    %c0_74 = arith.constant 0 : index
    %184 = vector.load %arg2[%c1, %c0_73, %c0_74] : memref<3x32x96xf32, #tpu.memory_space<vmem>>, vector<1x32x96xf32>
    %185 = vector.shape_cast %184 : vector<1x32x96xf32> to vector<32x96xf32>
    %cst_75 = arith.constant dense<0.000000e+00> : vector<20x96xf32>
    %186 = tpu.matmul %183, %185, %cst_75 {dimension_numbers = #tpu.dot_dimension_numbers<[1], [0], [0], [1], [0, 0, 1, 1], [], []>} : vector<20x32xf32>, vector<32x96xf32>, vector<20x96xf32> -> vector<20x96xf32>
    %c1_76 = arith.constant 1 : index
    %c0_77 = arith.constant 0 : index
    %c0_78 = arith.constant 0 : index
    %187 = vector.load %arg3[%c1_76, %c0_77, %c0_78] : memref<3x1x96xf32, #tpu.memory_space<vmem>>, vector<1x1x96xf32>
    %188 = vector.shape_cast %187 : vector<1x1x96xf32> to vector<1x96xf32>
    %189 = vector.broadcast %188 : vector<1x96xf32> to vector<20x96xf32>
    %190 = arith.addf %186, %189 : vector<20x96xf32>
    %191 = vector.extract_strided_slice %190 {offsets = [0, 0], sizes = [20, 32], strides = [1, 1]} : vector<20x96xf32> to vector<20x32xf32>
    %192 = vector.shape_cast %191 : vector<20x32xf32> to vector<2x10x32xf32>
    %193 = vector.extract_strided_slice %190 {offsets = [0, 32], sizes = [20, 32], strides = [1, 1]} : vector<20x96xf32> to vector<20x32xf32>
    %194 = vector.shape_cast %193 : vector<20x32xf32> to vector<2x10x32xf32>
    %195 = vector.extract_strided_slice %190 {offsets = [0, 64], sizes = [20, 32], strides = [1, 1]} : vector<20x96xf32> to vector<20x32xf32>
    %196 = vector.shape_cast %195 : vector<20x32xf32> to vector<2x10x32xf32>
    %197 = vector.shape_cast %192 : vector<2x10x32xf32> to vector<2x1x10x32xf32>
    %198 = vector.shape_cast %0 : vector<8x1x32xf32> to vector<1x8x1x32xf32>
    %199 = vector.broadcast %197 : vector<2x1x10x32xf32> to vector<2x8x10x32xf32>
    %200 = vector.broadcast %198 : vector<1x8x1x32xf32> to vector<2x8x10x32xf32>
    %201 = arith.mulf %199, %200 : vector<2x8x10x32xf32>
    %202 = vector.shape_cast %201 : vector<2x8x10x32xf32> to vector<16x10x32xf32>
    %203 = vector.shape_cast %196 : vector<2x10x32xf32> to vector<2x1x10x32xf32>
    %204 = vector.shape_cast %0 : vector<8x1x32xf32> to vector<1x8x1x32xf32>
    %205 = vector.broadcast %203 : vector<2x1x10x32xf32> to vector<2x8x10x32xf32>
    %206 = vector.broadcast %204 : vector<1x8x1x32xf32> to vector<2x8x10x32xf32>
    %207 = arith.mulf %205, %206 : vector<2x8x10x32xf32>
    %208 = vector.shape_cast %207 : vector<2x8x10x32xf32> to vector<16x10x32xf32>
    %209 = vector.shape_cast %194 : vector<2x10x32xf32> to vector<2x1x10x32xf32>
    %210 = vector.shape_cast %209 : vector<2x1x10x32xf32> to vector<2x1x10x32xf32>
    %211 = vector.broadcast %210 : vector<2x1x10x32xf32> to vector<2x8x10x32xf32>
    %212 = vector.shape_cast %211 : vector<2x8x10x32xf32> to vector<16x10x32xf32>
    "tpu.trace_start"() <{level = 10 : i32, message = "gqd,gkd->gqk"}> : () -> ()
    %cst_79 = arith.constant dense<0.000000e+00> : vector<16x10x10xf32>
    %213 = tpu.matmul %202, %212, %cst_79 {dimension_numbers = #tpu.dot_dimension_numbers<[2], [2], [1], [1], [0, 0, 0, 1, 1, 1], [0], [0]>} : vector<16x10x32xf32>, vector<16x10x32xf32>, vector<16x10x10xf32> -> vector<16x10x10xf32>
    "tpu.trace_stop"() : () -> ()
    %cst_80 = arith.constant dense<0xFF800000> : vector<16x10xf32>
    %214 = vector.multi_reduction <maximumf>, %213, %cst_80 [2] : vector<16x10x10xf32> to vector<16x10xf32>
    %215 = vector.shape_cast %214 : vector<16x10xf32> to vector<16x10x1xf32>
    %216 = vector.broadcast %215 : vector<16x10x1xf32> to vector<16x10x10xf32>
    %217 = arith.subf %213, %216 : vector<16x10x10xf32>
    %218 = math.exp %217 : vector<16x10x10xf32>
    %cst_81 = arith.constant dense<0.000000e+00> : vector<16x10xf32>
    %219 = vector.multi_reduction <add>, %218, %cst_81 [2] : vector<16x10x10xf32> to vector<16x10xf32>
    %220 = vector.shape_cast %219 : vector<16x10xf32> to vector<16x10x1xf32>
    %221 = tpu.reciprocal %220 {approx = true} : vector<16x10x1xf32> -> vector<16x10x1xf32>
    %222 = vector.broadcast %221 : vector<16x10x1xf32> to vector<16x10x10xf32>
    %223 = arith.mulf %218, %222 : vector<16x10x10xf32>
    "tpu.trace_start"() <{level = 10 : i32, message = "gqk,gkd->gqd"}> : () -> ()
    %cst_82 = arith.constant dense<0.000000e+00> : vector<16x10x32xf32>
    %224 = tpu.matmul %223, %208, %cst_82 {dimension_numbers = #tpu.dot_dimension_numbers<[2], [1], [1], [2], [0, 0, 0, 1, 1, 2], [0], [0]>} : vector<16x10x10xf32>, vector<16x10x32xf32>, vector<16x10x32xf32> -> vector<16x10x32xf32>
    "tpu.trace_stop"() : () -> ()
    %225 = vector.shape_cast %224 : vector<16x10x32xf32> to vector<2x8x10x32xf32>
    %226 = vector.extract_strided_slice %225 {offsets = [0, 0, 0, 0], sizes = [2, 1, 10, 32], strides = [1, 1, 1, 1]} : vector<2x8x10x32xf32> to vector<2x1x10x32xf32>
    %227 = vector.shape_cast %226 : vector<2x1x10x32xf32> to vector<2x10x32xf32>
    %228 = vector.extract_strided_slice %225 {offsets = [0, 1, 0, 0], sizes = [2, 1, 10, 32], strides = [1, 1, 1, 1]} : vector<2x8x10x32xf32> to vector<2x1x10x32xf32>
    %229 = vector.shape_cast %228 : vector<2x1x10x32xf32> to vector<2x10x32xf32>
    %230 = arith.addf %227, %229 : vector<2x10x32xf32>
    %231 = vector.extract_strided_slice %225 {offsets = [0, 2, 0, 0], sizes = [2, 1, 10, 32], strides = [1, 1, 1, 1]} : vector<2x8x10x32xf32> to vector<2x1x10x32xf32>
    %232 = vector.shape_cast %231 : vector<2x1x10x32xf32> to vector<2x10x32xf32>
    %233 = arith.addf %230, %232 : vector<2x10x32xf32>
    %234 = vector.extract_strided_slice %225 {offsets = [0, 3, 0, 0], sizes = [2, 1, 10, 32], strides = [1, 1, 1, 1]} : vector<2x8x10x32xf32> to vector<2x1x10x32xf32>
    %235 = vector.shape_cast %234 : vector<2x1x10x32xf32> to vector<2x10x32xf32>
    %236 = arith.addf %233, %235 : vector<2x10x32xf32>
    %237 = vector.extract_strided_slice %225 {offsets = [0, 4, 0, 0], sizes = [2, 1, 10, 32], strides = [1, 1, 1, 1]} : vector<2x8x10x32xf32> to vector<2x1x10x32xf32>
    %238 = vector.shape_cast %237 : vector<2x1x10x32xf32> to vector<2x10x32xf32>
    %239 = arith.addf %236, %238 : vector<2x10x32xf32>
    %240 = vector.extract_strided_slice %225 {offsets = [0, 5, 0, 0], sizes = [2, 1, 10, 32], strides = [1, 1, 1, 1]} : vector<2x8x10x32xf32> to vector<2x1x10x32xf32>
    %241 = vector.shape_cast %240 : vector<2x1x10x32xf32> to vector<2x10x32xf32>
    %242 = arith.addf %239, %241 : vector<2x10x32xf32>
    %243 = vector.extract_strided_slice %225 {offsets = [0, 6, 0, 0], sizes = [2, 1, 10, 32], strides = [1, 1, 1, 1]} : vector<2x8x10x32xf32> to vector<2x1x10x32xf32>
    %244 = vector.shape_cast %243 : vector<2x1x10x32xf32> to vector<2x10x32xf32>
    %245 = arith.addf %242, %244 : vector<2x10x32xf32>
    %246 = vector.extract_strided_slice %225 {offsets = [0, 7, 0, 0], sizes = [2, 1, 10, 32], strides = [1, 1, 1, 1]} : vector<2x8x10x32xf32> to vector<2x1x10x32xf32>
    %247 = vector.shape_cast %246 : vector<2x1x10x32xf32> to vector<2x10x32xf32>
    %248 = arith.addf %245, %247 : vector<2x10x32xf32>
    %249 = vector.shape_cast %248 : vector<2x10x32xf32> to vector<20x32xf32>
    %c1_83 = arith.constant 1 : index
    %c0_84 = arith.constant 0 : index
    %c0_85 = arith.constant 0 : index
    %250 = vector.load %arg4[%c1_83, %c0_84, %c0_85] : memref<3x32x32xf32, #tpu.memory_space<vmem>>, vector<1x32x32xf32>
    %251 = vector.shape_cast %250 : vector<1x32x32xf32> to vector<32x32xf32>
    %cst_86 = arith.constant dense<0.000000e+00> : vector<20x32xf32>
    %252 = tpu.matmul %249, %251, %cst_86 {dimension_numbers = #tpu.dot_dimension_numbers<[1], [0], [0], [1], [0, 0, 1, 1], [], []>} : vector<20x32xf32>, vector<32x32xf32>, vector<20x32xf32> -> vector<20x32xf32>
    %c1_87 = arith.constant 1 : index
    %c0_88 = arith.constant 0 : index
    %c0_89 = arith.constant 0 : index
    %253 = vector.load %arg5[%c1_87, %c0_88, %c0_89] : memref<3x1x32xf32, #tpu.memory_space<vmem>>, vector<1x1x32xf32>
    %254 = vector.shape_cast %253 : vector<1x1x32xf32> to vector<1x32xf32>
    %255 = vector.broadcast %254 : vector<1x32xf32> to vector<20x32xf32>
    %256 = arith.addf %252, %255 : vector<20x32xf32>
    %257 = arith.addf %256, %183 : vector<20x32xf32>
    %c1_90 = arith.constant 1 : index
    %c0_91 = arith.constant 0 : index
    %c0_92 = arith.constant 0 : index
    %258 = vector.load %arg6[%c1_90, %c0_91, %c0_92] : memref<3x1x32xf32, #tpu.memory_space<vmem>>, vector<1x1x32xf32>
    %259 = vector.shape_cast %258 : vector<1x1x32xf32> to vector<1x32xf32>
    %c1_93 = arith.constant 1 : index
    %c0_94 = arith.constant 0 : index
    %c0_95 = arith.constant 0 : index
    %260 = vector.load %arg7[%c1_93, %c0_94, %c0_95] : memref<3x1x32xf32, #tpu.memory_space<vmem>>, vector<1x1x32xf32>
    %261 = vector.shape_cast %260 : vector<1x1x32xf32> to vector<1x32xf32>
    %cst_96 = arith.constant dense<0.000000e+00> : vector<20xf32>
    %262 = vector.multi_reduction <add>, %257, %cst_96 [1] : vector<20x32xf32> to vector<20xf32>
    %263 = vector.shape_cast %262 : vector<20xf32> to vector<20x1xf32>
    %cst_97 = arith.constant 3.200000e+01 : f32
    %264 = vector.broadcast %cst_97 : f32 to vector<20x1xf32>
    %265 = arith.divf %263, %264 : vector<20x1xf32>
    %266 = vector.broadcast %265 : vector<20x1xf32> to vector<20x32xf32>
    %267 = arith.subf %257, %266 : vector<20x32xf32>
    %268 = arith.mulf %267, %267 : vector<20x32xf32>
    %cst_98 = arith.constant dense<0.000000e+00> : vector<20xf32>
    %269 = vector.multi_reduction <add>, %268, %cst_98 [1] : vector<20x32xf32> to vector<20xf32>
    %270 = vector.shape_cast %269 : vector<20xf32> to vector<20x1xf32>
    %cst_99 = arith.constant 3.200000e+01 : f32
    %271 = vector.broadcast %cst_99 : f32 to vector<20x1xf32>
    %272 = arith.divf %270, %271 : vector<20x1xf32>
    %273 = vector.broadcast %265 : vector<20x1xf32> to vector<20x32xf32>
    %274 = arith.subf %257, %273 : vector<20x32xf32>
    %cst_100 = arith.constant 9.99999996E-13 : f32
    %275 = vector.broadcast %cst_100 : f32 to vector<20x1xf32>
    %276 = arith.addf %272, %275 : vector<20x1xf32>
    %277 = math.rsqrt %276 : vector<20x1xf32>
    %278 = vector.broadcast %277 : vector<20x1xf32> to vector<20x32xf32>
    %279 = arith.mulf %274, %278 : vector<20x32xf32>
    %280 = vector.broadcast %259 : vector<1x32xf32> to vector<20x32xf32>
    %281 = arith.mulf %279, %280 : vector<20x32xf32>
    %282 = vector.broadcast %261 : vector<1x32xf32> to vector<20x32xf32>
    %283 = arith.addf %281, %282 : vector<20x32xf32>
    %c1_101 = arith.constant 1 : index
    %c0_102 = arith.constant 0 : index
    %c0_103 = arith.constant 0 : index
    %284 = vector.load %arg8[%c1_101, %c0_102, %c0_103] : memref<3x32x128xf32, #tpu.memory_space<vmem>>, vector<1x32x128xf32>
    %285 = vector.shape_cast %284 : vector<1x32x128xf32> to vector<32x128xf32>
    %cst_104 = arith.constant dense<0.000000e+00> : vector<20x128xf32>
    %286 = tpu.matmul %283, %285, %cst_104 {dimension_numbers = #tpu.dot_dimension_numbers<[1], [0], [0], [1], [0, 0, 1, 1], [], []>} : vector<20x32xf32>, vector<32x128xf32>, vector<20x128xf32> -> vector<20x128xf32>
    %c1_105 = arith.constant 1 : index
    %c0_106 = arith.constant 0 : index
    %c0_107 = arith.constant 0 : index
    %287 = vector.load %arg9[%c1_105, %c0_106, %c0_107] : memref<3x1x128xf32, #tpu.memory_space<vmem>>, vector<1x1x128xf32>
    %288 = vector.shape_cast %287 : vector<1x1x128xf32> to vector<1x128xf32>
    %289 = vector.broadcast %288 : vector<1x128xf32> to vector<20x128xf32>
    %290 = arith.addf %286, %289 : vector<20x128xf32>
    %cst_108 = arith.constant 5.000000e-01 : f32
    %291 = vector.broadcast %cst_108 : f32 to vector<20x128xf32>
    %292 = arith.mulf %291, %290 : vector<20x128xf32>
    %cst_109 = arith.constant 0.707106769 : f32
    %293 = vector.broadcast %cst_109 : f32 to vector<20x128xf32>
    %294 = arith.mulf %290, %293 : vector<20x128xf32>
    %cst_110 = arith.constant 0.000000e+00 : f32
    %295 = vector.broadcast %cst_110 : f32 to vector<20x128xf32>
    %296 = arith.cmpf oge, %294, %295 : vector<20x128xf32>
    %cst_111 = arith.constant 1.000000e+00 : f32
    %cst_112 = arith.constant -1.000000e+00 : f32
    %297 = vector.broadcast %cst_111 : f32 to vector<20x128xf32>
    %298 = vector.broadcast %cst_112 : f32 to vector<20x128xf32>
    %299 = arith.select %296, %297, %298 : vector<20x128xi1>, vector<20x128xf32>
    %300 = math.absf %294 : vector<20x128xf32>
    %cst_113 = arith.constant 0.327591091 : f32
    %301 = vector.broadcast %cst_113 : f32 to vector<20x128xf32>
    %302 = arith.mulf %301, %300 : vector<20x128xf32>
    %cst_114 = arith.constant 1.000000e+00 : f32
    %303 = vector.broadcast %cst_114 : f32 to vector<20x128xf32>
    %304 = arith.addf %303, %302 : vector<20x128xf32>
    %cst_115 = arith.constant 1.000000e+00 : f32
    %305 = vector.broadcast %cst_115 : f32 to vector<20x128xf32>
    %306 = arith.divf %305, %304 : vector<20x128xf32>
    %cst_116 = arith.constant 1.06140542 : f32
    %307 = vector.broadcast %cst_116 : f32 to vector<20x128xf32>
    %308 = arith.mulf %307, %306 : vector<20x128xf32>
    %cst_117 = arith.constant -1.45315206 : f32
    %309 = vector.broadcast %cst_117 : f32 to vector<20x128xf32>
    %310 = arith.addf %308, %309 : vector<20x128xf32>
    %311 = arith.mulf %310, %306 : vector<20x128xf32>
    %cst_118 = arith.constant 1.42141378 : f32
    %312 = vector.broadcast %cst_118 : f32 to vector<20x128xf32>
    %313 = arith.addf %311, %312 : vector<20x128xf32>
    %314 = arith.mulf %313, %306 : vector<20x128xf32>
    %cst_119 = arith.constant -0.284496725 : f32
    %315 = vector.broadcast %cst_119 : f32 to vector<20x128xf32>
    %316 = arith.addf %314, %315 : vector<20x128xf32>
    %317 = arith.mulf %316, %306 : vector<20x128xf32>
    %cst_120 = arith.constant 0.254829586 : f32
    %318 = vector.broadcast %cst_120 : f32 to vector<20x128xf32>
    %319 = arith.addf %317, %318 : vector<20x128xf32>
    %320 = arith.mulf %319, %306 : vector<20x128xf32>
    %cst_121 = arith.constant 0.000000e+00 : f32
    %321 = vector.broadcast %cst_121 : f32 to vector<20x128xf32>
    %322 = arith.subf %321, %300 : vector<20x128xf32>
    %323 = arith.mulf %322, %300 : vector<20x128xf32>
    %324 = math.exp %323 : vector<20x128xf32>
    %325 = arith.mulf %320, %324 : vector<20x128xf32>
    %cst_122 = arith.constant 1.000000e+00 : f32
    %326 = vector.broadcast %cst_122 : f32 to vector<20x128xf32>
    %327 = arith.subf %326, %325 : vector<20x128xf32>
    %328 = arith.mulf %299, %327 : vector<20x128xf32>
    %cst_123 = arith.constant 1.000000e+00 : f32
    %329 = vector.broadcast %cst_123 : f32 to vector<20x128xf32>
    %330 = arith.addf %329, %328 : vector<20x128xf32>
    %331 = arith.mulf %292, %330 : vector<20x128xf32>
    %c1_124 = arith.constant 1 : index
    %c0_125 = arith.constant 0 : index
    %c0_126 = arith.constant 0 : index
    %332 = vector.load %arg10[%c1_124, %c0_125, %c0_126] : memref<3x128x32xf32, #tpu.memory_space<vmem>>, vector<1x128x32xf32>
    %333 = vector.shape_cast %332 : vector<1x128x32xf32> to vector<128x32xf32>
    %cst_127 = arith.constant dense<0.000000e+00> : vector<20x32xf32>
    %334 = tpu.matmul %331, %333, %cst_127 {dimension_numbers = #tpu.dot_dimension_numbers<[1], [0], [0], [1], [0, 0, 1, 1], [], []>} : vector<20x128xf32>, vector<128x32xf32>, vector<20x32xf32> -> vector<20x32xf32>
    %c1_128 = arith.constant 1 : index
    %c0_129 = arith.constant 0 : index
    %c0_130 = arith.constant 0 : index
    %335 = vector.load %arg11[%c1_128, %c0_129, %c0_130] : memref<3x1x32xf32, #tpu.memory_space<vmem>>, vector<1x1x32xf32>
    %336 = vector.shape_cast %335 : vector<1x1x32xf32> to vector<1x32xf32>
    %337 = vector.broadcast %336 : vector<1x32xf32> to vector<20x32xf32>
    %338 = arith.addf %334, %337 : vector<20x32xf32>
    %339 = arith.addf %338, %283 : vector<20x32xf32>
    %c1_131 = arith.constant 1 : index
    %c0_132 = arith.constant 0 : index
    %c0_133 = arith.constant 0 : index
    %340 = vector.load %arg12[%c1_131, %c0_132, %c0_133] : memref<3x1x32xf32, #tpu.memory_space<vmem>>, vector<1x1x32xf32>
    %341 = vector.shape_cast %340 : vector<1x1x32xf32> to vector<1x32xf32>
    %c1_134 = arith.constant 1 : index
    %c0_135 = arith.constant 0 : index
    %c0_136 = arith.constant 0 : index
    %342 = vector.load %arg13[%c1_134, %c0_135, %c0_136] : memref<3x1x32xf32, #tpu.memory_space<vmem>>, vector<1x1x32xf32>
    %343 = vector.shape_cast %342 : vector<1x1x32xf32> to vector<1x32xf32>
    %cst_137 = arith.constant dense<0.000000e+00> : vector<20xf32>
    %344 = vector.multi_reduction <add>, %339, %cst_137 [1] : vector<20x32xf32> to vector<20xf32>
    %345 = vector.shape_cast %344 : vector<20xf32> to vector<20x1xf32>
    %cst_138 = arith.constant 3.200000e+01 : f32
    %346 = vector.broadcast %cst_138 : f32 to vector<20x1xf32>
    %347 = arith.divf %345, %346 : vector<20x1xf32>
    %348 = vector.broadcast %347 : vector<20x1xf32> to vector<20x32xf32>
    %349 = arith.subf %339, %348 : vector<20x32xf32>
    %350 = arith.mulf %349, %349 : vector<20x32xf32>
    %cst_139 = arith.constant dense<0.000000e+00> : vector<20xf32>
    %351 = vector.multi_reduction <add>, %350, %cst_139 [1] : vector<20x32xf32> to vector<20xf32>
    %352 = vector.shape_cast %351 : vector<20xf32> to vector<20x1xf32>
    %cst_140 = arith.constant 3.200000e+01 : f32
    %353 = vector.broadcast %cst_140 : f32 to vector<20x1xf32>
    %354 = arith.divf %352, %353 : vector<20x1xf32>
    %355 = vector.broadcast %347 : vector<20x1xf32> to vector<20x32xf32>
    %356 = arith.subf %339, %355 : vector<20x32xf32>
    %cst_141 = arith.constant 9.99999996E-13 : f32
    %357 = vector.broadcast %cst_141 : f32 to vector<20x1xf32>
    %358 = arith.addf %354, %357 : vector<20x1xf32>
    %359 = math.rsqrt %358 : vector<20x1xf32>
    %360 = vector.broadcast %359 : vector<20x1xf32> to vector<20x32xf32>
    %361 = arith.mulf %356, %360 : vector<20x32xf32>
    %362 = vector.broadcast %341 : vector<1x32xf32> to vector<20x32xf32>
    %363 = arith.mulf %361, %362 : vector<20x32xf32>
    %364 = vector.broadcast %343 : vector<1x32xf32> to vector<20x32xf32>
    %365 = arith.addf %363, %364 : vector<20x32xf32>
    %cst_142 = arith.constant 2.000000e-01 : f32
    %366 = vector.broadcast %cst_142 : f32 to vector<20x32xf32>
    %367 = arith.mulf %1, %366 : vector<20x32xf32>
    %368 = arith.addf %365, %367 : vector<20x32xf32>
    %c0_143 = arith.constant 0 : index
    %c0_144 = arith.constant 0 : index
    %369 = vector.load %arg14[%c0_143, %c0_144] : memref<32x64xf32, #tpu.memory_space<vmem>>, vector<32x64xf32>
    %cst_145 = arith.constant dense<0.000000e+00> : vector<20x64xf32>
    %370 = tpu.matmul %368, %369, %cst_145 {dimension_numbers = #tpu.dot_dimension_numbers<[1], [0], [0], [1], [0, 0, 1, 1], [], []>} : vector<20x32xf32>, vector<32x64xf32>, vector<20x64xf32> -> vector<20x64xf32>
    %c0_146 = arith.constant 0 : index
    %c0_147 = arith.constant 0 : index
    %371 = vector.load %arg15[%c0_146, %c0_147] : memref<1x64xf32, #tpu.memory_space<vmem>>, vector<1x64xf32>
    %372 = vector.broadcast %371 : vector<1x64xf32> to vector<20x64xf32>
    %373 = arith.addf %370, %372 : vector<20x64xf32>
    %cst_148 = arith.constant 0.000000e+00 : f32
    %374 = vector.broadcast %cst_148 : f32 to vector<20x64xf32>
    %375 = arith.maximumf %373, %374 : vector<20x64xf32>
    %c0_149 = arith.constant 0 : index
    %c0_150 = arith.constant 0 : index
    %376 = vector.load %arg16[%c0_149, %c0_150] : memref<1x1xf32, #tpu.memory_space<vmem>>, vector<1x1xf32>
    %cst_151 = arith.constant 0.000000e+00 : f32
    %377 = vector.broadcast %cst_151 : f32 to vector<20x64xf32>
    %378 = arith.minimumf %373, %377 : vector<20x64xf32>
    %379 = vector.broadcast %376 : vector<1x1xf32> to vector<20x64xf32>
    %380 = arith.mulf %379, %378 : vector<20x64xf32>
    %381 = arith.addf %375, %380 : vector<20x64xf32>
    %c0_152 = arith.constant 0 : index
    %c0_153 = arith.constant 0 : index
    %382 = vector.load %arg17[%c0_152, %c0_153] : memref<64x4xf32, #tpu.memory_space<vmem>>, vector<64x4xf32>
    %cst_154 = arith.constant dense<0.000000e+00> : vector<20x4xf32>
    %383 = tpu.matmul %381, %382, %cst_154 {dimension_numbers = #tpu.dot_dimension_numbers<[1], [0], [0], [1], [0, 0, 1, 1], [], []>} : vector<20x64xf32>, vector<64x4xf32>, vector<20x4xf32> -> vector<20x4xf32>
    %c0_155 = arith.constant 0 : index
    %c0_156 = arith.constant 0 : index
    %384 = vector.load %arg18[%c0_155, %c0_156] : memref<1x4xf32, #tpu.memory_space<vmem>>, vector<1x4xf32>
    %385 = vector.broadcast %384 : vector<1x4xf32> to vector<20x4xf32>
    %386 = arith.addf %383, %385 : vector<20x4xf32>
    %c2 = arith.constant 2 : index
    %c0_157 = arith.constant 0 : index
    %c0_158 = arith.constant 0 : index
    %387 = vector.load %arg2[%c2, %c0_157, %c0_158] : memref<3x32x96xf32, #tpu.memory_space<vmem>>, vector<1x32x96xf32>
    %388 = vector.shape_cast %387 : vector<1x32x96xf32> to vector<32x96xf32>
    %cst_159 = arith.constant dense<0.000000e+00> : vector<20x96xf32>
    %389 = tpu.matmul %1, %388, %cst_159 {dimension_numbers = #tpu.dot_dimension_numbers<[1], [0], [0], [1], [0, 0, 1, 1], [], []>} : vector<20x32xf32>, vector<32x96xf32>, vector<20x96xf32> -> vector<20x96xf32>
    %c2_160 = arith.constant 2 : index
    %c0_161 = arith.constant 0 : index
    %c0_162 = arith.constant 0 : index
    %390 = vector.load %arg3[%c2_160, %c0_161, %c0_162] : memref<3x1x96xf32, #tpu.memory_space<vmem>>, vector<1x1x96xf32>
    %391 = vector.shape_cast %390 : vector<1x1x96xf32> to vector<1x96xf32>
    %392 = vector.broadcast %391 : vector<1x96xf32> to vector<20x96xf32>
    %393 = arith.addf %389, %392 : vector<20x96xf32>
    %394 = vector.extract_strided_slice %393 {offsets = [0, 0], sizes = [20, 32], strides = [1, 1]} : vector<20x96xf32> to vector<20x32xf32>
    %395 = vector.shape_cast %394 : vector<20x32xf32> to vector<2x10x32xf32>
    %396 = vector.extract_strided_slice %393 {offsets = [0, 32], sizes = [20, 32], strides = [1, 1]} : vector<20x96xf32> to vector<20x32xf32>
    %397 = vector.shape_cast %396 : vector<20x32xf32> to vector<2x10x32xf32>
    %398 = vector.extract_strided_slice %393 {offsets = [0, 64], sizes = [20, 32], strides = [1, 1]} : vector<20x96xf32> to vector<20x32xf32>
    %399 = vector.shape_cast %398 : vector<20x32xf32> to vector<2x10x32xf32>
    %400 = vector.shape_cast %395 : vector<2x10x32xf32> to vector<2x1x10x32xf32>
    %401 = vector.shape_cast %0 : vector<8x1x32xf32> to vector<1x8x1x32xf32>
    %402 = vector.broadcast %400 : vector<2x1x10x32xf32> to vector<2x8x10x32xf32>
    %403 = vector.broadcast %401 : vector<1x8x1x32xf32> to vector<2x8x10x32xf32>
    %404 = arith.mulf %402, %403 : vector<2x8x10x32xf32>
    %405 = vector.shape_cast %404 : vector<2x8x10x32xf32> to vector<16x10x32xf32>
    %406 = vector.shape_cast %399 : vector<2x10x32xf32> to vector<2x1x10x32xf32>
    %407 = vector.shape_cast %0 : vector<8x1x32xf32> to vector<1x8x1x32xf32>
    %408 = vector.broadcast %406 : vector<2x1x10x32xf32> to vector<2x8x10x32xf32>
    %409 = vector.broadcast %407 : vector<1x8x1x32xf32> to vector<2x8x10x32xf32>
    %410 = arith.mulf %408, %409 : vector<2x8x10x32xf32>
    %411 = vector.shape_cast %410 : vector<2x8x10x32xf32> to vector<16x10x32xf32>
    %412 = vector.shape_cast %397 : vector<2x10x32xf32> to vector<2x1x10x32xf32>
    %413 = vector.shape_cast %412 : vector<2x1x10x32xf32> to vector<2x1x10x32xf32>
    %414 = vector.broadcast %413 : vector<2x1x10x32xf32> to vector<2x8x10x32xf32>
    %415 = vector.shape_cast %414 : vector<2x8x10x32xf32> to vector<16x10x32xf32>
    "tpu.trace_start"() <{level = 10 : i32, message = "gqd,gkd->gqk"}> : () -> ()
    %cst_163 = arith.constant dense<0.000000e+00> : vector<16x10x10xf32>
    %416 = tpu.matmul %405, %415, %cst_163 {dimension_numbers = #tpu.dot_dimension_numbers<[2], [2], [1], [1], [0, 0, 0, 1, 1, 1], [0], [0]>} : vector<16x10x32xf32>, vector<16x10x32xf32>, vector<16x10x10xf32> -> vector<16x10x10xf32>
    "tpu.trace_stop"() : () -> ()
    %cst_164 = arith.constant dense<0xFF800000> : vector<16x10xf32>
    %417 = vector.multi_reduction <maximumf>, %416, %cst_164 [2] : vector<16x10x10xf32> to vector<16x10xf32>
    %418 = vector.shape_cast %417 : vector<16x10xf32> to vector<16x10x1xf32>
    %419 = vector.broadcast %418 : vector<16x10x1xf32> to vector<16x10x10xf32>
    %420 = arith.subf %416, %419 : vector<16x10x10xf32>
    %421 = math.exp %420 : vector<16x10x10xf32>
    %cst_165 = arith.constant dense<0.000000e+00> : vector<16x10xf32>
    %422 = vector.multi_reduction <add>, %421, %cst_165 [2] : vector<16x10x10xf32> to vector<16x10xf32>
    %423 = vector.shape_cast %422 : vector<16x10xf32> to vector<16x10x1xf32>
    %424 = tpu.reciprocal %423 {approx = true} : vector<16x10x1xf32> -> vector<16x10x1xf32>
    %425 = vector.broadcast %424 : vector<16x10x1xf32> to vector<16x10x10xf32>
    %426 = arith.mulf %421, %425 : vector<16x10x10xf32>
    "tpu.trace_start"() <{level = 10 : i32, message = "gqk,gkd->gqd"}> : () -> ()
    %cst_166 = arith.constant dense<0.000000e+00> : vector<16x10x32xf32>
    %427 = tpu.matmul %426, %411, %cst_166 {dimension_numbers = #tpu.dot_dimension_numbers<[2], [1], [1], [2], [0, 0, 0, 1, 1, 2], [0], [0]>} : vector<16x10x10xf32>, vector<16x10x32xf32>, vector<16x10x32xf32> -> vector<16x10x32xf32>
    "tpu.trace_stop"() : () -> ()
    %428 = vector.shape_cast %427 : vector<16x10x32xf32> to vector<2x8x10x32xf32>
    %429 = vector.extract_strided_slice %428 {offsets = [0, 0, 0, 0], sizes = [2, 1, 10, 32], strides = [1, 1, 1, 1]} : vector<2x8x10x32xf32> to vector<2x1x10x32xf32>
    %430 = vector.shape_cast %429 : vector<2x1x10x32xf32> to vector<2x10x32xf32>
    %431 = vector.extract_strided_slice %428 {offsets = [0, 1, 0, 0], sizes = [2, 1, 10, 32], strides = [1, 1, 1, 1]} : vector<2x8x10x32xf32> to vector<2x1x10x32xf32>
    %432 = vector.shape_cast %431 : vector<2x1x10x32xf32> to vector<2x10x32xf32>
    %433 = arith.addf %430, %432 : vector<2x10x32xf32>
    %434 = vector.extract_strided_slice %428 {offsets = [0, 2, 0, 0], sizes = [2, 1, 10, 32], strides = [1, 1, 1, 1]} : vector<2x8x10x32xf32> to vector<2x1x10x32xf32>
    %435 = vector.shape_cast %434 : vector<2x1x10x32xf32> to vector<2x10x32xf32>
    %436 = arith.addf %433, %435 : vector<2x10x32xf32>
    %437 = vector.extract_strided_slice %428 {offsets = [0, 3, 0, 0], sizes = [2, 1, 10, 32], strides = [1, 1, 1, 1]} : vector<2x8x10x32xf32> to vector<2x1x10x32xf32>
    %438 = vector.shape_cast %437 : vector<2x1x10x32xf32> to vector<2x10x32xf32>
    %439 = arith.addf %436, %438 : vector<2x10x32xf32>
    %440 = vector.extract_strided_slice %428 {offsets = [0, 4, 0, 0], sizes = [2, 1, 10, 32], strides = [1, 1, 1, 1]} : vector<2x8x10x32xf32> to vector<2x1x10x32xf32>
    %441 = vector.shape_cast %440 : vector<2x1x10x32xf32> to vector<2x10x32xf32>
    %442 = arith.addf %439, %441 : vector<2x10x32xf32>
    %443 = vector.extract_strided_slice %428 {offsets = [0, 5, 0, 0], sizes = [2, 1, 10, 32], strides = [1, 1, 1, 1]} : vector<2x8x10x32xf32> to vector<2x1x10x32xf32>
    %444 = vector.shape_cast %443 : vector<2x1x10x32xf32> to vector<2x10x32xf32>
    %445 = arith.addf %442, %444 : vector<2x10x32xf32>
    %446 = vector.extract_strided_slice %428 {offsets = [0, 6, 0, 0], sizes = [2, 1, 10, 32], strides = [1, 1, 1, 1]} : vector<2x8x10x32xf32> to vector<2x1x10x32xf32>
    %447 = vector.shape_cast %446 : vector<2x1x10x32xf32> to vector<2x10x32xf32>
    %448 = arith.addf %445, %447 : vector<2x10x32xf32>
    %449 = vector.extract_strided_slice %428 {offsets = [0, 7, 0, 0], sizes = [2, 1, 10, 32], strides = [1, 1, 1, 1]} : vector<2x8x10x32xf32> to vector<2x1x10x32xf32>
    %450 = vector.shape_cast %449 : vector<2x1x10x32xf32> to vector<2x10x32xf32>
    %451 = arith.addf %448, %450 : vector<2x10x32xf32>
    %452 = vector.shape_cast %451 : vector<2x10x32xf32> to vector<20x32xf32>
    %c2_167 = arith.constant 2 : index
    %c0_168 = arith.constant 0 : index
    %c0_169 = arith.constant 0 : index
    %453 = vector.load %arg4[%c2_167, %c0_168, %c0_169] : memref<3x32x32xf32, #tpu.memory_space<vmem>>, vector<1x32x32xf32>
    %454 = vector.shape_cast %453 : vector<1x32x32xf32> to vector<32x32xf32>
    %cst_170 = arith.constant dense<0.000000e+00> : vector<20x32xf32>
    %455 = tpu.matmul %452, %454, %cst_170 {dimension_numbers = #tpu.dot_dimension_numbers<[1], [0], [0], [1], [0, 0, 1, 1], [], []>} : vector<20x32xf32>, vector<32x32xf32>, vector<20x32xf32> -> vector<20x32xf32>
    %c2_171 = arith.constant 2 : index
    %c0_172 = arith.constant 0 : index
    %c0_173 = arith.constant 0 : index
    %456 = vector.load %arg5[%c2_171, %c0_172, %c0_173] : memref<3x1x32xf32, #tpu.memory_space<vmem>>, vector<1x1x32xf32>
    %457 = vector.shape_cast %456 : vector<1x1x32xf32> to vector<1x32xf32>
    %458 = vector.broadcast %457 : vector<1x32xf32> to vector<20x32xf32>
    %459 = arith.addf %455, %458 : vector<20x32xf32>
    %460 = arith.addf %459, %1 : vector<20x32xf32>
    %c2_174 = arith.constant 2 : index
    %c0_175 = arith.constant 0 : index
    %c0_176 = arith.constant 0 : index
    %461 = vector.load %arg6[%c2_174, %c0_175, %c0_176] : memref<3x1x32xf32, #tpu.memory_space<vmem>>, vector<1x1x32xf32>
    %462 = vector.shape_cast %461 : vector<1x1x32xf32> to vector<1x32xf32>
    %c2_177 = arith.constant 2 : index
    %c0_178 = arith.constant 0 : index
    %c0_179 = arith.constant 0 : index
    %463 = vector.load %arg7[%c2_177, %c0_178, %c0_179] : memref<3x1x32xf32, #tpu.memory_space<vmem>>, vector<1x1x32xf32>
    %464 = vector.shape_cast %463 : vector<1x1x32xf32> to vector<1x32xf32>
    %cst_180 = arith.constant dense<0.000000e+00> : vector<20xf32>
    %465 = vector.multi_reduction <add>, %460, %cst_180 [1] : vector<20x32xf32> to vector<20xf32>
    %466 = vector.shape_cast %465 : vector<20xf32> to vector<20x1xf32>
    %cst_181 = arith.constant 3.200000e+01 : f32
    %467 = vector.broadcast %cst_181 : f32 to vector<20x1xf32>
    %468 = arith.divf %466, %467 : vector<20x1xf32>
    %469 = vector.broadcast %468 : vector<20x1xf32> to vector<20x32xf32>
    %470 = arith.subf %460, %469 : vector<20x32xf32>
    %471 = arith.mulf %470, %470 : vector<20x32xf32>
    %cst_182 = arith.constant dense<0.000000e+00> : vector<20xf32>
    %472 = vector.multi_reduction <add>, %471, %cst_182 [1] : vector<20x32xf32> to vector<20xf32>
    %473 = vector.shape_cast %472 : vector<20xf32> to vector<20x1xf32>
    %cst_183 = arith.constant 3.200000e+01 : f32
    %474 = vector.broadcast %cst_183 : f32 to vector<20x1xf32>
    %475 = arith.divf %473, %474 : vector<20x1xf32>
    %476 = vector.broadcast %468 : vector<20x1xf32> to vector<20x32xf32>
    %477 = arith.subf %460, %476 : vector<20x32xf32>
    %cst_184 = arith.constant 9.99999996E-13 : f32
    %478 = vector.broadcast %cst_184 : f32 to vector<20x1xf32>
    %479 = arith.addf %475, %478 : vector<20x1xf32>
    %480 = math.rsqrt %479 : vector<20x1xf32>
    %481 = vector.broadcast %480 : vector<20x1xf32> to vector<20x32xf32>
    %482 = arith.mulf %477, %481 : vector<20x32xf32>
    %483 = vector.broadcast %462 : vector<1x32xf32> to vector<20x32xf32>
    %484 = arith.mulf %482, %483 : vector<20x32xf32>
    %485 = vector.broadcast %464 : vector<1x32xf32> to vector<20x32xf32>
    %486 = arith.addf %484, %485 : vector<20x32xf32>
    %c2_185 = arith.constant 2 : index
    %c0_186 = arith.constant 0 : index
    %c0_187 = arith.constant 0 : index
    %487 = vector.load %arg8[%c2_185, %c0_186, %c0_187] : memref<3x32x128xf32, #tpu.memory_space<vmem>>, vector<1x32x128xf32>
    %488 = vector.shape_cast %487 : vector<1x32x128xf32> to vector<32x128xf32>
    %cst_188 = arith.constant dense<0.000000e+00> : vector<20x128xf32>
    %489 = tpu.matmul %486, %488, %cst_188 {dimension_numbers = #tpu.dot_dimension_numbers<[1], [0], [0], [1], [0, 0, 1, 1], [], []>} : vector<20x32xf32>, vector<32x128xf32>, vector<20x128xf32> -> vector<20x128xf32>
    %c2_189 = arith.constant 2 : index
    %c0_190 = arith.constant 0 : index
    %c0_191 = arith.constant 0 : index
    %490 = vector.load %arg9[%c2_189, %c0_190, %c0_191] : memref<3x1x128xf32, #tpu.memory_space<vmem>>, vector<1x1x128xf32>
    %491 = vector.shape_cast %490 : vector<1x1x128xf32> to vector<1x128xf32>
    %492 = vector.broadcast %491 : vector<1x128xf32> to vector<20x128xf32>
    %493 = arith.addf %489, %492 : vector<20x128xf32>
    %cst_192 = arith.constant 5.000000e-01 : f32
    %494 = vector.broadcast %cst_192 : f32 to vector<20x128xf32>
    %495 = arith.mulf %494, %493 : vector<20x128xf32>
    %cst_193 = arith.constant 0.707106769 : f32
    %496 = vector.broadcast %cst_193 : f32 to vector<20x128xf32>
    %497 = arith.mulf %493, %496 : vector<20x128xf32>
    %cst_194 = arith.constant 0.000000e+00 : f32
    %498 = vector.broadcast %cst_194 : f32 to vector<20x128xf32>
    %499 = arith.cmpf oge, %497, %498 : vector<20x128xf32>
    %cst_195 = arith.constant 1.000000e+00 : f32
    %cst_196 = arith.constant -1.000000e+00 : f32
    %500 = vector.broadcast %cst_195 : f32 to vector<20x128xf32>
    %501 = vector.broadcast %cst_196 : f32 to vector<20x128xf32>
    %502 = arith.select %499, %500, %501 : vector<20x128xi1>, vector<20x128xf32>
    %503 = math.absf %497 : vector<20x128xf32>
    %cst_197 = arith.constant 0.327591091 : f32
    %504 = vector.broadcast %cst_197 : f32 to vector<20x128xf32>
    %505 = arith.mulf %504, %503 : vector<20x128xf32>
    %cst_198 = arith.constant 1.000000e+00 : f32
    %506 = vector.broadcast %cst_198 : f32 to vector<20x128xf32>
    %507 = arith.addf %506, %505 : vector<20x128xf32>
    %cst_199 = arith.constant 1.000000e+00 : f32
    %508 = vector.broadcast %cst_199 : f32 to vector<20x128xf32>
    %509 = arith.divf %508, %507 : vector<20x128xf32>
    %cst_200 = arith.constant 1.06140542 : f32
    %510 = vector.broadcast %cst_200 : f32 to vector<20x128xf32>
    %511 = arith.mulf %510, %509 : vector<20x128xf32>
    %cst_201 = arith.constant -1.45315206 : f32
    %512 = vector.broadcast %cst_201 : f32 to vector<20x128xf32>
    %513 = arith.addf %511, %512 : vector<20x128xf32>
    %514 = arith.mulf %513, %509 : vector<20x128xf32>
    %cst_202 = arith.constant 1.42141378 : f32
    %515 = vector.broadcast %cst_202 : f32 to vector<20x128xf32>
    %516 = arith.addf %514, %515 : vector<20x128xf32>
    %517 = arith.mulf %516, %509 : vector<20x128xf32>
    %cst_203 = arith.constant -0.284496725 : f32
    %518 = vector.broadcast %cst_203 : f32 to vector<20x128xf32>
    %519 = arith.addf %517, %518 : vector<20x128xf32>
    %520 = arith.mulf %519, %509 : vector<20x128xf32>
    %cst_204 = arith.constant 0.254829586 : f32
    %521 = vector.broadcast %cst_204 : f32 to vector<20x128xf32>
    %522 = arith.addf %520, %521 : vector<20x128xf32>
    %523 = arith.mulf %522, %509 : vector<20x128xf32>
    %cst_205 = arith.constant 0.000000e+00 : f32
    %524 = vector.broadcast %cst_205 : f32 to vector<20x128xf32>
    %525 = arith.subf %524, %503 : vector<20x128xf32>
    %526 = arith.mulf %525, %503 : vector<20x128xf32>
    %527 = math.exp %526 : vector<20x128xf32>
    %528 = arith.mulf %523, %527 : vector<20x128xf32>
    %cst_206 = arith.constant 1.000000e+00 : f32
    %529 = vector.broadcast %cst_206 : f32 to vector<20x128xf32>
    %530 = arith.subf %529, %528 : vector<20x128xf32>
    %531 = arith.mulf %502, %530 : vector<20x128xf32>
    %cst_207 = arith.constant 1.000000e+00 : f32
    %532 = vector.broadcast %cst_207 : f32 to vector<20x128xf32>
    %533 = arith.addf %532, %531 : vector<20x128xf32>
    %534 = arith.mulf %495, %533 : vector<20x128xf32>
    %c2_208 = arith.constant 2 : index
    %c0_209 = arith.constant 0 : index
    %c0_210 = arith.constant 0 : index
    %535 = vector.load %arg10[%c2_208, %c0_209, %c0_210] : memref<3x128x32xf32, #tpu.memory_space<vmem>>, vector<1x128x32xf32>
    %536 = vector.shape_cast %535 : vector<1x128x32xf32> to vector<128x32xf32>
    %cst_211 = arith.constant dense<0.000000e+00> : vector<20x32xf32>
    %537 = tpu.matmul %534, %536, %cst_211 {dimension_numbers = #tpu.dot_dimension_numbers<[1], [0], [0], [1], [0, 0, 1, 1], [], []>} : vector<20x128xf32>, vector<128x32xf32>, vector<20x32xf32> -> vector<20x32xf32>
    %c2_212 = arith.constant 2 : index
    %c0_213 = arith.constant 0 : index
    %c0_214 = arith.constant 0 : index
    %538 = vector.load %arg11[%c2_212, %c0_213, %c0_214] : memref<3x1x32xf32, #tpu.memory_space<vmem>>, vector<1x1x32xf32>
    %539 = vector.shape_cast %538 : vector<1x1x32xf32> to vector<1x32xf32>
    %540 = vector.broadcast %539 : vector<1x32xf32> to vector<20x32xf32>
    %541 = arith.addf %537, %540 : vector<20x32xf32>
    %542 = arith.addf %541, %486 : vector<20x32xf32>
    %c2_215 = arith.constant 2 : index
    %c0_216 = arith.constant 0 : index
    %c0_217 = arith.constant 0 : index
    %543 = vector.load %arg12[%c2_215, %c0_216, %c0_217] : memref<3x1x32xf32, #tpu.memory_space<vmem>>, vector<1x1x32xf32>
    %544 = vector.shape_cast %543 : vector<1x1x32xf32> to vector<1x32xf32>
    %c2_218 = arith.constant 2 : index
    %c0_219 = arith.constant 0 : index
    %c0_220 = arith.constant 0 : index
    %545 = vector.load %arg13[%c2_218, %c0_219, %c0_220] : memref<3x1x32xf32, #tpu.memory_space<vmem>>, vector<1x1x32xf32>
    %546 = vector.shape_cast %545 : vector<1x1x32xf32> to vector<1x32xf32>
    %cst_221 = arith.constant dense<0.000000e+00> : vector<20xf32>
    %547 = vector.multi_reduction <add>, %542, %cst_221 [1] : vector<20x32xf32> to vector<20xf32>
    %548 = vector.shape_cast %547 : vector<20xf32> to vector<20x1xf32>
    %cst_222 = arith.constant 3.200000e+01 : f32
    %549 = vector.broadcast %cst_222 : f32 to vector<20x1xf32>
    %550 = arith.divf %548, %549 : vector<20x1xf32>
    %551 = vector.broadcast %550 : vector<20x1xf32> to vector<20x32xf32>
    %552 = arith.subf %542, %551 : vector<20x32xf32>
    %553 = arith.mulf %552, %552 : vector<20x32xf32>
    %cst_223 = arith.constant dense<0.000000e+00> : vector<20xf32>
    %554 = vector.multi_reduction <add>, %553, %cst_223 [1] : vector<20x32xf32> to vector<20xf32>
    %555 = vector.shape_cast %554 : vector<20xf32> to vector<20x1xf32>
    %cst_224 = arith.constant 3.200000e+01 : f32
    %556 = vector.broadcast %cst_224 : f32 to vector<20x1xf32>
    %557 = arith.divf %555, %556 : vector<20x1xf32>
    %558 = vector.broadcast %550 : vector<20x1xf32> to vector<20x32xf32>
    %559 = arith.subf %542, %558 : vector<20x32xf32>
    %cst_225 = arith.constant 9.99999996E-13 : f32
    %560 = vector.broadcast %cst_225 : f32 to vector<20x1xf32>
    %561 = arith.addf %557, %560 : vector<20x1xf32>
    %562 = math.rsqrt %561 : vector<20x1xf32>
    %563 = vector.broadcast %562 : vector<20x1xf32> to vector<20x32xf32>
    %564 = arith.mulf %559, %563 : vector<20x32xf32>
    %565 = vector.broadcast %544 : vector<1x32xf32> to vector<20x32xf32>
    %566 = arith.mulf %564, %565 : vector<20x32xf32>
    %567 = vector.broadcast %546 : vector<1x32xf32> to vector<20x32xf32>
    %568 = arith.addf %566, %567 : vector<20x32xf32>
    %569 = arith.addf %568, %368 : vector<20x32xf32>
    %c0_226 = arith.constant 0 : index
    %c0_227 = arith.constant 0 : index
    %570 = vector.load %arg19[%c0_226, %c0_227] : memref<32x64xf32, #tpu.memory_space<vmem>>, vector<32x64xf32>
    %cst_228 = arith.constant dense<0.000000e+00> : vector<20x64xf32>
    %571 = tpu.matmul %569, %570, %cst_228 {dimension_numbers = #tpu.dot_dimension_numbers<[1], [0], [0], [1], [0, 0, 1, 1], [], []>} : vector<20x32xf32>, vector<32x64xf32>, vector<20x64xf32> -> vector<20x64xf32>
    %c0_229 = arith.constant 0 : index
    %c0_230 = arith.constant 0 : index
    %572 = vector.load %arg20[%c0_229, %c0_230] : memref<1x64xf32, #tpu.memory_space<vmem>>, vector<1x64xf32>
    %573 = vector.broadcast %572 : vector<1x64xf32> to vector<20x64xf32>
    %574 = arith.addf %571, %573 : vector<20x64xf32>
    %cst_231 = arith.constant 0.000000e+00 : f32
    %575 = vector.broadcast %cst_231 : f32 to vector<20x64xf32>
    %576 = arith.maximumf %574, %575 : vector<20x64xf32>
    %c0_232 = arith.constant 0 : index
    %c0_233 = arith.constant 0 : index
    %577 = vector.load %arg21[%c0_232, %c0_233] : memref<1x1xf32, #tpu.memory_space<vmem>>, vector<1x1xf32>
    %cst_234 = arith.constant 0.000000e+00 : f32
    %578 = vector.broadcast %cst_234 : f32 to vector<20x64xf32>
    %579 = arith.minimumf %574, %578 : vector<20x64xf32>
    %580 = vector.broadcast %577 : vector<1x1xf32> to vector<20x64xf32>
    %581 = arith.mulf %580, %579 : vector<20x64xf32>
    %582 = arith.addf %576, %581 : vector<20x64xf32>
    %c0_235 = arith.constant 0 : index
    %c0_236 = arith.constant 0 : index
    %583 = vector.load %arg22[%c0_235, %c0_236] : memref<64x4xf32, #tpu.memory_space<vmem>>, vector<64x4xf32>
    %cst_237 = arith.constant dense<0.000000e+00> : vector<20x4xf32>
    %584 = tpu.matmul %582, %583, %cst_237 {dimension_numbers = #tpu.dot_dimension_numbers<[1], [0], [0], [1], [0, 0, 1, 1], [], []>} : vector<20x64xf32>, vector<64x4xf32>, vector<20x4xf32> -> vector<20x4xf32>
    %c0_238 = arith.constant 0 : index
    %c0_239 = arith.constant 0 : index
    %585 = vector.load %arg23[%c0_238, %c0_239] : memref<1x4xf32, #tpu.memory_space<vmem>>, vector<1x4xf32>
    %586 = vector.broadcast %585 : vector<1x4xf32> to vector<20x4xf32>
    %587 = arith.addf %584, %586 : vector<20x4xf32>
    %588 = tpu.concatenate %386, %587 in 1 : vector<20x4xf32>, vector<20x4xf32> -> vector<20x8xf32>
    %c0_240 = arith.constant 0 : index
    %c0_241 = arith.constant 0 : index
    %589 = vector.load %arg24[%c0_240, %c0_241] : memref<20x8xf32, #tpu.memory_space<vmem>>, vector<20x8xf32>
    tpu.vector_store %arg24[%c0_240, %c0_241], %588 {strides = array<i32>} : memref<20x8xf32, #tpu.memory_space<vmem>>, vector<20x8xf32>,
    return
  }
}

</mosaic_0001>

<bundles_post_ra>
// kernel: model_ms2_bert_forward.1
= control target key start
LH: loop header
LB: loop body
LE: loop exit
PB: predicated region body
PF: predicated region fallthrough
CT: control target
= control target key end

     0   :  { %v23576_v0 = vmov 0.0   ;;  %vm18311_vm0 = vmmov 0   ;;  %vm103_vm1 = vcmask 261120   ;;  %v18312_v8 = vmov 1983009808   ;;  %s23542_s2 = inlined_call_operand.vmem [shape: f32[3,32,96], index: 2, kind: input, shape index: {}]   ;;  %s23543_s0 = inlined_call_operand.vmem [shape: f32[20,32], index: 0, kind: input, shape index: {}]   ;;  %s23544_s1 = inlined_call_operand.vmem [shape: f32[8,1,32], index: 1, kind: input, shape index: {}]   ;;  %s23545_s3 = inlined_call_operand.vmem [shape: f32[3,1,96], index: 3, kind: input, shape index: {}]   ;;  %s23546_s4 = inlined_call_operand.vmem [shape: f32[3,32,32], index: 4, kind: input, shape index: {}]   ;;  %s23547_s5 = inlined_call_operand.vmem [shape: f32[3,1,32], index: 5, kind: input, shape index: {}]   ;;  %s23548_s8 = inlined_call_operand.vmem [shape: f32[3,32,128], index: 8, kind: input, shape index: {}]   ;;  %s23549_s6 = inlined_call_operand.vmem [shape: f32[3,1,32], index: 6, kind: input, shape index: {}]   ;;  %s23550_s7 = inlined_call_operand.vmem [shape: f32[3,1,32], index: 7, kind: input, shape index: {}]   ;;  %s23551_s10 = inlined_call_operand.vmem [shape: f32[3,128,32], index: 10, kind: input, shape index: {}]   ;;  %s23552_s9 = inlined_call_operand.vmem [shape: f32[3,1,128], index: 9, kind: input, shape index: {}]   ;;  %s23553_s11 = inlined_call_operand.vmem [shape: f32[3,1,32], index: 11, kind: input, shape index: {}]   ;;  %s23554_s12 = inlined_call_operand.vmem [shape: f32[3,1,32], index: 12, kind: input, shape index: {}]   ;;  %s23555_s13 = inlined_call_operand.vmem [shape: f32[3,1,32], index: 13, kind: input, shape index: {}]   ;;  %s23556_s14 = inlined_call_operand.vmem [shape: f32[32,64], index: 14, kind: input, shape index: {}]   ;;  %s23557_s16 = inlined_call_operand.<no memory space> [shape: f32[1,1], index: 16, kind: input, shape index: {}]   ;;  %s23558_s17 = inlined_call_operand.vmem [shape: f32[64,4], index: 17, kind: input, shape index: {}]   ;;  %s23559_s15 = inlined_call_operand.vmem [shape: f32[1,64], index: 15, kind: input, shape index: {}]   ;;  %s23560_s19 = inlined_call_operand.vmem [shape: f32[32,64], index: 19, kind: input, shape index: {}]   ;;  %s23561_s21 = inlined_call_operand.<no memory space> [shape: f32[1,1], index: 21, kind: input, shape index: {}]   ;;  %s23562_s22 = inlined_call_operand.vmem [shape: f32[64,4], index: 22, kind: input, shape index: {}]   ;;  %s23563_s20 = inlined_call_operand.vmem [shape: f32[1,64], index: 20, kind: input, shape index: {}]   ;;  %s23564_s23 = inlined_call_operand.vmem [shape: f32[1,4], index: 23, kind: input, shape index: {}]   ;;  %s23565_s18 = inlined_call_operand.vmem [shape: f32[1,4], index: 18, kind: input, shape index: {}]   ;;  %s23566_s24 = inlined_call_operand.vmem [shape: f32[20,8], index: 24, kind: output, shape index: {}]  }
   0x1   :  { %23809 = sst [smem:[#allocation86_spill]] %s23542_s2  ;;  %16803 = vmatprep.subr.mxu0 %v23576_v0  ;;  %16811 = vmatprep.mubr.msk.f32.mxu0 %vm18311_vm0, %v23576_v0  ;;  %v198_v9 = vunpack.c.l.s4 %v18312_v8  ;;  %v200_v10 = vlaneseq  ;;  %vm2898_vm2 = vcmask 1041408   ;;  %vm2508_vm3 = vcmask 74752  }
   0x2   :  { %23810 = sst [smem:[#allocation87_spill]] %s23543_s0  ;;  %s23715_s0 = smov 64   ;;  %vm2504_vm4 = vcmask 80896   ;;  %vm4961_vm5 = vcmask 257024   ;;  %vm10473_vm12 = vcmask 523264  }
   0x3   :  { %23811 = sst [smem:[#allocation88_spill]] %s23544_s1  ;;  %v199_v11 = vunpack.c.0.s8 %v198_v9  ;;  %v201_v12 = vshrl.u32 %v200_v10, 7 }
   0x4   :  { %23812 = sst [smem:[#allocation89_spill]] %s23545_s3  ;;  %s23717_s3 = smov 96  }
   0x5   :  { %23813 = sst [smem:[#allocation90_spill]] %s23546_s4  ;;  %v18483_v15 = vsub.s32 %v199_v11, %v201_v12 }
   0x6   :  { %23814 = sst [smem:[#allocation91_spill]] %s23547_s5  ;;  %s23958_s5 = smov 64  }
   0x7   :  { %23815 = sst [smem:[#allocation92_spill]] %s23548_s8 }
   0x8   :  { %23816 = sst [smem:[#allocation93_spill]] %s23549_s6 }
   0x9   :  { %23817 = sst [smem:[#allocation94_spill]] %s23550_s7 }
   0xa   :  { %23818 = sst [smem:[#allocation95_spill]] %s23564_s23 }
   0xb   :  { %23819 = sst [smem:[#allocation96_spill]] %s23565_s18 }
   0xc   :  { %23820 = sst [smem:[#allocation97_spill]] %s23566_s24 }
   0xd   :  { %s23821_s27 = sld [smem:[#allocation86_spill]] }
   0xe   :  { %s23822_s25 = sld [smem:[#allocation87_spill]] }
   0xf   :  { %s23823_s8 = sld [smem:[#allocation88_spill]] }
  0x10   :  { %s23824_s30 = sld [smem:[#allocation89_spill]] }
  0x11   :  { %s23935_s28 = sld [smem:[#allocation90_spill]] }
  0x12   :  { %s23936_s26 = sld [smem:[#allocation91_spill]] }
  0x13   :  { %v95_v1 = vld [vmem:[%s23821_s27 + $0x18] sm:$0xff]  ;;  %v94_v2 = vld [vmem:[%s23821_s27 + $0x10] sm:$0xff]  ;;  %v93_v3 = vld [vmem:[%s23821_s27 + $0x8] sm:$0xff]  ;;  %s23937_s1 = sld [smem:[#allocation92_spill]] }
  0x14   :  { %16804 = vmatpush3.msra.mxu0 %v95_v1  ;;  %v92_v4 = vld [vmem:[%s23821_s27] sm:$0xff]  ;;  %v90_v6 = vld [vmem:[%s23822_s25 + $0x8] sm:$0xff]  ;;  %v91_v7 = vld [vmem:[%s23822_s25 + $0x10] sm:$0xf]  ;;  %s23939_s6 = sld [smem:[#allocation94_spill]] }
  0x15   :  { %16805 = vmatprep.subr.mxu0 %v23576_v0  ;;  %v89_v5 = vld [vmem:[%s23822_s25] sm:$0xff]  ;;  %s24250_s23 = sld [smem:[#allocation96_spill]] }
  0x16   :  { %16806 = vmatpush3.msra.mxu0 %v94_v2  ;;  %v15782_v13 = vld [vmem:[%s23823_s8] ss:$0 sm:$0xff]  ;;  %v15784_v14 = vld [vmem:[%s23823_s8 + $0x2] ss:$0 sm:$0xff] }
  0x17   :  { %16807 = vmatprep.subr.mxu0 %v23576_v0  ;;  %v15778_v16 = vld [vmem:[%s23824_s30] ss:$0 sm:$0xff]  ;;  %v288_v17 = vcombine.high %v15782_v13, %v15782_v13  ;;  %v322_v18 = vcombine.high %v15784_v14, %v15784_v14  ;;  %v18489_v20 = vrot.slane %v15782_v13, %v18483_v15  ;;  %v18492_v21 = vrot.slane %v15784_v14, %v18483_v15  ;;  %v15783_v14 = vld [vmem:[%s23823_s8 + $0x1] ss:$0 sm:$0xff] }
  0x18   :  { %16808 = vmatpush3.msra.mxu0 %v93_v3 }
  0x19   :  { %16809 = vmatprep.subr.mxu0 %v23576_v0  ;;  %23825 = vst [vmem:[#allocation4_spill] sm:$0xff] %v18489_v20  ;;  %23826 = vst [vmem:[#allocation5_spill] sm:$0xff] %v18492_v21  ;;  %v18495_v24 = vrot.slane %v288_v17, %v18483_v15  ;;  %v18498_v25 = vrot.slane %v322_v18, %v18483_v15  ;;  %v18505_v29 = vcombine.high %v18489_v20, %v18489_v20 }
  0x1a   :  { %16810 = vmatpush3.msra.mxu0 %v92_v4  ;;  %v18509_v30 = vcombine.high %v18492_v21, %v18492_v21  ;;  %v18598_v17 = vrot.slane %v15783_v14, %v18483_v15  ;;  %v305_v18 = vcombine.high %v15783_v14, %v15783_v14 }
  0x1b   :  { %16812 = vmatmul.mubr.msk.f32.vlgmr.msra.gmra.mxu0 %vm103_vm1, %v89_v5  ;;  %23827 = vst [vmem:[#allocation6_spill] sm:$0xff] %v18495_v24  ;;  %23828 = vst [vmem:[#allocation7_spill] sm:$0xff] %v18498_v25  ;;  %v18520_v35 = vcombine.high %v18495_v24, %v18495_v24  ;;  %v18526_v37 = vcombine.high %v18498_v25, %v18498_v25 }
  0x1c   :  { %16814 = vmatprep.mubr.msk.f32.mxu0 %vm18311_vm0, %v23576_v0  ;;  %23829 = vst [vmem:[#allocation8_spill] sm:$0xff] %v18505_v29  ;;  %23830 = vst [vmem:[#allocation9_spill] sm:$0xff] %v18509_v30 }
  0x1d   :  { %23831 = vst [vmem:[#allocation10_spill] sm:$0xff] %v18520_v35  ;;  %23832 = vst [vmem:[#allocation11_spill] sm:$0xff] %v18526_v37 }
  0x1e   :  { %23833 = vst [vmem:[#allocation12_spill] sm:$0xff] %v18598_v17 }
  0x1f   :  { %16815 = vmatmul.mubr.msk.f32.gmra.mxu0 %vm103_vm1, %v90_v6 }
  0x20   :  { %16817 = vmatprep.mubr.msk.f32.mxu0 %vm18311_vm0, %v23576_v0 }
  0x23   :  { %16818 = vmatmul.mubr.msk.f32.gmra.mxu0 %vm103_vm1, %v91_v7 }
  0xdb   :  { %v179_v19 = vpop.f32.mrf.mxu0 }
  0xdc   :  { %v180_v22 = vadd.f32 %v15778_v16, %v179_v19  ;;  %v18606_v19 = vrot.slane %v305_v18, %v18483_v15 }
  0xdd   :  { %v16813_v23 = vpop.f32.mrf.mxu0 }
  0xde   :  { %v196_v26 = vcombine.high %v180_v22, %v180_v22  ;;  %v18501_v27 = vrot.slane %v180_v22, %v18483_v15  ;;  %23834 = vst [vmem:[#allocation13_spill] sm:$0xff] %v18606_v19  ;;  %v15785_v22 = vld [vmem:[%s23823_s8 + $0x3] ss:$0 sm:$0xff]  ;;  %v18623_v23 = vcombine.high %v18598_v17, %v18598_v17 }
  0xdf   :  { %v184_v28 = vpop.f32.mrf.mxu0 }
  0xe0   :  { %v18512_v31 = vrot.slane %v196_v26, %v18483_v15  ;;  %v185_v32 = vadd.f32 %v15778_v16, %v184_v28  ;;  %v18516_v33 = vcombine.high %v18501_v27, %v18501_v27  ;;  %v456_v36 = vmul.f32 %v18489_v20, %v18501_v27  ;;  %23835 = vst [vmem:[#allocation14_spill] sm:$0xff] %v18623_v23 }
  0xe1   :  { %v16816_v34 = vpop.f32.mrf.mxu0  ;;  %v466_v38 = vmul.f32 %v18492_v21, %v18501_v27  ;;  %v18626_v26 = vrot.slane %v15785_v22, %v18483_v15  ;;  %v339_v28 = vcombine.high %v15785_v22, %v15785_v22  ;;  %v461_v14 = vmul.f32 %v18598_v17, %v18501_v27 }
  0xe2   :  { %v213_v39 = vcombine.high %v185_v32, %v185_v32  ;;  %v18531_v40 = vrot.slane %v185_v32, %v18483_v15  ;;  %v18535_v41 = vcombine.high %v18512_v31, %v18512_v31  ;;  %v741_v42 = vcombine.low %v18501_v27, %v18516_v33 }
  0xe3   :  { %v189_v43 = vpop.f32.mrf.mxu0  ;;  %v457_v44 = vmul.f32 %v18505_v29, %v18516_v33  ;;  %v458_v45 = vmul.f32 %v18495_v24, %v18512_v31  ;;  %v467_v46 = vmul.f32 %v18509_v30, %v18516_v33  ;;  %v468_v47 = vmul.f32 %v18498_v25, %v18512_v31  ;;  %23836 = vst [vmem:[#allocation15_spill] sm:$0xff] %v18626_v26 }
  0xe4   :  { %v18548_v48 = vrot.slane %v213_v39, %v18483_v15  ;;  %v190_v49 = vadd.f32 %v15778_v16, %v189_v43  ;;  %v764_v50 = vrot.slane %v18531_v40, %v18483_v15  ;;  %v742_v51 = vcombine.low %v18512_v31, %v18535_v41  ;;  %v15787_v43 = vld [vmem:[%s23823_s8 + $0x5] ss:$0 sm:$0xff] }
  0xe5   :  { %v749_v52 = vrot.slane %v741_v42, %v18483_v15  ;;  %v459_v53 = vmul.f32 %v18520_v35, %v18535_v41  ;;  %v717_v54 = vcombine.low %v456_v36, %v457_v44  ;;  %v469_v55 = vmul.f32 %v18526_v37, %v18535_v41  ;;  %v16819_v56 = vpop.f32.mrf.mxu0  ;;  %v15786_v36 = vld [vmem:[%s23823_s8 + $0x4] ss:$0 sm:$0xff] }
  0xe6   :  { %v18560_v57 = vrot.slane %v190_v49, %v18483_v15  ;;  %767 = vrot.lane.b32.xlu0 %v764_v50, %s23717_s3  ;;  %v756_v58 = vrot.slane %v742_v51, %v18483_v15  ;;  %v965_v59 = vcombine.low %v466_v38, %v467_v46  ;;  %v18566_v60 = vcombine.high %v18531_v40, %v18531_v40  ;;  %v15788_v50 = vld [vmem:[%s23823_s8 + $0x6] ss:$0 sm:$0xff]  ;;  %v15789_v56 = vld [vmem:[%s23823_s8 + $0x7] ss:$0 sm:$0xff]  ;;  %s23938_s8 = sld [smem:[#allocation93_spill]] }
  0xe7   :  { %v718_v61 = vcombine.low %v458_v45, %v459_v53  ;;  %v966_v62 = vcombine.low %v468_v47, %v469_v55  ;;  %v18570_v63 = vcombine.high %v18548_v48, %v18548_v48  ;;  %v725_v2 = vrot.slane %v717_v54, %v18483_v15 }
  0xe8   :  { %v757_v1 = vcombine.low %v749_v52, %v756_v58  ;;  %v18575_v3 = vcombine.high %v18560_v57, %v18560_v57  ;;  %v1637_v4 = vcombine.low %v18566_v60, %v18548_v48  ;;  %v973_v6 = vrot.slane %v965_v59, %v18483_v15 }
  0xe9   :  { %v732_v5 = vrot.slane %v718_v61, %v18483_v15  ;;  %v980_v7 = vrot.slane %v966_v62, %v18483_v15  ;;  %v1638_v8 = vcombine.low %v18570_v63, %v18560_v57  ;;  %v18634_v32 = vcombine.high %v18606_v19, %v18606_v19 }
  0xea   :  { %765 = vrot.lane.b32.xlu0 %v757_v1, %s23717_s3  ;;  %v1660_v9 = vrot.slane %v18575_v3, %v18483_v15  ;;  %v1645_v13 = vrot.slane %v1637_v4, %v18483_v15  ;;  %v18639_v34 = vrot.slane %v339_v28, %v18483_v15  ;;  %v18647_v38 = vrot.slane %v15786_v36, %v18483_v15 }
  0xeb   :  { %v733_v10 = vcombine.low %v725_v2, %v732_v5  ;;  %v981_v11 = vcombine.low %v973_v6, %v980_v7  ;;  %v1652_v12 = vrot.slane %v1638_v8, %v18483_v15  ;;  %23837 = vst [vmem:[#allocation16_spill] sm:$0xff] %v18634_v32  ;;  %v356_v39 = vcombine.high %v15786_v36, %v15786_v36 }
  0xec   :  { %1663 = vrot.lane.b32.xlu1 %v1660_v9, %s23717_s3  ;;  %23838 = vst [vmem:[#allocation17_spill] sm:$0xff] %v18639_v34  ;;  %23839 = vst [vmem:[#allocation18_spill] sm:$0xff] %v18647_v38  ;;  %v18665_v44 = vcombine.high %v18626_v26, %v18626_v26  ;;  %v18668_v45 = vrot.slane %v15787_v43, %v18483_v15  ;;  %v373_v46 = vcombine.high %v15787_v43, %v15787_v43 }
  0xed   :  { %16824 = vmatprep.mubr.msk.f32.mxu1 %vm103_vm1, %v733_v10  ;;  %16838 = vmatprep.mubr.msk.f32.mxu0 %vm103_vm1, %v981_v11  ;;  %v1653_v16 = vcombine.low %v1645_v13, %v1652_v12  ;;  %v18656_v42 = vrot.slane %v356_v39, %v18483_v15  ;;  %v18676_v47 = vcombine.high %v18639_v34, %v18639_v34 }
  0xee   :  { %538 = vrot.lane.b32.xlu0 %v18505_v29, %s23715_s0  ;;  %23841 = vst [vmem:[#allocation20_spill] sm:$0xff] %v18665_v44  ;;  %23842 = vst [vmem:[#allocation21_spill] sm:$0xff] %v18668_v45  ;;  %v18681_v49 = vrot.slane %v373_v46, %v18483_v15  ;;  %v18690_v51 = vcombine.high %v18647_v38, %v18647_v38  ;;  %v18693_v52 = vrot.slane %v15788_v50, %v18483_v15 }
  0xef   :  { %23840 = vst [vmem:[#allocation19_spill] sm:$0xff] %v18656_v42  ;;  %23843 = vst [vmem:[#allocation22_spill] sm:$0xff] %v18676_v47  ;;  %v390_v53 = vcombine.high %v15788_v50, %v15788_v50  ;;  %v18701_v54 = vcombine.high %v18656_v42, %v18656_v42  ;;  %v18715_v58 = vcombine.high %v18668_v45, %v18668_v45 }
  0xf0   :  { %1661 = vrot.lane.b32.xlu1 %v1653_v16, %s23717_s3  ;;  %23844 = vst [vmem:[#allocation23_spill] sm:$0xff] %v18681_v49  ;;  %23845 = vst [vmem:[#allocation24_spill] sm:$0xff] %v18690_v51  ;;  %v18718_v59 = vrot.slane %v15789_v56, %v18483_v15  ;;  %v407_v61 = vcombine.high %v15789_v56, %v15789_v56  ;;  %v18726_v62 = vcombine.high %v18681_v49, %v18681_v49 }
  0xf1   :  { %23846 = vst [vmem:[#allocation25_spill] sm:$0xff] %v18693_v52  ;;  %23847 = vst [vmem:[#allocation26_spill] sm:$0xff] %v18701_v54  ;;  %v18706_v55 = vrot.slane %v390_v53, %v18483_v15  ;;  %v18737_v2 = vcombine.high %v18693_v52, %v18693_v52  ;;  %v464_v7 = vmul.f32 %v18634_v32, %v18535_v41 }
  0xf2   :  { %544 = vrot.lane.b32.xlu0 %v18598_v17, %s23715_s0  ;;  %23849 = vst [vmem:[#allocation28_spill] sm:$0xff] %v18715_v58  ;;  %23850 = vst [vmem:[#allocation29_spill] sm:$0xff] %v18718_v59  ;;  %v18731_v1 = vrot.slane %v407_v61, %v18483_v15  ;;  %v18749_v5 = vcombine.high %v18718_v59, %v18718_v59  ;;  %v479_v8 = vmul.f32 %v18701_v54, %v18535_v41 }
  0xf3   :  { %23848 = vst [vmem:[#allocation27_spill] sm:$0xff] %v18706_v55  ;;  %23851 = vst [vmem:[#allocation30_spill] sm:$0xff] %v18726_v62  ;;  %v18743_v4 = vcombine.high %v18706_v55, %v18706_v55  ;;  %v462_v9 = vmul.f32 %v18623_v23, %v18516_v33  ;;  %v463_v10 = vmul.f32 %v18606_v19, %v18512_v31 }
  0xf4   :  { %536 = vrot.lane.b32.xlu1 %v18489_v20, %s23715_s0  ;;  %23852 = vst [vmem:[#allocation31_spill] sm:$0xff] %v18731_v1  ;;  %23853 = vst [vmem:[#allocation32_spill] sm:$0xff] %v18737_v2  ;;  %v18755_v6 = vcombine.high %v18731_v1, %v18731_v1  ;;  %v477_v11 = vmul.f32 %v18690_v51, %v18516_v33  ;;  %v478_v12 = vmul.f32 %v18656_v42, %v18512_v31 }
  0xf5   :  { %23854 = vst [vmem:[#allocation33_spill] sm:$0xff] %v18743_v4  ;;  %23855 = vst [vmem:[#allocation34_spill] sm:$0xff] %v18749_v5  ;;  %v460_v13 = vmul.f32 %v18489_v20, %v18531_v40  ;;  %v858_v16 = vcombine.low %v463_v10, %v464_v7  ;;  %v470_v18 = vmul.f32 %v18492_v21, %v18531_v40 }
  0xf6   :  { %548 = vrot.lane.b32.xlu0 %v18606_v19, %s23715_s0  ;;  %23856 = vst [vmem:[#allocation35_spill] sm:$0xff] %v18755_v6  ;;  %v476_v22 = vmul.f32 %v18647_v38, %v18501_v27  ;;  %v1182_v28 = vcombine.low %v478_v12, %v479_v8  ;;  %v857_v36 = vcombine.low %v461_v14, %v462_v9 }
  0xf7   :  { %v474_v39 = vmul.f32 %v18676_v47, %v18535_v41  ;;  %v471_v50 = vmul.f32 %v18626_v26, %v18501_v27  ;;  %v472_v53 = vmul.f32 %v18665_v44, %v18516_v33  ;;  %v740_v56 = vrot.slane %v460_v13, %v18483_v15 }
  0xf8   :  { %540 = vrot.lane.b32.xlu1 %v18495_v24, %s23715_s0  ;;  %v1181_v46 = vcombine.low %v476_v22, %v477_v11  ;;  %v872_v61 = vrot.slane %v858_v16, %v18483_v15  ;;  %v473_v7 = vmul.f32 %v18639_v34, %v18512_v31  ;;  %v988_v8 = vrot.slane %v470_v18, %v18483_v15 }
  0xf9   :  { %v1196_v9 = vrot.slane %v1182_v28, %v18483_v15  ;;  %v489_v10 = vmul.f32 %v18743_v4, %v18535_v41  ;;  %v865_v11 = vrot.slane %v857_v36, %v18483_v15  ;;  %v18806_v12 = vmul.f32 %v18598_v17, %v18531_v40 }
  0xfa   :  { %552 = vrot.lane.b32.xlu0 %v18492_v21, %s23715_s0  ;;  %v1074_v13 = vcombine.low %v473_v7, %v474_v39  ;;  %v487_v14 = vmul.f32 %v18737_v2, %v18516_v33  ;;  %v1189_v22 = vrot.slane %v1181_v46, %v18483_v15  ;;  %v18815_v18 = vmul.f32 %v18647_v38, %v18531_v40 }
  0xfb   :  { %v1073_v28 = vcombine.low %v471_v50, %v472_v53  ;;  %v488_v36 = vmul.f32 %v18706_v55, %v18512_v31  ;;  %v873_v39 = vcombine.low %v865_v11, %v872_v61  ;;  %v486_v7 = vmul.f32 %v18693_v52, %v18501_v27 }
  0xfc   :  { %542 = vrot.lane.b32.xlu1 %v18520_v35, %s23715_s0  ;;  %v18827_v46 = vmul.f32 %v18626_v26, %v18531_v40  ;;  %v1197_v53 = vcombine.low %v1189_v22, %v1196_v9  ;;  %v482_v61 = vmul.f32 %v18715_v58, %v18516_v33  ;;  %v18842_v11 = vrot.slane %v1074_v13, %v18483_v15 }
  0xfd   :  { %v1398_v0 = vcombine.low %v488_v36, %v489_v10  ;;  %v18850_v9 = vmul.f32 %v18693_v52, %v18531_v40  ;;  %v481_v10 = vmul.f32 %v18668_v45, %v18501_v27  ;;  %v498_v22 = vmul.f32 %v18495_v24, %v18570_v63 }
  0xfe   :  { %556 = vrot.lane.b32.xlu0 %v18498_v25, %s23715_s0  ;;  %v499_v13 = vmul.f32 %v18520_v35, %v18560_v57  ;;  %v496_v36 = vmul.f32 %v18489_v20, %v18566_v60 }
  0xff   :  { %v1289_v35 = vcombine.low %v481_v10, %v482_v61  ;;  %v1204_v61 = vrot.slane %v18815_v18, %v18483_v15 }
 0x100   :  { %546 = vrot.lane.b32.xlu1 %v18623_v23, %s23715_s0 }
 0x101   :  { %v18901_v18 = vrot.slane %v1289_v35, %v18483_v15  ;;  %v491_v35 = vmul.f32 %v18718_v59, %v18501_v27 }
 0x102   :  { %560 = vrot.lane.b32.xlu0 %v18626_v26, %s23715_s0 }
 0x104   :  { %550 = vrot.lane.b32.xlu1 %v18634_v32, %s23715_s0 }
 0x106   :  { %564 = vrot.lane.b32.xlu0 %v18639_v34, %s23715_s0 }
 0x108   :  { %554 = vrot.lane.b32.xlu1 %v18509_v30, %s23715_s0 }
 0x10a   :  { %568 = vrot.lane.b32.xlu0 %v18647_v38, %s23715_s0 }
 0x10c   :  { %558 = vrot.lane.b32.xlu1 %v18526_v37, %s23715_s0 }
 0x10e   :  { %572 = vrot.lane.b32.xlu0 %v18656_v42, %s23715_s0 }
 0x110   :  { %562 = vrot.lane.b32.xlu1 %v18665_v44, %s23715_s0 }
 0x112   :  { %576 = vrot.lane.b32.xlu0 %v18668_v45, %s23715_s0 }
 0x114   :  { %566 = vrot.lane.b32.xlu1 %v18676_v47, %s23715_s0 }
 0x116   :  { %580 = vrot.lane.b32.xlu0 %v18681_v49, %s23715_s0 }
 0x118   :  { %570 = vrot.lane.b32.xlu1 %v18690_v51, %s23715_s0 }
 0x11a   :  { %584 = vrot.lane.b32.xlu0 %v18693_v52, %s23715_s0 }
 0x11c   :  { %574 = vrot.lane.b32.xlu1 %v18701_v54, %s23715_s0 }
 0x11e   :  { %588 = vrot.lane.b32.xlu0 %v18706_v55, %s23715_s0 }
 0x120   :  { %578 = vrot.lane.b32.xlu1 %v18715_v58, %s23715_s0  ;;  %v1081_v58 = vrot.slane %v1073_v28, %v18483_v15 }
 0x122   :  { %592 = vrot.lane.b32.xlu0 %v18718_v59, %s23715_s0 }
 0x124   :  { %582 = vrot.lane.b32.xlu1 %v18726_v62, %s23715_s0 }
 0x126   :  { %596 = vrot.lane.b32.xlu0 %v18731_v1, %s23715_s0 }
 0x128   :  { %586 = vrot.lane.b32.xlu1 %v18737_v2, %s23715_s0  ;;  %v1397_v2 = vcombine.low %v486_v7, %v487_v14  ;;  %v483_v14 = vmul.f32 %v18681_v49, %v18512_v31  ;;  %v497_v7 = vmul.f32 %v18505_v29, %v18548_v48  ;;  %v880_v29 = vrot.slane %v18806_v12, %v18483_v15 }
 0x12a   :  { %v1405_v10 = vrot.slane %v1397_v2, %v18483_v15  ;;  %v1613_v28 = vcombine.low %v496_v36, %v497_v7  ;;  %v492_v7 = vmul.f32 %v18749_v5, %v18516_v33 }
 0x12c   :  { %590 = vrot.lane.b32.xlu1 %v18743_v4, %s23715_s0  ;;  %v484_v4 = vmul.f32 %v18726_v62, %v18535_v41  ;;  %v1621_v2 = vrot.slane %v1613_v28, %v18483_v15  ;;  %v509_v28 = vmul.f32 %v18526_v37, %v18560_v57 }
 0x130   :  { %594 = vrot.lane.b32.xlu1 %v18749_v5, %s23715_s0 }
 0x134   :  { %598 = vrot.lane.b32.xlu1 %v18755_v6, %s23715_s0 }
 0x158   :  { %v18781_v43 = vpop.permute.xlu0 %767 }
 0x159   :  { %16820 = vmatprep.subr.msk.mxu1 %vm103_vm1, %v18781_v43  ;;  %16834 = vmatprep.subr.msk.mxu0 %vm103_vm1, %v18781_v43 }
 0x15a   :  { %16821 = vmatpush3.xpose.msk.msra.mxu1 %vm103_vm1, %v18781_v43  ;;  %16835 = vmatpush3.xpose.msk.msra.mxu0 %vm103_vm1, %v18781_v43 }
 0x15c   :  { %v18810_v16 = vpop.permute.xlu0 %765 }
 0x15d   :  { %16822 = vmatprep.subr.msk.mxu1 %vm103_vm1, %v18810_v16  ;;  %16836 = vmatprep.subr.msk.mxu0 %vm103_vm1, %v18810_v16 }
 0x15e   :  { %16823 = vmatpush3.xpose.msk.msra.mxu1 %vm103_vm1, %v18810_v16  ;;  %16837 = vmatpush3.xpose.msk.msra.mxu0 %vm103_vm1, %v18810_v16  ;;  %v18833_v50 = vpop.permute.xlu1 %1663 }
 0x15f   :  { %16827 = vmatprep.subr.msk.mxu1 %vm103_vm1, %v18781_v43  ;;  %16848 = vmatprep.subr.msk.mxu0 %vm103_vm1, %v18781_v43 }
 0x160   :  { %v18846_v55 = vpop.permute.xlu0 %538 }
 0x161   :  { %23857 = vst [vmem:[#allocation36_spill] sm:$0xff] %v18846_v55  ;;  %16825 = vmatmul.mubr.msk.f32.vlgmr.msra.gmra.mxu1 %vm103_vm1, %v740_v56  ;;  %16839 = vmatmul.mubr.msk.f32.vlgmr.msra.gmra.mxu0 %vm103_vm1, %v988_v8  ;;  %v1412_v56 = vrot.slane %v1398_v0, %v18483_v15  ;;  %v18874_v8 = vmul.f32 %v18668_v45, %v18531_v40 }
 0x162   :  { %16828 = vmatpush3.xpose.msk.msra.mxu1 %vm103_vm1, %v18781_v43  ;;  %16831 = vmatprep.mubr.msk.f32.mxu1 %vm103_vm1, %v873_v39  ;;  %v18869_v24 = vpop.permute.xlu1 %1661  ;;  %v1290_v39 = vcombine.low %v483_v14, %v484_v4  ;;  %v1089_v45 = vcombine.low %v1081_v58, %v18842_v11  ;;  %v18907_v58 = vmul.f32 %v18489_v20, %v18575_v3 }
 0x163   :  { %16849 = vmatpush3.xpose.msk.msra.mxu0 %vm103_vm1, %v18781_v43  ;;  %16852 = vmatprep.mubr.msk.f32.mxu0 %vm103_vm1, %v1197_v53  ;;  %v1614_v53 = vcombine.low %v498_v22, %v499_v13  ;;  %v1413_v62 = vcombine.low %v1405_v10, %v1412_v56  ;;  %v493_v56 = vmul.f32 %v18731_v1, %v18512_v31 }
 0x164   :  { %16829 = vmatprep.subr.msk.mxu1 %vm103_vm1, %v18810_v16  ;;  %16850 = vmatprep.subr.msk.mxu0 %vm103_vm1, %v18810_v16  ;;  %v18886_v0 = vpop.permute.xlu0 %544  ;;  %v18916_v22 = vrot.slane %v1290_v39, %v18483_v15  ;;  %v494_v39 = vmul.f32 %v18755_v6, %v18535_v41  ;;  %v506_v4 = vmul.f32 %v18492_v21, %v18566_v60 }
 0x165   :  { %23858 = vst [vmem:[#allocation37_spill] sm:$0xff] %v18886_v0  ;;  %v18925_v36 = vrot.slane %v1614_v53, %v18483_v15  ;;  %v507_v53 = vmul.f32 %v18509_v30, %v18548_v48 }
 0x166   :  { %16830 = vmatpush3.xpose.msk.msra.mxu1 %vm103_vm1, %v18810_v16  ;;  %v18898_v14 = vpop.permute.xlu1 %536  ;;  %v1506_v5 = vcombine.low %v493_v56, %v494_v39 }
 0x167   :  { %23859 = vst [vmem:[#allocation38_spill] sm:$0xff] %v18898_v14  ;;  %16851 = vmatpush3.xpose.msk.msra.mxu0 %vm103_vm1, %v18810_v16  ;;  %16841 = vmatprep.subr.msk.mxu1 %vm103_vm1, %v18781_v43  ;;  %v636_v11 = vmul.f32 %v18898_v14, %v18531_v40  ;;  %v632_v30 = vmul.f32 %v18898_v14, %v18501_v27 }
 0x168   :  { %16862 = vmatprep.subr.msk.mxu0 %vm103_vm1, %v18781_v43  ;;  %v18922_v13 = vpop.permute.xlu0 %548 }
 0x169   :  { %23860 = vst [vmem:[#allocation39_spill] sm:$0xff] %v18922_v13  ;;  %16832 = vmatmul.mubr.msk.f32.vlgmr.msra.gmra.mxu1 %vm103_vm1, %v880_v29  ;;  %v2886_v10 = vrot.slane %v636_v11, %v18483_v15  ;;  %v641_v29 = vmul.f32 %v18886_v0, %v18531_v40  ;;  %v508_v11 = vmul.f32 %v18498_v25, %v18570_v63 }
 0x16a   :  { %16853 = vmatmul.mubr.msk.f32.vlgmr.msra.gmra.mxu0 %vm103_vm1, %v1204_v61  ;;  %16842 = vmatpush3.xpose.msk.msra.mxu1 %vm103_vm1, %v18781_v43  ;;  %v18943_v12 = vpop.permute.xlu1 %540  ;;  %v1305_v61 = vcombine.low %v18901_v18, %v18916_v22  ;;  %v1505_v25 = vcombine.low %v491_v35, %v492_v7  ;;  %v633_v18 = vmul.f32 %v18846_v55, %v18516_v33 }
 0x16b   :  { %23861 = vst [vmem:[#allocation40_spill] sm:$0xff] %v18943_v12  ;;  %16845 = vmatprep.mubr.msk.f32.mxu1 %vm103_vm1, %v1089_v45  ;;  %16863 = vmatpush3.xpose.msk.msra.mxu0 %vm103_vm1, %v18781_v43  ;;  %v1629_v45 = vcombine.low %v1621_v2, %v18925_v36  ;;  %v1861_v22 = vcombine.low %v506_v4, %v507_v53 }
 0x16c   :  { %16866 = vmatprep.mubr.msk.f32.mxu0 %vm103_vm1, %v1413_v62  ;;  %16843 = vmatprep.subr.msk.mxu1 %vm103_vm1, %v18810_v16  ;;  %v18963_v37 = vpop.permute.xlu0 %552  ;;  %v18973_v62 = vmul.f32 %v18718_v59, %v18531_v40  ;;  %v3004_v2 = vrot.slane %v641_v29, %v18483_v15  ;;  %v1862_v35 = vcombine.low %v508_v11, %v509_v28 }
 0x16d   :  { %23862 = vst [vmem:[#allocation41_spill] sm:$0xff] %v18963_v37  ;;  %16864 = vmatprep.subr.msk.mxu0 %vm103_vm1, %v18810_v16  ;;  %2889 = vrot.lane.b32.xlu1 %v2886_v10, %s23715_s0  ;;  %v501_v36 = vmul.f32 %v18598_v17, %v18566_v60  ;;  %v502_v7 = vmul.f32 %v18623_v23, %v18548_v48 }
 0x16e   :  { %16844 = vmatpush3.xpose.msk.msra.mxu1 %vm103_vm1, %v18810_v16  ;;  %v18977_v20 = vpop.permute.xlu1 %542  ;;  %v634_v4 = vmul.f32 %v18943_v12, %v18512_v31  ;;  %v2863_v39 = vcombine.low %v632_v30, %v633_v18  ;;  %v1513_v53 = vrot.slane %v1505_v25, %v18483_v15  ;;  %v18999_v29 = vmul.f32 %v18492_v21, %v18575_v3 }
 0x16f   :  { %23863 = vst [vmem:[#allocation42_spill] sm:$0xff] %v18977_v20  ;;  %16865 = vmatpush3.xpose.msk.msra.mxu0 %vm103_vm1, %v18810_v16  ;;  %16855 = vmatprep.subr.msk.mxu1 %vm103_vm1, %v18781_v43  ;;  %v635_v56 = vmul.f32 %v18977_v20, %v18535_v41  ;;  %v503_v11 = vmul.f32 %v18606_v19, %v18570_v63  ;;  %v23879_v19 = vld [vmem:[#allocation32_spill] sm:$0xff] }
 0x170   :  { %v18992_v10 = vpop.permute.xlu0 %556  ;;  %16876 = vmatprep.subr.msk.mxu0 %vm103_vm1, %v18833_v50  ;;  %v504_v28 = vmul.f32 %v18634_v32, %v18560_v57  ;;  %v23865_v30 = vrot.slane %v18827_v46, %v18483_v15  ;;  %v1520_v25 = vrot.slane %v1506_v5, %v18483_v15  ;;  %v23866_v23 = vrot.slane %v18850_v9, %v18483_v15 }
 0x171   :  { %23864 = vst [vmem:[#allocation43_spill] sm:$0xff] %v18992_v10  ;;  %3007 = vrot.lane.b32.xlu1 %v3004_v2, %s23715_s0  ;;  %v2864_v18 = vcombine.low %v634_v4, %v635_v56  ;;  %v1869_v46 = vrot.slane %v1861_v22, %v18483_v15  ;;  %v1753_v4 = vcombine.low %v501_v36, %v502_v7 }
 0x172   :  { %16846 = vmatmul.mubr.msk.f32.vlgmr.msra.gmra.mxu1 %vm103_vm1, %v23865_v30  ;;  %16867 = vmatmul.mubr.msk.f32.vlgmr.msra.gmra.mxu0 %vm103_vm1, %v23866_v23  ;;  %v19019_v2 = vpop.permute.xlu1 %546  ;;  %v1876_v30 = vrot.slane %v1862_v35, %v18483_v15  ;;  %v2871_v5 = vrot.slane %v2863_v39, %v18483_v15  ;;  %v1754_v35 = vcombine.low %v503_v11, %v504_v28 }
 0x173   :  { %16856 = vmatpush3.xpose.msk.msra.mxu1 %vm103_vm1, %v18781_v43  ;;  %23867 = vst [vmem:[#allocation44_spill] sm:$0xff] %v19019_v2  ;;  %16859 = vmatprep.mubr.msk.f32.mxu1 %vm103_vm1, %v1305_v61  ;;  %v2878_v9 = vrot.slane %v2864_v18, %v18483_v15  ;;  %v638_v23 = vmul.f32 %v19019_v2, %v18516_v33 }
 0x174   :  { %16877 = vmatpush3.xpose.msk.msra.mxu0 %vm103_vm1, %v18833_v50  ;;  %16880 = vmatprep.mubr.msk.f32.mxu0 %vm103_vm1, %v1629_v45  ;;  %v19033_v22 = vpop.permute.xlu0 %560  ;;  %v19037_v61 = vmul.f32 %v18647_v38, %v18566_v60  ;;  %v19041_v36 = vmul.f32 %v18690_v51, %v18548_v48  ;;  %v637_v45 = vmul.f32 %v18886_v0, %v18501_v27 }
 0x175   :  { %16857 = vmatprep.subr.msk.mxu1 %vm103_vm1, %v18810_v16  ;;  %23868 = vst [vmem:[#allocation45_spill] sm:$0xff] %v19033_v22  ;;  %16878 = vmatprep.subr.msk.mxu0 %vm103_vm1, %v18869_v24  ;;  %v2879_v7 = vcombine.low %v2871_v5, %v2878_v9  ;;  %v518_v56 = vmul.f32 %v18656_v42, %v18570_v63 }
 0x176   :  { %v519_v39 = vmul.f32 %v18701_v54, %v18560_v57  ;;  %v19053_v11 = vpop.permute.xlu1 %550  ;;  %v1521_v28 = vcombine.low %v1513_v53, %v1520_v25  ;;  %v1877_v18 = vcombine.low %v1869_v46, %v1876_v30  ;;  %v646_v21 = vmul.f32 %v18963_v37, %v18531_v40 }
 0x177   :  { %16858 = vmatpush3.xpose.msk.msra.mxu1 %vm103_vm1, %v18810_v16  ;;  %23869 = vst [vmem:[#allocation46_spill] sm:$0xff] %v19053_v11  ;;  %v1884_v5 = vrot.slane %v18999_v29, %v18483_v15  ;;  %v639_v9 = vmul.f32 %v18922_v13, %v18512_v31  ;;  %v640_v54 = vmul.f32 %v19053_v11, %v18535_v41 }
 0x178   :  { %16879 = vmatpush3.xpose.msk.msra.mxu0 %vm103_vm1, %v18869_v24  ;;  %16869 = vmatprep.subr.msk.mxu1 %vm103_vm1, %v18781_v43  ;;  %v2981_v53 = vcombine.low %v637_v45, %v638_v23  ;;  %v19068_v25 = vpop.permute.xlu0 %564  ;;  %v1761_v29 = vrot.slane %v1753_v4, %v18483_v15  ;;  %v19075_v46 = vmul.f32 %v18598_v17, %v18575_v3 }
 0x179   :  { %2887 = vrot.lane.b32.xlu0 %v2879_v7, %s23715_s0  ;;  %23870 = vst [vmem:[#allocation47_spill] sm:$0xff] %v19068_v25  ;;  %16890 = vmatprep.subr.msk.mxu0 %vm103_vm1, %v18833_v50  ;;  %v19079_v30 = vmul.f32 %v18647_v38, %v18575_v3  ;;  %v23871_v23 = vrot.slane %v18874_v8, %v18483_v15 }
 0x17a   :  { %v2982_v7 = vcombine.low %v639_v9, %v640_v54  ;;  %v1768_v45 = vrot.slane %v1754_v35, %v18483_v15  ;;  %v2077_v42 = vcombine.low %v19037_v61, %v19041_v36  ;;  %v2078_v4 = vcombine.low %v518_v56, %v519_v39  ;;  %v19094_v38 = vpop.permute.xlu1 %554 }
 0x17b   :  { %16860 = vmatmul.mubr.msk.f32.vlgmr.msra.gmra.mxu1 %vm103_vm1, %v23871_v23  ;;  %v23872_v51 = vrot.slane %v18907_v58, %v18483_v15  ;;  %23873 = vst [vmem:[#allocation48_spill] sm:$0xff] %v19094_v38  ;;  %v3121_v8 = vrot.slane %v646_v21, %v18483_v15  ;;  %v651_v54 = vmul.f32 %v19033_v22, %v18531_v40 }
 0x17c   :  { %16870 = vmatpush3.xpose.msk.msra.mxu1 %vm103_vm1, %v18781_v43  ;;  %v19101_v35 = vmul.f32 %v18626_v26, %v18566_v60  ;;  %16873 = vmatprep.mubr.msk.f32.mxu1 %vm103_vm1, %v1521_v28  ;;  %v2996_v43 = vrot.slane %v2982_v7, %v18483_v15  ;;  %v643_v58 = vmul.f32 %v19094_v38, %v18516_v33  ;;  %v19113_v21 = vpop.permute.xlu0 %568  ;;  %v23876_v7 = vld [vmem:[#allocation27_spill] sm:$0xff] }
 0x17d   :  { %16881 = vmatmul.mubr.msk.f32.vlgmr.msra.gmra.mxu0 %vm103_vm1, %v23872_v51  ;;  %v2989_v51 = vrot.slane %v2981_v53, %v18483_v15  ;;  %16871 = vmatprep.subr.msk.mxu1 %vm103_vm1, %v18810_v16  ;;  %23874 = vst [vmem:[#allocation49_spill] sm:$0xff] %v19113_v21  ;;  %v512_v36 = vmul.f32 %v18665_v44, %v18548_v48 }
 0x17e   :  { %16891 = vmatpush3.xpose.msk.msra.mxu0 %vm103_vm1, %v18833_v50  ;;  %16894 = vmatprep.mubr.msk.f32.mxu0 %vm103_vm1, %v1877_v18  ;;  %v513_v56 = vmul.f32 %v18639_v34, %v18570_v63  ;;  %v642_v28 = vmul.f32 %v18963_v37, %v18501_v27  ;;  %v514_v18 = vmul.f32 %v18676_v47, %v18560_v57  ;;  %v19130_v9 = vpop.permute.xlu1 %558 }
 0x17f   :  { %3124 = vrot.lane.b32.xlu0 %v3121_v8, %s23715_s0  ;;  %16892 = vmatprep.subr.msk.mxu0 %vm103_vm1, %v18869_v24  ;;  %v2997_v39 = vcombine.low %v2989_v51, %v2996_v43  ;;  %23875 = vst [vmem:[#allocation50_spill] sm:$0xff] %v19130_v9  ;;  %v2092_v53 = vrot.slane %v2078_v4, %v18483_v15  ;;  %v23877_v51 = vld [vmem:[#allocation33_spill] sm:$0xff] }
 0x180   :  { %16872 = vmatpush3.xpose.msk.msra.mxu1 %vm103_vm1, %v18810_v16  ;;  %v644_v23 = vmul.f32 %v18992_v10, %v18512_v31  ;;  %v528_v8 = vmul.f32 %v23876_v7, %v18570_v63  ;;  %v529_v43 = vmul.f32 %v23877_v51, %v18560_v57  ;;  %v3238_v16 = vrot.slane %v651_v54, %v18483_v15  ;;  %v19149_v7 = vpop.permute.xlu0 %572 }
 0x181   :  { %16883 = vmatprep.subr.msk.mxu1 %vm103_vm1, %v18833_v50  ;;  %v645_v4 = vmul.f32 %v19130_v9, %v18535_v41  ;;  %v3098_v61 = vcombine.low %v642_v28, %v643_v58  ;;  %3005 = vrot.lane.b32.xlu1 %v2997_v39, %s23715_s0  ;;  %23878 = vst [vmem:[#allocation51_spill] sm:$0xff] %v19149_v7 }
 0x182   :  { %16893 = vmatpush3.xpose.msk.msra.mxu0 %vm103_vm1, %v18869_v24  ;;  %v2085_v51 = vrot.slane %v2077_v42, %v18483_v15  ;;  %v526_v32 = vmul.f32 %v18693_v52, %v18566_v60  ;;  %v527_v17 = vmul.f32 %v23879_v19, %v18548_v48  ;;  %v23880_v54 = vrot.slane %v18973_v62, %v18483_v15  ;;  %v19164_v42 = vpop.permute.xlu1 %562 }
 0x183   :  { %16904 = vmatprep.subr.msk.mxu0 %vm103_vm1, %v18833_v50  ;;  %3241 = vrot.lane.b32.xlu0 %v3238_v16, %s23715_s0  ;;  %v1769_v58 = vcombine.low %v1761_v29, %v1768_v45  ;;  %v3099_v39 = vcombine.low %v644_v23, %v645_v4  ;;  %v1970_v28 = vcombine.low %v513_v56, %v514_v18  ;;  %v23883_v56 = vld [vmem:[#allocation30_spill] sm:$0xff]  ;;  %v23886_v16 = vld [vmem:[#allocation28_spill] sm:$0xff] }
 0x184   :  { %16874 = vmatmul.mubr.msk.f32.vlgmr.msra.gmra.mxu1 %vm103_vm1, %v23880_v54  ;;  %23881 = vst [vmem:[#allocation52_spill] sm:$0xff] %v19164_v42  ;;  %v2093_v47 = vcombine.low %v2085_v51, %v2092_v53  ;;  %v1969_v19 = vcombine.low %v19101_v35, %v512_v36  ;;  %v2294_v34 = vcombine.low %v528_v8, %v529_v43  ;;  %v19177_v45 = vpop.permute.xlu0 %576  ;;  %v23885_v51 = vld [vmem:[#allocation21_spill] sm:$0xff] }
 0x185   :  { %16895 = vmatmul.mubr.msk.f32.vlgmr.msra.gmra.mxu0 %vm103_vm1, %v1884_v5  ;;  %16884 = vmatpush3.xpose.msk.msra.mxu1 %vm103_vm1, %v18833_v50  ;;  %v3106_v62 = vrot.slane %v3098_v61, %v18483_v15  ;;  %v3113_v29 = vrot.slane %v3099_v39, %v18483_v15  ;;  %v648_v5 = vmul.f32 %v19164_v42, %v18516_v33 }
 0x186   :  { %16887 = vmatprep.mubr.msk.f32.mxu1 %vm103_vm1, %v1769_v58  ;;  %16905 = vmatpush3.xpose.msk.msra.mxu0 %vm103_vm1, %v18833_v50  ;;  %23882 = vst [vmem:[#allocation53_spill] sm:$0xff] %v19177_v45  ;;  %v2293_v35 = vcombine.low %v526_v32, %v527_v17  ;;  %v523_v36 = vmul.f32 %v18681_v49, %v18570_v63  ;;  %v19192_v17 = vpop.permute.xlu1 %566 }
 0x187   :  { %16908 = vmatprep.mubr.msk.f32.mxu0 %vm103_vm1, %v2093_v47  ;;  %16885 = vmatprep.subr.msk.mxu1 %vm103_vm1, %v18869_v24  ;;  %v524_v18 = vmul.f32 %v23883_v56, %v18560_v57  ;;  %v3114_v61 = vcombine.low %v3106_v62, %v3113_v29  ;;  %v1984_v53 = vrot.slane %v1970_v28, %v18483_v15 }
 0x188   :  { %16906 = vmatprep.subr.msk.mxu0 %vm103_vm1, %v18869_v24  ;;  %v647_v47 = vmul.f32 %v19033_v22, %v18501_v27  ;;  %v515_v23 = vmul.f32 %v18626_v26, %v18575_v3  ;;  %23884 = vst [vmem:[#allocation54_spill] sm:$0xff] %v19192_v17  ;;  %v1977_v32 = vrot.slane %v1969_v19, %v18483_v15 }
 0x189   :  { %16886 = vmatpush3.xpose.msk.msra.mxu1 %vm103_vm1, %v18869_v24  ;;  %v2308_v8 = vrot.slane %v2294_v34, %v18483_v15  ;;  %v521_v43 = vmul.f32 %v23885_v51, %v18566_v60  ;;  %v522_v4 = vmul.f32 %v23886_v16, %v18548_v48  ;;  %v649_v54 = vmul.f32 %v19068_v25, %v18512_v31  ;;  %v19211_v34 = vpop.permute.xlu0 %580 }
 0x18a   :  { %16907 = vmatpush3.xpose.msk.msra.mxu0 %vm103_vm1, %v18869_v24  ;;  %16897 = vmatprep.subr.msk.mxu1 %vm103_vm1, %v18833_v50  ;;  %v650_v19 = vmul.f32 %v19192_v17, %v18535_v41  ;;  %v3215_v58 = vcombine.low %v647_v47, %v648_v5  ;;  %23887 = vst [vmem:[#allocation55_spill] sm:$0xff] %v19211_v34  ;;  %v19223_v47 = vpop.permute.xlu1 %570 }
 0x18b   :  { %3122 = vrot.lane.b32.xlu1 %v3114_v61, %s23715_s0  ;;  %16918 = vmatprep.subr.msk.mxu0 %vm103_vm1, %v18833_v50  ;;  %v2100_v39 = vrot.slane %v19079_v30, %v18483_v15  ;;  %v2301_v28 = vrot.slane %v2293_v35, %v18483_v15  ;;  %v2186_v62 = vcombine.low %v523_v36, %v524_v18 }
 0x18c   :  { %v23888_v29 = vrot.slane %v19075_v46, %v18483_v15  ;;  %v1985_v56 = vcombine.low %v1977_v32, %v1984_v53  ;;  %v3216_v5 = vcombine.low %v649_v54, %v650_v19  ;;  %v530_v61 = vmul.f32 %v18693_v52, %v18575_v3  ;;  %23889 = vst [vmem:[#allocation56_spill] sm:$0xff] %v19223_v47 }
 0x18d   :  { %16909 = vmatmul.mubr.msk.f32.vlgmr.msra.gmra.mxu0 %vm103_vm1, %v2100_v39  ;;  %v2309_v30 = vcombine.low %v2301_v28, %v2308_v8  ;;  %v1992_v35 = vrot.slane %v515_v23, %v18483_v15  ;;  %v2185_v36 = vcombine.low %v521_v43, %v522_v4  ;;  %v3223_v46 = vrot.slane %v3215_v58, %v18483_v15  ;;  %v19238_v32 = vpop.permute.xlu0 %584 }
 0x18e   :  { %16888 = vmatmul.mubr.msk.f32.vlgmr.msra.gmra.mxu1 %vm103_vm1, %v23888_v29  ;;  %16919 = vmatpush3.xpose.msk.msra.mxu0 %vm103_vm1, %v18833_v50  ;;  %v3230_v18 = vrot.slane %v3216_v5, %v18483_v15  ;;  %v653_v53 = vmul.f32 %v19223_v47, %v18516_v33  ;;  %23890 = vst [vmem:[#allocation57_spill] sm:$0xff] %v19238_v32  ;;  %v19253_v58 = vpop.permute.xlu1 %574  ;;  %v23892_v29 = vld [vmem:[#allocation34_spill] sm:$0xff] }
 0x18f   :  { %16898 = vmatpush3.xpose.msk.msra.mxu1 %vm103_vm1, %v18833_v50  ;;  %16901 = vmatprep.mubr.msk.f32.mxu1 %vm103_vm1, %v1985_v56  ;;  %v2200_v23 = vrot.slane %v2186_v62, %v18483_v15  ;;  %v533_v56 = vmul.f32 %v18731_v1, %v18570_v63  ;;  %v534_v8 = vmul.f32 %v18755_v6, %v18560_v57 }
 0x190   :  { %16922 = vmatprep.mubr.msk.f32.mxu0 %vm103_vm1, %v2309_v30  ;;  %16899 = vmatprep.subr.msk.mxu1 %vm103_vm1, %v18869_v24  ;;  %v3231_v43 = vcombine.low %v3223_v46, %v3230_v18  ;;  %v666_v4 = vmul.f32 %v19238_v32, %v18531_v40  ;;  %v656_v54 = vmul.f32 %v19113_v21, %v18531_v40 }
 0x191   :  { %16920 = vmatprep.subr.msk.mxu0 %vm103_vm1, %v18869_v24  ;;  %v652_v19 = vmul.f32 %v19113_v21, %v18501_v27  ;;  %23891 = vst [vmem:[#allocation58_spill] sm:$0xff] %v19253_v58  ;;  %v2193_v39 = vrot.slane %v2185_v36, %v18483_v15  ;;  %v654_v28 = vmul.f32 %v19149_v7, %v18512_v31  ;;  %v19272_v18 = vpop.permute.xlu0 %588 }
 0x192   :  { %v531_v62 = vmul.f32 %v18718_v59, %v18566_v60  ;;  %v532_v5 = vmul.f32 %v23892_v29, %v18548_v48  ;;  %16921 = vmatpush3.xpose.msk.msra.mxu0 %vm103_vm1, %v18869_v24  ;;  %3239 = vrot.lane.b32.xlu1 %v3231_v43, %s23715_s0  ;;  %v3589_v30 = vrot.slane %v666_v4, %v18483_v15  ;;  %v19279_v29 = vpop.permute.xlu1 %578 }
 0x193   :  { %16900 = vmatpush3.xpose.msk.msra.mxu1 %vm103_vm1, %v18869_v24  ;;  %v655_v46 = vmul.f32 %v19253_v58, %v18535_v41  ;;  %v3332_v36 = vcombine.low %v652_v19, %v653_v53  ;;  %23893 = vst [vmem:[#allocation59_spill] sm:$0xff] %v19272_v18  ;;  %v2316_v52 = vrot.slane %v530_v61, %v18483_v15  ;;  %23894 = vst [vmem:[#allocation60_spill] sm:$0xff] %v19279_v29 }
 0x194   :  { %16911 = vmatprep.subr.msk.mxu1 %vm103_vm1, %v18833_v50  ;;  %v2402_v6 = vcombine.low %v533_v56, %v534_v8  ;;  %3592 = vrot.lane.b32.xlu0 %v3589_v30, %s23715_s0  ;;  %v2201_v1 = vcombine.low %v2193_v39, %v2200_v23  ;;  %v3355_v43 = vrot.slane %v656_v54, %v18483_v15 }
 0x195   :  { %v3333_v4 = vcombine.low %v654_v28, %v655_v46  ;;  %16923 = vmatmul.mubr.msk.f32.vlgmr.msra.gmra.mxu0 %vm103_vm1, %v2316_v52  ;;  %v525_v53 = vmul.f32 %v23885_v51, %v18575_v3  ;;  %v2401_v61 = vcombine.low %v531_v62, %v532_v5  ;;  %v658_v52 = vmul.f32 %v19279_v29, %v18516_v33  ;;  %v19293_v56 = vpop.permute.xlu0 %592 }
 0x196   :  { %16902 = vmatmul.mubr.msk.f32.vlgmr.msra.gmra.mxu1 %vm103_vm1, %v1992_v35  ;;  %3358 = vrot.lane.b32.xlu1 %v3355_v43, %s23715_s0  ;;  %v3340_v35 = vrot.slane %v3332_v36, %v18483_v15  ;;  %23895 = vst [vmem:[#allocation61_spill] sm:$0xff] %v19293_v56  ;;  %v2416_v8 = vrot.slane %v2402_v6, %v18483_v15  ;;  %v19302_v28 = vpop.permute.xlu1 %582 }
 0x197   :  { %16912 = vmatpush3.xpose.msk.msra.mxu1 %vm103_vm1, %v18833_v50  ;;  %16915 = vmatprep.mubr.msk.f32.mxu1 %vm103_vm1, %v2201_v1  ;;  %v3347_v23 = vrot.slane %v3333_v4, %v18483_v15  ;;  %v671_v1 = vmul.f32 %v19293_v56, %v18531_v40  ;;  %v661_v19 = vmul.f32 %v19177_v45, %v18531_v40 }
 0x198   :  { %16913 = vmatprep.subr.msk.mxu1 %vm103_vm1, %v18869_v24  ;;  %v657_v39 = vmul.f32 %v19177_v45, %v18501_v27  ;;  %23896 = vst [vmem:[#allocation62_spill] sm:$0xff] %v19302_v28  ;;  %v2208_v62 = vrot.slane %v525_v53, %v18483_v15  ;;  %v2409_v5 = vrot.slane %v2401_v61, %v18483_v15 }
 0x199   :  { %v3348_v54 = vcombine.low %v3340_v35, %v3347_v23  ;;  %v676_v6 = vmul.f32 %v18898_v14, %v18575_v3  ;;  %v659_v30 = vmul.f32 %v19211_v34, %v18512_v31  ;;  %v3706_v40 = vrot.slane %v671_v1, %v18483_v15 }
 0x19a   :  { %v660_v46 = vmul.f32 %v19302_v28, %v18535_v41  ;;  %v3449_v36 = vcombine.low %v657_v39, %v658_v52  ;;  %v2417_v43 = vcombine.low %v2409_v5, %v2416_v8  ;;  %v3472_v4 = vrot.slane %v661_v19, %v18483_v15  ;;  %v19321_v61 = vpop.permute.xlu1 %586 }
 0x19b   :  { %16914 = vmatpush3.xpose.msk.msra.mxu1 %vm103_vm1, %v18869_v24  ;;  %3356 = vrot.lane.b32.xlu1 %v3348_v54, %s23715_s0  ;;  %23897 = vst [vmem:[#allocation63_spill] sm:$0xff] %v19321_v61  ;;  %v3823_v35 = vrot.slane %v676_v6, %v18483_v15  ;;  %v681_v23 = vmul.f32 %v18886_v0, %v18575_v3 }
 0x19c   :  { %16925 = vmatprep.subr.msk.mxu1 %vm103_vm1, %v18833_v50  ;;  %3709 = vrot.lane.b32.xlu0 %v3706_v40, %s23715_s0  ;;  %v3450_v53 = vcombine.low %v659_v30, %v660_v46  ;;  %v535_v52 = vmul.f32 %v18718_v59, %v18575_v3  ;;  %v3457_v8 = vrot.slane %v3449_v36, %v18483_v15 }
 0x19d   :  { %v662_v19 = vmul.f32 %v19238_v32, %v18501_v27  ;;  %v686_v6 = vmul.f32 %v18963_v37, %v18575_v3  ;;  %v664_v30 = vmul.f32 %v19272_v18, %v18512_v31 }
 0x19e   :  { %16916 = vmatmul.mubr.msk.f32.vlgmr.msra.gmra.mxu1 %vm103_vm1, %v2208_v62  ;;  %v3464_v54 = vrot.slane %v3450_v53, %v18483_v15  ;;  %v19341_v39 = vpop.permute.xlu1 %590  ;;  %v3940_v62 = vrot.slane %v681_v23, %v18483_v15  ;;  %v2424_v5 = vrot.slane %v535_v52, %v18483_v15  ;;  %v19365_v52 = vpop.permute.xlu0 %596 }
 0x19f   :  { %16926 = vmatpush3.xpose.msk.msra.mxu1 %vm103_vm1, %v18833_v50  ;;  %16929 = vmatprep.mubr.msk.f32.mxu1 %vm103_vm1, %v2417_v43  ;;  %v663_v50 = vmul.f32 %v19321_v61, %v18516_v33  ;;  %23898 = vst [vmem:[#allocation64_spill] sm:$0xff] %v19341_v39  ;;  %v665_v40 = vmul.f32 %v19341_v39, %v18535_v41  ;;  %23900 = vst [vmem:[#allocation66_spill] sm:$0xff] %v19365_v52 }
 0x1a0   :  { %3475 = vrot.lane.b32.xlu1 %v3472_v4, %s23715_s0  ;;  %16927 = vmatprep.subr.msk.mxu1 %vm103_vm1, %v18869_v24  ;;  %v3465_v1 = vcombine.low %v3457_v8, %v3464_v54  ;;  %v691_v43 = vmul.f32 %v19033_v22, %v18575_v3  ;;  %v4057_v4 = vrot.slane %v686_v6, %v18483_v15 }
 0x1a1   :  { %3826 = vrot.lane.b32.xlu0 %v3823_v35, %s23715_s0  ;;  %v3566_v46 = vcombine.low %v662_v19, %v663_v50  ;;  %v667_v54 = vmul.f32 %v19293_v56, %v18501_v27  ;;  %v675_v50 = vmul.f32 %v18977_v20, %v18560_v57  ;;  %v669_v27 = vmul.f32 %v19365_v52, %v18512_v31 }
 0x1a2   :  { %v19356_v36 = vpop.permute.xlu1 %594  ;;  %v4174_v19 = vrot.slane %v691_v43, %v18483_v15  ;;  %v680_v43 = vmul.f32 %v19053_v11, %v18560_v57  ;;  %v679_v31 = vmul.f32 %v18922_v13, %v18570_v63 }
 0x1a3   :  { %16928 = vmatpush3.xpose.msk.msra.mxu1 %vm103_vm1, %v18869_v24  ;;  %v3567_v24 = vcombine.low %v664_v30, %v665_v40  ;;  %23899 = vst [vmem:[#allocation65_spill] sm:$0xff] %v19356_v36  ;;  %v3574_v53 = vrot.slane %v3566_v46, %v18483_v15  ;;  %v668_v23 = vmul.f32 %v19356_v36, %v18516_v33 }
 0x1a4   :  { %3473 = vrot.lane.b32.xlu1 %v3465_v1, %s23715_s0  ;;  %v674_v33 = vmul.f32 %v18943_v12, %v18570_v63  ;;  %v673_v40 = vmul.f32 %v18846_v55, %v18548_v48 }
 0x1a5   :  { %3943 = vrot.lane.b32.xlu0 %v3940_v62, %s23715_s0  ;;  %v3581_v35 = vrot.slane %v3567_v24, %v18483_v15  ;;  %v672_v62 = vmul.f32 %v18898_v14, %v18566_v60  ;;  %v3683_v30 = vcombine.low %v667_v54, %v668_v23  ;;  %v677_v54 = vmul.f32 %v18886_v0, %v18566_v60 }
 0x1a6   :  { %16930 = vmatmul.mubr.msk.f32.vlgmr.msra.gmra.mxu1 %vm103_vm1, %v2424_v5  ;;  %v19372_v1 = vpop.permute.xlu1 %598  ;;  %v696_v5 = vmul.f32 %v19113_v21, %v18575_v3  ;;  %v3801_v24 = vcombine.low %v674_v33, %v675_v50  ;;  %v685_v33 = vmul.f32 %v19130_v9, %v18560_v57 }
 0x1a7   :  { %v3582_v8 = vcombine.low %v3574_v53, %v3581_v35  ;;  %23901 = vst [vmem:[#allocation67_spill] sm:$0xff] %v19372_v1  ;;  %v670_v6 = vmul.f32 %v19372_v1, %v18535_v41  ;;  %v678_v53 = vmul.f32 %v19019_v2, %v18548_v48  ;;  %v3691_v35 = vrot.slane %v3683_v30, %v18483_v15 }
 0x1a8   :  { %v4291_v41 = vrot.slane %v696_v5, %v18483_v15  ;;  %v683_v30 = vmul.f32 %v19094_v38, %v18548_v48 }
 0x1a9   :  { %4060 = vrot.lane.b32.xlu0 %v4057_v4, %s23715_s0  ;;  %3590 = vrot.lane.b32.xlu1 %v3582_v8, %s23715_s0  ;;  %v3684_v46 = vcombine.low %v669_v27, %v670_v6  ;;  %v3800_v4 = vcombine.low %v672_v62, %v673_v40  ;;  %v701_v8 = vmul.f32 %v19177_v45, %v18575_v3 }
 0x1aa   :  { %v3918_v62 = vcombine.low %v679_v31, %v680_v43  ;;  %v3917_v6 = vcombine.low %v677_v54, %v678_v53  ;;  %v684_v40 = vmul.f32 %v18992_v10, %v18570_v63  ;;  %v690_v31 = vmul.f32 %v19192_v17, %v18560_v57 }
 0x1ab   :  { %v3698_v23 = vrot.slane %v3684_v46, %v18483_v15  ;;  %v3808_v5 = vrot.slane %v3800_v4, %v18483_v15  ;;  %v4408_v27 = vrot.slane %v701_v8, %v18483_v15  ;;  %v682_v46 = vmul.f32 %v18963_v37, %v18566_v60 }
 0x1ac   :  { %v3932_v43 = vrot.slane %v3918_v62, %v18483_v15  ;;  %v4035_v4 = vcombine.low %v684_v40, %v685_v33  ;;  %v3925_v53 = vrot.slane %v3917_v6, %v18483_v15  ;;  %v687_v8 = vmul.f32 %v19033_v22, %v18566_v60 }
 0x1ad   :  { %4177 = vrot.lane.b32.xlu0 %v4174_v19, %s23715_s0  ;;  %v3699_v50 = vcombine.low %v3691_v35, %v3698_v23  ;;  %v3815_v19 = vrot.slane %v3801_v24, %v18483_v15  ;;  %v688_v35 = vmul.f32 %v19164_v42, %v18548_v48  ;;  %v689_v23 = vmul.f32 %v19068_v25, %v18570_v63 }
 0x1ae   :  { %v3933_v54 = vcombine.low %v3925_v53, %v3932_v43  ;;  %v695_v62 = vmul.f32 %v19253_v58, %v18560_v57  ;;  %v694_v6 = vmul.f32 %v19149_v7, %v18570_v63  ;;  %v700_v43 = vmul.f32 %v19302_v28, %v18560_v57 }
 0x1af   :  { %3707 = vrot.lane.b32.xlu1 %v3699_v50, %s23715_s0  ;;  %v3816_v24 = vcombine.low %v3808_v5, %v3815_v19  ;;  %v4049_v50 = vrot.slane %v4035_v4, %v18483_v15  ;;  %v4152_v19 = vcombine.low %v689_v23, %v690_v31  ;;  %v4151_v5 = vcombine.low %v687_v8, %v688_v35 }
 0x1b0   :  { %v698_v53 = vmul.f32 %v19279_v29, %v18548_v48  ;;  %v697_v8 = vmul.f32 %v19177_v45, %v18566_v60  ;;  %v702_v7 = vmul.f32 %v19238_v32, %v18566_v60 }
 0x1b1   :  { %4294 = vrot.lane.b32.xlu0 %v4291_v41, %s23715_s0  ;;  %v4034_v41 = vcombine.low %v682_v46, %v683_v30  ;;  %v692_v30 = vmul.f32 %v19113_v21, %v18566_v60  ;;  %v4166_v46 = vrot.slane %v4152_v19, %v18483_v15  ;;  %v4159_v4 = vrot.slane %v4151_v5, %v18483_v15 }
 0x1b2   :  { %v4385_v19 = vcombine.low %v697_v8, %v698_v53 }
 0x1b3   :  { %3824 = vrot.lane.b32.xlu1 %v3816_v24, %s23715_s0  ;;  %v4042_v33 = vrot.slane %v4034_v41, %v18483_v15  ;;  %v4269_v24 = vcombine.low %v694_v6, %v695_v62  ;;  %v699_v41 = vmul.f32 %v19211_v34, %v18570_v63  ;;  %v4167_v35 = vcombine.low %v4159_v4, %v4166_v46 }
 0x1b4   :  { %v4393_v5 = vrot.slane %v4385_v19, %v18483_v15 }
 0x1b5   :  { %4411 = vrot.lane.b32.xlu0 %v4408_v27, %s23715_s0  ;;  %v693_v27 = vmul.f32 %v19223_v47, %v18548_v48  ;;  %v4050_v40 = vcombine.low %v4042_v33, %v4049_v50  ;;  %v4283_v23 = vrot.slane %v4269_v24, %v18483_v15 }
 0x1b7   :  { %3941 = vrot.lane.b32.xlu1 %v3933_v54, %s23715_s0  ;;  %v4268_v31 = vcombine.low %v692_v30, %v693_v27  ;;  %v4386_v54 = vcombine.low %v699_v41, %v700_v43 }
 0x1b9   :  { %v4276_v50 = vrot.slane %v4268_v31, %v18483_v15  ;;  %v4400_v33 = vrot.slane %v4386_v54, %v18483_v15 }
 0x1bb   :  { %4058 = vrot.lane.b32.xlu1 %v4050_v40, %s23715_s0  ;;  %v4284_v62 = vcombine.low %v4276_v50, %v4283_v23  ;;  %v4401_v27 = vcombine.low %v4393_v5, %v4400_v33 }
 0x1bf   :  { %4175 = vrot.lane.b32.xlu1 %v4167_v35, %s23715_s0 }
 0x1c3   :  { %4292 = vrot.lane.b32.xlu1 %v4284_v62, %s23715_s0 }
 0x1c7   :  { %4409 = vrot.lane.b32.xlu1 %v4401_v27, %s23715_s0 }
 0x1df   :  { %v2890_v6 = vpop.permute.xlu1 %2889 }
 0x1e0   :  { %16932 = vmatprep.subr.msk.mxu0 %vm2898_vm2, %v2890_v6 }
 0x1e1   :  { %16933 = vmatpush3.msk.msra.mxu0 %vm2898_vm2, %v2890_v6 }
 0x1e3   :  { %v19458_v40 = vpop.permute.xlu1 %3007 }
 0x1eb   :  { %v2888_v30 = vpop.permute.xlu0 %2887 }
 0x1ec   :  { %16934 = vmatprep.subr.mxu0 %v2888_v30 }
 0x1ed   :  { %16935 = vmatpush3.msra.mxu0 %v2888_v30 }
 0x1ee   :  { %16939 = vmatprep.subr.msk.mxu0 %vm2898_vm2, %v19458_v40 }
 0x1f1   :  { %v3125_v46 = vpop.permute.xlu0 %3124 }
 0x1f2   :  { %16946 = vmatprep.subr.msk.mxu1 %vm2898_vm2, %v3125_v46 }
 0x1f3   :  { %16947 = vmatpush3.msk.msra.mxu1 %vm2898_vm2, %v3125_v46  ;;  %v19464_v24 = vpop.permute.xlu1 %3005 }
 0x1fd   :  { %v3123_v43 = vpop.permute.xlu1 %3122 }
 0x1fe   :  { %16948 = vmatprep.subr.mxu1 %v3123_v43 }
 0x1ff   :  { %16949 = vmatpush3.msra.mxu1 %v3123_v43 }
 0x204   :  { %v19466_v4 = vpop.permute.xlu1 %3239 }
 0x205   :  { %23902 = vst [vmem:[#allocation68_spill] sm:$0xff] %v19466_v4 }
 0x208   :  { %v19468_v31 = vpop.permute.xlu1 %3358 }
 0x209   :  { %16960 = vmatprep.subr.msk.mxu1 %vm2898_vm2, %v19468_v31 }
 0x20d   :  { %v19608_v20 = vpop.permute.xlu1 %3356 }
 0x212   :  { %v19614_v55 = vpop.permute.xlu1 %3475 }
 0x213   :  { %23903 = vst [vmem:[#allocation69_spill] sm:$0xff] %v19614_v55 }
 0x221   :  { %v19472_v53 = vpop.f32.mrf.mxu1  ;;  %v19474_v41 = vpop.f32.mrf.mxu0 }
 0x222   :  { %v2509_v35 = vsel %vm2508_vm3, %v19472_v53, -inf  ;;  %v2521_v23 = vsel %vm2508_vm3, %v19474_v41, -inf }
 0x223   :  { %2510 = vmax.xlane.f32.xlu1 %v2509_v35  ;;  %v19480_v8 = vpop.f32.mrf.mxu1  ;;  %2522 = vmax.xlane.f32.xlu0 %v2521_v23  ;;  %v19482_v54 = vpop.f32.mrf.mxu0 }
 0x224   :  { %v2518_v50 = vsel %vm2504_vm4, %v19482_v54, -inf  ;;  %v2505_v19 = vsel %vm2504_vm4, %v19480_v8, -inf }
 0x227   :  { %2519 = vmax.xlane.f32.xlu1 %v2518_v50  ;;  %2506 = vmax.xlane.f32.xlu0 %v2505_v19 }
 0x229   :  { %v19488_v62 = vpop.f32.mrf.mxu1 }
 0x22a   :  { %v19490_v33 = vpop.f32.mrf.mxu0  ;;  %v2515_v5 = vsel %vm2508_vm3, %v19488_v62, -inf }
 0x22b   :  { %2516 = vmax.xlane.f32.xlu0 %v2515_v5  ;;  %v19498_v30 = vpop.f32.mrf.mxu1  ;;  %v2533_v46 = vsel %vm2508_vm3, %v19490_v33, -inf }
 0x22c   :  { %v19494_v27 = vpop.f32.mrf.mxu0  ;;  %v2512_v50 = vsel %vm2504_vm4, %v19498_v30, -inf }
 0x22d   :  { %v2530_v6 = vsel %vm2504_vm4, %v19494_v27, -inf }
 0x22e   :  { %2531 = vmax.xlane.f32.xlu1 %v2530_v6 }
 0x22f   :  { %2534 = vmax.xlane.f32.xlu0 %v2533_v46 }
 0x232   :  { %v19502_v43 = vpop.f32.mrf.mxu1  ;;  %v19504_v35 = vpop.f32.mrf.mxu0 }
 0x233   :  { %2513 = vmax.xlane.f32.xlu0 %v2512_v50  ;;  %v2527_v6 = vsel %vm2508_vm3, %v19502_v43, -inf  ;;  %v2545_v50 = vsel %vm2508_vm3, %v19504_v35, -inf }
 0x234   :  { %v19506_v23 = vpop.f32.mrf.mxu1  ;;  %v19512_v5 = vpop.f32.mrf.mxu0 }
 0x235   :  { %v2524_v19 = vsel %vm2504_vm4, %v19506_v23, -inf  ;;  %v2542_v46 = vsel %vm2504_vm4, %v19512_v5, -inf }
 0x236   :  { %2525 = vmax.xlane.f32.xlu1 %v2524_v19 }
 0x237   :  { %2528 = vmax.xlane.f32.xlu0 %v2527_v6 }
 0x23a   :  { %2543 = vmax.xlane.f32.xlu1 %v2542_v46 }
 0x23b   :  { %v19518_v0 = vpop.f32.mrf.mxu1  ;;  %2546 = vmax.xlane.f32.xlu0 %v2545_v50 }
 0x23c   :  { %v2539_v6 = vsel %vm2508_vm3, %v19518_v0, -inf }
 0x23d   :  { %v19520_v25 = vpop.f32.mrf.mxu0  ;;  %v19522_v42 = vpop.f32.mrf.mxu1 }
 0x23e   :  { %v2536_v19 = vsel %vm2504_vm4, %v19522_v42, -inf  ;;  %v2557_v50 = vsel %vm2508_vm3, %v19520_v25, -inf }
 0x23f   :  { %v19528_v10 = vpop.f32.mrf.mxu0  ;;  %2537 = vmax.xlane.f32.xlu1 %v2536_v19  ;;  %2540 = vmax.xlane.f32.xlu0 %v2539_v6 }
 0x240   :  { %v2554_v46 = vsel %vm2504_vm4, %v19528_v10, -inf }
 0x243   :  { %2555 = vmax.xlane.f32.xlu1 %v2554_v46  ;;  %2558 = vmax.xlane.f32.xlu0 %v2557_v50 }
 0x244   :  { %v19534_v38 = vpop.f32.mrf.mxu1 }
 0x245   :  { %v19536_v17 = vpop.f32.mrf.mxu0  ;;  %v2551_v6 = vsel %vm2508_vm3, %v19534_v38, -inf }
 0x246   :  { %v19538_v9 = vpop.f32.mrf.mxu1  ;;  %v2569_v50 = vsel %vm2508_vm3, %v19536_v17, -inf }
 0x247   :  { %v2548_v19 = vsel %vm2504_vm4, %v19538_v9, -inf  ;;  %v19544_v11 = vpop.f32.mrf.mxu0  ;;  %2552 = vmax.xlane.f32.xlu0 %v2551_v6 }
 0x248   :  { %2549 = vmax.xlane.f32.xlu1 %v2548_v19  ;;  %v2566_v46 = vsel %vm2504_vm4, %v19544_v11, -inf }
 0x24b   :  { %2570 = vmax.xlane.f32.xlu0 %v2569_v50 }
 0x24c   :  { %2567 = vmax.xlane.f32.xlu1 %v2566_v46 }
 0x24d   :  { %v19552_v2 = vpop.f32.mrf.mxu0 }
 0x24e   :  { %v19550_v13 = vpop.f32.mrf.mxu1  ;;  %v2581_v50 = vsel %vm2508_vm3, %v19552_v2, -inf }
 0x24f   :  { %v19560_v37 = vpop.f32.mrf.mxu0  ;;  %v2563_v6 = vsel %vm2508_vm3, %v19550_v13, -inf }
 0x250   :  { %v19554_v22 = vpop.f32.mrf.mxu1  ;;  %2564 = vmax.xlane.f32.xlu0 %v2563_v6  ;;  %v2578_v46 = vsel %vm2504_vm4, %v19560_v37, -inf }
 0x251   :  { %v2560_v19 = vsel %vm2504_vm4, %v19554_v22, -inf }
 0x252   :  { %2561 = vmax.xlane.f32.xlu1 %v2560_v19 }
 0x254   :  { %2582 = vmax.xlane.f32.xlu0 %v2581_v50 }
 0x255   :  { %v19568_v49 = vpop.f32.mrf.mxu0 }
 0x256   :  { %v19566_v59 = vpop.f32.mrf.mxu1  ;;  %2579 = vmax.xlane.f32.xlu1 %v2578_v46  ;;  %v2593_v50 = vsel %vm2508_vm3, %v19568_v49, -inf }
 0x257   :  { %v19576_v51 = vpop.f32.mrf.mxu0  ;;  %v2575_v6 = vsel %vm2508_vm3, %v19566_v59, -inf }
 0x258   :  { %v19570_v16 = vpop.f32.mrf.mxu1  ;;  %2576 = vmax.xlane.f32.xlu0 %v2575_v6  ;;  %v2590_v46 = vsel %vm2504_vm4, %v19576_v51, -inf }
 0x259   :  { %v2572_v19 = vsel %vm2504_vm4, %v19570_v16, -inf }
 0x25a   :  { %2573 = vmax.xlane.f32.xlu1 %v2572_v19 }
 0x25c   :  { %2594 = vmax.xlane.f32.xlu0 %v2593_v50  ;;  %v705_v50 = vmul.f32 %v19341_v39, %v18560_v57  ;;  %v706_v39 = vmul.f32 %v19238_v32, %v18575_v3 }
 0x25e   :  { %v19582_v28 = vpop.f32.mrf.mxu1  ;;  %2591 = vmax.xlane.f32.xlu1 %v2590_v46 }
 0x25f   :  { %v2587_v19 = vsel %vm2508_vm3, %v19582_v28, -inf }
 0x260   :  { %v19584_v34 = vpop.f32.mrf.mxu1  ;;  %2588 = vmax.xlane.f32.xlu0 %v2587_v19  ;;  %v704_v19 = vmul.f32 %v19272_v18, %v18570_v63  ;;  %v4525_v18 = vrot.slane %v706_v39, %v18483_v15 }
 0x261   :  { %v2584_v29 = vsel %vm2504_vm4, %v19584_v34, -inf }
 0x262   :  { %2585 = vmax.xlane.f32.xlu1 %v2584_v29  ;;  %v703_v29 = vmul.f32 %v19321_v61, %v18548_v48  ;;  %v4503_v47 = vcombine.low %v704_v19, %v705_v50  ;;  %v19619_v50 = vpop.permute.xlu1 %3473 }
 0x263   :  { %23904 = vst [vmem:[#allocation70_spill] sm:$0xff] %v19619_v50 }
 0x264   :  { %v4502_v21 = vcombine.low %v702_v7, %v703_v29  ;;  %v19621_v7 = vpop.permute.xlu0 %3241 }
 0x266   :  { %v19592_v6 = vpop.f32.mrf.mxu1  ;;  %v19623_v29 = vpop.permute.xlu1 %3590 }
 0x267   :  { %v2599_v45 = vsel %vm2508_vm3, %v19592_v6, -inf }
 0x268   :  { %v19596_v46 = vpop.f32.mrf.mxu1  ;;  %2600 = vmax.xlane.f32.xlu0 %v2599_v45  ;;  %v4517_v45 = vrot.slane %v4503_v47, %v18483_v15  ;;  %v19625_v47 = vpop.permute.xlu0 %3592 }
 0x269   :  { %v2596_v58 = vsel %vm2504_vm4, %v19596_v46, -inf }
 0x26a   :  { %2597 = vmax.xlane.f32.xlu1 %v2596_v58  ;;  %v4510_v58 = vrot.slane %v4502_v21, %v18483_v15  ;;  %v19627_v21 = vpop.permute.xlu1 %3707 }
 0x26b   :  { %23905 = vst [vmem:[#allocation71_spill] sm:$0xff] %v19627_v21 }
 0x26c   :  { %v4518_v12 = vcombine.low %v4510_v58, %v4517_v45  ;;  %v19629_v19 = vpop.permute.xlu0 %3709 }
 0x26d   :  { %23906 = vst [vmem:[#allocation72_spill] sm:$0xff] %v19629_v19 }
 0x26e   :  { %v19631_v45 = vpop.permute.xlu1 %3824 }
 0x26f   :  { %23907 = vst [vmem:[#allocation73_spill] sm:$0xff] %v19631_v45 }
 0x270   :  { %v19633_v58 = vpop.permute.xlu0 %3826 }
 0x274   :  { %v19637_v39 = vpop.permute.xlu0 %3943 }
 0x275   :  { %23909 = vst [vmem:[#allocation75_spill] sm:$0xff] %v19637_v39 }
 0x278   :  { %v19641_v61 = vpop.permute.xlu0 %4060 }
 0x279   :  { %23911 = vst [vmem:[#allocation77_spill] sm:$0xff] %v19641_v61 }
 0x27b   :  { %4526 = vrot.lane.b32.xlu1 %v4518_v12, %s23715_s0  ;;  %v19635_v12 = vpop.permute.xlu1 %3941 }
 0x27c   :  { %23908 = vst [vmem:[#allocation74_spill] sm:$0xff] %v19635_v12  ;;  %v19645_v14 = vpop.permute.xlu0 %4177 }
 0x27d   :  { %23913 = vst [vmem:[#allocation79_spill] sm:$0xff] %v19645_v14 }
 0x27e   :  { %4528 = vrot.lane.b32.xlu0 %v4525_v18, %s23715_s0 }
 0x27f   :  { %v19639_v18 = vpop.permute.xlu1 %4058 }
 0x280   :  { %23910 = vst [vmem:[#allocation76_spill] sm:$0xff] %v19639_v18  ;;  %v19649_v26 = vpop.permute.xlu0 %4294 }
 0x281   :  { %23915 = vst [vmem:[#allocation81_spill] sm:$0xff] %v19649_v26 }
 0x283   :  { %v19643_v32 = vpop.permute.xlu1 %4175 }
 0x284   :  { %23912 = vst [vmem:[#allocation78_spill] sm:$0xff] %v19643_v32  ;;  %v19653_v45 = vpop.permute.xlu0 %4411 }
 0x285   :  { %23917 = vst [vmem:[#allocation83_spill] sm:$0xff] %v19653_v45 }
 0x287   :  { %v19647_v44 = vpop.permute.xlu1 %4292 }
 0x288   :  { %23914 = vst [vmem:[#allocation80_spill] sm:$0xff] %v19647_v44 }
 0x28b   :  { %v19651_v21 = vpop.permute.xlu1 %4409 }
 0x28c   :  { %23916 = vst [vmem:[#allocation82_spill] sm:$0xff] %v19651_v21 }
 0x2ac   :  { %v2511_v19 = vpop.xlane.xlu1 %2510  ;;  %v2523_v39 = vpop.xlane.xlu0 %2522 }
 0x2ad   :  { %v2603_v12 = vsub.f32 %v19472_v53, %v2511_v19  ;;  %v2607_v18 = vsub.f32 %v19474_v41, %v2523_v39 }
 0x2af   :  { %v2636_v50 = vmul.f32 1.442695, %v2603_v12  ;;  %v2644_v61 = vmul.f32 1.442695, %v2607_v18 }
 0x2b0   :  { %v2520_v55 = vpop.xlane.xlu1 %2519  ;;  %v2507_v32 = vpop.xlane.xlu0 %2506 }
 0x2b1   :  { %17845 = vpow2.f32 %v2636_v50  ;;  %v2606_v14 = vsub.f32 %v19482_v54, %v2520_v55  ;;  %v2602_v44 = vsub.f32 %v19480_v8, %v2507_v32 }
 0x2b2   :  { %17847 = vpow2.f32 %v2644_v61 }
 0x2b3   :  { %v2642_v26 = vmul.f32 1.442695, %v2606_v14  ;;  %v2634_v21 = vmul.f32 1.442695, %v2602_v44 }
 0x2b4   :  { %v2517_v45 = vpop.xlane.xlu0 %2516 }
 0x2b5   :  { %17849 = vpow2.f32 %v2642_v26  ;;  %v2605_v53 = vsub.f32 %v19488_v62, %v2517_v45 }
 0x2b6   :  { %17851 = vpow2.f32 %v2634_v21 }
 0x2b7   :  { %v2532_v19 = vpop.xlane.xlu1 %2531  ;;  %v2640_v4 = vmul.f32 1.442695, %v2605_v53 }
 0x2b8   :  { %v2610_v41 = vsub.f32 %v19494_v27, %v2532_v19  ;;  %v2535_v12 = vpop.xlane.xlu0 %2534 }
 0x2b9   :  { %17853 = vpow2.f32 %v2640_v4  ;;  %v2611_v39 = vsub.f32 %v19490_v33, %v2535_v12 }
 0x2ba   :  { %v2650_v50 = vmul.f32 1.442695, %v2610_v41 }
 0x2bb   :  { %v2652_v55 = vmul.f32 1.442695, %v2611_v39 }
 0x2bc   :  { %17855 = vpow2.f32 %v2650_v50  ;;  %v2514_v61 = vpop.xlane.xlu0 %2513 }
 0x2bd   :  { %17857 = vpow2.f32 %v2652_v55  ;;  %v2604_v26 = vsub.f32 %v19498_v30, %v2514_v61 }
 0x2be   :  { %v19662_v32 = vpop.eup %17845 }
 0x2bf   :  { %v2526_v44 = vpop.xlane.xlu1 %2525  ;;  %v19665_v14 = vpop.eup %17847  ;;  %v2701_v54 = vsel %vm2508_vm3, %v19662_v32, 0.0  ;;  %v2638_v4 = vmul.f32 1.442695, %v2604_v26 }
 0x2c0   :  { %v2608_v8 = vsub.f32 %v19506_v23, %v2526_v44  ;;  %v2713_v62 = vsel %vm2508_vm3, %v19665_v14, 0.0  ;;  %2702 = vadd.xlane.f32.xlu1 %v2701_v54  ;;  %v2529_v27 = vpop.xlane.xlu0 %2528 }
 0x2c1   :  { %2714 = vadd.xlane.f32.xlu0 %v2713_v62  ;;  %17859 = vpow2.f32 %v2638_v4  ;;  %v2609_v30 = vsub.f32 %v19502_v43, %v2529_v27 }
 0x2c2   :  { %v2646_v33 = vmul.f32 1.442695, %v2608_v8  ;;  %v19672_v21 = vpop.eup %17849 }
 0x2c3   :  { %v2544_v45 = vpop.xlane.xlu1 %2543  ;;  %v19675_v18 = vpop.eup %17851  ;;  %v2710_v53 = vsel %vm2504_vm4, %v19672_v21, 0.0  ;;  %v2648_v19 = vmul.f32 1.442695, %v2609_v30 }
 0x2c4   :  { %17861 = vpow2.f32 %v2646_v33  ;;  %v2614_v23 = vsub.f32 %v19512_v5, %v2544_v45  ;;  %v2698_v41 = vsel %vm2504_vm4, %v19675_v18, 0.0  ;;  %2711 = vadd.xlane.f32.xlu1 %v2710_v53  ;;  %v2547_v50 = vpop.xlane.xlu0 %2546 }
 0x2c5   :  { %2699 = vadd.xlane.f32.xlu0 %v2698_v41  ;;  %17863 = vpow2.f32 %v2648_v19  ;;  %v2615_v43 = vsub.f32 %v19504_v35, %v2547_v50 }
 0x2c6   :  { %v2658_v12 = vmul.f32 1.442695, %v2614_v23  ;;  %v19683_v55 = vpop.eup %17853 }
 0x2c7   :  { %v2660_v61 = vmul.f32 1.442695, %v2615_v43  ;;  %v2707_v26 = vsel %vm2508_vm3, %v19683_v55, 0.0 }
 0x2c8   :  { %v2538_v39 = vpop.xlane.xlu1 %2537  ;;  %17865 = vpow2.f32 %v2658_v12  ;;  %v2541_v54 = vpop.xlane.xlu0 %2540 }
 0x2c9   :  { %v2612_v5 = vsub.f32 %v19522_v42, %v2538_v39  ;;  %v19688_v44 = vpop.eup %17855  ;;  %2708 = vadd.xlane.f32.xlu0 %v2707_v26  ;;  %17867 = vpow2.f32 %v2660_v61  ;;  %v2613_v4 = vsub.f32 %v19518_v0, %v2541_v54 }
 0x2ca   :  { %v2722_v35 = vsel %vm2504_vm4, %v19688_v44, 0.0  ;;  %v19693_v33 = vpop.eup %17857 }
 0x2cb   :  { %v2654_v8 = vmul.f32 1.442695, %v2612_v5  ;;  %2723 = vadd.xlane.f32.xlu1 %v2722_v35  ;;  %v2656_v27 = vmul.f32 1.442695, %v2613_v4  ;;  %v2725_v30 = vsel %vm2508_vm3, %v19693_v33, 0.0 }
 0x2cc   :  { %v2556_v62 = vpop.xlane.xlu1 %2555  ;;  %v2559_v23 = vpop.xlane.xlu0 %2558 }
 0x2cd   :  { %17869 = vpow2.f32 %v2654_v8  ;;  %v2618_v42 = vsub.f32 %v19528_v10, %v2556_v62  ;;  %2726 = vadd.xlane.f32.xlu0 %v2725_v30  ;;  %v2619_v0 = vsub.f32 %v19520_v25, %v2559_v23 }
 0x2ce   :  { %17871 = vpow2.f32 %v2656_v27  ;;  %v19699_v19 = vpop.eup %17859 }
 0x2cf   :  { %v2666_v45 = vmul.f32 1.442695, %v2618_v42  ;;  %v2668_v10 = vmul.f32 1.442695, %v2619_v0  ;;  %v2704_v50 = vsel %vm2504_vm4, %v19699_v19, 0.0 }
 0x2d0   :  { %v2553_v39 = vpop.xlane.xlu0 %2552 }
 0x2d1   :  { %v2550_v53 = vpop.xlane.xlu1 %2549  ;;  %17873 = vpow2.f32 %v2666_v45  ;;  %v19702_v12 = vpop.eup %17861  ;;  %2705 = vadd.xlane.f32.xlu0 %v2704_v50  ;;  %v2617_v25 = vsub.f32 %v19534_v38, %v2553_v39 }
 0x2d2   :  { %v2616_v41 = vsub.f32 %v19538_v9, %v2550_v53  ;;  %v2716_v5 = vsel %vm2504_vm4, %v19702_v12, 0.0  ;;  %17875 = vpow2.f32 %v2668_v10  ;;  %v19709_v26 = vpop.eup %17863 }
 0x2d3   :  { %2717 = vadd.xlane.f32.xlu1 %v2716_v5  ;;  %v2664_v54 = vmul.f32 1.442695, %v2617_v25  ;;  %v2719_v4 = vsel %vm2508_vm3, %v19709_v26, 0.0 }
 0x2d4   :  { %v2662_v43 = vmul.f32 1.442695, %v2616_v41  ;;  %v2571_v35 = vpop.xlane.xlu0 %2570 }
 0x2d5   :  { %v2568_v61 = vpop.xlane.xlu1 %2567  ;;  %v19712_v8 = vpop.eup %17865  ;;  %2720 = vadd.xlane.f32.xlu0 %v2719_v4  ;;  %v2623_v38 = vsub.f32 %v19536_v17, %v2571_v35 }
 0x2d6   :  { %17877 = vpow2.f32 %v2662_v43  ;;  %v2622_v9 = vsub.f32 %v19544_v11, %v2568_v61  ;;  %v2734_v42 = vsel %vm2504_vm4, %v19712_v8, 0.0  ;;  %v19719_v30 = vpop.eup %17867 }
 0x2d7   :  { %17879 = vpow2.f32 %v2664_v54  ;;  %2735 = vadd.xlane.f32.xlu1 %v2734_v42  ;;  %v2676_v23 = vmul.f32 1.442695, %v2623_v38  ;;  %v2737_v0 = vsel %vm2508_vm3, %v19719_v30, 0.0 }
 0x2d8   :  { %v2674_v62 = vmul.f32 1.442695, %v2622_v9 }
 0x2d9   :  { %v2565_v41 = vpop.xlane.xlu0 %2564  ;;  %2738 = vadd.xlane.f32.xlu0 %v2737_v0 }
 0x2da   :  { %17881 = vpow2.f32 %v2674_v62  ;;  %v19722_v45 = vpop.eup %17869  ;;  %v2621_v17 = vsub.f32 %v19550_v13, %v2565_v41 }
 0x2db   :  { %v2562_v27 = vpop.xlane.xlu1 %2561  ;;  %v2728_v10 = vsel %vm2504_vm4, %v19722_v45, 0.0  ;;  %17883 = vpow2.f32 %v2676_v23  ;;  %v19729_v43 = vpop.eup %17871 }
 0x2dc   :  { %v2620_v11 = vsub.f32 %v19554_v22, %v2562_v27  ;;  %2729 = vadd.xlane.f32.xlu1 %v2728_v10  ;;  %v2672_v39 = vmul.f32 1.442695, %v2621_v17  ;;  %v2731_v25 = vsel %vm2508_vm3, %v19729_v43, 0.0 }
 0x2dd   :  { %v2583_v61 = vpop.xlane.xlu0 %2582  ;;  %2732 = vadd.xlane.f32.xlu0 %v2731_v25 }
 0x2de   :  { %v2670_v53 = vmul.f32 1.442695, %v2620_v11  ;;  %v19731_v22 = vpop.eup %17873  ;;  %v2627_v13 = vsub.f32 %v19552_v2, %v2583_v61 }
 0x2df   :  { %v2580_v50 = vpop.xlane.xlu1 %2579  ;;  %v2746_v9 = vsel %vm2504_vm4, %v19731_v22, 0.0  ;;  %v19739_v4 = vpop.eup %17875 }
 0x2e0   :  { %17885 = vpow2.f32 %v2670_v53  ;;  %v2626_v5 = vsub.f32 %v19560_v37, %v2580_v50  ;;  %2747 = vadd.xlane.f32.xlu1 %v2746_v9  ;;  %v2684_v42 = vmul.f32 1.442695, %v2627_v13  ;;  %v2749_v38 = vsel %vm2508_vm3, %v19739_v4, 0.0 }
 0x2e1   :  { %17887 = vpow2.f32 %v2672_v39  ;;  %v2577_v11 = vpop.xlane.xlu0 %2576  ;;  %2750 = vadd.xlane.f32.xlu0 %v2749_v38 }
 0x2e2   :  { %v2682_v37 = vmul.f32 1.442695, %v2626_v5  ;;  %17889 = vpow2.f32 %v2684_v42  ;;  %v2625_v2 = vsub.f32 %v19566_v59, %v2577_v11 }
 0x2e3   :  { %v2574_v54 = vpop.xlane.xlu1 %2573  ;;  %v19742_v35 = vpop.eup %17877 }
 0x2e4   :  { %v2624_v62 = vsub.f32 %v19570_v16, %v2574_v54  ;;  %v2740_v23 = vsel %vm2504_vm4, %v19742_v35, 0.0  ;;  %v19749_v53 = vpop.eup %17879  ;;  %v2680_v41 = vmul.f32 1.442695, %v2625_v2 }
 0x2e5   :  { %2741 = vadd.xlane.f32.xlu1 %v2740_v23  ;;  %v2743_v10 = vsel %vm2508_vm3, %v19749_v53, 0.0  ;;  %v2595_v17 = vpop.xlane.xlu0 %2594 }
 0x2e6   :  { %v2678_v27 = vmul.f32 1.442695, %v2624_v62  ;;  %2744 = vadd.xlane.f32.xlu0 %v2743_v10  ;;  %v2631_v39 = vsub.f32 %v19568_v49, %v2595_v17 }
 0x2e7   :  { %v2592_v0 = vpop.xlane.xlu1 %2591  ;;  %v19751_v16 = vpop.eup %17881 }
 0x2e8   :  { %17891 = vpow2.f32 %v2678_v27  ;;  %v2758_v50 = vsel %vm2504_vm4, %v19751_v16, 0.0  ;;  %v19758_v5 = vpop.eup %17883  ;;  %v2630_v9 = vsub.f32 %v19576_v51, %v2592_v0  ;;  %v2692_v13 = vmul.f32 1.442695, %v2631_v39 }
 0x2e9   :  { %17893 = vpow2.f32 %v2682_v37  ;;  %2759 = vadd.xlane.f32.xlu1 %v2758_v50  ;;  %v2761_v54 = vsel %vm2508_vm3, %v19758_v5, 0.0  ;;  %v2589_v37 = vpop.xlane.xlu0 %2588 }
 0x2ea   :  { %17895 = vpow2.f32 %v2680_v41  ;;  %2762 = vadd.xlane.f32.xlu0 %v2761_v54  ;;  %v2629_v38 = vsub.f32 %v19582_v28, %v2589_v37 }
 0x2eb   :  { %v2586_v59 = vpop.xlane.xlu1 %2585 }
 0x2ec   :  { %v2628_v25 = vsub.f32 %v19584_v34, %v2586_v59  ;;  %v2690_v34 = vmul.f32 1.442695, %v2630_v9  ;;  %v2688_v41 = vmul.f32 1.442695, %v2629_v38 }
 0x2ed   :  { %v19761_v61 = vpop.eup %17885 }
 0x2ee   :  { %v2686_v62 = vmul.f32 1.442695, %v2628_v25  ;;  %v2752_v49 = vsel %vm2504_vm4, %v19761_v61, 0.0  ;;  %v19768_v42 = vpop.eup %17887 }
 0x2ef   :  { %2753 = vadd.xlane.f32.xlu1 %v2752_v49  ;;  %v2755_v51 = vsel %vm2508_vm3, %v19768_v42, 0.0  ;;  %v19773_v23 = vpop.eup %17889 }
 0x2f0   :  { %17897 = vpow2.f32 %v2686_v62  ;;  %2756 = vadd.xlane.f32.xlu0 %v2755_v51  ;;  %v2773_v17 = vsel %vm2508_vm3, %v19773_v23, 0.0 }
 0x2f1   :  { %17899 = vpow2.f32 %v2692_v13  ;;  %v2601_v27 = vpop.xlane.xlu0 %2600 }
 0x2f2   :  { %17901 = vpow2.f32 %v2690_v34  ;;  %v2633_v10 = vsub.f32 %v19592_v6, %v2601_v27 }
 0x2f3   :  { %v2598_v11 = vpop.xlane.xlu1 %2597 }
 0x2f4   :  { %v2632_v2 = vsub.f32 %v19596_v46, %v2598_v11  ;;  %2774 = vadd.xlane.f32.xlu0 %v2773_v17  ;;  %v2696_v46 = vmul.f32 1.442695, %v2633_v10  ;;  %v709_v10 = vmul.f32 %v19365_v52, %v18570_v63 }
 0x2f5   :  { %v19776_v0 = vpop.eup %17891 }
 0x2f6   :  { %v19781_v28 = vpop.eup %17893  ;;  %v2694_v50 = vmul.f32 1.442695, %v2632_v2  ;;  %v2764_v39 = vsel %vm2504_vm4, %v19776_v0, 0.0  ;;  %v710_v2 = vmul.f32 %v19372_v1, %v18560_v57 }
 0x2f7   :  { %2765 = vadd.xlane.f32.xlu1 %v2764_v39  ;;  %v2770_v59 = vsel %vm2504_vm4, %v19781_v28, 0.0  ;;  %v19787_v25 = vpop.eup %17895 }
 0x2f8   :  { %17903 = vpow2.f32 %v2694_v50  ;;  %2771 = vadd.xlane.f32.xlu0 %v2770_v59  ;;  %v2767_v9 = vsel %vm2508_vm3, %v19787_v25, 0.0  ;;  %v707_v50 = vmul.f32 %v19293_v56, %v18566_v60  ;;  %v4620_v39 = vcombine.low %v709_v10, %v710_v2 }
 0x2f9   :  { %17905 = vpow2.f32 %v2688_v41  ;;  %v708_v41 = vmul.f32 %v19356_v36, %v18548_v48  ;;  %v711_v48 = vmul.f32 %v19293_v56, %v18575_v3 }
 0x2fa   :  { %17907 = vpow2.f32 %v2696_v46  ;;  %v4634_v59 = vrot.slane %v4620_v39, %v18483_v15 }
 0x2fb   :  { %v4619_v46 = vcombine.low %v707_v50, %v708_v41  ;;  %v4642_v63 = vrot.slane %v711_v48, %v18483_v15 }
 0x2fc   :  { %2768 = vadd.xlane.f32.xlu0 %v2767_v9 }
 0x2fd   :  { %v19789_v6 = vpop.eup %17897  ;;  %v4627_v9 = vrot.slane %v4619_v46, %v18483_v15 }
 0x2fe   :  { %v19793_v13 = vpop.eup %17899  ;;  %v2776_v54 = vsel %vm2504_vm4, %v19789_v6, 0.0 }
 0x2ff   :  { %2777 = vadd.xlane.f32.xlu1 %v2776_v54  ;;  %v2785_v62 = vsel %vm2508_vm3, %v19793_v13, 0.0  ;;  %v19799_v37 = vpop.eup %17901  ;;  %v4635_v57 = vcombine.low %v4627_v9, %v4634_v59  ;;  %v19830_v54 = vpop.permute.xlu1 %4526 }
 0x300   :  { %2786 = vadd.xlane.f32.xlu0 %v2785_v62  ;;  %v2782_v34 = vsel %vm2504_vm4, %v19799_v37, 0.0  ;;  %v19832_v62 = vpop.permute.xlu0 %4528 }
 0x304   :  { %2783 = vadd.xlane.f32.xlu0 %v2782_v34 }
 0x305   :  { %v19801_v49 = vpop.eup %17903 }
 0x306   :  { %v19805_v38 = vpop.eup %17905  ;;  %v2788_v51 = vsel %vm2504_vm4, %v19801_v49, 0.0 }
 0x307   :  { %2789 = vadd.xlane.f32.xlu1 %v2788_v51  ;;  %v2779_v27 = vsel %vm2508_vm3, %v19805_v38, 0.0  ;;  %v19811_v11 = vpop.eup %17907 }
 0x308   :  { %2780 = vadd.xlane.f32.xlu0 %v2779_v27  ;;  %v2791_v17 = vsel %vm2508_vm3, %v19811_v11, 0.0 }
 0x30c   :  { %2792 = vadd.xlane.f32.xlu0 %v2791_v17 }
 0x318   :  { %4643 = vrot.lane.b32.xlu1 %v4635_v57, %s23715_s0 }
 0x322   :  { %4645 = vrot.lane.b32.xlu0 %v4642_v63, %s23715_s0  ;;  %s23955_s0 = smov 96  }
 0x349   :  { %v2703_v60 = vpop.xlane.xlu1 %2702 }
 0x34a   :  { %v2715_v34 = vpop.xlane.xlu0 %2714  ;;  %17909 = vrcp.f32 %v2703_v60 }
 0x34b   :  { %17911 = vrcp.f32 %v2715_v34 }
 0x34d   :  { %v2712_v51 = vpop.xlane.xlu1 %2711 }
 0x34e   :  { %v2700_v27 = vpop.xlane.xlu0 %2699  ;;  %17913 = vrcp.f32 %v2712_v51 }
 0x34f   :  { %17915 = vrcp.f32 %v2700_v27 }
 0x352   :  { %v2709_v2 = vpop.xlane.xlu0 %2708 }
 0x354   :  { %v2724_v41 = vpop.xlane.xlu1 %2723 }
 0x355   :  { %17917 = vrcp.f32 %v2724_v41 }
 0x356   :  { %v2727_v3 = vpop.xlane.xlu0 %2726 }
 0x357   :  { %17919 = vrcp.f32 %v2727_v3  ;;  %v17910_v10 = vpop.eup %17909 }
 0x358   :  { %v17912_v17 = vpop.eup %17911  ;;  %17921 = vrcp.f32 %v2709_v2  ;;  %v2827_v60 = vmul.f32 %v17910_v10, %v19662_v32 }
 0x359   :  { %v2831_v48 = vmul.f32 %v17912_v17, %v19665_v14 }
 0x35a   :  { %v2706_v50 = vpop.xlane.xlu0 %2705 }
 0x35b   :  { %v17914_v39 = vpop.eup %17913  ;;  %17923 = vrcp.f32 %v2706_v50 }
 0x35c   :  { %v2718_v46 = vpop.xlane.xlu1 %2717  ;;  %v17916_v59 = vpop.eup %17915  ;;  %v2830_v9 = vmul.f32 %v17914_v39, %v19672_v21 }
 0x35d   :  { %17925 = vrcp.f32 %v2718_v46  ;;  %v2826_v57 = vmul.f32 %v17916_v59, %v19675_v18  ;;  %v23919_v46 = vld [vmem:[#allocation69_spill] sm:$0xff] }
 0x35e   :  { %v2721_v63 = vpop.xlane.xlu0 %2720  ;;  %16950 = vmatprep.mubr.msk.f32.mxu1 %vm2504_vm4, %v2830_v9 }
 0x35f   :  { %17927 = vrcp.f32 %v2721_v63  ;;  %16936 = vmatprep.mubr.msk.f32.mxu0 %vm2504_vm4, %v2826_v57  ;;  %16951 = vmatmul.mubr.msk.f32.vlgmr.msra.gmra.mxu1 %vm2504_vm4, %v2831_v48  ;;  %v23921_v63 = vld [vmem:[#allocation72_spill] sm:$0xff] }
 0x360   :  { %v2736_v34 = vpop.xlane.xlu1 %2735  ;;  %16937 = vmatmul.mubr.msk.f32.vlgmr.msra.gmra.mxu0 %vm2504_vm4, %v2827_v60  ;;  %16961 = vmatpush3.msk.msra.mxu1 %vm2898_vm2, %v19468_v31  ;;  %v23922_v60 = vld [vmem:[#allocation73_spill] sm:$0xff] }
 0x361   :  { %17929 = vrcp.f32 %v2736_v34  ;;  %16940 = vmatpush3.msk.msra.mxu0 %vm2898_vm2, %v19458_v40  ;;  %16962 = vmatprep.subr.mxu1 %v19608_v20 }
 0x362   :  { %v17918_v14 = vpop.eup %17917  ;;  %16941 = vmatprep.subr.mxu0 %v19464_v24  ;;  %v2739_v32 = vpop.xlane.xlu0 %2738  ;;  %16963 = vmatpush3.msra.mxu1 %v19608_v20 }
 0x363   :  { %17931 = vrcp.f32 %v2739_v32  ;;  %16942 = vmatpush3.msra.mxu0 %v19464_v24  ;;  %16974 = vmatprep.subr.msk.mxu1 %vm2898_vm2, %v19625_v47  ;;  %v2834_v31 = vmul.f32 %v17918_v14, %v19688_v44  ;;  %v23923_v32 = vld [vmem:[#allocation77_spill] sm:$0xff] }
 0x364   :  { %v17920_v18 = vpop.eup %17919  ;;  %16953 = vmatprep.subr.msk.mxu0 %vm2898_vm2, %v19621_v7 }
 0x365   :  { %v2730_v21 = vpop.xlane.xlu1 %2729  ;;  %16964 = vmatprep.mubr.msk.f32.mxu1 %vm2504_vm4, %v2834_v31  ;;  %v2835_v40 = vmul.f32 %v17920_v18, %v19693_v33  ;;  %v17922_v20 = vpop.eup %17921  ;;  %v23924_v31 = vld [vmem:[#allocation71_spill] sm:$0xff] }
 0x366   :  { %17933 = vrcp.f32 %v2730_v21  ;;  %v2733_v51 = vpop.xlane.xlu0 %2732  ;;  %v2829_v33 = vmul.f32 %v17922_v20, %v19683_v55  ;;  %v23918_v55 = vld [vmem:[#allocation68_spill] sm:$0xff] }
 0x367   :  { %17935 = vrcp.f32 %v2733_v51  ;;  %16965 = vmatmul.mubr.msk.f32.vlgmr.msra.gmra.mxu1 %vm2504_vm4, %v2835_v40  ;;  %v23925_v40 = vld [vmem:[#allocation75_spill] sm:$0xff] }
 0x368   :  { %v17924_v27 = vpop.eup %17923  ;;  %16975 = vmatpush3.msk.msra.mxu1 %vm2898_vm2, %v19625_v47 }
 0x369   :  { %v2748_v24 = vpop.xlane.xlu1 %2747  ;;  %16976 = vmatprep.subr.mxu1 %v19623_v29  ;;  %v2828_v2 = vmul.f32 %v17924_v27, %v19699_v19 }
 0x36a   :  { %17937 = vrcp.f32 %v2748_v24  ;;  %v17926_v44 = vpop.eup %17925  ;;  %16977 = vmatpush3.msra.mxu1 %v19623_v29  ;;  %v2751_v41 = vpop.xlane.xlu0 %2750 }
 0x36b   :  { %v2832_v3 = vmul.f32 %v17926_v44, %v19702_v12  ;;  %17939 = vrcp.f32 %v2751_v41  ;;  %16988 = vmatprep.subr.msk.mxu1 %vm2898_vm2, %v19633_v58  ;;  %16943 = vmatprep.mubr.msk.f32.mxu0 %vm2504_vm4, %v2828_v2  ;;  %v23927_v2 = vld [vmem:[#allocation81_spill] sm:$0xff] }
 0x36c   :  { %v17928_v10 = vpop.eup %17927  ;;  %16944 = vmatmul.mubr.msk.f32.vlgmr.msra.gmra.mxu0 %vm2504_vm4, %v2829_v33 }
 0x36d   :  { %16954 = vmatpush3.msk.msra.mxu0 %vm2898_vm2, %v19621_v7  ;;  %16957 = vmatprep.mubr.msk.f32.mxu0 %vm2504_vm4, %v2832_v3  ;;  %v2833_v29 = vmul.f32 %v17928_v10, %v19709_v26  ;;  %v23929_v10 = vld [vmem:[#allocation79_spill] sm:$0xff] }
 0x36e   :  { %v2742_v47 = vpop.xlane.xlu1 %2741  ;;  %v17930_v17 = vpop.eup %17929  ;;  %16955 = vmatprep.subr.mxu0 %v23918_v55 }
 0x36f   :  { %17941 = vrcp.f32 %v2742_v47  ;;  %v2745_v19 = vpop.xlane.xlu0 %2744  ;;  %v2838_v12 = vmul.f32 %v17930_v17, %v19712_v8  ;;  %16956 = vmatpush3.msra.mxu0 %v23918_v55  ;;  %v23920_v8 = vld [vmem:[#allocation70_spill] sm:$0xff] }
 0x370   :  { %17943 = vrcp.f32 %v2745_v19  ;;  %v17932_v39 = vpop.eup %17931  ;;  %16967 = vmatprep.subr.msk.mxu0 %vm2898_vm2, %v23919_v46  ;;  %16958 = vmatmul.mubr.msk.f32.vlgmr.msra.gmra.mxu0 %vm2504_vm4, %v2833_v29 }
 0x371   :  { %16968 = vmatpush3.msk.msra.mxu0 %vm2898_vm2, %v23919_v46  ;;  %16978 = vmatprep.mubr.msk.f32.mxu1 %vm2504_vm4, %v2838_v12  ;;  %v2839_v26 = vmul.f32 %v17932_v39, %v19719_v30  ;;  %v23931_v12 = vld [vmem:[#allocation78_spill] sm:$0xff]  ;;  %v23932_v46 = vld [vmem:[#allocation83_spill] sm:$0xff] }
 0x372   :  { %v2760_v50 = vpop.xlane.xlu1 %2759  ;;  %16969 = vmatprep.subr.mxu0 %v23920_v8 }
 0x373   :  { %17945 = vrcp.f32 %v2760_v50  ;;  %v17934_v7 = vpop.eup %17933  ;;  %v2763_v59 = vpop.xlane.xlu0 %2762  ;;  %16970 = vmatpush3.msra.mxu0 %v23920_v8  ;;  %16979 = vmatmul.mubr.msk.f32.vlgmr.msra.gmra.mxu1 %vm2504_vm4, %v2839_v26 }
 0x374   :  { %v2836_v9 = vmul.f32 %v17934_v7, %v19722_v45  ;;  %17947 = vrcp.f32 %v2763_v59  ;;  %v17936_v48 = vpop.eup %17935  ;;  %16981 = vmatprep.subr.msk.mxu0 %vm2898_vm2, %v23921_v63  ;;  %16989 = vmatpush3.msk.msra.mxu1 %vm2898_vm2, %v19633_v58 }
 0x375   :  { %16990 = vmatprep.subr.mxu1 %v23922_v60  ;;  %v2837_v45 = vmul.f32 %v17936_v48, %v19729_v43 }
 0x376   :  { %16971 = vmatprep.mubr.msk.f32.mxu0 %vm2504_vm4, %v2836_v9  ;;  %16991 = vmatpush3.msra.mxu1 %v23922_v60 }
 0x377   :  { %v17938_v30 = vpop.eup %17937  ;;  %17002 = vmatprep.subr.msk.mxu1 %vm2898_vm2, %v23923_v32  ;;  %16972 = vmatmul.mubr.msk.f32.vlgmr.msra.gmra.mxu0 %vm2504_vm4, %v2837_v45 }
 0x378   :  { %v2754_v57 = vpop.xlane.xlu1 %2753  ;;  %v2842_v14 = vmul.f32 %v17938_v30, %v19731_v22  ;;  %v17940_v58 = vpop.eup %17939  ;;  %16982 = vmatpush3.msk.msra.mxu0 %vm2898_vm2, %v23921_v63 }
 0x379   :  { %17949 = vrcp.f32 %v2754_v57  ;;  %v2757_v34 = vpop.xlane.xlu0 %2756  ;;  %16983 = vmatprep.subr.mxu0 %v23924_v31  ;;  %v2843_v43 = vmul.f32 %v17940_v58, %v19739_v4  ;;  %v23926_v4 = vld [vmem:[#allocation76_spill] sm:$0xff] }
 0x37a   :  { %17951 = vrcp.f32 %v2757_v34  ;;  %16992 = vmatprep.mubr.msk.f32.mxu1 %vm2504_vm4, %v2842_v14  ;;  %16984 = vmatpush3.msra.mxu0 %v23924_v31 }
 0x37b   :  { %16995 = vmatprep.subr.msk.mxu0 %vm2898_vm2, %v23925_v40  ;;  %16993 = vmatmul.mubr.msk.f32.vlgmr.msra.gmra.mxu1 %vm2504_vm4, %v2843_v43 }
 0x37c   :  { %v17942_v21 = vpop.eup %17941  ;;  %17003 = vmatpush3.msk.msra.mxu1 %vm2898_vm2, %v23923_v32 }
 0x37d   :  { %v2775_v22 = vpop.xlane.xlu0 %2774  ;;  %v2840_v18 = vmul.f32 %v17942_v21, %v19742_v35  ;;  %v17944_v20 = vpop.eup %17943  ;;  %17004 = vmatprep.subr.mxu1 %v23926_v4 }
 0x37e   :  { %v2841_v27 = vmul.f32 %v17944_v20, %v19749_v53  ;;  %17005 = vmatpush3.msra.mxu1 %v23926_v4  ;;  %v23928_v53 = vld [vmem:[#allocation74_spill] sm:$0xff] }
 0x37f   :  { %16985 = vmatprep.mubr.msk.f32.mxu0 %vm2504_vm4, %v2840_v18  ;;  %17016 = vmatprep.subr.msk.mxu1 %vm2898_vm2, %v23927_v2 }
 0x380   :  { %v2766_v51 = vpop.xlane.xlu1 %2765  ;;  %v17946_v24 = vpop.eup %17945  ;;  %16986 = vmatmul.mubr.msk.f32.vlgmr.msra.gmra.mxu0 %vm2504_vm4, %v2841_v27 }
 0x381   :  { %17953 = vrcp.f32 %v2766_v51  ;;  %v2772_v35 = vpop.xlane.xlu0 %2771  ;;  %v2846_v44 = vmul.f32 %v17946_v24, %v19751_v16  ;;  %v17948_v41 = vpop.eup %17947  ;;  %16996 = vmatpush3.msk.msra.mxu0 %vm2898_vm2, %v23925_v40 }
 0x382   :  { %17955 = vrcp.f32 %v2775_v22  ;;  %16997 = vmatprep.subr.mxu0 %v23928_v53  ;;  %v2847_v3 = vmul.f32 %v17948_v41, %v19758_v5  ;;  %v23930_v5 = vld [vmem:[#allocation80_spill] sm:$0xff] }
 0x383   :  { %17957 = vrcp.f32 %v2772_v35  ;;  %17006 = vmatprep.mubr.msk.f32.mxu1 %vm2504_vm4, %v2846_v44  ;;  %16998 = vmatpush3.msra.mxu0 %v23928_v53 }
 0x384   :  { %17009 = vmatprep.subr.msk.mxu0 %vm2898_vm2, %v23929_v10  ;;  %17007 = vmatmul.mubr.msk.f32.vlgmr.msra.gmra.mxu1 %vm2504_vm4, %v2847_v3 }
 0x385   :  { %v2769_v16 = vpop.xlane.xlu0 %2768  ;;  %17017 = vmatpush3.msk.msra.mxu1 %vm2898_vm2, %v23927_v2 }
 0x386   :  { %v17950_v33 = vpop.eup %17949  ;;  %17959 = vrcp.f32 %v2769_v16  ;;  %17018 = vmatprep.subr.mxu1 %v23930_v5 }
 0x387   :  { %v2844_v47 = vmul.f32 %v17950_v33, %v19761_v61  ;;  %v17952_v29 = vpop.eup %17951  ;;  %17019 = vmatpush3.msra.mxu1 %v23930_v5 }
 0x388   :  { %v2778_v17 = vpop.xlane.xlu1 %2777  ;;  %v2845_v55 = vmul.f32 %v17952_v29, %v19768_v42  ;;  %17030 = vmatprep.subr.msk.mxu1 %vm2898_vm2, %v19832_v62 }
 0x389   :  { %17961 = vrcp.f32 %v2778_v17  ;;  %16999 = vmatprep.mubr.msk.f32.mxu0 %vm2504_vm4, %v2844_v47  ;;  %v2787_v61 = vpop.xlane.xlu0 %2786 }
 0x38a   :  { %17000 = vmatmul.mubr.msk.f32.vlgmr.msra.gmra.mxu0 %vm2504_vm4, %v2845_v55  ;;  %17963 = vrcp.f32 %v2787_v61 }
 0x38b   :  { %17010 = vmatpush3.msk.msra.mxu0 %vm2898_vm2, %v23929_v10 }
 0x38c   :  { %17011 = vmatprep.subr.mxu0 %v23931_v12 }
 0x38d   :  { %17012 = vmatpush3.msra.mxu0 %v23931_v12  ;;  %v2784_v50 = vpop.xlane.xlu0 %2783 }
 0x38e   :  { %v17954_v19 = vpop.eup %17953  ;;  %17965 = vrcp.f32 %v2784_v50  ;;  %17023 = vmatprep.subr.msk.mxu0 %vm2898_vm2, %v23932_v46 }
 0x38f   :  { %v2848_v42 = vmul.f32 %v17954_v19, %v19776_v0  ;;  %v17956_v39 = vpop.eup %17955 }
 0x390   :  { %v2790_v7 = vpop.xlane.xlu1 %2789  ;;  %v17958_v26 = vpop.eup %17957  ;;  %v2851_v9 = vmul.f32 %v17956_v39, %v19773_v23  ;;  %v23933_v23 = vld [vmem:[#allocation82_spill] sm:$0xff] }
 0x391   :  { %17013 = vmatprep.mubr.msk.f32.mxu0 %vm2504_vm4, %v2848_v42  ;;  %v2850_v8 = vmul.f32 %v17958_v26, %v19781_v28  ;;  %17967 = vrcp.f32 %v2790_v7  ;;  %v2781_v59 = vpop.xlane.xlu0 %2780 }
 0x392   :  { %17969 = vrcp.f32 %v2781_v59 }
 0x393   :  { %17020 = vmatprep.mubr.msk.f32.mxu1 %vm2504_vm4, %v2850_v8  ;;  %v17960_v57 = vpop.eup %17959 }
 0x394   :  { %17021 = vmatmul.mubr.msk.f32.vlgmr.msra.gmra.mxu1 %vm2504_vm4, %v2851_v9  ;;  %v2849_v48 = vmul.f32 %v17960_v57, %v19787_v25  ;;  %v4644_v21 = vpop.permute.xlu1 %4643 }
 0x395   :  { %17031 = vmatpush3.msk.msra.mxu1 %vm2898_vm2, %v19832_v62  ;;  %v2793_v63 = vpop.xlane.xlu0 %2792  ;;  %v23934_v62 = vmov 0.0  }
 0x396   :  { %v17962_v0 = vpop.eup %17961  ;;  %17032 = vmatprep.subr.mxu1 %v19830_v54  ;;  %17971 = vrcp.f32 %v2793_v63  ;;  %17014 = vmatmul.mubr.msk.f32.vlgmr.msra.gmra.mxu0 %vm2504_vm4, %v2849_v48 }
 0x397   :  { %v2852_v28 = vmul.f32 %v17962_v0, %v19789_v6  ;;  %17033 = vmatpush3.msra.mxu1 %v19830_v54  ;;  %17024 = vmatpush3.msk.msra.mxu0 %vm2898_vm2, %v23932_v46  ;;  %v17964_v30 = vpop.eup %17963 }
 0x398   :  { %17025 = vmatprep.subr.mxu0 %v23933_v23  ;;  %17044 = vmatprep.subr.mxu1 %v23934_v62  ;;  %v2855_v60 = vmul.f32 %v17964_v30, %v19793_v13 }
 0x399   :  { %17027 = vmatprep.mubr.msk.f32.mxu0 %vm2504_vm4, %v2852_v28  ;;  %17026 = vmatpush3.msra.mxu0 %v23933_v23  ;;  %v4646_v25 = vpop.permute.xlu0 %4645 }
 0x39a   :  { %17037 = vmatprep.subr.msk.mxu0 %vm2898_vm2, %v4646_v25 }
 0x39b   :  { %v17966_v6 = vpop.eup %17965 }
 0x39c   :  { %v2854_v54 = vmul.f32 %v17966_v6, %v19799_v37  ;;  %v4814_v37 = vld [vmem:[%s23935_s28 + $0x18] sm:$0xff] }
 0x39e   :  { %v17968_v45 = vpop.eup %17967  ;;  %17034 = vmatprep.mubr.msk.f32.mxu1 %vm2504_vm4, %v2854_v54 }
 0x39f   :  { %v17970_v34 = vpop.eup %17969  ;;  %17035 = vmatmul.mubr.msk.f32.vlgmr.msra.gmra.mxu1 %vm2504_vm4, %v2855_v60  ;;  %v2856_v32 = vmul.f32 %v17968_v45, %v19801_v49  ;;  %v4813_v49 = vld [vmem:[%s23935_s28 + $0x10] sm:$0xff] }
 0x3a0   :  { %v2853_v14 = vmul.f32 %v17970_v34, %v19805_v38  ;;  %17052 = vmatprep.mubr.msk.f32.mxu1 %vm18311_vm0, %v23934_v62  ;;  %17045 = vmatpush3.msra.mxu1 %v4814_v37  ;;  %v4812_v38 = vld [vmem:[%s23935_s28 + $0x8] sm:$0xff] }
 0x3a1   :  { %17046 = vmatprep.subr.mxu1 %v23934_v62 }
 0x3a2   :  { %17028 = vmatmul.mubr.msk.f32.vlgmr.msra.gmra.mxu0 %vm2504_vm4, %v2853_v14  ;;  %17047 = vmatpush3.msra.mxu1 %v4813_v49 }
 0x3a3   :  { %v17972_v58 = vpop.eup %17971  ;;  %17038 = vmatpush3.msk.msra.mxu0 %vm2898_vm2, %v4646_v25  ;;  %17041 = vmatprep.mubr.msk.f32.mxu0 %vm2504_vm4, %v2856_v32 }
 0x3a4   :  { %17039 = vmatprep.subr.mxu0 %v4644_v21  ;;  %v2857_v13 = vmul.f32 %v17972_v58, %v19811_v11  ;;  %17048 = vmatprep.subr.mxu1 %v23934_v62  ;;  %v4811_v11 = vld [vmem:[%s23935_s28] sm:$0xff] }
 0x3a5   :  { %17040 = vmatpush3.msra.mxu0 %v4644_v21  ;;  %17049 = vmatpush3.msra.mxu1 %v4812_v38 }
 0x3a6   :  { %17042 = vmatmul.mubr.msk.f32.vlgmr.msra.gmra.mxu0 %vm2504_vm4, %v2857_v13  ;;  %17061 = vmatprep.subr.mxu0 %v23934_v62 }
 0x3a7   :  { %17069 = vmatprep.mubr.msk.f32.mxu0 %vm18311_vm0, %v23934_v62  ;;  %17050 = vmatprep.subr.mxu1 %v23934_v62 }
 0x3a8   :  { %17051 = vmatpush3.msra.mxu1 %v4811_v11 }
 0x3a9   :  { %17078 = vmatprep.subr.mxu1 %v23934_v62 }
 0x41f   :  { %v16952_v18 = vpop.f32.mrf.mxu1 }
 0x420   :  { %v16938_v31 = vpop.f32.mrf.mxu0 }
 0x421   :  { %v3201_v24 = vpop.f32.mrf.mxu1 }
 0x422   :  { %v2967_v43 = vpop.f32.mrf.mxu0 }
 0x427   :  { %v16966_v35 = vpop.f32.mrf.mxu1 }
 0x429   :  { %v3435_v41 = vpop.f32.mrf.mxu1 }
 0x42c   :  { %v16945_v22 = vpop.f32.mrf.mxu0 }
 0x42d   :  { %v4732_v9 = vadd.f32 %v16945_v22, %v16938_v31 }
 0x42e   :  { %v3084_v40 = vpop.f32.mrf.mxu0 }
 0x42f   :  { %v4731_v51 = vadd.f32 %v3084_v40, %v2967_v43  ;;  %v4736_v63 = vadd.f32 %v16952_v18, %v4732_v9 }
 0x430   :  { %v16959_v20 = vpop.f32.mrf.mxu0 }
 0x431   :  { %v4735_v4 = vadd.f32 %v4731_v51, %v3201_v24  ;;  %v4740_v6 = vadd.f32 %v16959_v20, %v4736_v63 }
 0x432   :  { %v3318_v27 = vpop.f32.mrf.mxu0 }
 0x433   :  { %v4739_v44 = vadd.f32 %v4735_v4, %v3318_v27  ;;  %v16980_v3 = vpop.f32.mrf.mxu1  ;;  %v4744_v14 = vadd.f32 %v16966_v35, %v4740_v6 }
 0x435   :  { %v4743_v53 = vadd.f32 %v4739_v44, %v3435_v41  ;;  %v3669_v47 = vpop.f32.mrf.mxu1 }
 0x437   :  { %v16973_v2 = vpop.f32.mrf.mxu0 }
 0x438   :  { %v4748_v13 = vadd.f32 %v16973_v2, %v4744_v14 }
 0x439   :  { %v3552_v33 = vpop.f32.mrf.mxu0 }
 0x43a   :  { %v4747_v16 = vadd.f32 %v4743_v53, %v3552_v33  ;;  %v4752_v43 = vadd.f32 %v16980_v3, %v4748_v13  ;;  %v5014_v13 = vld [vmem:[%s23937_s1] sm:$0xff] }
 0x43b   :  { %v16994_v26 = vpop.f32.mrf.mxu1 }
 0x43c   :  { %v4751_v17 = vadd.f32 %v4747_v16, %v3669_v47 }
 0x43d   :  { %v3903_v57 = vpop.f32.mrf.mxu1 }
 0x440   :  { %v16987_v10 = vpop.f32.mrf.mxu0 }
 0x441   :  { %v4756_v20 = vadd.f32 %v16987_v10, %v4752_v43 }
 0x442   :  { %v3786_v29 = vpop.f32.mrf.mxu0 }
 0x443   :  { %v4755_v5 = vadd.f32 %v4751_v17, %v3786_v29  ;;  %v4786_v35 = vrot.slane %v4756_v20, %v18483_v15 }
 0x444   :  { %v17008_v0 = vpop.f32.mrf.mxu1 }
 0x445   :  { %v4763_v55 = vcombine.high %v4755_v5, %v4755_v5  ;;  %v4770_v61 = vrot.slane %v4755_v5, %v18483_v15 }
 0x446   :  { %v4137_v30 = vpop.f32.mrf.mxu1 }
 0x447   :  { %v4777_v19 = vrot.slane %v4763_v55, %v18483_v15  ;;  %v4778_v12 = vcombine.high %v4770_v61, %v4770_v61 }
 0x449   :  { %v4779_v50 = vcombine.high %v4777_v19, %v4777_v19  ;;  %v4822_v42 = vcombine.low %v4770_v61, %v4778_v12  ;;  %v15902_v12 = vld [vmem:[%s23936_s26] ss:$0 sm:$0xff] }
 0x44a   :  { %v17001_v59 = vpop.f32.mrf.mxu0 }
 0x44b   :  { %v4823_v39 = vcombine.low %v4777_v19, %v4779_v50  ;;  %v4830_v46 = vrot.slane %v4822_v42, %v18483_v15  ;;  %v4734_v23 = vadd.f32 %v17001_v59, %v16994_v26 }
 0x44c   :  { %v4020_v48 = vpop.f32.mrf.mxu0 }
 0x44d   :  { %v4837_v7 = vrot.slane %v4823_v39, %v18483_v15  ;;  %v4733_v25 = vadd.f32 %v4020_v48, %v3903_v57  ;;  %v4738_v45 = vadd.f32 %v17008_v0, %v4734_v23  ;;  %v18302_v57 = vld [vmem:[%s23822_s25 + $0x8] sm:$0xff] }
 0x44f   :  { %v4838_v8 = vcombine.low %v4830_v46, %v4837_v7  ;;  %v4737_v34 = vadd.f32 %v4733_v25, %v4137_v30  ;;  %v18301_v46 = vld [vmem:[%s23822_s25] sm:$0xff]  ;;  %v18303_v25 = vld [vmem:[%s23822_s25 + $0x10] sm:$0xf] }
 0x451   :  { %17053 = vmatmul.mubr.msk.f32.vlgmr.msra.gmra.mxu1 %vm103_vm1, %v4838_v8 }
 0x452   :  { %17055 = vmatprep.mubr.msk.f32.mxu1 %vm18311_vm0, %v23934_v62 }
 0x454   :  { %v17022_v54 = vpop.f32.mrf.mxu1 }
 0x456   :  { %v17015_v28 = vpop.f32.mrf.mxu0  ;;  %v4371_v21 = vpop.f32.mrf.mxu1 }
 0x457   :  { %v4742_v32 = vadd.f32 %v17015_v28, %v4738_v45 }
 0x458   :  { %v4254_v60 = vpop.f32.mrf.mxu0 }
 0x459   :  { %v4741_v58 = vadd.f32 %v4737_v34, %v4254_v60  ;;  %v4746_v38 = vadd.f32 %v17022_v54, %v4742_v32  ;;  %v5017_v32 = vld [vmem:[%s23937_s1 + $0x18] sm:$0xff] }
 0x45a   :  { %17062 = vmatpush3.msra.mxu0 %v5017_v32 }
 0x45b   :  { %v4745_v11 = vadd.f32 %v4741_v58, %v4371_v21  ;;  %v5016_v58 = vld [vmem:[%s23937_s1 + $0x10] sm:$0xff]  ;;  %17063 = vmatprep.subr.mxu0 %v23934_v62  ;;  %v5015_v21 = vld [vmem:[%s23937_s1 + $0x8] sm:$0xff] }
 0x45c   :  { %17064 = vmatpush3.msra.mxu0 %v5016_v58 }
 0x45d   :  { %17065 = vmatprep.subr.mxu0 %v23934_v62 }
 0x45e   :  { %17066 = vmatpush3.msra.mxu0 %v5015_v21 }
 0x45f   :  { %v17036_v37 = vpop.f32.mrf.mxu1  ;;  %17067 = vmatprep.subr.mxu0 %v23934_v62 }
 0x460   :  { %17068 = vmatpush3.msra.mxu0 %v5014_v13 }
 0x461   :  { %v4605_v40 = vpop.f32.mrf.mxu1  ;;  %17119 = vmatprep.subr.mxu0 %v23934_v62 }
 0x462   :  { %v17029_v49 = vpop.f32.mrf.mxu0 }
 0x463   :  { %v4750_v22 = vadd.f32 %v17029_v49, %v4746_v38 }
 0x464   :  { %v4488_v31 = vpop.f32.mrf.mxu0 }
 0x465   :  { %v4749_v18 = vadd.f32 %v4745_v11, %v4488_v31  ;;  %v4754_v27 = vadd.f32 %v17036_v37, %v4750_v22 }
 0x466   :  { %v17043_v51 = vpop.f32.mrf.mxu0 }
 0x467   :  { %v4753_v24 = vadd.f32 %v4749_v18, %v4605_v40  ;;  %v4758_v33 = vadd.f32 %v17043_v51, %v4754_v27 }
 0x468   :  { %v4722_v4 = vpop.f32.mrf.mxu0 }
 0x469   :  { %v4757_v44 = vadd.f32 %v4753_v24, %v4722_v4  ;;  %v4810_v29 = vrot.slane %v4758_v33, %v18483_v15 }
 0x46b   :  { %v4787_v41 = vcombine.high %v4757_v44, %v4757_v44  ;;  %v4794_v2 = vrot.slane %v4757_v44, %v18483_v15  ;;  %v15906_v44 = vld [vmem:[%s23938_s8] ss:$0 sm:$0xff] }
 0x46d   :  { %v4801_v53 = vrot.slane %v4787_v41, %v18483_v15  ;;  %v4802_v16 = vcombine.high %v4794_v2, %v4794_v2  ;;  %v4839_v47 = vcombine.low %v4786_v35, %v4794_v2  ;;  %v15907_v41 = vld [vmem:[%s23939_s6] ss:$0 sm:$0xff] }
 0x46f   :  { %v4803_v3 = vcombine.high %v4801_v53, %v4801_v53  ;;  %v4840_v17 = vcombine.low %v4802_v16, %v4801_v53  ;;  %v4847_v10 = vrot.slane %v4839_v47, %v18483_v15 }
 0x471   :  { %v4854_v5 = vrot.slane %v4840_v17, %v18483_v15  ;;  %v4856_v55 = vcombine.low %v4803_v3, %v4810_v29 }
 0x473   :  { %v4855_v61 = vcombine.low %v4847_v10, %v4854_v5  ;;  %v4863_v19 = vrot.slane %v4856_v55, %v18483_v15 }
 0x475   :  { %17056 = vmatmul.mubr.msk.f32.gmra.mxu1 %vm103_vm1, %v4855_v61 }
 0x476   :  { %17058 = vmatprep.mubr.msk.f32.mxu1 %vm18311_vm0, %v23934_v62 }
 0x479   :  { %17059 = vmatmul.mubr.msk.f32.gmra.mxu1 %vm103_vm1, %v4863_v19 }
 0x47a   :  { %17110 = vmatprep.mubr.msk.f32.mxu1 %vm18311_vm0, %v23934_v62 }
 0x511   :  { %v4936_v50 = vpop.f32.mrf.mxu1 }
 0x512   :  { %v4937_v42 = vadd.f32 %v15902_v12, %v4936_v50 }
 0x513   :  { %v17054_v39 = vpop.f32.mrf.mxu1 }
 0x514   :  { %v4950_v7 = vadd.f32 %v18301_v46, %v4937_v42  ;;  %v5210_v39 = vld [vmem:[%s23551_s10 + $0x78] sm:$0xff]  ;;  %v5209_v46 = vld [vmem:[%s23551_s10 + $0x70] sm:$0xff] }
 0x515   :  { %17079 = vmatpush3.msra.mxu1 %v5210_v39 }
 0x516   :  { %v4955_v26 = vsel %vm103_vm1, %v4950_v7, 0.0  ;;  %17080 = vmatprep.subr.mxu1 %v23934_v62 }
 0x517   :  { %4956 = vadd.xlane.f32.xlu0 %v4955_v26  ;;  %17081 = vmatpush3.msra.mxu1 %v5209_v46  ;;  %v5207_v26 = vld [vmem:[%s23551_s10 + $0x60] sm:$0xff] }
 0x518   :  { %17082 = vmatprep.subr.mxu1 %v23934_v62 }
 0x535   :  { %v4941_v8 = vpop.f32.mrf.mxu1 }
 0x536   :  { %v4942_v59 = vadd.f32 %v15902_v12, %v4941_v8  ;;  %v5206_v8 = vld [vmem:[%s23551_s10 + $0x58] sm:$0xff] }
 0x537   :  { %v17057_v9 = vpop.f32.mrf.mxu1 }
 0x538   :  { %v4951_v0 = vadd.f32 %v18302_v57, %v4942_v59  ;;  %v5205_v59 = vld [vmem:[%s23551_s10 + $0x50] sm:$0xff]  ;;  %v5204_v9 = vld [vmem:[%s23551_s10 + $0x48] sm:$0xff]  ;;  %v5203_v57 = vld [vmem:[%s23551_s10 + $0x40] sm:$0xff] }
 0x539   :  { %v4946_v48 = vpop.f32.mrf.mxu1 }
 0x53a   :  { %v4947_v63 = vadd.f32 %v15902_v12, %v4946_v48  ;;  %v4958_v28 = vsel %vm103_vm1, %v4951_v0, 0.0  ;;  %v5201_v48 = vld [vmem:[%s23551_s10 + $0x30] sm:$0xff] }
 0x53b   :  { %4959 = vadd.xlane.f32.xlu1 %v4958_v28  ;;  %v17060_v23 = vpop.f32.mrf.mxu1  ;;  %v5199_v28 = vld [vmem:[%s23551_s10 + $0x20] sm:$0xff] }
 0x53c   :  { %v4952_v30 = vadd.f32 %v18303_v25, %v4947_v63  ;;  %v5200_v63 = vld [vmem:[%s23551_s10 + $0x28] sm:$0xff]  ;;  %v5198_v23 = vld [vmem:[%s23551_s10 + $0x18] sm:$0xff]  ;;  %v5197_v25 = vld [vmem:[%s23551_s10 + $0x10] sm:$0xff] }
 0x53e   :  { %v4962_v6 = vsel %vm4961_vm5, %v4952_v30, 0.0 }
 0x53f   :  { %4963 = vadd.xlane.f32.xlu0 %v4962_v6  ;;  %v5195_v6 = vld [vmem:[%s23551_s10] sm:$0xff] }
 0x5a0   :  { %v4957_v54 = vpop.xlane.xlu0 %4956 }
 0x5a1   :  { %v4966_v60 = vmul.f32 0.03125, %v4957_v54  ;;  %v15908_v54 = vld [vmem:[%s23552_s9] ss:$0 sm:$0xff] }
 0x5a3   :  { %v4969_v45 = vsub.f32 %v4950_v7, %v4966_v60  ;;  %v5208_v7 = vld [vmem:[%s23551_s10 + $0x68] sm:$0xff] }
 0x5a4   :  { %17083 = vmatpush3.msra.mxu1 %v5208_v7 }
 0x5a5   :  { %v4972_v34 = vmul.f32 %v4969_v45, %v4969_v45  ;;  %17084 = vmatprep.subr.mxu1 %v23934_v62 }
 0x5a6   :  { %17085 = vmatpush3.msra.mxu1 %v5207_v26 }
 0x5a7   :  { %v4975_v14 = vsel %vm103_vm1, %v4972_v34, 0.0  ;;  %17086 = vmatprep.subr.mxu1 %v23934_v62 }
 0x5a8   :  { %4976 = vadd.xlane.f32.xlu0 %v4975_v14  ;;  %17087 = vmatpush3.msra.mxu1 %v5206_v8 }
 0x5a9   :  { %17088 = vmatprep.subr.mxu1 %v23934_v62 }
 0x5aa   :  { %17089 = vmatpush3.msra.mxu1 %v5205_v59 }
 0x5ab   :  { %17090 = vmatprep.subr.mxu1 %v23934_v62 }
 0x5ac   :  { %17091 = vmatpush3.msra.mxu1 %v5204_v9 }
 0x5ad   :  { %17092 = vmatprep.subr.mxu1 %v23934_v62 }
 0x5ae   :  { %17093 = vmatpush3.msra.mxu1 %v5203_v57 }
 0x5af   :  { %17094 = vmatprep.subr.mxu1 %v23934_v62 }
 0x5c4   :  { %v4960_v37 = vpop.xlane.xlu1 %4959 }
 0x5c5   :  { %v4967_v49 = vmul.f32 0.03125, %v4960_v37 }
 0x5c7   :  { %v4970_v38 = vsub.f32 %v4951_v0, %v4967_v49  ;;  %v5202_v0 = vld [vmem:[%s23551_s10 + $0x38] sm:$0xff] }
 0x5c8   :  { %v4964_v11 = vpop.xlane.xlu0 %4963  ;;  %17095 = vmatpush3.msra.mxu1 %v5202_v0 }
 0x5c9   :  { %v4968_v31 = vmul.f32 0.03125, %v4964_v11  ;;  %v4973_v43 = vmul.f32 %v4970_v38, %v4970_v38  ;;  %17096 = vmatprep.subr.mxu1 %v23934_v62 }
 0x5ca   :  { %17097 = vmatpush3.msra.mxu1 %v5201_v48 }
 0x5cb   :  { %v4971_v22 = vsub.f32 %v4952_v30, %v4968_v31  ;;  %v4978_v18 = vsel %vm103_vm1, %v4973_v43, 0.0  ;;  %17098 = vmatprep.subr.mxu1 %v23934_v62  ;;  %v5196_v30 = vld [vmem:[%s23551_s10 + $0x8] sm:$0xff] }
 0x5cc   :  { %4979 = vadd.xlane.f32.xlu1 %v4978_v18  ;;  %17099 = vmatpush3.msra.mxu1 %v5200_v63 }
 0x5cd   :  { %v4974_v40 = vmul.f32 %v4971_v22, %v4971_v22  ;;  %17100 = vmatprep.subr.mxu1 %v23934_v62 }
 0x5ce   :  { %17101 = vmatpush3.msra.mxu1 %v5199_v28 }
 0x5cf   :  { %v4981_v51 = vsel %vm4961_vm5, %v4974_v40, 0.0  ;;  %17102 = vmatprep.subr.mxu1 %v23934_v62 }
 0x5d0   :  { %4982 = vadd.xlane.f32.xlu0 %v4981_v51  ;;  %17103 = vmatpush3.msra.mxu1 %v5198_v23 }
 0x5d1   :  { %17104 = vmatprep.subr.mxu1 %v23934_v62 }
 0x5d2   :  { %17105 = vmatpush3.msra.mxu1 %v5197_v25 }
 0x5d3   :  { %17106 = vmatprep.subr.mxu1 %v23934_v62 }
 0x5d4   :  { %17107 = vmatpush3.msra.mxu1 %v5196_v30 }
 0x5d5   :  { %17108 = vmatprep.subr.mxu1 %v23934_v62 }
 0x5d6   :  { %17109 = vmatpush3.msra.mxu1 %v5195_v6 }
 0x631   :  { %v4977_v20 = vpop.xlane.xlu0 %4976 }
 0x632   :  { %v4984_v24 = vmul.f32 0.03125, %v4977_v20 }
 0x634   :  { %v4987_v4 = vadd.f32 1e-12, %v4984_v24 }
 0x636   :  { %17973 = vrsqrt.f32 %v4987_v4 }
 0x643   :  { %v17974_v27 = vpop.eup %17973 }
 0x644   :  { %v4993_v35 = vmul.f32 %v17974_v27, %v4969_v45 }
 0x646   :  { %v5002_v2 = vmul.f32 %v15906_v44, %v4993_v35 }
 0x648   :  { %v20056_v33 = vadd.f32 %v15907_v41, %v5002_v2 }
 0x64a   :  { %17070 = vmatmul.mubr.msk.f32.vlgmr.msra.gmra.mxu0 %vm103_vm1, %v20056_v33 }
 0x64b   :  { %17072 = vmatprep.mubr.msk.f32.mxu0 %vm18311_vm0, %v23934_v62 }
 0x655   :  { %v4980_v53 = vpop.xlane.xlu1 %4979 }
 0x656   :  { %v4985_v16 = vmul.f32 0.03125, %v4980_v53 }
 0x658   :  { %v4988_v47 = vadd.f32 1e-12, %v4985_v16 }
 0x659   :  { %v4983_v3 = vpop.xlane.xlu0 %4982 }
 0x65a   :  { %17975 = vrsqrt.f32 %v4988_v47  ;;  %v4986_v17 = vmul.f32 0.03125, %v4983_v3 }
 0x65c   :  { %v4989_v29 = vadd.f32 1e-12, %v4986_v17 }
 0x65e   :  { %17977 = vrsqrt.f32 %v4989_v29 }
 0x667   :  { %v17976_v10 = vpop.eup %17975 }
 0x668   :  { %v4994_v5 = vmul.f32 %v17976_v10, %v4970_v38 }
 0x66a   :  { %v5003_v55 = vmul.f32 %v15906_v44, %v4994_v5 }
 0x66b   :  { %v17978_v61 = vpop.eup %17977 }
 0x66c   :  { %v20062_v19 = vadd.f32 %v15907_v41, %v5003_v55  ;;  %v4995_v12 = vmul.f32 %v17978_v61, %v4971_v22  ;;  %v23720_v61 = vmov -1.0  }
 0x66e   :  { %17073 = vmatmul.mubr.msk.f32.gmra.mxu0 %vm103_vm1, %v20062_v19  ;;  %v5004_v50 = vmul.f32 %v15906_v44, %v4995_v12 }
 0x66f   :  { %17075 = vmatprep.mubr.msk.f32.mxu0 %vm18311_vm0, %v23934_v62 }
 0x670   :  { %v20068_v42 = vadd.f32 %v15907_v41, %v5004_v50 }
 0x672   :  { %17076 = vmatmul.mubr.msk.f32.gmra.mxu0 %vm103_vm1, %v20068_v42 }
 0x673   :  { %17127 = vmatprep.mubr.msk.f32.mxu0 %vm18311_vm0, %v23934_v62 }
 0x70a   :  { %v5100_v60 = vpop.f32.mrf.mxu0 }
 0x70b   :  { %v5101_v45 = vadd.f32 %v15908_v54, %v5100_v60 }
 0x70c   :  { %v17071_v34 = vpop.f32.mrf.mxu0 }
 0x70d   :  { %v5117_v14 = vmul.f32 0.70710677, %v5101_v45  ;;  %v5114_v7 = vmul.f32 0.5, %v5101_v45 }
 0x70f   :  { %v5126_v32 = vand.u32 2147483647, %v5117_v14  ;;  %vm5120_vm6 = vcmp.ge.f32.partialorder %v5117_v14, 0.0 }
 0x710   :  { %v5123_v12 = vsel %vm5120_vm6, 1.0, %v23720_v61 }
 0x711   :  { %v5129_v58 = vmul.f32 0.3275911, %v5126_v32  ;;  %v5168_v13 = vsub.f32 0.0, %v5126_v32 }
 0x713   :  { %v5132_v21 = vadd.f32 1.0, %v5129_v58  ;;  %v5171_v37 = vmul.f32 %v5168_v13, %v5126_v32 }
 0x715   :  { %17979 = vrcp.f32 %v5132_v21  ;;  %v5174_v11 = vmul.f32 1.442695, %v5171_v37 }
 0x717   :  { %17981 = vpow2.f32 %v5174_v11 }
 0x722   :  { %v17980_v49 = vpop.eup %17979 }
 0x723   :  { %v5141_v38 = vmul.f32 1.0614054, %v17980_v49 }
 0x724   :  { %v17982_v3 = vpop.eup %17981 }
 0x725   :  { %v5144_v31 = vadd.f32 -1.4531521, %v5141_v38 }
 0x727   :  { %v5147_v43 = vmul.f32 %v17980_v49, %v5144_v31 }
 0x729   :  { %v5150_v22 = vadd.f32 1.4214138, %v5147_v43 }
 0x72b   :  { %v5153_v18 = vmul.f32 %v17980_v49, %v5150_v22 }
 0x72d   :  { %v5156_v51 = vadd.f32 -0.28449672, %v5153_v18 }
 0x72e   :  { %v5105_v40 = vpop.f32.mrf.mxu0 }
 0x72f   :  { %v20140_v20 = vadd.f32 %v15908_v54, %v5105_v40  ;;  %v5159_v4 = vmul.f32 %v17980_v49, %v5156_v51 }
 0x730   :  { %v17074_v24 = vpop.f32.mrf.mxu0 }
 0x731   :  { %v5118_v27 = vmul.f32 0.70710677, %v20140_v20  ;;  %v5162_v35 = vadd.f32 0.2548296, %v5159_v4 }
 0x732   :  { %v5110_v44 = vpop.f32.mrf.mxu0 }
 0x733   :  { %v5127_v41 = vand.u32 2147483647, %v5118_v27  ;;  %v20143_v2 = vadd.f32 %v15908_v54, %v5110_v44  ;;  %v5165_v16 = vmul.f32 %v17980_v49, %v5162_v35  ;;  %vm5121_vm7 = vcmp.ge.f32.partialorder %v5118_v27, 0.0 }
 0x734   :  { %v17077_v53 = vpop.f32.mrf.mxu0  ;;  %v5124_v40 = vsel %vm5121_vm7, 1.0, %v23720_v61  ;;  %v5115_v35 = vmul.f32 0.5, %v20140_v20 }
 0x735   :  { %v5130_v47 = vmul.f32 0.3275911, %v5127_v41  ;;  %v5119_v17 = vmul.f32 0.70710677, %v20143_v2  ;;  %v5180_v29 = vmul.f32 %v17982_v3, %v5165_v16  ;;  %v5169_v59 = vsub.f32 0.0, %v5127_v41 }
 0x736   :  { %v5116_v27 = vmul.f32 0.5, %v20143_v2 }
 0x737   :  { %v5133_v10 = vadd.f32 1.0, %v5130_v47  ;;  %v5128_v5 = vand.u32 2147483647, %v5119_v17  ;;  %v5183_v55 = vsub.f32 1.0, %v5180_v29  ;;  %v5172_v9 = vmul.f32 %v5169_v59, %v5127_v41 }
 0x738   :  { %vm5122_vm8 = vcmp.ge.f32.partialorder %v5119_v17, 0.0  ;;  %v15912_v17 = vld [vmem:[%s23553_s11] ss:$0 sm:$0xff] }
 0x739   :  { %17983 = vrcp.f32 %v5133_v10  ;;  %v5131_v50 = vmul.f32 0.3275911, %v5128_v5  ;;  %v5186_v39 = vmul.f32 %v5183_v55, %v5123_v12  ;;  %v5170_v57 = vsub.f32 0.0, %v5128_v5 }
 0x73a   :  { %v5176_v48 = vmul.f32 1.442695, %v5172_v9  ;;  %v5125_v16 = vsel %vm5122_vm8, 1.0, %v23720_v61  ;;  %v23981_v61 = vld [vmem:[#allocation28_spill] sm:$0xff] }
 0x73b   :  { %v5134_v46 = vadd.f32 1.0, %v5131_v50  ;;  %v5189_v26 = vadd.f32 1.0, %v5186_v39  ;;  %v5173_v28 = vmul.f32 %v5170_v57, %v5128_v5 }
 0x73d   :  { %17985 = vrcp.f32 %v5134_v46  ;;  %v5192_v8 = vmul.f32 %v5189_v26, %v5114_v7  ;;  %v5178_v6 = vmul.f32 1.442695, %v5173_v28 }
 0x73e   :  { %17987 = vpow2.f32 %v5176_v48 }
 0x73f   :  { %17111 = vmatmul.mubr.f32.vlgmr.msra.gmra.mxu1 %v5192_v8  ;;  %17989 = vpow2.f32 %v5178_v6  ;;  %v15918_v6 = vld [vmem:[%s23821_s27 + $0x38] sm:$0xff] }
 0x740   :  { %17113 = vmatprep.mubr.msk.f32.mxu1 %vm18311_vm0, %v23934_v62  ;;  %17120 = vmatpush3.msra.mxu0 %v15918_v6 }
 0x741   :  { %17121 = vmatprep.subr.mxu0 %v23934_v62 }
 0x746   :  { %v17984_v0 = vpop.eup %17983 }
 0x747   :  { %v5142_v63 = vmul.f32 1.0614054, %v17984_v0 }
 0x749   :  { %v5145_v23 = vadd.f32 -1.4531521, %v5142_v63 }
 0x74a   :  { %v17986_v25 = vpop.eup %17985 }
 0x74b   :  { %v5148_v30 = vmul.f32 %v17984_v0, %v5145_v23  ;;  %v5143_v54 = vmul.f32 1.0614054, %v17986_v25  ;;  %v17988_v11 = vpop.eup %17987 }
 0x74c   :  { %v17990_v24 = vpop.eup %17989 }
 0x74d   :  { %v5151_v60 = vadd.f32 1.4214138, %v5148_v30  ;;  %v5146_v45 = vadd.f32 -1.4531521, %v5143_v54 }
 0x74f   :  { %v5154_v34 = vmul.f32 %v17984_v0, %v5151_v60  ;;  %v5149_v14 = vmul.f32 %v17986_v25, %v5146_v45 }
 0x751   :  { %v5157_v32 = vadd.f32 -0.28449672, %v5154_v34  ;;  %v5152_v58 = vadd.f32 1.4214138, %v5149_v14  ;;  %v15916_v34 = vld [vmem:[%s23821_s27 + $0x28] sm:$0xff] }
 0x753   :  { %v5160_v21 = vmul.f32 %v17984_v0, %v5157_v32  ;;  %v5155_v13 = vmul.f32 %v17986_v25, %v5152_v58  ;;  %v15915_v58 = vld [vmem:[%s23821_s27 + $0x20] sm:$0xff] }
 0x755   :  { %v5163_v37 = vadd.f32 0.2548296, %v5160_v21  ;;  %v5158_v49 = vadd.f32 -0.28449672, %v5155_v13 }
 0x757   :  { %v5166_v38 = vmul.f32 %v17984_v0, %v5163_v37  ;;  %v5161_v31 = vmul.f32 %v17986_v25, %v5158_v49 }
 0x759   :  { %v5181_v43 = vmul.f32 %v17988_v11, %v5166_v38  ;;  %v5164_v22 = vadd.f32 0.2548296, %v5161_v31  ;;  %v15913_v31 = vld [vmem:[%s23554_s12] ss:$0 sm:$0xff] }
 0x75b   :  { %v5184_v18 = vsub.f32 1.0, %v5181_v43  ;;  %v5167_v51 = vmul.f32 %v17986_v25, %v5164_v22  ;;  %v15914_v22 = vld [vmem:[%s23555_s13] ss:$0 sm:$0xff] }
 0x75d   :  { %v5187_v4 = vmul.f32 %v5184_v18, %v5124_v40  ;;  %v5182_v44 = vmul.f32 %v17990_v24, %v5167_v51 }
 0x75f   :  { %v5190_v41 = vadd.f32 1.0, %v5187_v4  ;;  %v5185_v53 = vsub.f32 1.0, %v5182_v44 }
 0x761   :  { %v5193_v47 = vmul.f32 %v5190_v41, %v5115_v35  ;;  %v5188_v3 = vmul.f32 %v5185_v53, %v5125_v16 }
 0x763   :  { %17114 = vmatmul.mubr.f32.gmra.mxu1 %v5193_v47  ;;  %v5191_v29 = vadd.f32 1.0, %v5188_v3 }
 0x764   :  { %17116 = vmatprep.mubr.msk.f32.mxu1 %vm18311_vm0, %v23934_v62 }
 0x765   :  { %v5194_v10 = vmul.f32 %v5191_v29, %v5116_v27 }
 0x767   :  { %17117 = vmatmul.mubr.f32.gmra.mxu1 %v5194_v10 }
 0x7ff   :  { %v5284_v20 = vpop.f32.mrf.mxu1 }
 0x800   :  { %v5285_v5 = vadd.f32 %v15912_v17, %v5284_v20  ;;  %v20207_v20 = vld [vmem:[%s23824_s30 + $0x1] ss:$0 sm:$0xff] }
 0x801   :  { %v17112_v55 = vpop.f32.mrf.mxu1 }
 0x802   :  { %v5298_v12 = vadd.f32 %v5285_v5, %v20056_v33 }
 0x804   :  { %v5303_v50 = vsel %vm103_vm1, %v5298_v12, 0.0 }
 0x805   :  { %5304 = vadd.xlane.f32.xlu1 %v5303_v50 }
 0x823   :  { %v5289_v39 = vpop.f32.mrf.mxu1 }
 0x824   :  { %v5290_v2 = vadd.f32 %v15912_v17, %v5289_v39 }
 0x825   :  { %v17115_v46 = vpop.f32.mrf.mxu1 }
 0x826   :  { %v5299_v7 = vadd.f32 %v5290_v2, %v20062_v19 }
 0x827   :  { %v5294_v26 = vpop.f32.mrf.mxu1 }
 0x828   :  { %v5306_v8 = vsel %vm103_vm1, %v5299_v7, 0.0  ;;  %v5295_v59 = vadd.f32 %v15912_v17, %v5294_v26 }
 0x829   :  { %5307 = vadd.xlane.f32.xlu0 %v5306_v8  ;;  %v17118_v9 = vpop.f32.mrf.mxu1 }
 0x82a   :  { %v5300_v57 = vadd.f32 %v5295_v59, %v20068_v42  ;;  %v15917_v42 = vld [vmem:[%s23821_s27 + $0x30] sm:$0xff]  ;;  %v23944_v9 = vld [vmem:[#allocation8_spill] sm:$0xff] }
 0x82b   :  { %17122 = vmatpush3.msra.mxu0 %v15917_v42 }
 0x82c   :  { %v5309_v0 = vsel %vm4961_vm5, %v5300_v57, 0.0  ;;  %17123 = vmatprep.subr.mxu0 %v23934_v62 }
 0x82d   :  { %5310 = vadd.xlane.f32.xlu1 %v5309_v0  ;;  %17124 = vmatpush3.msra.mxu0 %v15916_v34  ;;  %v23945_v0 = vld [vmem:[#allocation15_spill] sm:$0xff]  ;;  %v23951_v34 = vld [vmem:[#allocation17_spill] sm:$0xff] }
 0x82e   :  { %17125 = vmatprep.subr.mxu0 %v23934_v62 }
 0x82f   :  { %17126 = vmatpush3.msra.mxu0 %v15915_v58 }
 0x88e   :  { %v5305_v33 = vpop.xlane.xlu1 %5304 }
 0x88f   :  { %v5312_v48 = vmul.f32 0.03125, %v5305_v33 }
 0x891   :  { %v5315_v63 = vsub.f32 %v5298_v12, %v5312_v48  ;;  %v23946_v48 = vld [vmem:[#allocation6_spill] sm:$0xff] }
 0x893   :  { %v5318_v28 = vmul.f32 %v5315_v63, %v5315_v63 }
 0x895   :  { %v5321_v23 = vsel %vm103_vm1, %v5318_v28, 0.0  ;;  %v23947_v28 = vld [vmem:[#allocation20_spill] sm:$0xff] }
 0x896   :  { %5322 = vadd.xlane.f32.xlu0 %v5321_v23 }
 0x8b2   :  { %v5308_v25 = vpop.xlane.xlu0 %5307 }
 0x8b3   :  { %v5313_v19 = vmul.f32 0.03125, %v5308_v25  ;;  %v23948_v25 = vld [vmem:[#allocation38_spill] sm:$0xff] }
 0x8b5   :  { %v5316_v30 = vsub.f32 %v5299_v7, %v5313_v19  ;;  %v23943_v7 = vld [vmem:[#allocation4_spill] sm:$0xff] }
 0x8b6   :  { %v5311_v54 = vpop.xlane.xlu1 %5310 }
 0x8b7   :  { %v5319_v60 = vmul.f32 %v5316_v30, %v5316_v30  ;;  %v5314_v45 = vmul.f32 0.03125, %v5311_v54  ;;  %v23950_v54 = vld [vmem:[#allocation10_spill] sm:$0xff] }
 0x8b9   :  { %v5324_v14 = vsel %vm103_vm1, %v5319_v60, 0.0  ;;  %v5317_v32 = vsub.f32 %v5300_v57, %v5314_v45 }
 0x8ba   :  { %5325 = vadd.xlane.f32.xlu1 %v5324_v14 }
 0x8bb   :  { %v5320_v21 = vmul.f32 %v5317_v32, %v5317_v32 }
 0x8bd   :  { %v5327_v13 = vsel %vm4961_vm5, %v5320_v21, 0.0 }
 0x8be   :  { %5328 = vadd.xlane.f32.xlu0 %v5327_v13  ;;  %v23953_v13 = vld [vmem:[#allocation40_spill] sm:$0xff] }
 0x91f   :  { %v5323_v37 = vpop.xlane.xlu0 %5322 }
 0x920   :  { %v5330_v49 = vmul.f32 0.03125, %v5323_v37 }
 0x922   :  { %v5333_v38 = vadd.f32 1e-12, %v5330_v49  ;;  %v23954_v49 = vld [vmem:[#allocation42_spill] sm:$0xff] }
 0x924   :  { %17991 = vrsqrt.f32 %v5333_v38 }
 0x931   :  { %v17992_v11 = vpop.eup %17991 }
 0x932   :  { %v5339_v43 = vmul.f32 %v17992_v11, %v5315_v63 }
 0x934   :  { %v5348_v18 = vmul.f32 %v15913_v31, %v5339_v43 }
 0x936   :  { %v20188_v40 = vadd.f32 %v15914_v22, %v5348_v18 }
 0x938   :  { %23940 = vst [vmem:[#allocation68_spill] sm:$0xff] %v20188_v40  ;;  %17128 = vmatmul.mubr.msk.f32.vlgmr.msra.gmra.mxu0 %vm103_vm1, %v20188_v40  ;;  %v23985_v40 = vld [vmem:[#allocation5_spill] sm:$0xff] }
 0x939   :  { %17130 = vmatprep.mubr.msk.f32.mxu0 %vm18311_vm0, %v23934_v62 }
 0x943   :  { %v5326_v51 = vpop.xlane.xlu1 %5325 }
 0x944   :  { %v5331_v24 = vmul.f32 0.03125, %v5326_v51 }
 0x946   :  { %v5334_v4 = vadd.f32 1e-12, %v5331_v24 }
 0x947   :  { %v5329_v44 = vpop.xlane.xlu0 %5328 }
 0x948   :  { %17993 = vrsqrt.f32 %v5334_v4  ;;  %v5332_v35 = vmul.f32 0.03125, %v5329_v44 }
 0x94a   :  { %v5335_v41 = vadd.f32 1e-12, %v5332_v35 }
 0x94c   :  { %17995 = vrsqrt.f32 %v5335_v41 }
 0x955   :  { %v17994_v53 = vpop.eup %17993 }
 0x956   :  { %v5340_v16 = vmul.f32 %v17994_v53, %v5316_v30  ;;  %v23949_v30 = vld [vmem:[#allocation36_spill] sm:$0xff] }
 0x958   :  { %v5349_v47 = vmul.f32 %v15913_v31, %v5340_v16 }
 0x959   :  { %v17996_v3 = vpop.eup %17995 }
 0x95a   :  { %v20194_v27 = vadd.f32 %v15914_v22, %v5349_v47  ;;  %v5341_v29 = vmul.f32 %v17996_v3, %v5317_v32  ;;  %v23952_v32 = vld [vmem:[#allocation22_spill] sm:$0xff] }
 0x95c   :  { %23941 = vst [vmem:[#allocation69_spill] sm:$0xff] %v20194_v27  ;;  %17131 = vmatmul.mubr.msk.f32.gmra.mxu0 %vm103_vm1, %v20194_v27  ;;  %v5350_v10 = vmul.f32 %v15913_v31, %v5341_v29 }
 0x95d   :  { %17133 = vmatprep.mubr.msk.f32.mxu0 %vm18311_vm0, %v23934_v62 }
 0x95e   :  { %v20200_v17 = vadd.f32 %v15914_v22, %v5350_v10  ;;  %v23956_v10 = vld [vmem:[#allocation49_spill] sm:$0xff] }
 0x960   :  { %23942 = vst [vmem:[#allocation70_spill] sm:$0xff] %v20200_v17  ;;  %17134 = vmatmul.mubr.msk.f32.gmra.mxu0 %vm103_vm1, %v20200_v17 }
 0x9f8   :  { %v5448_v5 = vpop.f32.mrf.mxu0 }
 0x9f9   :  { %v5449_v55 = vadd.f32 %v20207_v20, %v5448_v5 }
 0x9fa   :  { %v17129_v12 = vpop.f32.mrf.mxu0 }
 0x9fb   :  { %v5465_v50 = vcombine.high %v5449_v55, %v5449_v55  ;;  %v20211_v39 = vrot.slane %v5449_v55, %v18483_v15  ;;  %v23957_v55 = vld [vmem:[#allocation56_spill] sm:$0xff] }
 0x9fd   :  { %v20214_v2 = vrot.slane %v5465_v50, %v18483_v15  ;;  %v20218_v46 = vcombine.high %v20211_v39, %v20211_v39  ;;  %v5517_v26 = vmul.f32 %v20211_v39, %v23943_v7  ;;  %v5532_v33 = vmul.f32 %v20211_v39, %v23945_v0  ;;  %v23959_v50 = vld [vmem:[#allocation51_spill] sm:$0xff] }
 0x9fe   :  { %v5597_v19 = vmul.f32 %v20211_v39, %v23948_v25  ;;  %v5617_v5 = vmul.f32 %v20211_v39, %v23956_v10  ;;  %v20344_v62 = vmul.f32 %v20211_v39, %v23985_v40 }
 0x9ff   :  { %v20224_v8 = vcombine.high %v20214_v2, %v20214_v2  ;;  %v5706_v59 = vcombine.low %v20211_v39, %v20218_v46  ;;  %v5518_v57 = vmul.f32 %v20218_v46, %v23944_v9  ;;  %v5519_v63 = vmul.f32 %v20214_v2, %v23946_v48  ;;  %v24008_v9 = vld [vmem:[#allocation37_spill] sm:$0xff] }
 0xa00   :  { %v5533_v23 = vmul.f32 %v20218_v46, %v23947_v28  ;;  %v5598_v6 = vmul.f32 %v20218_v46, %v23949_v30  ;;  %v5534_v14 = vmul.f32 %v20214_v2, %v23951_v34  ;;  %v5599_v37 = vmul.f32 %v20214_v2, %v23953_v13 }
 0xa01   :  { %v5707_v42 = vcombine.low %v20214_v2, %v20224_v8  ;;  %v5520_v60 = vmul.f32 %v20224_v8, %v23950_v54  ;;  %v5682_v45 = vcombine.low %v5517_v26, %v5518_v57  ;;  %v5535_v58 = vmul.f32 %v20224_v8, %v23952_v32  ;;  %v24006_v54 = vld [vmem:[#allocation52_spill] sm:$0xff] }
 0xa02   :  { %v6038_v21 = vcombine.low %v5532_v33, %v5533_v23  ;;  %v5600_v38 = vmul.f32 %v20224_v8, %v23954_v49  ;;  %v5714_v11 = vrot.slane %v5706_v59, %v18483_v15  ;;  %v7826_v22 = vcombine.low %v5597_v19, %v5598_v6  ;;  %v23960_v59 = vld [vmem:[#allocation58_spill] sm:$0xff]  ;;  %v23962_v19 = vld [vmem:[#allocation60_spill] sm:$0xff] }
 0xa03   :  { %v5721_v31 = vrot.slane %v5707_v42, %v18483_v15  ;;  %v5683_v43 = vcombine.low %v5519_v63, %v5520_v60  ;;  %v6039_v18 = vcombine.low %v5534_v14, %v5535_v58  ;;  %v5690_v4 = vrot.slane %v5682_v45, %v18483_v15  ;;  %v23961_v63 = vld [vmem:[#allocation53_spill] sm:$0xff]  ;;  %v23963_v60 = vld [vmem:[#allocation55_spill] sm:$0xff]  ;;  %v23964_v14 = vld [vmem:[#allocation62_spill] sm:$0xff] }
 0xa04   :  { %v7827_v51 = vcombine.low %v5599_v37, %v5600_v38  ;;  %v6046_v35 = vrot.slane %v6038_v21, %v18483_v15  ;;  %v7834_v47 = vrot.slane %v7826_v22, %v18483_v15  ;;  %v5618_v12 = vmul.f32 %v20218_v46, %v23957_v55  ;;  %v23966_v38 = vld [vmem:[#allocation57_spill] sm:$0xff] }
 0xa05   :  { %v5722_v24 = vcombine.low %v5714_v11, %v5721_v31  ;;  %v5697_v44 = vrot.slane %v5683_v43, %v18483_v15  ;;  %v6053_v41 = vrot.slane %v6039_v18, %v18483_v15  ;;  %v5619_v26 = vmul.f32 %v20214_v2, %v23959_v50  ;;  %v23967_v31 = vld [vmem:[#allocation63_spill] sm:$0xff] }
 0xa06   :  { %v7841_v53 = vrot.slane %v7827_v51, %v18483_v15  ;;  %v5620_v57 = vmul.f32 %v20224_v8, %v23960_v59  ;;  %v8294_v33 = vcombine.low %v5617_v5, %v5618_v12  ;;  %v5622_v23 = vmul.f32 %v20211_v39, %v23961_v63  ;;  %v23969_v51 = vld [vmem:[#allocation59_spill] sm:$0xff] }
 0xa07   :  { %5730 = vrot.lane.b32.xlu0 %v5722_v24, %s23955_s0  ;;  %v5698_v16 = vcombine.low %v5690_v4, %v5697_v44  ;;  %v6054_v3 = vcombine.low %v6046_v35, %v6053_v41  ;;  %v5623_v6 = vmul.f32 %v20218_v46, %v23962_v19  ;;  %v5624_v45 = vmul.f32 %v20214_v2, %v23963_v60  ;;  %v23970_v4 = vld [vmem:[#allocation64_spill] sm:$0xff]  ;;  %v23988_v59 = vld [vmem:[#allocation7_spill] sm:$0xff] }
 0xa08   :  { %v7842_v29 = vcombine.low %v7834_v47, %v7841_v53  ;;  %v8295_v42 = vcombine.low %v5619_v26, %v5620_v57  ;;  %v5625_v58 = vmul.f32 %v20224_v8, %v23964_v14  ;;  %v20281_v21 = vrot.slane %v8294_v33, %v18483_v15  ;;  %v23974_v33 = vld [vmem:[#allocation12_spill] sm:$0xff]  ;;  %v23982_v47 = vld [vmem:[#allocation23_spill] sm:$0xff] }
 0xa09   :  { %17140 = vmatprep.mubr.msk.f32.mxu0 %vm103_vm1, %v5698_v16  ;;  %17161 = vmatprep.mubr.msk.f32.mxu1 %vm103_vm1, %v6054_v3  ;;  %v8411_v37 = vcombine.low %v5622_v23, %v5623_v6  ;;  %v5627_v11 = vmul.f32 %v20211_v39, %v23966_v38  ;;  %v5628_v43 = vmul.f32 %v20218_v46, %v23967_v31  ;;  %v23995_v31 = vld [vmem:[#allocation31_spill] sm:$0xff] }
 0xa0a   :  { %23965 = vst [vmem:[#allocation72_spill] sm:$0xff] %v20281_v21  ;;  %v20288_v22 = vrot.slane %v8295_v42, %v18483_v15  ;;  %v8412_v18 = vcombine.low %v5624_v45, %v5625_v58  ;;  %v5629_v24 = vmul.f32 %v20214_v2, %v23969_v51  ;;  %v5630_v44 = vmul.f32 %v20224_v8, %v23970_v4  ;;  %v23976_v45 = vld [vmem:[#allocation14_spill] sm:$0xff]  ;;  %v24004_v21 = vld [vmem:[#allocation48_spill] sm:$0xff] }
 0xa0b   :  { %7850 = vrot.lane.b32.xlu0 %v7842_v29, %s23958_s5  ;;  %v20295_v35 = vrot.slane %v8411_v37, %v18483_v15  ;;  %v8528_v41 = vcombine.low %v5627_v11, %v5628_v43  ;;  %v5632_v53 = vmul.f32 %v20211_v39, %v19293_v56  ;;  %v5633_v16 = vmul.f32 %v20218_v46, %v19356_v36  ;;  %v23977_v37 = vld [vmem:[#allocation13_spill] sm:$0xff] }
 0xa0c   :  { %23968 = vst [vmem:[#allocation73_spill] sm:$0xff] %v20288_v22  ;;  %v20304_v3 = vrot.slane %v8412_v18, %v18483_v15  ;;  %v8529_v29 = vcombine.low %v5629_v24, %v5630_v44  ;;  %v5634_v5 = vmul.f32 %v20214_v2, %v19365_v52  ;;  %v5635_v26 = vmul.f32 %v20224_v8, %v19372_v1  ;;  %v23979_v24 = vld [vmem:[#allocation16_spill] sm:$0xff]  ;;  %v23990_v1 = vld [vmem:[#allocation11_spill] sm:$0xff]  ;;  %v23992_v36 = vld [vmem:[#allocation29_spill] sm:$0xff] }
 0xa0d   :  { %23971 = vst [vmem:[#allocation77_spill] sm:$0xff] %v20295_v35  ;;  %v20309_v12 = vrot.slane %v8528_v41, %v18483_v15  ;;  %v8645_v57 = vcombine.low %v5632_v53, %v5633_v16  ;;  %v5522_v23 = vmul.f32 %v20211_v39, %v23974_v33  ;;  %v5523_v58 = vmul.f32 %v20218_v46, %v23976_v45  ;;  %v23980_v41 = vld [vmem:[#allocation21_spill] sm:$0xff]  ;;  %v24001_v35 = vld [vmem:[#allocation46_spill] sm:$0xff] }
 0xa0e   :  { %23972 = vst [vmem:[#allocation71_spill] sm:$0xff] %v20304_v3  ;;  %v20318_v42 = vrot.slane %v8529_v29, %v18483_v15  ;;  %v5524_v11 = vmul.f32 %v20214_v2, %v23977_v37  ;;  %v8646_v43 = vcombine.low %v5634_v5, %v5635_v26  ;;  %v5525_v44 = vmul.f32 %v20224_v8, %v23979_v24 }
 0xa0f   :  { %23973 = vst [vmem:[#allocation75_spill] sm:$0xff] %v20309_v12  ;;  %v20325_v18 = vrot.slane %v8645_v57, %v18483_v15  ;;  %v5542_v53 = vmul.f32 %v20211_v39, %v23980_v41  ;;  %v5822_v29 = vcombine.low %v5522_v23, %v5523_v58  ;;  %v5543_v6 = vmul.f32 %v20218_v46, %v23981_v61  ;;  %v23984_v57 = vld [vmem:[#allocation30_spill] sm:$0xff]  ;;  %v23987_v58 = vld [vmem:[#allocation9_spill] sm:$0xff] }
 0xa10   :  { %23975 = vst [vmem:[#allocation76_spill] sm:$0xff] %v20318_v42  ;;  %v5544_v17 = vmul.f32 %v20214_v2, %v23982_v47  ;;  %v20338_v5 = vrot.slane %v8646_v43, %v18483_v15  ;;  %v5823_v26 = vcombine.low %v5524_v11, %v5525_v44  ;;  %v5545_v27 = vmul.f32 %v20224_v8, %v23984_v57  ;;  %v23993_v11 = vld [vmem:[#allocation34_spill] sm:$0xff]  ;;  %v24005_v57 = vld [vmem:[#allocation43_spill] sm:$0xff] }
 0xa11   :  { %23978 = vst [vmem:[#allocation81_spill] sm:$0xff] %v20325_v18  ;;  %v20347_v16 = vrot.slane %v5822_v29, %v18483_v15  ;;  %v6254_v23 = vcombine.low %v5542_v53, %v5543_v6  ;;  %v20351_v55 = vmul.f32 %v20218_v46, %v23987_v58  ;;  %v20355_v43 = vmul.f32 %v20214_v2, %v23988_v59  ;;  %v23996_v18 = vld [vmem:[#allocation35_spill] sm:$0xff]  ;;  %v24003_v59 = vld [vmem:[#allocation54_spill] sm:$0xff] }
 0xa12   :  { %23983 = vst [vmem:[#allocation74_spill] sm:$0xff] %v20338_v5  ;;  %v20360_v44 = vrot.slane %v5823_v26, %v18483_v15  ;;  %v6255_v50 = vcombine.low %v5544_v17, %v5545_v27  ;;  %v20364_v29 = vmul.f32 %v20224_v8, %v23990_v1  ;;  %v20373_v4 = vmul.f32 %v20211_v39, %v23992_v36 }
 0xa13   :  { %23986 = vst [vmem:[#allocation79_spill] sm:$0xff] %v20347_v16  ;;  %v20367_v53 = vrot.slane %v6254_v23, %v18483_v15  ;;  %v20377_v26 = vmul.f32 %v20218_v46, %v23993_v11  ;;  %v20389_v5 = vmul.f32 %v20214_v2, %v23995_v31  ;;  %v20393_v42 = vmul.f32 %v20224_v8, %v23996_v18  ;;  %v23997_v18 = vld [vmem:[#allocation41_spill] sm:$0xff]  ;;  %v24002_v11 = vld [vmem:[#allocation50_spill] sm:$0xff] }
 0xa14   :  { %23989 = vst [vmem:[#allocation80_spill] sm:$0xff] %v20360_v44  ;;  %v20383_v51 = vrot.slane %v6255_v50, %v18483_v15  ;;  %v5610_v36 = vmul.f32 %v20224_v8, %v24002_v11  ;;  %v5615_v58 = vmul.f32 %v20224_v8, %v24003_v59  ;;  %v5608_v11 = vmul.f32 %v20218_v46, %v24004_v21  ;;  %v24007_v59 = vld [vmem:[#allocation47_spill] sm:$0xff] }
 0xa15   :  { %23991 = vst [vmem:[#allocation78_spill] sm:$0xff] %v20367_v53  ;;  %v5609_v47 = vmul.f32 %v20214_v2, %v24005_v57  ;;  %v5613_v48 = vmul.f32 %v20218_v46, %v24006_v54  ;;  %v5602_v7 = vmul.f32 %v20211_v39, %v24008_v9  ;;  %v5607_v21 = vmul.f32 %v20211_v39, %v23997_v18 }
 0xa16   :  { %23994 = vst [vmem:[#allocation83_spill] sm:$0xff] %v20383_v51 }
 0xa17   :  { %v8061_v54 = vcombine.low %v5609_v47, %v5610_v36 }
 0xa19   :  { %v20478_v36 = vrot.slane %v8061_v54, %v18483_v15 }
 0xa1c   :  { %v5453_v6 = vpop.f32.mrf.mxu0 }
 0xa1d   :  { %v5454_v27 = vadd.f32 %v20207_v20, %v5453_v6 }
 0xa1e   :  { %v17132_v52 = vpop.f32.mrf.mxu0 }
 0xa1f   :  { %v5482_v12 = vcombine.high %v5454_v27, %v5454_v27  ;;  %v20398_v17 = vrot.slane %v5454_v27, %v18483_v15 }
 0xa20   :  { %v5458_v44 = vpop.f32.mrf.mxu0 }
 0xa21   :  { %v20405_v23 = vrot.slane %v5482_v12, %v18483_v15  ;;  %v5729_v16 = vrot.slane %v20398_v17, %v18483_v15  ;;  %v5611_v6 = vmul.f32 %v20398_v17, %v23997_v18  ;;  %v5459_v31 = vadd.f32 %v20207_v20, %v5458_v44  ;;  %v23998_v12 = vld [vmem:[#allocation45_spill] sm:$0xff]  ;;  %v23999_v20 = vld [vmem:[#allocation44_spill] sm:$0xff] }
 0xa22   :  { %v20414_v27 = vcombine.high %v20398_v17, %v20398_v17  ;;  %v17135_v50 = vpop.f32.mrf.mxu0  ;;  %v5616_v51 = vmul.f32 %v20398_v17, %v23998_v12  ;;  %v5603_v44 = vmul.f32 %v20218_v46, %v23999_v20  ;;  %v5626_v22 = vmul.f32 %v20398_v17, %v23961_v63 }
 0xa23   :  { %5732 = vrot.lane.b32.xlu1 %v5729_v16, %s23955_s0  ;;  %v8083_v52 = vrot.slane %v5611_v6, %v18483_v15  ;;  %v20422_v53 = vcombine.high %v20405_v23, %v20405_v23  ;;  %v20425_v3 = vrot.slane %v5459_v31, %v18483_v15  ;;  %v24000_v50 = vld [vmem:[#allocation39_spill] sm:$0xff]  ;;  %v5605_v6 = vmul.f32 %v20224_v8, %v24001_v35 }
 0xa24   :  { %v5604_v16 = vmul.f32 %v20214_v2, %v24000_v50  ;;  %v6602_v31 = vcombine.low %v20414_v27, %v20405_v23  ;;  %v8200_v40 = vrot.slane %v5616_v51, %v18483_v15  ;;  %v5614_v51 = vmul.f32 %v20214_v2, %v24007_v59 }
 0xa25   :  { %8086 = vrot.lane.b32.xlu0 %v8083_v52, %s23958_s5  ;;  %v20438_v1 = vcombine.high %v20425_v3, %v20425_v3  ;;  %v6603_v52 = vcombine.low %v20422_v53, %v20425_v3  ;;  %v5612_v57 = vmul.f32 %v20211_v39, %v23998_v12  ;;  %v8434_v59 = vrot.slane %v5626_v22, %v18483_v15 }
 0xa26   :  { %v7944_v32 = vcombine.low %v5604_v16, %v5605_v6  ;;  %v8178_v34 = vcombine.low %v5614_v51, %v5615_v58  ;;  %v7943_v28 = vcombine.low %v5602_v7, %v5603_v44  ;;  %v5601_v35 = vmul.f32 %v20398_v17, %v23948_v25  ;;  %v24012_v51 = vld [vmem:[#allocation18_spill] sm:$0xff] }
 0xa27   :  { %v6625_v61 = vrot.slane %v20438_v1, %v18483_v15  ;;  %v6617_v41 = vrot.slane %v6603_v52, %v18483_v15  ;;  %v6610_v52 = vrot.slane %v6602_v31, %v18483_v15  ;;  %v8060_v50 = vcombine.low %v5607_v21, %v5608_v11 }
 0xa28   :  { %v8177_v24 = vcombine.low %v5612_v57, %v5613_v48  ;;  %v20481_v22 = vrot.slane %v8178_v34, %v18483_v15  ;;  %v5636_v47 = vmul.f32 %v20398_v17, %v19293_v56  ;;  %v7951_v21 = vrot.slane %v7943_v28, %v18483_v15  ;;  %v24019_v28 = vld [vmem:[#allocation46_spill] sm:$0xff] }
 0xa29   :  { %8203 = vrot.lane.b32.xlu0 %v8200_v40, %s23958_s5  ;;  %6628 = vrot.lane.b32.xlu1 %v6625_v61, %s23955_s0  ;;  %v5631_v40 = vmul.f32 %v20398_v17, %v23966_v38  ;;  %v6618_v0 = vcombine.low %v6610_v52, %v6617_v41  ;;  %v7958_v61 = vrot.slane %v7944_v32, %v18483_v15 }
 0xa2a   :  { %v7849_v48 = vrot.slane %v5601_v35, %v18483_v15  ;;  %v8068_v32 = vrot.slane %v8060_v50, %v18483_v15  ;;  %v20492_v54 = vrot.slane %v8177_v24, %v18483_v15  ;;  %v8668_v35 = vrot.slane %v5636_v47, %v18483_v15 }
 0xa2b   :  { %v8551_v7 = vrot.slane %v5631_v40, %v18483_v15  ;;  %v7959_v34 = vcombine.low %v7951_v21, %v7958_v61  ;;  %v5641_v41 = vmul.f32 %v20438_v1, %v23948_v25  ;;  %v24009_v24 = vcombine.low %v20344_v62, %v20351_v55  ;;  %v24013_v40 = vld [vmem:[#allocation24_spill] sm:$0xff] }
 0xa2c   :  { %v24010_v58 = vcombine.low %v20355_v43, %v20364_v29  ;;  %v20517_v50 = vmul.f32 %v20398_v17, %v23956_v10  ;;  %v5662_v16 = vmul.f32 %v20414_v27, %v23961_v63  ;;  %v24011_v62 = vcombine.low %v20373_v4, %v20377_v26 }
 0xa2d   :  { %8437 = vrot.lane.b32.xlu0 %v8434_v59, %s23958_s5  ;;  %6626 = vrot.lane.b32.xlu1 %v6618_v0, %s23955_s0  ;;  %v5606_v0 = vmul.f32 %v20398_v17, %v24008_v9  ;;  %v8076_v59 = vcombine.low %v8068_v32, %v20478_v36  ;;  %v20506_v57 = vrot.slane %v24009_v24, %v18483_v15 }
 0xa2e   :  { %v20512_v11 = vrot.slane %v24010_v58, %v18483_v15  ;;  %v20525_v55 = vrot.slane %v24011_v62, %v18483_v15  ;;  %v5646_v43 = vmul.f32 %v20438_v1, %v24008_v9  ;;  %v5651_v29 = vmul.f32 %v20438_v1, %v23997_v18 }
 0xa2f   :  { %v7966_v44 = vrot.slane %v5606_v0, %v18483_v15  ;;  %v5663_v6 = vmul.f32 %v20405_v23, %v23962_v19  ;;  %v5664_v31 = vmul.f32 %v20422_v53, %v23963_v60  ;;  %v20539_v4 = vmul.f32 %v20438_v1, %v23998_v12 }
 0xa30   :  { %v5665_v26 = vmul.f32 %v20425_v3, %v23964_v14  ;;  %v5537_v52 = vmul.f32 %v20211_v39, %v24012_v51  ;;  %v5538_v61 = vmul.f32 %v20218_v46, %v24013_v40  ;;  %v8785_v36 = vrot.slane %v5641_v41, %v18483_v15 }
 0xa31   :  { %8554 = vrot.lane.b32.xlu0 %v8551_v7, %s23958_s5  ;;  %7852 = vrot.lane.b32.xlu1 %v7849_v48, %s23958_s5  ;;  %v20550_v7 = vmul.f32 %v20438_v1, %v23956_v10  ;;  %v20554_v47 = vmul.f32 %v20438_v1, %v23961_v63  ;;  %v9347_v21 = vcombine.low %v5662_v16, %v5663_v6  ;;  %v24023_v63 = vld [vmem:[#allocation33_spill] sm:$0xff] }
 0xa32   :  { %v20560_v0 = vmul.f32 %v20414_v27, %v23948_v25  ;;  %v20564_v32 = vmul.f32 %v20405_v23, %v23949_v30  ;;  %v8902_v41 = vrot.slane %v5646_v43, %v18483_v15  ;;  %v9019_v24 = vrot.slane %v5651_v29, %v18483_v15  ;;  %v24041_v30 = vld [vmem:[#allocation30_spill] sm:$0xff] }
 0xa33   :  { %v20571_v58 = vmul.f32 %v20422_v53, %v23953_v13  ;;  %v9136_v16 = vrot.slane %v20539_v4, %v18483_v15  ;;  %v20579_v62 = vrot.slane %v9347_v21, %v18483_v15  ;;  %v24014_v43 = vcombine.low %v20389_v5, %v20393_v42  ;;  %v24017_v42 = vld [vmem:[#allocation16_spill] sm:$0xff] }
 0xa34   :  { %v6146_v5 = vcombine.low %v5537_v52, %v5538_v61  ;;  %v20616_v52 = vmul.f32 %v20414_v27, %v24008_v9  ;;  %v20620_v61 = vmul.f32 %v20405_v23, %v23999_v20  ;;  %v5585_v25 = vmul.f32 %v20425_v3, %v24041_v30 }
 0xa35   :  { %8671 = vrot.lane.b32.xlu0 %v8668_v35, %s23958_s5  ;;  %7969 = vrot.lane.b32.xlu1 %v7966_v44, %s23958_s5  ;;  %v9348_v35 = vcombine.low %v5664_v31, %v5665_v26  ;;  %v20588_v29 = vrot.slane %v24014_v43, %v18483_v15  ;;  %v9253_v31 = vrot.slane %v20550_v7, %v18483_v15  ;;  %v24015_v26 = vld [vmem:[#allocation19_spill] sm:$0xff] }
 0xa36   :  { %v5539_v4 = vmul.f32 %v20214_v2, %v24015_v26  ;;  %v5562_v43 = vmul.f32 %v20414_v27, %v23974_v33  ;;  %v20607_v7 = vmul.f32 %v20425_v3, %v23954_v49  ;;  %v8762_v44 = vcombine.low %v20560_v0, %v20564_v32  ;;  %v24018_v32 = vld [vmem:[#allocation39_spill] sm:$0xff] }
 0xa37   :  { %v20582_v6 = vrot.slane %v9348_v35, %v18483_v15  ;;  %v5563_v35 = vmul.f32 %v20405_v23, %v23976_v45  ;;  %v5565_v0 = vmul.f32 %v20425_v3, %v24017_v42  ;;  %v20638_v45 = vmul.f32 %v20425_v3, %v24019_v28  ;;  %v24021_v42 = vld [vmem:[#allocation32_spill] sm:$0xff]  ;;  %v24027_v28 = vld [vmem:[#allocation17_spill] sm:$0xff]  ;;  %v24040_v49 = vld [vmem:[#allocation23_spill] sm:$0xff] }
 0xa38   :  { %v5548_v14 = vmul.f32 %v20218_v46, %v24021_v42  ;;  %v5584_v13 = vmul.f32 %v20422_v53, %v24040_v49 }
 0xa39   :  { %8788 = vrot.lane.b32.xlu0 %v8785_v36, %s23958_s5  ;;  %7967 = vrot.lane.b32.xlu1 %v7959_v34, %s23958_s5  ;;  %v24016_v36 = vld [vmem:[#allocation26_spill] sm:$0xff]  ;;  %v6718_v48 = vcombine.low %v5562_v43, %v5563_v35  ;;  %v24022_v35 = vld [vmem:[#allocation27_spill] sm:$0xff] }
 0xa3a   :  { %v5540_v21 = vmul.f32 %v20224_v8, %v24016_v36  ;;  %v5549_v43 = vmul.f32 %v20214_v2, %v24022_v35  ;;  %v20667_v2 = vmul.f32 %v20414_v27, %v23997_v18 }
 0xa3c   :  { %v6147_v34 = vcombine.low %v5539_v4, %v5540_v21  ;;  %v20628_v4 = vmul.f32 %v20422_v53, %v24018_v32  ;;  %v5574_v32 = vmul.f32 %v20422_v53, %v24027_v28  ;;  %v24031_v28 = vld [vmem:[#allocation4_spill] sm:$0xff] }
 0xa3d   :  { %8905 = vrot.lane.b32.xlu0 %v8902_v41, %s23958_s5  ;;  %8084 = vrot.lane.b32.xlu1 %v8076_v59, %s23958_s5  ;;  %v5564_v41 = vmul.f32 %v20422_v53, %v23977_v37  ;;  %v20631_v59 = vrot.slane %v6146_v5, %v18483_v15  ;;  %v24020_v37 = vld [vmem:[#allocation25_spill] sm:$0xff] }
 0xa3e   :  { %v20634_v21 = vrot.slane %v6147_v34, %v18483_v15  ;;  %v5547_v19 = vmul.f32 %v20211_v39, %v24020_v37  ;;  %v20648_v34 = vrot.slane %v6718_v48, %v18483_v15  ;;  %v24024_v39 = vcombine.low %v20492_v54, %v20481_v22  ;;  %v24026_v48 = vld [vmem:[#allocation20_spill] sm:$0xff]  ;;  %v24028_v22 = vld [vmem:[#allocation22_spill] sm:$0xff] }
 0xa3f   :  { %v6719_v60 = vcombine.low %v5564_v41, %v5565_v0  ;;  %v5550_v41 = vmul.f32 %v20224_v8, %v24023_v63  ;;  %v24025_v0 = vld [vmem:[#allocation15_spill] sm:$0xff]  ;;  %v5573_v9 = vmul.f32 %v20405_v23, %v24026_v48  ;;  %v5575_v54 = vmul.f32 %v20425_v3, %v24028_v22 }
 0xa40   :  { %v5572_v5 = vmul.f32 %v20414_v27, %v24025_v0  ;;  %v8880_v30 = vcombine.low %v20628_v4, %v20638_v45 }
 0xa41   :  { %9022 = vrot.lane.b32.xlu0 %v9019_v24, %s23958_s5  ;;  %8201 = vrot.lane.b32.xlu1 %v24024_v39, %s23958_s5  ;;  %v20659_v46 = vrot.slane %v6719_v60, %v18483_v15  ;;  %v6362_v24 = vcombine.low %v5547_v19, %v5548_v14  ;;  %v6363_v8 = vcombine.low %v5549_v43, %v5550_v41  ;;  %v24029_v60 = vld [vmem:[#allocation48_spill] sm:$0xff] }
 0xa42   :  { %v8763_v19 = vcombine.low %v20571_v58, %v20607_v7  ;;  %v20677_v14 = vmul.f32 %v20405_v23, %v24029_v60  ;;  %v6934_v48 = vcombine.low %v5572_v5, %v5573_v9  ;;  %v6935_v22 = vcombine.low %v5574_v32, %v5575_v54  ;;  %v24039_v60 = vld [vmem:[#allocation28_spill] sm:$0xff] }
 0xa43   :  { %v20683_v43 = vrot.slane %v6362_v24, %v18483_v15  ;;  %v20686_v41 = vrot.slane %v6363_v8, %v18483_v15  ;;  %v5557_v58 = vmul.f32 %v20414_v27, %v24031_v28  ;;  %v24032_v7 = vrot.slane %v20517_v50, %v18483_v15  ;;  %v24035_v24 = vld [vmem:[#allocation6_spill] sm:$0xff]  ;;  %v24042_v8 = vld [vmem:[#allocation43_spill] sm:$0xff] }
 0xa44   :  { %v20695_v39 = vrot.slane %v8762_v44, %v18483_v15  ;;  %v20698_v9 = vrot.slane %v6934_v48, %v18483_v15  ;;  %v5559_v32 = vmul.f32 %v20422_v53, %v24035_v24  ;;  %v20707_v54 = vrot.slane %v6935_v22, %v18483_v15  ;;  %v24037_v50 = vld [vmem:[#allocation10_spill] sm:$0xff]  ;;  %v24038_v44 = vld [vmem:[#allocation21_spill] sm:$0xff] }
 0xa45   :  { %9139 = vrot.lane.b32.xlu0 %v9136_v16, %s23958_s5  ;;  %24030 = vst [vmem:[#allocation82_spill] sm:$0xff] %v20686_v41  ;;  %8320 = vrot.lane.b32.xlu1 %v24032_v7, %s23958_s5  ;;  %v24034_v16 = vld [vmem:[#allocation8_spill] sm:$0xff]  ;;  %v5560_v7 = vmul.f32 %v20425_v3, %v24037_v50  ;;  %v5582_v18 = vmul.f32 %v20414_v27, %v24038_v44  ;;  %v24044_v24 = vld [vmem:[#allocation73_spill] sm:$0xff] }
 0xa46   :  { %24033 = vst [vmem:[#allocation84_spill] sm:$0xff] %v20698_v9  ;;  %v5558_v5 = vmul.f32 %v20405_v23, %v24034_v16  ;;  %24036 = vst [vmem:[#allocation85_spill] sm:$0xff] %v20707_v54  ;;  %v5583_v20 = vmul.f32 %v20405_v23, %v24039_v60  ;;  %v8879_v22 = vcombine.low %v20616_v52, %v20620_v61  ;;  %v24043_v60 = vld [vmem:[#allocation72_spill] sm:$0xff]  ;;  %v24046_v41 = vld [vmem:[#allocation5_spill] sm:$0xff] }
 0xa47   :  { %v20724_v50 = vmul.f32 %v20422_v53, %v24042_v8  ;;  %v24045_v49 = vcombine.low %v24043_v60, %v24044_v24  ;;  %v7151_v16 = vcombine.low %v5584_v13, %v5585_v25  ;;  %v5567_v52 = vmul.f32 %v20414_v27, %v24046_v41  ;;  %v24047_v61 = vld [vmem:[#allocation50_spill] sm:$0xff]  ;;  %v24048_v60 = vld [vmem:[#allocation9_spill] sm:$0xff]  ;;  %v24049_v13 = vld [vmem:[#allocation7_spill] sm:$0xff] }
 0xa48   :  { %v6578_v48 = vcombine.low %v5557_v58, %v5558_v5  ;;  %v6579_v5 = vcombine.low %v5559_v32, %v5560_v7  ;;  %v20738_v8 = vmul.f32 %v20425_v3, %v24047_v61  ;;  %v24051_v24 = vrot.slane %v20554_v47, %v18483_v15  ;;  %v24058_v7 = vld [vmem:[#allocation35_spill] sm:$0xff] }
 0xa49   :  { %9256 = vrot.lane.b32.xlu0 %v9253_v31, %s23958_s5  ;;  %8318 = vrot.lane.b32.xlu1 %v24045_v49, %s23958_s5  ;;  %v7150_v31 = vcombine.low %v5582_v18, %v5583_v20  ;;  %v5568_v49 = vmul.f32 %v20405_v23, %v24048_v60  ;;  %v20752_v25 = vrot.slane %v7151_v16, %v18483_v15  ;;  %v24050_v20 = vld [vmem:[#allocation11_spill] sm:$0xff]  ;;  %v24053_v16 = vld [vmem:[#allocation34_spill] sm:$0xff] }
 0xa4a   :  { %v20741_v58 = vrot.slane %v6578_v48, %v18483_v15  ;;  %v20744_v32 = vrot.slane %v6579_v5, %v18483_v15  ;;  %v5569_v18 = vmul.f32 %v20422_v53, %v24049_v13  ;;  %v5570_v4 = vmul.f32 %v20425_v3, %v24050_v20  ;;  %v24052_v5 = vld [vmem:[#allocation29_spill] sm:$0xff]  ;;  %v24055_v60 = vld [vmem:[#allocation71_spill] sm:$0xff] }
 0xa4b   :  { %v20749_v45 = vrot.slane %v7150_v31, %v18483_v15  ;;  %v6826_v48 = vcombine.low %v5567_v52, %v5568_v49  ;;  %v5592_v31 = vmul.f32 %v20414_v27, %v24052_v5  ;;  %v5593_v61 = vmul.f32 %v20405_v23, %v24053_v16  ;;  %v24054_v13 = vld [vmem:[#allocation77_spill] sm:$0xff] }
 0xa4c   :  { %v24056_v54 = vcombine.low %v24054_v13, %v24055_v60  ;;  %v6827_v47 = vcombine.low %v5569_v18, %v5570_v4  ;;  %v5595_v52 = vmul.f32 %v20425_v3, %v24058_v7  ;;  %v8996_v49 = vcombine.low %v20667_v2, %v20677_v14 }
 0xa4d   :  { %9373 = vrot.lane.b32.xlu0 %v24051_v24, %s23958_s5  ;;  %v24057_v24 = vld [vmem:[#allocation31_spill] sm:$0xff]  ;;  %v20782_v16 = vmul.f32 %v20414_v27, %v23998_v12  ;;  %v20785_v60 = vrot.slane %v6826_v48, %v18483_v15  ;;  %v5577_v4 = vmul.f32 %v20414_v27, %v24012_v51  ;;  %v5578_v20 = vmul.f32 %v20405_v23, %v24013_v40 }
 0xa4e   :  { %8435 = vrot.lane.b32.xlu1 %v24056_v54, %s23958_s5  ;;  %v5594_v9 = vmul.f32 %v20422_v53, %v24057_v24  ;;  %v7366_v54 = vcombine.low %v5592_v31, %v5593_v61  ;;  %v20788_v13 = vrot.slane %v6827_v47, %v18483_v15  ;;  %v8777_v2 = vrot.slane %v8763_v19, %v18483_v15  ;;  %v24059_v48 = vld [vmem:[#allocation75_spill] sm:$0xff]  ;;  %v24060_v31 = vld [vmem:[#allocation76_spill] sm:$0xff] }
 0xa4f   :  { %v8887_v14 = vrot.slane %v8879_v22, %v18483_v15  ;;  %v5579_v61 = vmul.f32 %v20422_v53, %v24015_v26  ;;  %v5580_v19 = vmul.f32 %v20425_v3, %v24016_v36  ;;  %v7042_v22 = vcombine.low %v5577_v4, %v5578_v20 }
 0xa50   :  { %v7367_v18 = vcombine.low %v5594_v9, %v5595_v52  ;;  %v20797_v7 = vrot.slane %v7366_v54, %v18483_v15  ;;  %v24061_v9 = vcombine.low %v24059_v48, %v24060_v31  ;;  %v24062_v54 = vld [vmem:[#allocation47_spill] sm:$0xff]  ;;  %v5587_v26 = vmul.f32 %v20414_v27, %v24020_v37 }
 0xa51   :  { %v5654_v24 = vmul.f32 %v20422_v53, %v24062_v54  ;;  %v5588_v48 = vmul.f32 %v20405_v23, %v24021_v42  ;;  %v5589_v31 = vmul.f32 %v20422_v53, %v24022_v35  ;;  %v7043_v47 = vcombine.low %v5579_v61, %v5580_v19  ;;  %v24063_v35 = vld [vmem:[#allocation81_spill] sm:$0xff] }
 0xa52   :  { %8552 = vrot.lane.b32.xlu1 %v24061_v9, %s23958_s5  ;;  %v20808_v52 = vrot.slane %v7367_v18, %v18483_v15  ;;  %v8894_v9 = vrot.slane %v8880_v30, %v18483_v15  ;;  %v5590_v20 = vmul.f32 %v20425_v3, %v24023_v63  ;;  %v8997_v4 = vcombine.low %v20724_v50, %v20738_v8  ;;  %v24064_v30 = vld [vmem:[#allocation74_spill] sm:$0xff]  ;;  %v24066_v18 = vld [vmem:[#allocation63_spill] sm:$0xff] }
 0xa53   :  { %v20828_v36 = vrot.slane %v7042_v22, %v18483_v15  ;;  %v7258_v40 = vcombine.low %v5587_v26, %v5588_v48  ;;  %v5667_v42 = vmul.f32 %v20414_v27, %v23966_v38  ;;  %v24065_v54 = vcombine.low %v24063_v35, %v24064_v30  ;;  %v24067_v8 = vld [vmem:[#allocation59_spill] sm:$0xff]  ;;  %v24068_v22 = vld [vmem:[#allocation54_spill] sm:$0xff]  ;;  %v24069_v35 = vld [vmem:[#allocation64_spill] sm:$0xff] }
 0xa54   :  { %v20837_v61 = vrot.slane %v7043_v47, %v18483_v15  ;;  %v7259_v19 = vcombine.low %v5589_v31, %v5590_v20  ;;  %v5668_v63 = vmul.f32 %v20405_v23, %v24066_v18  ;;  %v5669_v50 = vmul.f32 %v20422_v53, %v24067_v8  ;;  %v24071_v18 = vld [vmem:[#allocation65_spill] sm:$0xff] }
 0xa55   :  { %v8778_v26 = vcombine.low %v20695_v39, %v8777_v2  ;;  %v5655_v48 = vmul.f32 %v20425_v3, %v24068_v22  ;;  %v20847_v12 = vrot.slane %v7258_v40, %v18483_v15  ;;  %v5672_v30 = vmul.f32 %v20414_v27, %v19293_v56  ;;  %v24070_v39 = vld [vmem:[#allocation52_spill] sm:$0xff]  ;;  %v24072_v22 = vld [vmem:[#allocation66_spill] sm:$0xff] }
 0xa56   :  { %8669 = vrot.lane.b32.xlu1 %v24065_v54, %s23958_s5  ;;  %v5670_v54 = vmul.f32 %v20425_v3, %v24069_v35  ;;  %v20854_v31 = vrot.slane %v7259_v19, %v18483_v15  ;;  %v9464_v20 = vcombine.low %v5667_v42, %v5668_v63  ;;  %v5653_v2 = vmul.f32 %v20405_v23, %v24070_v39  ;;  %v24073_v63 = vld [vmem:[#allocation67_spill] sm:$0xff] }
 0xa57   :  { %v5673_v40 = vmul.f32 %v20405_v23, %v24071_v18  ;;  %v5674_v35 = vmul.f32 %v20422_v53, %v24072_v22  ;;  %v8895_v47 = vcombine.low %v8887_v14, %v8894_v9  ;;  %v5675_v42 = vmul.f32 %v20425_v3, %v24073_v63  ;;  %v24074_v22 = vld [vmem:[#allocation51_spill] sm:$0xff]  ;;  %v24075_v14 = vld [vmem:[#allocation58_spill] sm:$0xff] }
 0xa58   :  { %v9465_v8 = vcombine.low %v5669_v50, %v5670_v54  ;;  %v9011_v56 = vrot.slane %v8997_v4, %v18483_v15  ;;  %v20871_v39 = vrot.slane %v9464_v20, %v18483_v15  ;;  %v9114_v18 = vcombine.low %v5654_v24, %v5655_v48  ;;  %v24076_v24 = vld [vmem:[#allocation56_spill] sm:$0xff] }
 0xa59   :  { %v9581_v54 = vcombine.low %v5672_v30, %v5673_v40  ;;  %v5660_v9 = vmul.f32 %v20425_v3, %v24075_v14  ;;  %v9582_v19 = vcombine.low %v5674_v35, %v5675_v42  ;;  %v9004_v38 = vrot.slane %v8996_v49, %v18483_v15  ;;  %v24078_v42 = vld [vmem:[#allocation79_spill] sm:$0xff] }
 0xa5a   :  { %8786 = vrot.lane.b32.xlu1 %v8778_v26, %s23958_s5  ;;  %v20874_v50 = vrot.slane %v9465_v8, %v18483_v15  ;;  %v5659_v26 = vmul.f32 %v20422_v53, %v24074_v22  ;;  %v9113_v63 = vcombine.low %v20782_v16, %v5653_v2  ;;  %v5657_v8 = vmul.f32 %v20414_v27, %v23956_v10 }
 0xa5b   :  { %v5658_v48 = vmul.f32 %v20405_v23, %v24076_v24  ;;  %v20890_v53 = vrot.slane %v9581_v54, %v18483_v15  ;;  %v20893_v3 = vrot.slane %v9582_v19, %v18483_v15  ;;  %v9012_v49 = vcombine.low %v9004_v38, %v9011_v56  ;;  %v24079_v54 = vld [vmem:[#allocation80_spill] sm:$0xff] }
 0xa5c   :  { %v9480_v4 = vcombine.low %v20871_v39, %v20874_v50  ;;  %v9128_v16 = vrot.slane %v9114_v18, %v18483_v15  ;;  %v9231_v35 = vcombine.low %v5659_v26, %v5660_v9  ;;  %v9121_v27 = vrot.slane %v9113_v63, %v18483_v15  ;;  %v24081_v9 = vld [vmem:[#allocation78_spill] sm:$0xff] }
 0xa5d   :  { %v24077_v56 = vcombine.low %v20579_v62, %v20582_v6  ;;  %v5521_v62 = vmul.f32 %v20398_v17, %v24031_v28  ;;  %v5536_v6 = vmul.f32 %v20398_v17, %v24025_v0  ;;  %v24080_v26 = vcombine.low %v24078_v42, %v24079_v54  ;;  %v24091_v42 = vld [vmem:[#allocation85_spill] sm:$0xff] }
 0xa5e   :  { %8903 = vrot.lane.b32.xlu1 %v8895_v47, %s23958_s5  ;;  %v9230_v47 = vcombine.low %v5657_v8, %v5658_v48  ;;  %v9129_v30 = vcombine.low %v9121_v27, %v9128_v16  ;;  %v9245_v23 = vrot.slane %v9231_v35, %v18483_v15  ;;  %v24082_v8 = vld [vmem:[#allocation83_spill] sm:$0xff]  ;;  %v5546_v16 = vmul.f32 %v20398_v17, %v24038_v44 }
 0xa5f   :  { %v5705_v19 = vrot.slane %v5521_v62, %v18483_v15  ;;  %v6061_v63 = vrot.slane %v5536_v6, %v18483_v15  ;;  %v24083_v48 = vcombine.low %v24081_v9, %v24082_v8  ;;  %v24087_v62 = vcombine.low %v20648_v34, %v20659_v46  ;;  %v24088_v46 = vld [vmem:[#allocation82_spill] sm:$0xff] }
 0xa60   :  { %v9238_v2 = vrot.slane %v9230_v47, %v18483_v15  ;;  %v6277_v27 = vrot.slane %v5546_v16, %v18483_v15  ;;  %v24084_v47 = vcombine.low %v20506_v57, %v20512_v11  ;;  %v24089_v6 = vcombine.low %v20683_v43, %v24088_v46 }
 0xa61   :  { %v24094_v9 = vcombine.low %v20749_v45, %v20752_v25  ;;  %v5586_v8 = vmul.f32 %v20438_v1, %v24038_v44  ;;  %v24096_v16 = vcombine.low %v20797_v7, %v20808_v52 }
 0xa62   :  { %9020 = vrot.lane.b32.xlu1 %v9012_v49, %s23958_s5  ;;  %v9246_v40 = vcombine.low %v9238_v2, %v9245_v23  ;;  %v5526_v49 = vmul.f32 %v20398_v17, %v23974_v33  ;;  %v24085_v23 = vcombine.low %v20525_v55, %v20588_v29  ;;  %v5556_v2 = vmul.f32 %v20398_v17, %v24052_v5 }
 0xa63   :  { %v24086_v29 = vcombine.low %v20631_v59, %v20634_v21  ;;  %v5566_v59 = vmul.f32 %v20438_v1, %v23974_v33  ;;  %v7173_v45 = vrot.slane %v5586_v8, %v18483_v15 }
 0xa64   :  { %v5845_v35 = vrot.slane %v5526_v49, %v18483_v15  ;;  %v6493_v55 = vrot.slane %v5556_v2, %v18483_v15  ;;  %v5571_v49 = vmul.f32 %v20438_v1, %v24046_v41  ;;  %v5591_v2 = vmul.f32 %v20438_v1, %v24020_v37 }
 0xa65   :  { %v6741_v34 = vrot.slane %v5566_v59, %v18483_v15 }
 0xa66   :  { %9137 = vrot.lane.b32.xlu1 %v9129_v30, %s23958_s5  ;;  %v5531_v30 = vmul.f32 %v20398_v17, %v24046_v41  ;;  %v6849_v7 = vrot.slane %v5571_v49, %v18483_v15 }
 0xa68   :  { %v5953_v11 = vrot.slane %v5531_v30, %v18483_v15  ;;  %v5581_v30 = vmul.f32 %v20438_v1, %v24012_v51 }
 0xa6a   :  { %9254 = vrot.lane.b32.xlu1 %v9246_v40, %s23958_s5  ;;  %v5541_v40 = vmul.f32 %v20398_v17, %v24012_v51 }
 0xa6c   :  { %v6169_v21 = vrot.slane %v5541_v40, %v18483_v15 }
 0xa6e   :  { %9371 = vrot.lane.b32.xlu1 %v24077_v56, %s23958_s5 }
 0xa79   :  { %v20914_v18 = vpop.permute.xlu0 %5730 }
 0xa7d   :  { %v7851_v25 = vpop.permute.xlu0 %7850 }
 0xa95   :  { %v20908_v38 = vpop.permute.xlu1 %5732 }
 0xa96   :  { %17136 = vmatprep.subr.msk.mxu0 %vm103_vm1, %v20908_v38  ;;  %17157 = vmatprep.subr.msk.mxu1 %vm103_vm1, %v20908_v38 }
 0xa97   :  { %17137 = vmatpush3.xpose.msk.msra.mxu0 %vm103_vm1, %v20908_v38  ;;  %17158 = vmatpush3.xpose.msk.msra.mxu1 %vm103_vm1, %v20908_v38 }
 0xa98   :  { %17138 = vmatprep.subr.msk.mxu0 %vm103_vm1, %v20914_v18  ;;  %17159 = vmatprep.subr.msk.mxu1 %vm103_vm1, %v20914_v18 }
 0xa9b   :  { %17139 = vmatpush3.xpose.msk.msra.mxu0 %vm103_vm1, %v20914_v18  ;;  %17160 = vmatpush3.xpose.msk.msra.mxu1 %vm103_vm1, %v20914_v18  ;;  %v20992_v57 = vpop.permute.xlu1 %6628 }
 0xa9c   :  { %17143 = vmatprep.subr.msk.mxu0 %vm103_vm1, %v20908_v38  ;;  %17171 = vmatprep.subr.msk.mxu1 %vm103_vm1, %v20908_v38 }
 0xa9e   :  { %17141 = vmatmul.mubr.msk.f32.vlgmr.msra.gmra.mxu0 %vm103_vm1, %v5705_v19  ;;  %17162 = vmatmul.mubr.msk.f32.vlgmr.msra.gmra.mxu1 %vm103_vm1, %v6061_v63  ;;  %v5551_v19 = vmul.f32 %v20398_v17, %v24020_v37  ;;  %v24090_v63 = vld [vmem:[#allocation84_spill] sm:$0xff] }
 0xa9f   :  { %17144 = vmatpush3.xpose.msk.msra.mxu0 %vm103_vm1, %v20908_v38  ;;  %17147 = vmatprep.mubr.msk.f32.mxu0 %vm103_vm1, %v24080_v26  ;;  %v21016_v56 = vpop.permute.xlu1 %6626  ;;  %v24092_v54 = vcombine.low %v24090_v63, %v24091_v42  ;;  %v5561_v26 = vmul.f32 %v20438_v1, %v24031_v28 }
 0xaa0   :  { %17172 = vmatpush3.xpose.msk.msra.mxu1 %vm103_vm1, %v20908_v38  ;;  %17175 = vmatprep.mubr.msk.f32.mxu1 %vm103_vm1, %v24083_v48  ;;  %v6385_v17 = vrot.slane %v5551_v19, %v18483_v15  ;;  %v24095_v48 = vcombine.low %v20785_v60, %v20788_v13  ;;  %v21126_v13 = vpop.permute.xlu0 %8086 }
 0xaa1   :  { %17145 = vmatprep.subr.msk.mxu0 %vm103_vm1, %v20914_v18  ;;  %17173 = vmatprep.subr.msk.mxu1 %vm103_vm1, %v20914_v18 }
 0xaa3   :  { %17146 = vmatpush3.xpose.msk.msra.mxu0 %vm103_vm1, %v20914_v18 }
 0xaa4   :  { %17174 = vmatpush3.xpose.msk.msra.mxu1 %vm103_vm1, %v20914_v18  ;;  %17150 = vmatprep.subr.msk.mxu0 %vm103_vm1, %v20908_v38 }
 0xaa5   :  { %17185 = vmatprep.subr.msk.mxu1 %vm103_vm1, %v20908_v38 }
 0xaa6   :  { %17148 = vmatmul.mubr.msk.f32.vlgmr.msra.gmra.mxu0 %vm103_vm1, %v5845_v35  ;;  %v5596_v35 = vmul.f32 %v20438_v1, %v24052_v5 }
 0xaa7   :  { %17176 = vmatmul.mubr.msk.f32.vlgmr.msra.gmra.mxu1 %vm103_vm1, %v6277_v27  ;;  %17151 = vmatpush3.xpose.msk.msra.mxu0 %vm103_vm1, %v20908_v38 }
 0xaa8   :  { %17154 = vmatprep.mubr.msk.f32.mxu0 %vm103_vm1, %v24084_v47  ;;  %17186 = vmatpush3.xpose.msk.msra.mxu1 %vm103_vm1, %v20908_v38  ;;  %v7389_v52 = vrot.slane %v5596_v35, %v18483_v15  ;;  %v24097_v47 = vcombine.low %v20828_v36, %v20837_v61  ;;  %v7065_v36 = vrot.slane %v5581_v30, %v18483_v15 }
 0xaa9   :  { %17189 = vmatprep.mubr.msk.f32.mxu1 %vm103_vm1, %v24085_v23  ;;  %17152 = vmatprep.subr.msk.mxu0 %vm103_vm1, %v20914_v18  ;;  %v21148_v23 = vpop.permute.xlu0 %8203  ;;  %v24098_v61 = vcombine.low %v20847_v12, %v20854_v31 }
 0xaaa   :  { %17187 = vmatprep.subr.msk.mxu1 %vm103_vm1, %v20914_v18 }
 0xaab   :  { %17153 = vmatpush3.xpose.msk.msra.mxu0 %vm103_vm1, %v20914_v18 }
 0xaac   :  { %17188 = vmatpush3.xpose.msk.msra.mxu1 %vm103_vm1, %v20914_v18  ;;  %17164 = vmatprep.subr.msk.mxu0 %vm103_vm1, %v20908_v38 }
 0xaad   :  { %17199 = vmatprep.subr.msk.mxu1 %vm103_vm1, %v20992_v57 }
 0xaae   :  { %17155 = vmatmul.mubr.msk.f32.vlgmr.msra.gmra.mxu0 %vm103_vm1, %v5953_v11  ;;  %v7281_v11 = vrot.slane %v5591_v2, %v18483_v15 }
 0xaaf   :  { %17190 = vmatmul.mubr.msk.f32.vlgmr.msra.gmra.mxu1 %vm103_vm1, %v6493_v55  ;;  %17165 = vmatpush3.xpose.msk.msra.mxu0 %vm103_vm1, %v20908_v38 }
 0xab0   :  { %17168 = vmatprep.mubr.msk.f32.mxu0 %vm103_vm1, %v24086_v29  ;;  %17200 = vmatpush3.xpose.msk.msra.mxu1 %vm103_vm1, %v20992_v57 }
 0xab1   :  { %17203 = vmatprep.mubr.msk.f32.mxu1 %vm103_vm1, %v24087_v62  ;;  %17166 = vmatprep.subr.msk.mxu0 %vm103_vm1, %v20914_v18 }
 0xab2   :  { %17201 = vmatprep.subr.msk.mxu1 %vm103_vm1, %v21016_v56 }
 0xab3   :  { %17167 = vmatpush3.xpose.msk.msra.mxu0 %vm103_vm1, %v20914_v18 }
 0xab4   :  { %17202 = vmatpush3.xpose.msk.msra.mxu1 %vm103_vm1, %v21016_v56  ;;  %17178 = vmatprep.subr.msk.mxu0 %vm103_vm1, %v20908_v38 }
 0xab5   :  { %17213 = vmatprep.subr.msk.mxu1 %vm103_vm1, %v20992_v57 }
 0xab6   :  { %17169 = vmatmul.mubr.msk.f32.vlgmr.msra.gmra.mxu0 %vm103_vm1, %v6169_v21 }
 0xab7   :  { %17204 = vmatmul.mubr.msk.f32.vlgmr.msra.gmra.mxu1 %vm103_vm1, %v6741_v34  ;;  %17179 = vmatpush3.xpose.msk.msra.mxu0 %vm103_vm1, %v20908_v38  ;;  %v5576_v38 = vmul.f32 %v20438_v1, %v24025_v0 }
 0xab8   :  { %17182 = vmatprep.mubr.msk.f32.mxu0 %vm103_vm1, %v24089_v6  ;;  %17214 = vmatpush3.xpose.msk.msra.mxu1 %vm103_vm1, %v20992_v57 }
 0xab9   :  { %17217 = vmatprep.mubr.msk.f32.mxu1 %vm103_vm1, %v24092_v54  ;;  %17180 = vmatprep.subr.msk.mxu0 %vm103_vm1, %v20914_v18  ;;  %v6957_v43 = vrot.slane %v5576_v38, %v18483_v15 }
 0xaba   :  { %17215 = vmatprep.subr.msk.mxu1 %vm103_vm1, %v21016_v56 }
 0xabb   :  { %17181 = vmatpush3.xpose.msk.msra.mxu0 %vm103_vm1, %v20914_v18  ;;  %v24093_v18 = vcombine.low %v20741_v58, %v20744_v32  ;;  %v7853_v58 = vpop.permute.xlu1 %7852  ;;  %v6601_v32 = vrot.slane %v5561_v26, %v18483_v15 }
 0xabc   :  { %17216 = vmatpush3.xpose.msk.msra.mxu1 %vm103_vm1, %v21016_v56  ;;  %17192 = vmatprep.subr.msk.mxu0 %vm103_vm1, %v20992_v57 }
 0xabd   :  { %17227 = vmatprep.subr.msk.mxu1 %vm103_vm1, %v20992_v57 }
 0xabe   :  { %17183 = vmatmul.mubr.msk.f32.vlgmr.msra.gmra.mxu0 %vm103_vm1, %v6385_v17 }
 0xabf   :  { %17218 = vmatmul.mubr.msk.f32.vlgmr.msra.gmra.mxu1 %vm103_vm1, %v6957_v43  ;;  %17193 = vmatpush3.xpose.msk.msra.mxu0 %vm103_vm1, %v20992_v57  ;;  %v7970_v60 = vpop.permute.xlu1 %7969 }
 0xac0   :  { %17196 = vmatprep.mubr.msk.f32.mxu0 %vm103_vm1, %v24093_v18  ;;  %17228 = vmatpush3.xpose.msk.msra.mxu1 %vm103_vm1, %v20992_v57 }
 0xac1   :  { %17231 = vmatprep.mubr.msk.f32.mxu1 %vm103_vm1, %v24094_v9  ;;  %17194 = vmatprep.subr.msk.mxu0 %vm103_vm1, %v21016_v56 }
 0xac2   :  { %17229 = vmatprep.subr.msk.mxu1 %vm103_vm1, %v21016_v56 }
 0xac3   :  { %17195 = vmatpush3.xpose.msk.msra.mxu0 %vm103_vm1, %v21016_v56  ;;  %v7968_v27 = vpop.permute.xlu1 %7967 }
 0xac4   :  { %17230 = vmatpush3.xpose.msk.msra.mxu1 %vm103_vm1, %v21016_v56  ;;  %17206 = vmatprep.subr.msk.mxu0 %vm103_vm1, %v20992_v57 }
 0xac5   :  { %17241 = vmatprep.subr.msk.mxu1 %vm103_vm1, %v20992_v57 }
 0xac6   :  { %17197 = vmatmul.mubr.msk.f32.vlgmr.msra.gmra.mxu0 %vm103_vm1, %v6601_v32 }
 0xac7   :  { %17232 = vmatmul.mubr.msk.f32.vlgmr.msra.gmra.mxu1 %vm103_vm1, %v7173_v45  ;;  %17207 = vmatpush3.xpose.msk.msra.mxu0 %vm103_vm1, %v20992_v57 }
 0xac8   :  { %17210 = vmatprep.mubr.msk.f32.mxu0 %vm103_vm1, %v24095_v48  ;;  %17242 = vmatpush3.xpose.msk.msra.mxu1 %vm103_vm1, %v20992_v57 }
 0xac9   :  { %17245 = vmatprep.mubr.msk.f32.mxu1 %vm103_vm1, %v24096_v16  ;;  %17208 = vmatprep.subr.msk.mxu0 %vm103_vm1, %v21016_v56 }
 0xaca   :  { %17243 = vmatprep.subr.msk.mxu1 %vm103_vm1, %v21016_v56 }
 0xacb   :  { %17209 = vmatpush3.xpose.msk.msra.mxu0 %vm103_vm1, %v21016_v56 }
 0xacc   :  { %17244 = vmatpush3.xpose.msk.msra.mxu1 %vm103_vm1, %v21016_v56  ;;  %17220 = vmatprep.subr.msk.mxu0 %vm103_vm1, %v20992_v57 }
 0xacd   :  { %17255 = vmatprep.subr.msk.mxu1 %vm2898_vm2, %v7970_v60 }
 0xace   :  { %17211 = vmatmul.mubr.msk.f32.vlgmr.msra.gmra.mxu0 %vm103_vm1, %v6849_v7 }
 0xacf   :  { %17246 = vmatmul.mubr.msk.f32.vlgmr.msra.gmra.mxu1 %vm103_vm1, %v7389_v52  ;;  %17221 = vmatpush3.xpose.msk.msra.mxu0 %vm103_vm1, %v20992_v57 }
 0xad0   :  { %17224 = vmatprep.mubr.msk.f32.mxu0 %vm103_vm1, %v24097_v47  ;;  %17256 = vmatpush3.msk.msra.mxu1 %vm2898_vm2, %v7970_v60 }
 0xad1   :  { %17222 = vmatprep.subr.msk.mxu0 %vm103_vm1, %v21016_v56  ;;  %17257 = vmatprep.subr.mxu1 %v7968_v27 }
 0xad2   :  { %17258 = vmatpush3.msra.mxu1 %v7968_v27 }
 0xad3   :  { %17269 = vmatprep.subr.msk.mxu1 %vm2898_vm2, %v21148_v23  ;;  %17223 = vmatpush3.xpose.msk.msra.mxu0 %vm103_vm1, %v21016_v56 }
 0xad4   :  { %17234 = vmatprep.subr.msk.mxu0 %vm103_vm1, %v20992_v57 }
 0xad6   :  { %17225 = vmatmul.mubr.msk.f32.vlgmr.msra.gmra.mxu0 %vm103_vm1, %v7065_v36 }
 0xad7   :  { %17235 = vmatpush3.xpose.msk.msra.mxu0 %vm103_vm1, %v20992_v57  ;;  %17238 = vmatprep.mubr.msk.f32.mxu0 %vm103_vm1, %v24098_v61 }
 0xad8   :  { %17236 = vmatprep.subr.msk.mxu0 %vm103_vm1, %v21016_v56 }
 0xadb   :  { %17237 = vmatpush3.xpose.msk.msra.mxu0 %vm103_vm1, %v21016_v56 }
 0xadc   :  { %17248 = vmatprep.subr.msk.mxu0 %vm2898_vm2, %v7853_v58 }
 0xade   :  { %17239 = vmatmul.mubr.msk.f32.vlgmr.msra.gmra.mxu0 %vm103_vm1, %v7281_v11 }
 0xadf   :  { %17249 = vmatpush3.msk.msra.mxu0 %vm2898_vm2, %v7853_v58 }
 0xae0   :  { %17250 = vmatprep.subr.mxu0 %v7851_v25 }
 0xae1   :  { %17251 = vmatpush3.msra.mxu0 %v7851_v25 }
 0xae2   :  { %17262 = vmatprep.subr.msk.mxu0 %vm2898_vm2, %v21126_v13 }
 0xb5e   :  { %v21176_v12 = vpop.f32.mrf.mxu0  ;;  %v21178_v31 = vpop.f32.mrf.mxu1 }
 0xb5f   :  { %v7472_v57 = vsel %vm2508_vm3, %v21176_v12, -inf  ;;  %v7490_v55 = vsel %vm2508_vm3, %v21178_v31, -inf }
 0xb60   :  { %7473 = vmax.xlane.f32.xlu1 %v7472_v57  ;;  %v21184_v29 = vpop.f32.mrf.mxu0  ;;  %7491 = vmax.xlane.f32.xlu0 %v7490_v55  ;;  %v21186_v40 = vpop.f32.mrf.mxu1 }
 0xb61   :  { %v7469_v56 = vsel %vm2504_vm4, %v21184_v29, -inf  ;;  %v7487_v62 = vsel %vm2504_vm4, %v21186_v40, -inf }
 0xb64   :  { %7470 = vmax.xlane.f32.xlu0 %v7469_v56  ;;  %7488 = vmax.xlane.f32.xlu1 %v7487_v62 }
 0xb66   :  { %v21192_v59 = vpop.f32.mrf.mxu0 }
 0xb67   :  { %v21194_v21 = vpop.f32.mrf.mxu1  ;;  %v7478_v34 = vsel %vm2508_vm3, %v21192_v59, -inf }
 0xb68   :  { %7479 = vmax.xlane.f32.xlu0 %v7478_v34  ;;  %v7502_v19 = vsel %vm2508_vm3, %v21194_v21, -inf  ;;  %v21204_v63 = vpop.f32.mrf.mxu0 }
 0xb69   :  { %v21198_v46 = vpop.f32.mrf.mxu1  ;;  %v7475_v38 = vsel %vm2504_vm4, %v21204_v63, -inf }
 0xb6a   :  { %v7499_v6 = vsel %vm2504_vm4, %v21198_v46, -inf }
 0xb6b   :  { %7500 = vmax.xlane.f32.xlu1 %v7499_v6 }
 0xb6c   :  { %7503 = vmax.xlane.f32.xlu0 %v7502_v19 }
 0xb6e   :  { %v21206_v42 = vpop.f32.mrf.mxu0 }
 0xb6f   :  { %v21208_v54 = vpop.f32.mrf.mxu1  ;;  %v7484_v26 = vsel %vm2508_vm3, %v21206_v42, -inf }
 0xb70   :  { %v21212_v17 = vpop.f32.mrf.mxu0  ;;  %7476 = vmax.xlane.f32.xlu0 %v7475_v38  ;;  %v7514_v32 = vsel %vm2508_vm3, %v21208_v54, -inf }
 0xb71   :  { %v7481_v43 = vsel %vm2504_vm4, %v21212_v17, -inf  ;;  %v21216_v18 = vpop.f32.mrf.mxu1 }
 0xb72   :  { %7482 = vmax.xlane.f32.xlu1 %v7481_v43  ;;  %v7511_v9 = vsel %vm2504_vm4, %v21216_v18, -inf }
 0xb74   :  { %7485 = vmax.xlane.f32.xlu0 %v7484_v26 }
 0xb76   :  { %v21222_v8 = vpop.f32.mrf.mxu0  ;;  %7512 = vmax.xlane.f32.xlu1 %v7511_v9 }
 0xb77   :  { %v21224_v58 = vpop.f32.mrf.mxu1  ;;  %v7496_v49 = vsel %vm2508_vm3, %v21222_v8, -inf }
 0xb78   :  { %v21228_v45 = vpop.f32.mrf.mxu0  ;;  %7515 = vmax.xlane.f32.xlu0 %v7514_v32  ;;  %v7526_v7 = vsel %vm2508_vm3, %v21224_v58, -inf }
 0xb79   :  { %v7493_v25 = vsel %vm2504_vm4, %v21228_v45, -inf  ;;  %v21232_v48 = vpop.f32.mrf.mxu1 }
 0xb7a   :  { %7494 = vmax.xlane.f32.xlu1 %v7493_v25  ;;  %v7523_v16 = vsel %vm2504_vm4, %v21232_v48, -inf }
 0xb7c   :  { %7497 = vmax.xlane.f32.xlu0 %v7496_v49 }
 0xb7e   :  { %v21238_v35 = vpop.f32.mrf.mxu0  ;;  %7524 = vmax.xlane.f32.xlu1 %v7523_v16 }
 0xb7f   :  { %v21240_v60 = vpop.f32.mrf.mxu1  ;;  %v7508_v30 = vsel %vm2508_vm3, %v21238_v35, -inf }
 0xb80   :  { %v21244_v52 = vpop.f32.mrf.mxu0  ;;  %7527 = vmax.xlane.f32.xlu0 %v7526_v7  ;;  %v7538_v11 = vsel %vm2508_vm3, %v21240_v60, -inf }
 0xb81   :  { %v7505_v27 = vsel %vm2504_vm4, %v21244_v52, -inf  ;;  %v21248_v47 = vpop.f32.mrf.mxu1 }
 0xb82   :  { %7506 = vmax.xlane.f32.xlu1 %v7505_v27  ;;  %v7535_v36 = vsel %vm2504_vm4, %v21248_v47, -inf }
 0xb84   :  { %7509 = vmax.xlane.f32.xlu0 %v7508_v30 }
 0xb86   :  { %v21254_v61 = vpop.f32.mrf.mxu0  ;;  %7536 = vmax.xlane.f32.xlu1 %v7535_v36  ;;  %v21296_v36 = vpop.permute.xlu1 %8084 }
 0xb87   :  { %v21256_v2 = vpop.f32.mrf.mxu1  ;;  %v7520_v62 = vsel %vm2508_vm3, %v21254_v61, -inf }
 0xb88   :  { %v21260_v57 = vpop.f32.mrf.mxu0  ;;  %7539 = vmax.xlane.f32.xlu0 %v7538_v11  ;;  %v7550_v38 = vsel %vm2508_vm3, %v21256_v2, -inf }
 0xb89   :  { %v7517_v55 = vsel %vm2504_vm4, %v21260_v57, -inf  ;;  %v21264_v56 = vpop.f32.mrf.mxu1 }
 0xb8a   :  { %7518 = vmax.xlane.f32.xlu1 %v7517_v55  ;;  %v7547_v34 = vsel %vm2504_vm4, %v21264_v56, -inf }
 0xb8c   :  { %7521 = vmax.xlane.f32.xlu0 %v7520_v62 }
 0xb8e   :  { %v21270_v6 = vpop.f32.mrf.mxu0  ;;  %7548 = vmax.xlane.f32.xlu1 %v7547_v34 }
 0xb8f   :  { %v21272_v19 = vpop.f32.mrf.mxu1  ;;  %v7532_v32 = vsel %vm2508_vm3, %v21270_v6, -inf }
 0xb90   :  { %v21276_v43 = vpop.f32.mrf.mxu0  ;;  %7551 = vmax.xlane.f32.xlu0 %v7550_v38  ;;  %v7562_v16 = vsel %vm2508_vm3, %v21272_v19, -inf  ;;  %v21306_v38 = vpop.permute.xlu1 %8201 }
 0xb91   :  { %v7529_v26 = vsel %vm2504_vm4, %v21276_v43, -inf  ;;  %v21280_v9 = vpop.f32.mrf.mxu1 }
 0xb92   :  { %7530 = vmax.xlane.f32.xlu1 %v7529_v26  ;;  %v7559_v25 = vsel %vm2504_vm4, %v21280_v9, -inf }
 0xb94   :  { %7533 = vmax.xlane.f32.xlu0 %v7532_v32  ;;  %v21308_v26 = vpop.permute.xlu1 %8320 }
 0xb96   :  { %v21286_v49 = vpop.f32.mrf.mxu0  ;;  %7560 = vmax.xlane.f32.xlu1 %v7559_v25  ;;  %v24099_v25 = vld [vmem:[#allocation57_spill] sm:$0xff] }
 0xb97   :  { %v7544_v30 = vsel %vm2508_vm3, %v21286_v49, -inf }
 0xb98   :  { %v21290_v7 = vpop.f32.mrf.mxu0  ;;  %7563 = vmax.xlane.f32.xlu0 %v7562_v16  ;;  %v21310_v32 = vpop.permute.xlu1 %8318  ;;  %v5671_v16 = vmul.f32 %v20438_v1, %v24099_v25 }
 0xb99   :  { %v7541_v27 = vsel %vm2504_vm4, %v21290_v7, -inf }
 0xb9a   :  { %7542 = vmax.xlane.f32.xlu1 %v7541_v27  ;;  %v9487_v27 = vrot.slane %v5671_v16, %v18483_v15 }
 0xb9c   :  { %7545 = vmax.xlane.f32.xlu0 %v7544_v30  ;;  %v21319_v30 = vpop.permute.xlu0 %8437 }
 0xb9e   :  { %v21298_v11 = vpop.f32.mrf.mxu0 }
 0xb9f   :  { %v7556_v55 = vsel %vm2508_vm3, %v21298_v11, -inf }
 0xba0   :  { %v21302_v62 = vpop.f32.mrf.mxu0  ;;  %7557 = vmax.xlane.f32.xlu0 %v7556_v55  ;;  %v21321_v55 = vpop.permute.xlu1 %8435 }
 0xba1   :  { %v7553_v34 = vsel %vm2504_vm4, %v21302_v62, -inf }
 0xba2   :  { %7554 = vmax.xlane.f32.xlu1 %v7553_v34  ;;  %v21324_v34 = vpop.permute.xlu0 %8554 }
 0xba4   :  { %v21326_v20 = vpop.permute.xlu1 %8552 }
 0xba5   :  { %24100 = vst [vmem:[#allocation72_spill] sm:$0xff] %v21326_v20 }
 0xba6   :  { %v21328_v5 = vpop.permute.xlu0 %8671 }
 0xba8   :  { %v21330_v44 = vpop.permute.xlu1 %8669 }
 0xbaa   :  { %v21332_v37 = vpop.permute.xlu0 %8788 }
 0xbab   :  { %24101 = vst [vmem:[#allocation73_spill] sm:$0xff] %v21332_v37 }
 0xbac   :  { %v21334_v39 = vpop.permute.xlu1 %8786 }
 0xbad   :  { %24102 = vst [vmem:[#allocation77_spill] sm:$0xff] %v21334_v39 }
 0xbae   :  { %v21336_v50 = vpop.permute.xlu0 %8905 }
 0xbb2   :  { %v21340_v16 = vpop.permute.xlu0 %9022 }
 0xbb3   :  { %9488 = vrot.lane.b32.xlu1 %v9480_v4, %s23958_s5  ;;  %v21338_v4 = vpop.permute.xlu1 %8903  ;;  %24103 = vst [vmem:[#allocation71_spill] sm:$0xff] %v21340_v16 }
 0xbb6   :  { %9490 = vrot.lane.b32.xlu0 %v9487_v27, %s23958_s5  ;;  %v21344_v27 = vpop.permute.xlu0 %9139 }
 0xbb7   :  { %v21342_v0 = vpop.permute.xlu1 %9020 }
 0xbb8   :  { %24104 = vst [vmem:[#allocation75_spill] sm:$0xff] %v21342_v0 }
 0xbba   :  { %v21348_v33 = vpop.permute.xlu0 %9256 }
 0xbbb   :  { %v21346_v51 = vpop.permute.xlu1 %9137  ;;  %24106 = vst [vmem:[#allocation81_spill] sm:$0xff] %v21348_v33 }
 0xbbc   :  { %24105 = vst [vmem:[#allocation76_spill] sm:$0xff] %v21346_v51 }
 0xbbe   :  { %v21352_v10 = vpop.permute.xlu0 %9373 }
 0xbbf   :  { %v21350_v22 = vpop.permute.xlu1 %9254  ;;  %24108 = vst [vmem:[#allocation79_spill] sm:$0xff] %v21352_v10 }
 0xbc0   :  { %24107 = vst [vmem:[#allocation74_spill] sm:$0xff] %v21350_v22 }
 0xbc3   :  { %v21354_v25 = vpop.permute.xlu1 %9371 }
 0xbc4   :  { %24109 = vst [vmem:[#allocation80_spill] sm:$0xff] %v21354_v25 }
 0xbe9   :  { %v7474_v14 = vpop.xlane.xlu1 %7473  ;;  %v7492_v24 = vpop.xlane.xlu0 %7491 }
 0xbea   :  { %v7566_v41 = vsub.f32 %v21176_v12, %v7474_v14  ;;  %v7572_v28 = vsub.f32 %v21178_v31, %v7492_v24 }
 0xbec   :  { %v7599_v16 = vmul.f32 1.442695, %v7566_v41  ;;  %v7611_v0 = vmul.f32 1.442695, %v7572_v28 }
 0xbed   :  { %v7471_v39 = vpop.xlane.xlu0 %7470  ;;  %v7489_v37 = vpop.xlane.xlu1 %7488 }
 0xbee   :  { %17997 = vpow2.f32 %v7599_v16  ;;  %v7565_v51 = vsub.f32 %v21184_v29, %v7471_v39  ;;  %v7571_v33 = vsub.f32 %v21186_v40, %v7489_v37 }
 0xbef   :  { %17999 = vpow2.f32 %v7611_v0 }
 0xbf0   :  { %v7597_v22 = vmul.f32 1.442695, %v7565_v51  ;;  %v7609_v10 = vmul.f32 1.442695, %v7571_v33 }
 0xbf1   :  { %v7480_v20 = vpop.xlane.xlu0 %7479 }
 0xbf2   :  { %18001 = vpow2.f32 %v7597_v22  ;;  %v7568_v25 = vsub.f32 %v21192_v59, %v7480_v20 }
 0xbf3   :  { %18003 = vpow2.f32 %v7609_v10 }
 0xbf4   :  { %v7603_v14 = vmul.f32 1.442695, %v7568_v25  ;;  %v7501_v12 = vpop.xlane.xlu1 %7500 }
 0xbf5   :  { %v7504_v24 = vpop.xlane.xlu0 %7503  ;;  %v7575_v41 = vsub.f32 %v21198_v46, %v7501_v12 }
 0xbf6   :  { %18005 = vpow2.f32 %v7603_v14  ;;  %v7576_v28 = vsub.f32 %v21194_v21, %v7504_v24 }
 0xbf7   :  { %v7617_v33 = vmul.f32 1.442695, %v7575_v41 }
 0xbf8   :  { %v7619_v31 = vmul.f32 1.442695, %v7576_v28 }
 0xbf9   :  { %v7477_v29 = vpop.xlane.xlu0 %7476 }
 0xbfa   :  { %18007 = vpow2.f32 %v7619_v31  ;;  %v7567_v37 = vsub.f32 %v21204_v63, %v7477_v29 }
 0xbfb   :  { %v21364_v51 = vpop.eup %17997  ;;  %v7483_v0 = vpop.xlane.xlu1 %7482 }
 0xbfc   :  { %v7601_v22 = vmul.f32 1.442695, %v7567_v37  ;;  %v7569_v10 = vsub.f32 %v21212_v17, %v7483_v0  ;;  %v7664_v20 = vsel %vm2508_vm3, %v21364_v51, 0.0  ;;  %v21369_v40 = vpop.eup %17999 }
 0xbfd   :  { %v7486_v59 = vpop.xlane.xlu0 %7485  ;;  %7665 = vadd.xlane.f32.xlu0 %v7664_v20  ;;  %v7682_v17 = vsel %vm2508_vm3, %v21369_v40, 0.0 }
 0xbfe   :  { %18009 = vpow2.f32 %v7601_v22  ;;  %v7570_v21 = vsub.f32 %v21206_v42, %v7486_v59  ;;  %v7605_v63 = vmul.f32 1.442695, %v7569_v10 }
 0xbff   :  { %v21372_v46 = vpop.eup %18001  ;;  %18011 = vpow2.f32 %v7617_v33  ;;  %v7513_v25 = vpop.xlane.xlu1 %7512 }
 0xc00   :  { %v7607_v39 = vmul.f32 1.442695, %v7570_v21  ;;  %v7579_v16 = vsub.f32 %v21216_v18, %v7513_v25  ;;  %v7661_v14 = vsel %vm2504_vm4, %v21372_v46, 0.0  ;;  %v21379_v12 = vpop.eup %18003 }
 0xc01   :  { %v7516_v24 = vpop.xlane.xlu0 %7515  ;;  %7683 = vadd.xlane.f32.xlu0 %v7682_v17  ;;  %7662 = vadd.xlane.f32.xlu1 %v7661_v14  ;;  %v7679_v33 = vsel %vm2504_vm4, %v21379_v12, 0.0 }
 0xc02   :  { %18013 = vpow2.f32 %v7607_v39  ;;  %v7580_v42 = vsub.f32 %v21208_v54, %v7516_v24  ;;  %v7625_v41 = vmul.f32 1.442695, %v7579_v16 }
 0xc03   :  { %v21382_v28 = vpop.eup %18005  ;;  %18015 = vpow2.f32 %v7605_v63  ;;  %v7495_v31 = vpop.xlane.xlu1 %7494 }
 0xc04   :  { %v7627_v18 = vmul.f32 1.442695, %v7580_v42  ;;  %v7573_v29 = vsub.f32 %v21228_v45, %v7495_v31  ;;  %v7670_v37 = vsel %vm2508_vm3, %v21382_v28, 0.0 }
 0xc05   :  { %v7498_v0 = vpop.xlane.xlu0 %7497  ;;  %7671 = vadd.xlane.f32.xlu0 %v7670_v37  ;;  %7680 = vadd.xlane.f32.xlu1 %v7679_v33 }
 0xc06   :  { %18017 = vpow2.f32 %v7627_v18  ;;  %v7574_v54 = vsub.f32 %v21222_v8, %v7498_v0  ;;  %v7613_v20 = vmul.f32 1.442695, %v7573_v29 }
 0xc07   :  { %v21390_v22 = vpop.eup %18007  ;;  %18019 = vpow2.f32 %v7625_v41  ;;  %v7525_v10 = vpop.xlane.xlu1 %7524 }
 0xc08   :  { %v7615_v59 = vmul.f32 1.442695, %v7574_v54  ;;  %v7583_v45 = vsub.f32 %v21232_v48, %v7525_v10  ;;  %v7694_v21 = vsel %vm2508_vm3, %v21390_v22, 0.0 }
 0xc09   :  { %v7528_v63 = vpop.xlane.xlu0 %7527  ;;  %7695 = vadd.xlane.f32.xlu0 %v7694_v21 }
 0xc0a   :  { %18021 = vpow2.f32 %v7615_v59  ;;  %v7584_v25 = vsub.f32 %v21224_v58, %v7528_v63  ;;  %v7633_v16 = vmul.f32 1.442695, %v7583_v45 }
 0xc0b   :  { %v21396_v39 = vpop.eup %18009  ;;  %v7507_v8 = vpop.xlane.xlu1 %7506  ;;  %18023 = vpow2.f32 %v7613_v20 }
 0xc0c   :  { %v21398_v17 = vpop.eup %18011  ;;  %v7635_v14 = vmul.f32 1.442695, %v7584_v25  ;;  %v7577_v24 = vsub.f32 %v21244_v52, %v7507_v8  ;;  %v7667_v48 = vsel %vm2504_vm4, %v21396_v39, 0.0 }
 0xc0d   :  { %v7510_v42 = vpop.xlane.xlu0 %7509  ;;  %7668 = vadd.xlane.f32.xlu1 %v7667_v48  ;;  %v7691_v0 = vsel %vm2504_vm4, %v21398_v17, 0.0 }
 0xc0e   :  { %18025 = vpow2.f32 %v7635_v14  ;;  %v7578_v41 = vsub.f32 %v21238_v35, %v7510_v42  ;;  %v7621_v58 = vmul.f32 1.442695, %v7577_v24 }
 0xc0f   :  { %v21404_v31 = vpop.eup %18013  ;;  %18027 = vpow2.f32 %v7633_v16  ;;  %v7537_v18 = vpop.xlane.xlu1 %7536 }
 0xc10   :  { %v21406_v29 = vpop.eup %18015  ;;  %v7623_v37 = vmul.f32 1.442695, %v7578_v41  ;;  %v7587_v33 = vsub.f32 %v21248_v47, %v7537_v18  ;;  %v7676_v52 = vsel %vm2508_vm3, %v21404_v31, 0.0 }
 0xc11   :  { %v7540_v54 = vpop.xlane.xlu0 %7539  ;;  %7677 = vadd.xlane.f32.xlu0 %v7676_v52  ;;  %7692 = vadd.xlane.f32.xlu1 %v7691_v0  ;;  %v7673_v59 = vsel %vm2504_vm4, %v21406_v29, 0.0 }
 0xc12   :  { %18029 = vpow2.f32 %v7623_v37  ;;  %v7588_v35 = vsub.f32 %v21240_v60, %v7540_v54  ;;  %v7641_v45 = vmul.f32 1.442695, %v7587_v33 }
 0xc13   :  { %v21414_v10 = vpop.eup %18017  ;;  %18031 = vpow2.f32 %v7621_v58  ;;  %v7519_v20 = vpop.xlane.xlu1 %7518 }
 0xc14   :  { %v21418_v47 = vpop.eup %18019  ;;  %v7643_v21 = vmul.f32 1.442695, %v7588_v35  ;;  %v7581_v63 = vsub.f32 %v21260_v57, %v7519_v20  ;;  %v7706_v25 = vsel %vm2508_vm3, %v21414_v10, 0.0 }
 0xc15   :  { %v7522_v16 = vpop.xlane.xlu0 %7521  ;;  %7707 = vadd.xlane.f32.xlu0 %v7706_v25  ;;  %7674 = vadd.xlane.f32.xlu1 %v7673_v59  ;;  %v7703_v48 = vsel %vm2504_vm4, %v21418_v47, 0.0 }
 0xc16   :  { %18033 = vpow2.f32 %v7643_v21  ;;  %v7582_v60 = vsub.f32 %v21254_v61, %v7522_v16  ;;  %v7629_v14 = vmul.f32 1.442695, %v7581_v63 }
 0xc17   :  { %v21424_v8 = vpop.eup %18021  ;;  %v7549_v24 = vpop.xlane.xlu1 %7548  ;;  %18035 = vpow2.f32 %v7641_v45 }
 0xc18   :  { %v7631_v42 = vmul.f32 1.442695, %v7582_v60  ;;  %v7591_v57 = vsub.f32 %v21264_v56, %v7549_v24  ;;  %v7688_v41 = vsel %vm2508_vm3, %v21424_v8, 0.0  ;;  %v21431_v58 = vpop.eup %18023 }
 0xc19   :  { %v7552_v18 = vpop.xlane.xlu0 %7551  ;;  %7689 = vadd.xlane.f32.xlu0 %v7688_v41  ;;  %7704 = vadd.xlane.f32.xlu1 %v7703_v48  ;;  %v7685_v20 = vsel %vm2504_vm4, %v21431_v58, 0.0 }
 0xc1a   :  { %18037 = vpow2.f32 %v7631_v42  ;;  %v7592_v61 = vsub.f32 %v21256_v2, %v7552_v18  ;;  %v7649_v33 = vmul.f32 1.442695, %v7591_v57 }
 0xc1b   :  { %v21434_v37 = vpop.eup %18025  ;;  %18039 = vpow2.f32 %v7629_v14  ;;  %v7531_v52 = vpop.xlane.xlu1 %7530 }
 0xc1c   :  { %v21436_v0 = vpop.eup %18027  ;;  %v7651_v54 = vmul.f32 1.442695, %v7592_v61  ;;  %v7585_v56 = vsub.f32 %v21276_v43, %v7531_v52  ;;  %v7718_v35 = vsel %vm2508_vm3, %v21434_v37, 0.0 }
 0xc1d   :  { %v7534_v59 = vpop.xlane.xlu0 %7533  ;;  %7719 = vadd.xlane.f32.xlu0 %v7718_v35  ;;  %7686 = vadd.xlane.f32.xlu1 %v7685_v20  ;;  %v7715_v43 = vsel %vm2504_vm4, %v21436_v0, 0.0 }
 0xc1e   :  { %18041 = vpow2.f32 %v7651_v54  ;;  %v7637_v2 = vmul.f32 1.442695, %v7585_v56  ;;  %v7586_v45 = vsub.f32 %v21270_v6, %v7534_v59 }
 0xc1f   :  { %v21444_v21 = vpop.eup %18029  ;;  %18043 = vpow2.f32 %v7649_v33  ;;  %v7561_v63 = vpop.xlane.xlu1 %7560 }
 0xc20   :  { %v21448_v25 = vpop.eup %18031  ;;  %18045 = vpow2.f32 %v7637_v2  ;;  %v7639_v16 = vmul.f32 1.442695, %v7586_v45  ;;  %v7595_v60 = vsub.f32 %v21280_v9, %v7561_v63  ;;  %v7700_v14 = vsel %vm2508_vm3, %v21444_v21, 0.0 }
 0xc21   :  { %7701 = vadd.xlane.f32.xlu0 %v7700_v14  ;;  %v7564_v24 = vpop.xlane.xlu0 %7563  ;;  %7716 = vadd.xlane.f32.xlu1 %v7715_v43  ;;  %v7697_v41 = vsel %vm2504_vm4, %v21448_v25, 0.0 }
 0xc22   :  { %v7657_v6 = vmul.f32 1.442695, %v7595_v60  ;;  %v7596_v48 = vsub.f32 %v21272_v19, %v7564_v24  ;;  %18047 = vpow2.f32 %v7639_v16 }
 0xc23   :  { %v21454_v42 = vpop.eup %18033  ;;  %v7543_v57 = vpop.xlane.xlu1 %7542 }
 0xc24   :  { %18049 = vpow2.f32 %v7657_v6  ;;  %v7659_v18 = vmul.f32 1.442695, %v7596_v48  ;;  %v7589_v9 = vsub.f32 %v21290_v7, %v7543_v57  ;;  %v7730_v61 = vsel %vm2508_vm3, %v21454_v42, 0.0  ;;  %v21461_v33 = vpop.eup %18035 }
 0xc25   :  { %7731 = vadd.xlane.f32.xlu0 %v7730_v61  ;;  %v7546_v52 = vpop.xlane.xlu0 %7545  ;;  %7698 = vadd.xlane.f32.xlu1 %v7697_v41  ;;  %v7727_v59 = vsel %vm2504_vm4, %v21461_v33, 0.0 }
 0xc26   :  { %v7645_v19 = vmul.f32 1.442695, %v7589_v9  ;;  %v7590_v54 = vsub.f32 %v21286_v49, %v7546_v52  ;;  %18051 = vpow2.f32 %v7659_v18 }
 0xc27   :  { %v21464_v56 = vpop.eup %18037 }
 0xc28   :  { %v21466_v35 = vpop.eup %18039  ;;  %18053 = vpow2.f32 %v7645_v19  ;;  %v7647_v20 = vmul.f32 1.442695, %v7590_v54  ;;  %v7712_v7 = vsel %vm2508_vm3, %v21464_v56, 0.0 }
 0xc29   :  { %7713 = vadd.xlane.f32.xlu0 %v7712_v7  ;;  %v7558_v2 = vpop.xlane.xlu0 %7557  ;;  %7728 = vadd.xlane.f32.xlu1 %v7727_v59  ;;  %v7709_v43 = vsel %vm2504_vm4, %v21466_v35, 0.0 }
 0xc2a   :  { %v7594_v45 = vsub.f32 %v21298_v11, %v7558_v2  ;;  %18055 = vpow2.f32 %v7647_v20 }
 0xc2b   :  { %v21473_v63 = vpop.eup %18041  ;;  %v7555_v49 = vpop.xlane.xlu1 %7554 }
 0xc2c   :  { %v21477_v16 = vpop.eup %18043  ;;  %v7655_v60 = vmul.f32 1.442695, %v7594_v45  ;;  %v7593_v14 = vsub.f32 %v21302_v62, %v7555_v49  ;;  %v7742_v24 = vsel %vm2508_vm3, %v21473_v63, 0.0 }
 0xc2d   :  { %v21482_v6 = vpop.eup %18045  ;;  %7743 = vadd.xlane.f32.xlu0 %v7742_v24  ;;  %7710 = vadd.xlane.f32.xlu1 %v7709_v43  ;;  %v7739_v57 = vsel %vm2504_vm4, %v21477_v16, 0.0  ;;  %v24110_v43 = vcombine.low %v20890_v53, %v20893_v3 }
 0xc2e   :  { %v7653_v11 = vmul.f32 1.442695, %v7593_v14  ;;  %18057 = vpow2.f32 %v7655_v60  ;;  %v7721_v41 = vsel %vm2504_vm4, %v21482_v6, 0.0  ;;  %v24111_v60 = vld [vmem:[#allocation61_spill] sm:$0xff] }
 0xc2f   :  { %v21484_v48 = vpop.eup %18047  ;;  %v5676_v14 = vmul.f32 %v20438_v1, %v24111_v60 }
 0xc30   :  { %18059 = vpow2.f32 %v7653_v11  ;;  %v7724_v9 = vsel %vm2508_vm3, %v21484_v48, 0.0  ;;  %v21524_v11 = vpop.permute.xlu0 %9490 }
 0xc31   :  { %v21490_v18 = vpop.eup %18049  ;;  %7740 = vadd.xlane.f32.xlu0 %v7739_v57  ;;  %7722 = vadd.xlane.f32.xlu1 %v7721_v41  ;;  %v9604_v24 = vrot.slane %v5676_v14, %v18483_v15  ;;  %v21526_v57 = vpop.permute.xlu1 %9488 }
 0xc32   :  { %v7751_v61 = vsel %vm2504_vm4, %v21490_v18, 0.0 }
 0xc33   :  { %v21492_v62 = vpop.eup %18051 }
 0xc34   :  { %v7754_v19 = vsel %vm2508_vm3, %v21492_v62, 0.0 }
 0xc35   :  { %v21498_v52 = vpop.eup %18053  ;;  %7725 = vadd.xlane.f32.xlu0 %v7724_v9  ;;  %7752 = vadd.xlane.f32.xlu1 %v7751_v61 }
 0xc36   :  { %v7733_v54 = vsel %vm2504_vm4, %v21498_v52, 0.0 }
 0xc37   :  { %v21504_v20 = vpop.eup %18055 }
 0xc38   :  { %v7736_v59 = vsel %vm2508_vm3, %v21504_v20, 0.0 }
 0xc39   :  { %7755 = vadd.xlane.f32.xlu0 %v7754_v19  ;;  %7734 = vadd.xlane.f32.xlu1 %v7733_v54 }
 0xc3b   :  { %v21506_v7 = vpop.eup %18057 }
 0xc3c   :  { %v7748_v49 = vsel %vm2508_vm3, %v21506_v7, 0.0 }
 0xc3d   :  { %v21510_v2 = vpop.eup %18059  ;;  %7737 = vadd.xlane.f32.xlu0 %v7736_v59 }
 0xc3e   :  { %v7745_v45 = vsel %vm2504_vm4, %v21510_v2, 0.0 }
 0xc3f   :  { %7746 = vadd.xlane.f32.xlu1 %v7745_v45 }
 0xc41   :  { %7749 = vadd.xlane.f32.xlu0 %v7748_v49 }
 0xc50   :  { %9605 = vrot.lane.b32.xlu1 %v24110_v43, %s23958_s5 }
 0xc57   :  { %9607 = vrot.lane.b32.xlu0 %v9604_v24, %s23958_s5 }
 0xc86   :  { %v7666_v41 = vpop.xlane.xlu0 %7665 }
 0xc87   :  { %18061 = vrcp.f32 %v7666_v41 }
 0xc8a   :  { %v7684_v9 = vpop.xlane.xlu0 %7683  ;;  %v7663_v61 = vpop.xlane.xlu1 %7662 }
 0xc8b   :  { %18063 = vrcp.f32 %v7663_v61 }
 0xc8e   :  { %v7672_v19 = vpop.xlane.xlu0 %7671  ;;  %v7681_v54 = vpop.xlane.xlu1 %7680 }
 0xc8f   :  { %18065 = vrcp.f32 %v7672_v19 }
 0xc90   :  { %18067 = vrcp.f32 %v7681_v54 }
 0xc92   :  { %v7696_v53 = vpop.xlane.xlu0 %7695 }
 0xc94   :  { %v18062_v1 = vpop.eup %18061 }
 0xc95   :  { %v7790_v14 = vmul.f32 %v18062_v1, %v21364_v51 }
 0xc96   :  { %v7669_v3 = vpop.xlane.xlu1 %7668 }
 0xc97   :  { %18069 = vrcp.f32 %v7669_v3 }
 0xc98   :  { %v18064_v59 = vpop.eup %18063  ;;  %18071 = vrcp.f32 %v7684_v9 }
 0xc99   :  { %v7789_v43 = vmul.f32 %v18064_v59, %v21372_v46 }
 0xc9a   :  { %v7678_v45 = vpop.xlane.xlu0 %7677  ;;  %v7693_v49 = vpop.xlane.xlu1 %7692 }
 0xc9b   :  { %18073 = vrcp.f32 %v7693_v49  ;;  %17252 = vmatprep.mubr.msk.f32.mxu0 %vm2504_vm4, %v7789_v43 }
 0xc9c   :  { %17253 = vmatmul.mubr.msk.f32.vlgmr.msra.gmra.mxu0 %vm2504_vm4, %v7790_v14  ;;  %18075 = vrcp.f32 %v7696_v53  ;;  %v18066_v51 = vpop.eup %18065 }
 0xc9d   :  { %17263 = vmatpush3.msk.msra.mxu0 %vm2898_vm2, %v21126_v13  ;;  %18077 = vrcp.f32 %v7678_v45  ;;  %v18068_v61 = vpop.eup %18067  ;;  %v7792_v3 = vmul.f32 %v18066_v51, %v21382_v28 }
 0xc9e   :  { %v7708_v24 = vpop.xlane.xlu0 %7707  ;;  %v7675_v41 = vpop.xlane.xlu1 %7674  ;;  %17264 = vmatprep.subr.mxu0 %v21296_v36 }
 0xc9f   :  { %17265 = vmatpush3.msra.mxu0 %v21296_v36  ;;  %18079 = vrcp.f32 %v7675_v41  ;;  %v7795_v36 = vmul.f32 %v18068_v61, %v21379_v12 }
 0xca0   :  { %17276 = vmatprep.subr.msk.mxu0 %vm2898_vm2, %v21308_v26  ;;  %18081 = vrcp.f32 %v7708_v24 }
 0xca2   :  { %v7690_v46 = vpop.xlane.xlu0 %7689  ;;  %v7705_v9 = vpop.xlane.xlu1 %7704 }
 0xca3   :  { %18083 = vrcp.f32 %v7705_v9  ;;  %v24112_v9 = vld [vmem:[#allocation72_spill] sm:$0xff] }
 0xca4   :  { %v18070_v19 = vpop.eup %18069  ;;  %18085 = vrcp.f32 %v7690_v46 }
 0xca5   :  { %v7791_v13 = vmul.f32 %v18070_v19, %v21396_v39  ;;  %v18072_v1 = vpop.eup %18071 }
 0xca6   :  { %v7720_v54 = vpop.xlane.xlu0 %7719  ;;  %v7687_v53 = vpop.xlane.xlu1 %7686  ;;  %v7796_v28 = vmul.f32 %v18072_v1, %v21369_v40 }
 0xca7   :  { %17259 = vmatprep.mubr.msk.f32.mxu1 %vm2504_vm4, %v7791_v13  ;;  %18087 = vrcp.f32 %v7687_v53  ;;  %v24113_v13 = vld [vmem:[#allocation73_spill] sm:$0xff] }
 0xca8   :  { %17260 = vmatmul.mubr.msk.f32.vlgmr.msra.gmra.mxu1 %vm2504_vm4, %v7792_v3  ;;  %v18074_v59 = vpop.eup %18073  ;;  %18089 = vrcp.f32 %v7720_v54 }
 0xca9   :  { %17270 = vmatpush3.msk.msra.mxu1 %vm2898_vm2, %v21148_v23  ;;  %17273 = vmatprep.mubr.msk.f32.mxu1 %vm2504_vm4, %v7795_v36  ;;  %v18076_v49 = vpop.eup %18075  ;;  %v7799_v12 = vmul.f32 %v18074_v59, %v21398_v17  ;;  %v24115_v36 = vld [vmem:[#allocation79_spill] sm:$0xff] }
 0xcaa   :  { %17271 = vmatprep.subr.mxu1 %v21306_v38  ;;  %v7702_v39 = vpop.xlane.xlu0 %7701  ;;  %v7717_v45 = vpop.xlane.xlu1 %7716  ;;  %v7800_v24 = vmul.f32 %v18076_v49, %v21390_v22  ;;  %v24117_v49 = vld [vmem:[#allocation71_spill] sm:$0xff] }
 0xcab   :  { %17272 = vmatpush3.msra.mxu1 %v21306_v38  ;;  %v18078_v43 = vpop.eup %18077  ;;  %18091 = vrcp.f32 %v7717_v45 }
 0xcac   :  { %17283 = vmatprep.subr.msk.mxu1 %vm2898_vm2, %v21319_v30  ;;  %17274 = vmatmul.mubr.msk.f32.vlgmr.msra.gmra.mxu1 %vm2504_vm4, %v7796_v28  ;;  %v18080_v23 = vpop.eup %18079  ;;  %18093 = vrcp.f32 %v7702_v39  ;;  %v7794_v17 = vmul.f32 %v18078_v43, %v21404_v31 }
 0xcad   :  { %17284 = vmatpush3.msk.msra.mxu1 %vm2898_vm2, %v21319_v30  ;;  %17287 = vmatprep.mubr.msk.f32.mxu1 %vm2504_vm4, %v7799_v12  ;;  %v7793_v38 = vmul.f32 %v18080_v23, %v21406_v29  ;;  %v18082_v41 = vpop.eup %18081 }
 0xcae   :  { %17285 = vmatprep.subr.mxu1 %v21321_v55  ;;  %v7732_v40 = vpop.xlane.xlu0 %7731  ;;  %v7699_v14 = vpop.xlane.xlu1 %7698 }
 0xcaf   :  { %17286 = vmatpush3.msra.mxu1 %v21321_v55  ;;  %18095 = vrcp.f32 %v7699_v14  ;;  %17266 = vmatprep.mubr.msk.f32.mxu0 %vm2504_vm4, %v7793_v38 }
 0xcb0   :  { %17297 = vmatprep.subr.msk.mxu1 %vm2898_vm2, %v21328_v5  ;;  %v18084_v30 = vpop.eup %18083  ;;  %17267 = vmatmul.mubr.msk.f32.vlgmr.msra.gmra.mxu0 %vm2504_vm4, %v7794_v17  ;;  %18097 = vrcp.f32 %v7732_v40 }
 0xcb1   :  { %17288 = vmatmul.mubr.msk.f32.vlgmr.msra.gmra.mxu1 %vm2504_vm4, %v7800_v24  ;;  %17277 = vmatpush3.msk.msra.mxu0 %vm2898_vm2, %v21308_v26  ;;  %v7803_v31 = vmul.f32 %v18084_v30, %v21418_v47  ;;  %v18086_v29 = vpop.eup %18085  ;;  %v7804_v26 = vmul.f32 %v18082_v41, %v21414_v10  ;;  %v24119_v41 = vld [vmem:[#allocation75_spill] sm:$0xff] }
 0xcb2   :  { %17298 = vmatpush3.msk.msra.mxu1 %vm2898_vm2, %v21328_v5  ;;  %v7714_v55 = vpop.xlane.xlu0 %7713  ;;  %v7729_v22 = vpop.xlane.xlu1 %7728  ;;  %17278 = vmatprep.subr.mxu0 %v21310_v32 }
 0xcb3   :  { %17299 = vmatprep.subr.mxu1 %v21330_v44  ;;  %17279 = vmatpush3.msra.mxu0 %v21310_v32  ;;  %18099 = vrcp.f32 %v7729_v22 }
 0xcb4   :  { %17300 = vmatpush3.msra.mxu1 %v21330_v44  ;;  %v18088_v51 = vpop.eup %18087  ;;  %17290 = vmatprep.subr.msk.mxu0 %vm2898_vm2, %v21324_v34  ;;  %18101 = vrcp.f32 %v7714_v55  ;;  %v7798_v44 = vmul.f32 %v18086_v29, %v21424_v8 }
 0xcb5   :  { %17301 = vmatprep.mubr.msk.f32.mxu1 %vm2504_vm4, %v7803_v31  ;;  %17311 = vmatprep.subr.msk.mxu1 %vm2898_vm2, %v21336_v50  ;;  %v7797_v32 = vmul.f32 %v18088_v51, %v21431_v58  ;;  %v18090_v10 = vpop.eup %18089  ;;  %v24121_v51 = vld [vmem:[#allocation74_spill] sm:$0xff] }
 0xcb6   :  { %17302 = vmatmul.mubr.msk.f32.vlgmr.msra.gmra.mxu1 %vm2504_vm4, %v7804_v26  ;;  %v7744_v5 = vpop.xlane.xlu0 %7743  ;;  %v7711_v47 = vpop.xlane.xlu1 %7710  ;;  %v7808_v61 = vmul.f32 %v18090_v10, %v21434_v37  ;;  %v24114_v37 = vld [vmem:[#allocation76_spill] sm:$0xff] }
 0xcb7   :  { %17312 = vmatpush3.msk.msra.mxu1 %vm2898_vm2, %v21336_v50  ;;  %18103 = vrcp.f32 %v7711_v47  ;;  %17280 = vmatprep.mubr.msk.f32.mxu0 %vm2504_vm4, %v7797_v32  ;;  %v24122_v32 = vmov 0.0  }
 0xcb8   :  { %17313 = vmatprep.subr.mxu1 %v21338_v4  ;;  %v18092_v46 = vpop.eup %18091  ;;  %17281 = vmatmul.mubr.msk.f32.vlgmr.msra.gmra.mxu0 %vm2504_vm4, %v7798_v44  ;;  %18105 = vrcp.f32 %v7744_v5 }
 0xcb9   :  { %17314 = vmatpush3.msra.mxu1 %v21338_v4  ;;  %17291 = vmatpush3.msk.msra.mxu0 %vm2898_vm2, %v21324_v34  ;;  %v7807_v58 = vmul.f32 %v18092_v46, %v21436_v0  ;;  %v18094_v19 = vpop.eup %18093 }
 0xcba   :  { %17325 = vmatprep.subr.msk.mxu1 %vm2898_vm2, %v21344_v27  ;;  %v7741_v50 = vpop.xlane.xlu0 %7740  ;;  %v7723_v8 = vpop.xlane.xlu1 %7722  ;;  %17292 = vmatprep.subr.mxu0 %v24112_v9  ;;  %v7802_v53 = vmul.f32 %v18094_v19, %v21444_v21  ;;  %v24116_v21 = vld [vmem:[#allocation77_spill] sm:$0xff] }
 0xcbb   :  { %18107 = vrcp.f32 %v7741_v50  ;;  %17293 = vmatpush3.msra.mxu0 %v24112_v9  ;;  %17315 = vmatprep.mubr.msk.f32.mxu1 %vm2504_vm4, %v7807_v58 }
 0xcbc   :  { %18109 = vrcp.f32 %v7723_v8  ;;  %v18096_v4 = vpop.eup %18095  ;;  %17304 = vmatprep.subr.msk.mxu0 %vm2898_vm2, %v24113_v13  ;;  %17316 = vmatmul.mubr.msk.f32.vlgmr.msra.gmra.mxu1 %vm2504_vm4, %v7808_v61 }
 0xcbd   :  { %17326 = vmatpush3.msk.msra.mxu1 %vm2898_vm2, %v21344_v27  ;;  %v7801_v54 = vmul.f32 %v18096_v4, %v21448_v25  ;;  %v18098_v3 = vpop.eup %18097 }
 0xcbe   :  { %v7726_v34 = vpop.xlane.xlu0 %7725  ;;  %v7753_v0 = vpop.xlane.xlu1 %7752  ;;  %17327 = vmatprep.subr.mxu1 %v24114_v37  ;;  %v7812_v39 = vmul.f32 %v18098_v3, %v21454_v42  ;;  %v24118_v42 = vld [vmem:[#allocation80_spill] sm:$0xff] }
 0xcbf   :  { %18111 = vrcp.f32 %v7726_v34  ;;  %17328 = vmatpush3.msra.mxu1 %v24114_v37  ;;  %17294 = vmatprep.mubr.msk.f32.mxu0 %vm2504_vm4, %v7801_v54 }
 0xcc0   :  { %18113 = vrcp.f32 %v7753_v0  ;;  %v18100_v1 = vpop.eup %18099  ;;  %17339 = vmatprep.subr.msk.mxu1 %vm2898_vm2, %v24115_v36  ;;  %17295 = vmatmul.mubr.msk.f32.vlgmr.msra.gmra.mxu0 %vm2504_vm4, %v7802_v53 }
 0xcc1   :  { %17305 = vmatpush3.msk.msra.mxu0 %vm2898_vm2, %v24113_v13  ;;  %v7811_v59 = vmul.f32 %v18100_v1, %v21461_v33  ;;  %v18102_v45 = vpop.eup %18101 }
 0xcc2   :  { %v7756_v27 = vpop.xlane.xlu0 %7755  ;;  %v7735_v25 = vpop.xlane.xlu1 %7734  ;;  %17306 = vmatprep.subr.mxu0 %v24116_v21  ;;  %v7806_v23 = vmul.f32 %v18102_v45, %v21464_v56 }
 0xcc3   :  { %18115 = vrcp.f32 %v7756_v27  ;;  %17307 = vmatpush3.msra.mxu0 %v24116_v21  ;;  %17329 = vmatprep.mubr.msk.f32.mxu1 %vm2504_vm4, %v7811_v59 }
 0xcc4   :  { %18117 = vrcp.f32 %v7735_v25  ;;  %v18104_v28 = vpop.eup %18103  ;;  %17318 = vmatprep.subr.msk.mxu0 %vm2898_vm2, %v24117_v49  ;;  %17330 = vmatmul.mubr.msk.f32.vlgmr.msra.gmra.mxu1 %vm2504_vm4, %v7812_v39 }
 0xcc5   :  { %17340 = vmatpush3.msk.msra.mxu1 %vm2898_vm2, %v24115_v36  ;;  %v7805_v12 = vmul.f32 %v18104_v28, %v21466_v35  ;;  %v18106_v43 = vpop.eup %18105 }
 0xcc6   :  { %v7738_v33 = vpop.xlane.xlu0 %7737  ;;  %17341 = vmatprep.subr.mxu1 %v24118_v42  ;;  %v7816_v56 = vmul.f32 %v18106_v43, %v21473_v63 }
 0xcc7   :  { %18119 = vrcp.f32 %v7738_v33  ;;  %17342 = vmatpush3.msra.mxu1 %v24118_v42  ;;  %17308 = vmatprep.mubr.msk.f32.mxu0 %vm2504_vm4, %v7805_v12 }
 0xcc8   :  { %v18108_v40 = vpop.eup %18107  ;;  %v7747_v14 = vpop.xlane.xlu1 %7746  ;;  %17309 = vmatmul.mubr.msk.f32.vlgmr.msra.gmra.mxu0 %vm2504_vm4, %v7806_v23 }
 0xcc9   :  { %v18110_v38 = vpop.eup %18109  ;;  %18121 = vrcp.f32 %v7747_v14  ;;  %v7815_v17 = vmul.f32 %v18108_v40, %v21477_v16  ;;  %17319 = vmatpush3.msk.msra.mxu0 %vm2898_vm2, %v24117_v49  ;;  %v24120_v16 = vld [vmem:[#allocation81_spill] sm:$0xff] }
 0xcca   :  { %v7750_v35 = vpop.xlane.xlu0 %7749  ;;  %v7809_v24 = vmul.f32 %v18110_v38, %v21482_v6  ;;  %17320 = vmatprep.subr.mxu0 %v24119_v41 }
 0xccb   :  { %18123 = vrcp.f32 %v7750_v35  ;;  %17343 = vmatprep.mubr.msk.f32.mxu1 %vm2504_vm4, %v7815_v17  ;;  %17321 = vmatpush3.msra.mxu0 %v24119_v41 }
 0xccc   :  { %v18112_v30 = vpop.eup %18111  ;;  %17322 = vmatprep.mubr.msk.f32.mxu0 %vm2504_vm4, %v7809_v24  ;;  %17332 = vmatprep.subr.msk.mxu0 %vm2898_vm2, %v24120_v16  ;;  %v9606_v26 = vpop.permute.xlu1 %9605 }
 0xccd   :  { %v18114_v55 = vpop.eup %18113  ;;  %17344 = vmatmul.mubr.msk.f32.vlgmr.msra.gmra.mxu1 %vm2504_vm4, %v7816_v56  ;;  %v7810_v6 = vmul.f32 %v18112_v30, %v21484_v48 }
 0xcce   :  { %v9608_v22 = vpop.permute.xlu0 %9607  ;;  %v7819_v31 = vmul.f32 %v18114_v55, %v21490_v18 }
 0xccf   :  { %17323 = vmatmul.mubr.msk.f32.vlgmr.msra.gmra.mxu0 %vm2504_vm4, %v7810_v6  ;;  %17353 = vmatprep.subr.msk.mxu1 %vm2898_vm2, %v9608_v22 }
 0xcd0   :  { %v18116_v63 = vpop.eup %18115  ;;  %17333 = vmatpush3.msk.msra.mxu0 %vm2898_vm2, %v24120_v16  ;;  %17357 = vmatprep.mubr.msk.f32.mxu1 %vm2504_vm4, %v7819_v31 }
 0xcd1   :  { %v18118_v29 = vpop.eup %18117  ;;  %17334 = vmatprep.subr.mxu0 %v24121_v51  ;;  %17354 = vmatpush3.msk.msra.mxu1 %vm2898_vm2, %v9608_v22  ;;  %v7820_v48 = vmul.f32 %v18116_v63, %v21492_v62 }
 0xcd2   :  { %17335 = vmatpush3.msra.mxu0 %v24121_v51  ;;  %17355 = vmatprep.subr.mxu1 %v9606_v26  ;;  %v7813_v18 = vmul.f32 %v18118_v29, %v21498_v52 }
 0xcd3   :  { %17346 = vmatprep.subr.msk.mxu0 %vm2898_vm2, %v21524_v11  ;;  %17356 = vmatpush3.msra.mxu1 %v9606_v26 }
 0xcd4   :  { %v18120_v5 = vpop.eup %18119  ;;  %17336 = vmatprep.mubr.msk.f32.mxu0 %vm2504_vm4, %v7813_v18  ;;  %17358 = vmatmul.mubr.msk.f32.vlgmr.msra.gmra.mxu1 %vm2504_vm4, %v7820_v48 }
 0xcd5   :  { %v7814_v47 = vmul.f32 %v18120_v5, %v21504_v20  ;;  %17377 = vmatprep.subr.mxu1 %v24122_v32  ;;  %17385 = vmatprep.mubr.msk.f32.mxu1 %vm18311_vm0, %v24122_v32 }
 0xcd6   :  { %v18122_v62 = vpop.eup %18121 }
 0xcd7   :  { %17337 = vmatmul.mubr.msk.f32.vlgmr.msra.gmra.mxu0 %vm2504_vm4, %v7814_v47  ;;  %v7817_v52 = vmul.f32 %v18122_v62, %v21510_v2  ;;  %v16039_v2 = vld [vmem:[%s23935_s28 + $0x38] sm:$0xff] }
 0xcd8   :  { %v18124_v44 = vpop.eup %18123  ;;  %17347 = vmatpush3.msk.msra.mxu0 %vm2898_vm2, %v21524_v11  ;;  %v16038_v11 = vld [vmem:[%s23935_s28 + $0x30] sm:$0xff] }
 0xcd9   :  { %17348 = vmatprep.subr.mxu0 %v21526_v57  ;;  %17350 = vmatprep.mubr.msk.f32.mxu0 %vm2504_vm4, %v7817_v52  ;;  %v7818_v20 = vmul.f32 %v18124_v44, %v21506_v7  ;;  %v16037_v7 = vld [vmem:[%s23935_s28 + $0x28] sm:$0xff] }
 0xcda   :  { %17349 = vmatpush3.msra.mxu0 %v21526_v57  ;;  %v16036_v57 = vld [vmem:[%s23935_s28 + $0x20] sm:$0xff] }
 0xcdb   :  { %17351 = vmatmul.mubr.msk.f32.vlgmr.msra.gmra.mxu0 %vm2504_vm4, %v7818_v20  ;;  %17360 = vmatprep.subr.mxu0 %v24122_v32 }
 0xcdc   :  { %17368 = vmatprep.mubr.msk.f32.mxu0 %vm18311_vm0, %v24122_v32  ;;  %17361 = vmatpush3.msra.mxu0 %v16039_v2 }
 0xcdd   :  { %17362 = vmatprep.subr.mxu0 %v24122_v32 }
 0xcde   :  { %17363 = vmatpush3.msra.mxu0 %v16038_v11 }
 0xcdf   :  { %17364 = vmatprep.subr.mxu0 %v24122_v32 }
 0xce0   :  { %17365 = vmatpush3.msra.mxu0 %v16037_v7 }
 0xce1   :  { %17366 = vmatprep.subr.mxu0 %v24122_v32 }
 0xce2   :  { %17367 = vmatpush3.msra.mxu0 %v16036_v57 }
 0xce3   :  { %17394 = vmatprep.subr.mxu0 %v24122_v32 }
 0xd5c   :  { %v17254_v46 = vpop.f32.mrf.mxu0 }
 0xd5e   :  { %v7929_v8 = vpop.f32.mrf.mxu0 }
 0xd68   :  { %v17261_v10 = vpop.f32.mrf.mxu1 }
 0xd69   :  { %v9694_v42 = vadd.f32 %v17261_v10, %v17254_v46 }
 0xd6a   :  { %v8046_v50 = vpop.f32.mrf.mxu1 }
 0xd6b   :  { %v9693_v4 = vadd.f32 %v8046_v50, %v7929_v8 }
 0xd6c   :  { %v17275_v58 = vpop.f32.mrf.mxu1 }
 0xd6e   :  { %v8280_v61 = vpop.f32.mrf.mxu1 }
 0xd70   :  { %v17268_v9 = vpop.f32.mrf.mxu0 }
 0xd71   :  { %v17289_v34 = vpop.f32.mrf.mxu1  ;;  %v9698_v17 = vadd.f32 %v17268_v9, %v9694_v42 }
 0xd72   :  { %v8163_v19 = vpop.f32.mrf.mxu0 }
 0xd73   :  { %v9697_v13 = vadd.f32 %v9693_v4, %v8163_v19  ;;  %v8514_v53 = vpop.f32.mrf.mxu1  ;;  %v9702_v6 = vadd.f32 %v17275_v58, %v9698_v17 }
 0xd75   :  { %v9701_v37 = vadd.f32 %v9697_v13, %v8280_v61 }
 0xd76   :  { %v17303_v1 = vpop.f32.mrf.mxu1 }
 0xd78   :  { %v17282_v0 = vpop.f32.mrf.mxu0  ;;  %v8748_v21 = vpop.f32.mrf.mxu1 }
 0xd79   :  { %v9706_v26 = vadd.f32 %v17282_v0, %v9702_v6 }
 0xd7a   :  { %v8397_v54 = vpop.f32.mrf.mxu0 }
 0xd7b   :  { %v9705_v3 = vadd.f32 %v9701_v37, %v8397_v54  ;;  %v9710_v47 = vadd.f32 %v17289_v34, %v9706_v26  ;;  %v16052_v26 = vld [vmem:[%s23937_s1 + $0x38] sm:$0xff] }
 0xd7c   :  { %v17317_v49 = vpop.f32.mrf.mxu1  ;;  %17378 = vmatpush3.msra.mxu1 %v16052_v26 }
 0xd7d   :  { %v9709_v27 = vadd.f32 %v9705_v3, %v8514_v53  ;;  %17379 = vmatprep.subr.mxu1 %v24122_v32 }
 0xd7e   :  { %v8982_v14 = vpop.f32.mrf.mxu1 }
 0xd80   :  { %v17296_v36 = vpop.f32.mrf.mxu0 }
 0xd81   :  { %v9714_v2 = vadd.f32 %v17296_v36, %v9710_v47  ;;  %v16049_v47 = vld [vmem:[%s23937_s1 + $0x20] sm:$0xff] }
 0xd82   :  { %v8631_v25 = vpop.f32.mrf.mxu0 }
 0xd83   :  { %v9713_v59 = vadd.f32 %v9709_v27, %v8631_v25  ;;  %v9718_v8 = vadd.f32 %v17303_v1, %v9714_v2 }
 0xd84   :  { %v17331_v24 = vpop.f32.mrf.mxu1 }
 0xd85   :  { %v9717_v39 = vadd.f32 %v9713_v59, %v8748_v21  ;;  %v9748_v4 = vrot.slane %v9718_v8, %v18483_v15 }
 0xd86   :  { %v9216_v29 = vpop.f32.mrf.mxu1 }
 0xd87   :  { %v9725_v45 = vcombine.high %v9717_v39, %v9717_v39  ;;  %v9732_v28 = vrot.slane %v9717_v39, %v18483_v15 }
 0xd88   :  { %v17310_v33 = vpop.f32.mrf.mxu0 }
 0xd89   :  { %v9739_v12 = vrot.slane %v9725_v45, %v18483_v15  ;;  %v9740_v43 = vcombine.high %v9732_v28, %v9732_v28  ;;  %v9696_v55 = vadd.f32 %v17317_v49, %v17310_v33  ;;  %v16041_v45 = vld [vmem:[%s23936_s26 + $0x1] ss:$0 sm:$0xff] }
 0xd8a   :  { %v8865_v38 = vpop.f32.mrf.mxu0 }
 0xd8b   :  { %v9741_v23 = vcombine.high %v9739_v12, %v9739_v12  ;;  %v9786_v40 = vcombine.low %v9732_v28, %v9740_v43  ;;  %v9695_v31 = vadd.f32 %v8982_v14, %v8865_v38  ;;  %v24124_v38 = vld [vmem:[#allocation69_spill] sm:$0xff] }
 0xd8d   :  { %v9787_v35 = vcombine.low %v9739_v12, %v9741_v23  ;;  %v9794_v56 = vrot.slane %v9786_v40, %v18483_v15  ;;  %v17345_v48 = vpop.f32.mrf.mxu1  ;;  %v24123_v12 = vld [vmem:[#allocation68_spill] sm:$0xff] }
 0xd8f   :  { %v17324_v41 = vpop.f32.mrf.mxu0  ;;  %v9801_v30 = vrot.slane %v9787_v35, %v18483_v15  ;;  %v9450_v44 = vpop.f32.mrf.mxu1 }
 0xd90   :  { %v9700_v63 = vadd.f32 %v17324_v41, %v9696_v55 }
 0xd91   :  { %v9099_v16 = vpop.f32.mrf.mxu0  ;;  %v9802_v22 = vcombine.low %v9794_v56, %v9801_v30  ;;  %v24125_v30 = vld [vmem:[#allocation70_spill] sm:$0xff] }
 0xd92   :  { %v9699_v51 = vadd.f32 %v9695_v31, %v9099_v16  ;;  %v9704_v18 = vadd.f32 %v17331_v24, %v9700_v63 }
 0xd93   :  { %17369 = vmatmul.mubr.msk.f32.vlgmr.msra.gmra.mxu0 %vm103_vm1, %v9802_v22 }
 0xd94   :  { %17371 = vmatprep.mubr.msk.f32.mxu0 %vm18311_vm0, %v24122_v32  ;;  %v9703_v52 = vadd.f32 %v9699_v51, %v9216_v29  ;;  %v17359_v7 = vpop.f32.mrf.mxu1  ;;  %v16051_v51 = vld [vmem:[%s23937_s1 + $0x30] sm:$0xff] }
 0xd95   :  { %17380 = vmatpush3.msra.mxu1 %v16051_v51 }
 0xd96   :  { %v9684_v9 = vpop.f32.mrf.mxu1  ;;  %17381 = vmatprep.subr.mxu1 %v24122_v32 }
 0xd97   :  { %v17338_v5 = vpop.f32.mrf.mxu0 }
 0xd98   :  { %v9708_v62 = vadd.f32 %v17338_v5, %v9704_v18  ;;  %v16050_v18 = vld [vmem:[%s23937_s1 + $0x28] sm:$0xff] }
 0xd99   :  { %v9333_v20 = vpop.f32.mrf.mxu0  ;;  %17382 = vmatpush3.msra.mxu1 %v16050_v18 }
 0xd9a   :  { %v9707_v11 = vadd.f32 %v9703_v52, %v9333_v20  ;;  %v9712_v10 = vadd.f32 %v17345_v48, %v9708_v62  ;;  %17383 = vmatprep.subr.mxu1 %v24122_v32 }
 0xd9b   :  { %v17352_v57 = vpop.f32.mrf.mxu0  ;;  %17384 = vmatpush3.msra.mxu1 %v16049_v47 }
 0xd9c   :  { %v9711_v46 = vadd.f32 %v9707_v11, %v9450_v44  ;;  %v9716_v61 = vadd.f32 %v17352_v57, %v9712_v10  ;;  %17435 = vmatprep.subr.mxu1 %v24122_v32 }
 0xd9d   :  { %v9567_v50 = vpop.f32.mrf.mxu0 }
 0xd9e   :  { %v9715_v58 = vadd.f32 %v9711_v46, %v9567_v50  ;;  %v9720_v0 = vadd.f32 %v17359_v7, %v9716_v61  ;;  %v16048_v61 = vld [vmem:[%s23939_s6 + $0x1] ss:$0 sm:$0xff] }
 0xda0   :  { %v9719_v19 = vadd.f32 %v9715_v58, %v9684_v9  ;;  %v9772_v27 = vrot.slane %v9720_v0, %v18483_v15  ;;  %v16047_v58 = vld [vmem:[%s23938_s8 + $0x1] ss:$0 sm:$0xff] }
 0xda2   :  { %v9749_v13 = vcombine.high %v9719_v19, %v9719_v19  ;;  %v9756_v34 = vrot.slane %v9719_v19, %v18483_v15 }
 0xda4   :  { %v9763_v54 = vrot.slane %v9749_v13, %v18483_v15  ;;  %v9764_v37 = vcombine.high %v9756_v34, %v9756_v34  ;;  %v9803_v53 = vcombine.low %v9748_v4, %v9756_v34 }
 0xda6   :  { %v9765_v3 = vcombine.high %v9763_v54, %v9763_v54  ;;  %v9804_v36 = vcombine.low %v9764_v37, %v9763_v54  ;;  %v9811_v1 = vrot.slane %v9803_v53, %v18483_v15 }
 0xda8   :  { %v9818_v25 = vrot.slane %v9804_v36, %v18483_v15  ;;  %v9820_v21 = vcombine.low %v9765_v3, %v9772_v27 }
 0xdaa   :  { %v9819_v59 = vcombine.low %v9811_v1, %v9818_v25  ;;  %v9827_v39 = vrot.slane %v9820_v21, %v18483_v15 }
 0xdac   :  { %17372 = vmatmul.mubr.msk.f32.gmra.mxu0 %vm103_vm1, %v9819_v59 }
 0xdad   :  { %17374 = vmatprep.mubr.msk.f32.mxu0 %vm18311_vm0, %v24122_v32 }
 0xdb0   :  { %17375 = vmatmul.mubr.msk.f32.gmra.mxu0 %vm103_vm1, %v9827_v39 }
 0xdb1   :  { %17426 = vmatprep.mubr.msk.f32.mxu0 %vm18311_vm0, %v24122_v32 }
 0xe53   :  { %v9900_v28 = vpop.f32.mrf.mxu0 }
 0xe54   :  { %v9901_v49 = vadd.f32 %v16041_v45, %v9900_v28  ;;  %v16072_v28 = vld [vmem:[%s23551_s10 + $0xf0] sm:$0xff] }
 0xe55   :  { %v17370_v33 = vpop.f32.mrf.mxu0 }
 0xe56   :  { %v9914_v43 = vadd.f32 %v9901_v49, %v24123_v12  ;;  %v16071_v49 = vld [vmem:[%s23551_s10 + $0xe8] sm:$0xff]  ;;  %v16070_v33 = vld [vmem:[%s23551_s10 + $0xe0] sm:$0xff]  ;;  %v16069_v12 = vld [vmem:[%s23551_s10 + $0xd8] sm:$0xff] }
 0xe58   :  { %v9921_v42 = vsel %vm103_vm1, %v9914_v43, 0.0 }
 0xe59   :  { %9922 = vadd.xlane.f32.xlu0 %v9921_v42  ;;  %v16067_v42 = vld [vmem:[%s23551_s10 + $0xc8] sm:$0xff] }
 0xe6c   :  { %v9905_v23 = vpop.f32.mrf.mxu0 }
 0xe6d   :  { %v9906_v40 = vadd.f32 %v16041_v45, %v9905_v23  ;;  %v16066_v23 = vld [vmem:[%s23551_s10 + $0xc0] sm:$0xff] }
 0xe6e   :  { %v17373_v14 = vpop.f32.mrf.mxu0 }
 0xe6f   :  { %v9915_v17 = vadd.f32 %v9906_v40, %v24124_v38  ;;  %v16065_v40 = vld [vmem:[%s23551_s10 + $0xb8] sm:$0xff]  ;;  %v16064_v14 = vld [vmem:[%s23551_s10 + $0xb0] sm:$0xff]  ;;  %v16063_v38 = vld [vmem:[%s23551_s10 + $0xa8] sm:$0xff] }
 0xe70   :  { %v9910_v35 = vpop.f32.mrf.mxu0 }
 0xe71   :  { %v9911_v24 = vadd.f32 %v16041_v45, %v9910_v35  ;;  %v9924_v41 = vsel %vm103_vm1, %v9915_v17, 0.0  ;;  %v16073_v45 = vld [vmem:[%s23551_s10 + $0xf8] sm:$0xff] }
 0xe72   :  { %9925 = vadd.xlane.f32.xlu1 %v9924_v41  ;;  %v17376_v56 = vpop.f32.mrf.mxu0  ;;  %17395 = vmatpush3.msra.mxu0 %v16073_v45  ;;  %v16061_v35 = vld [vmem:[%s23551_s10 + $0x98] sm:$0xff]  ;;  %v16059_v41 = vld [vmem:[%s23551_s10 + $0x88] sm:$0xff] }
 0xe73   :  { %v9916_v55 = vadd.f32 %v9911_v24, %v24125_v30  ;;  %17396 = vmatprep.subr.mxu0 %v24122_v32  ;;  %v16060_v24 = vld [vmem:[%s23551_s10 + $0x90] sm:$0xff]  ;;  %v16058_v56 = vld [vmem:[%s23551_s10 + $0x80] sm:$0xff] }
 0xe74   :  { %17397 = vmatpush3.msra.mxu0 %v16072_v28  ;;  %v16054_v30 = vld [vmem:[%s23552_s9 + $0x1] ss:$0 sm:$0xff] }
 0xe75   :  { %v9927_v16 = vsel %vm4961_vm5, %v9916_v55, 0.0  ;;  %17398 = vmatprep.subr.mxu0 %v24122_v32 }
 0xe76   :  { %9928 = vadd.xlane.f32.xlu0 %v9927_v16  ;;  %17399 = vmatpush3.msra.mxu0 %v16071_v49 }
 0xe77   :  { %17400 = vmatprep.subr.mxu0 %v24122_v32 }
 0xe78   :  { %17401 = vmatpush3.msra.mxu0 %v16070_v33 }
 0xe79   :  { %17402 = vmatprep.subr.mxu0 %v24122_v32 }
 0xe7a   :  { %17403 = vmatpush3.msra.mxu0 %v16069_v12 }
 0xe7b   :  { %17404 = vmatprep.subr.mxu0 %v24122_v32 }
 0xee2   :  { %v9923_v6 = vpop.xlane.xlu0 %9922 }
 0xee3   :  { %v9930_v22 = vmul.f32 0.03125, %v9923_v6 }
 0xee5   :  { %v9933_v31 = vsub.f32 %v9914_v43, %v9930_v22  ;;  %v16068_v43 = vld [vmem:[%s23551_s10 + $0xd0] sm:$0xff] }
 0xee6   :  { %17405 = vmatpush3.msra.mxu0 %v16068_v43 }
 0xee7   :  { %v9936_v63 = vmul.f32 %v9933_v31, %v9933_v31  ;;  %17406 = vmatprep.subr.mxu0 %v24122_v32 }
 0xee8   :  { %17407 = vmatpush3.msra.mxu0 %v16067_v42 }
 0xee9   :  { %v9939_v29 = vsel %vm103_vm1, %v9936_v63, 0.0  ;;  %17408 = vmatprep.subr.mxu0 %v24122_v32 }
 0xeea   :  { %9940 = vadd.xlane.f32.xlu0 %v9939_v29  ;;  %17409 = vmatpush3.msra.mxu0 %v16066_v23 }
 0xeeb   :  { %17410 = vmatprep.subr.mxu0 %v24122_v32 }
 0xeec   :  { %17411 = vmatpush3.msra.mxu0 %v16065_v40 }
 0xeed   :  { %17412 = vmatprep.subr.mxu0 %v24122_v32 }
 0xeee   :  { %17413 = vmatpush3.msra.mxu0 %v16064_v14 }
 0xeef   :  { %17414 = vmatprep.subr.mxu0 %v24122_v32 }
 0xef0   :  { %17415 = vmatpush3.msra.mxu0 %v16063_v38 }
 0xef1   :  { %17416 = vmatprep.subr.mxu0 %v24122_v32 }
 0xefb   :  { %v9926_v48 = vpop.xlane.xlu1 %9925 }
 0xefc   :  { %v9931_v5 = vmul.f32 0.03125, %v9926_v48 }
 0xefe   :  { %v9934_v62 = vsub.f32 %v9915_v17, %v9931_v5  ;;  %v16062_v17 = vld [vmem:[%s23551_s10 + $0xa0] sm:$0xff] }
 0xeff   :  { %v9929_v52 = vpop.xlane.xlu0 %9928  ;;  %17417 = vmatpush3.msra.mxu0 %v16062_v17 }
 0xf00   :  { %v9932_v44 = vmul.f32 0.03125, %v9929_v52  ;;  %v9937_v20 = vmul.f32 %v9934_v62, %v9934_v62  ;;  %17418 = vmatprep.subr.mxu0 %v24122_v32 }
 0xf01   :  { %17419 = vmatpush3.msra.mxu0 %v16061_v35 }
 0xf02   :  { %v9935_v2 = vsub.f32 %v9916_v55, %v9932_v44  ;;  %v9942_v11 = vsel %vm103_vm1, %v9937_v20, 0.0  ;;  %17420 = vmatprep.subr.mxu0 %v24122_v32 }
 0xf03   :  { %9943 = vadd.xlane.f32.xlu1 %v9942_v11  ;;  %17421 = vmatpush3.msra.mxu0 %v16060_v24 }
 0xf04   :  { %v9938_v7 = vmul.f32 %v9935_v2, %v9935_v2  ;;  %17422 = vmatprep.subr.mxu0 %v24122_v32 }
 0xf05   :  { %17423 = vmatpush3.msra.mxu0 %v16059_v41 }
 0xf06   :  { %v9945_v57 = vsel %vm4961_vm5, %v9938_v7, 0.0  ;;  %17424 = vmatprep.subr.mxu0 %v24122_v32 }
 0xf07   :  { %9946 = vadd.xlane.f32.xlu0 %v9945_v57  ;;  %17425 = vmatpush3.msra.mxu0 %v16058_v56 }
 0xf73   :  { %v9941_v10 = vpop.xlane.xlu0 %9940 }
 0xf74   :  { %v9948_v46 = vmul.f32 0.03125, %v9941_v10 }
 0xf76   :  { %v9951_v50 = vadd.f32 1e-12, %v9948_v46 }
 0xf78   :  { %18125 = vrsqrt.f32 %v9951_v50 }
 0xf85   :  { %v18126_v8 = vpop.eup %18125 }
 0xf86   :  { %v9957_v9 = vmul.f32 %v18126_v8, %v9933_v31 }
 0xf88   :  { %v9966_v19 = vmul.f32 %v16047_v58, %v9957_v9 }
 0xf8a   :  { %v21744_v4 = vadd.f32 %v16048_v61, %v9966_v19 }
 0xf8c   :  { %v9944_v13 = vpop.xlane.xlu1 %9943  ;;  %17386 = vmatmul.mubr.msk.f32.vlgmr.msra.gmra.mxu1 %vm103_vm1, %v21744_v4 }
 0xf8d   :  { %v9949_v34 = vmul.f32 0.03125, %v9944_v13  ;;  %17388 = vmatprep.mubr.msk.f32.mxu1 %vm18311_vm0, %v24122_v32 }
 0xf8f   :  { %v9952_v0 = vadd.f32 1e-12, %v9949_v34 }
 0xf90   :  { %v9947_v54 = vpop.xlane.xlu0 %9946 }
 0xf91   :  { %18127 = vrsqrt.f32 %v9952_v0  ;;  %v9950_v37 = vmul.f32 0.03125, %v9947_v54 }
 0xf93   :  { %v9953_v53 = vadd.f32 1e-12, %v9950_v37 }
 0xf95   :  { %18129 = vrsqrt.f32 %v9953_v53 }
 0xf9e   :  { %v18128_v3 = vpop.eup %18127 }
 0xf9f   :  { %v9958_v36 = vmul.f32 %v18128_v3, %v9934_v62 }
 0xfa1   :  { %v9967_v27 = vmul.f32 %v16047_v58, %v9958_v36 }
 0xfa2   :  { %v18130_v1 = vpop.eup %18129 }
 0xfa3   :  { %v21750_v25 = vadd.f32 %v16048_v61, %v9967_v27  ;;  %v9959_v59 = vmul.f32 %v18130_v1, %v9935_v2 }
 0xfa5   :  { %17389 = vmatmul.mubr.msk.f32.gmra.mxu1 %vm103_vm1, %v21750_v25  ;;  %v9968_v21 = vmul.f32 %v16047_v58, %v9959_v59  ;;  %v24126_v59 = vmov -1.0  }
 0xfa6   :  { %17391 = vmatprep.mubr.msk.f32.mxu1 %vm18311_vm0, %v24122_v32 }
 0xfa7   :  { %v21756_v39 = vadd.f32 %v16048_v61, %v9968_v21 }
 0xfa9   :  { %17392 = vmatmul.mubr.msk.f32.gmra.mxu1 %vm103_vm1, %v21756_v39 }
 0xfaa   :  { %17443 = vmatprep.mubr.msk.f32.mxu1 %vm18311_vm0, %v24122_v32 }
0x104c   :  { %v10066_v55 = vpop.f32.mrf.mxu1 }
0x104d   :  { %v10067_v16 = vadd.f32 %v16054_v30, %v10066_v55 }
0x104e   :  { %v17387_v6 = vpop.f32.mrf.mxu1 }
0x104f   :  { %v10083_v22 = vmul.f32 0.70710677, %v10067_v16  ;;  %v10080_v33 = vmul.f32 0.5, %v10067_v16 }
0x1051   :  { %v10092_v31 = vand.u32 2147483647, %v10083_v22  ;;  %vm10086_vm9 = vcmp.ge.f32.partialorder %v10083_v22, 0.0 }
0x1052   :  { %v10089_v21 = vsel %vm10086_vm9, 1.0, %v24126_v59 }
0x1053   :  { %v10095_v63 = vmul.f32 0.3275911, %v10092_v31  ;;  %v10134_v26 = vsub.f32 0.0, %v10092_v31 }
0x1055   :  { %v10098_v29 = vadd.f32 1.0, %v10095_v63  ;;  %v10137_v51 = vmul.f32 %v10134_v26, %v10092_v31 }
0x1057   :  { %18131 = vrcp.f32 %v10098_v29  ;;  %v10140_v47 = vmul.f32 1.442695, %v10137_v51 }
0x1059   :  { %18133 = vpow2.f32 %v10140_v47 }
0x1064   :  { %v18132_v48 = vpop.eup %18131 }
0x1065   :  { %v10071_v18 = vpop.f32.mrf.mxu1  ;;  %v10107_v5 = vmul.f32 1.0614054, %v18132_v48 }
0x1066   :  { %v21828_v62 = vadd.f32 %v16054_v30, %v10071_v18  ;;  %v18134_v3 = vpop.eup %18133 }
0x1067   :  { %v17390_v52 = vpop.f32.mrf.mxu1  ;;  %v10110_v44 = vadd.f32 -1.4531521, %v10107_v5 }
0x1068   :  { %v21831_v20 = vmul.f32 0.70710677, %v21828_v62 }
0x1069   :  { %v10076_v2 = vpop.f32.mrf.mxu1  ;;  %v10113_v11 = vmul.f32 %v18132_v48, %v10110_v44 }
0x106a   :  { %v10093_v7 = vand.u32 2147483647, %v21831_v20  ;;  %v21834_v57 = vadd.f32 %v16054_v30, %v10076_v2  ;;  %vm10087_vm10 = vcmp.ge.f32.partialorder %v21831_v20, 0.0 }
0x106b   :  { %v17393_v10 = vpop.f32.mrf.mxu1  ;;  %v10116_v46 = vadd.f32 1.4214138, %v10113_v11  ;;  %v10090_v52 = vsel %vm10087_vm10, 1.0, %v24126_v59 }
0x106c   :  { %v10096_v50 = vmul.f32 0.3275911, %v10093_v7  ;;  %v21837_v8 = vmul.f32 0.70710677, %v21834_v57  ;;  %v10135_v53 = vsub.f32 0.0, %v10093_v7  ;;  %v10081_v10 = vmul.f32 0.5, %v21828_v62 }
0x106d   :  { %v10119_v58 = vmul.f32 %v18132_v48, %v10116_v46  ;;  %v10082_v20 = vmul.f32 0.5, %v21834_v57 }
0x106e   :  { %v10099_v9 = vadd.f32 1.0, %v10096_v50  ;;  %v10094_v61 = vand.u32 2147483647, %v21837_v8  ;;  %v10138_v1 = vmul.f32 %v10135_v53, %v10093_v7  ;;  %vm10088_vm11 = vcmp.ge.f32.partialorder %v21837_v8, 0.0  ;;  %v16075_v8 = vld [vmem:[%s23553_s11 + $0x1] ss:$0 sm:$0xff] }
0x106f   :  { %v10122_v19 = vadd.f32 -0.28449672, %v10119_v58  ;;  %v10091_v58 = vsel %vm10088_vm11, 1.0, %v24126_v59 }
0x1070   :  { %18135 = vrcp.f32 %v10099_v9  ;;  %v10097_v13 = vmul.f32 0.3275911, %v10094_v61  ;;  %v10136_v45 = vsub.f32 0.0, %v10094_v61  ;;  %v10142_v43 = vmul.f32 1.442695, %v10138_v1 }
0x1071   :  { %v10125_v34 = vmul.f32 %v18132_v48, %v10122_v19 }
0x1072   :  { %v10100_v0 = vadd.f32 1.0, %v10097_v13  ;;  %v10139_v23 = vmul.f32 %v10136_v45, %v10094_v61 }
0x1073   :  { %v10128_v54 = vadd.f32 0.2548296, %v10125_v34 }
0x1074   :  { %18137 = vrcp.f32 %v10100_v0  ;;  %v10144_v35 = vmul.f32 1.442695, %v10139_v23 }
0x1075   :  { %v10131_v37 = vmul.f32 %v18132_v48, %v10128_v54  ;;  %18139 = vpow2.f32 %v10142_v43 }
0x1076   :  { %18141 = vpow2.f32 %v10144_v35 }
0x1077   :  { %v10146_v36 = vmul.f32 %v18134_v3, %v10131_v37 }
0x1079   :  { %v10149_v27 = vsub.f32 1.0, %v10146_v36 }
0x107b   :  { %v10152_v28 = vmul.f32 %v10149_v27, %v10089_v21 }
0x107d   :  { %v18136_v49 = vpop.eup %18135  ;;  %v10155_v12 = vadd.f32 1.0, %v10152_v28 }
0x107e   :  { %v10108_v42 = vmul.f32 1.0614054, %v18136_v49 }
0x107f   :  { %v10158_v40 = vmul.f32 %v10155_v12, %v10080_v33 }
0x1080   :  { %v10111_v14 = vadd.f32 -1.4531521, %v10108_v42 }
0x1081   :  { %v18138_v38 = vpop.eup %18137  ;;  %17427 = vmatmul.mubr.f32.vlgmr.msra.gmra.mxu0 %v10158_v40 }
0x1082   :  { %v10114_v17 = vmul.f32 %v18136_v49, %v10111_v14  ;;  %17429 = vmatprep.mubr.msk.f32.mxu0 %vm18311_vm0, %v24122_v32  ;;  %v10109_v24 = vmul.f32 1.0614054, %v18138_v38  ;;  %v18140_v51 = vpop.eup %18139 }
0x1083   :  { %v18142_v2 = vpop.eup %18141 }
0x1084   :  { %v10117_v41 = vadd.f32 1.4214138, %v10114_v17  ;;  %v10112_v56 = vadd.f32 -1.4531521, %v10109_v24 }
0x1086   :  { %v10120_v30 = vmul.f32 %v18136_v49, %v10117_v41  ;;  %v10115_v55 = vmul.f32 %v18138_v38, %v10112_v56  ;;  %v10339_v56 = vld [vmem:[%s23556_s14 + $0x18] sm:$0xff] }
0x1087   :  { %17436 = vmatpush3.msra.mxu1 %v10339_v56 }
0x1088   :  { %v10123_v16 = vadd.f32 -0.28449672, %v10120_v30  ;;  %v10118_v6 = vadd.f32 1.4214138, %v10115_v55  ;;  %v10338_v30 = vld [vmem:[%s23556_s14 + $0x10] sm:$0xff]  ;;  %17437 = vmatprep.subr.mxu1 %v24122_v32  ;;  %v10337_v55 = vld [vmem:[%s23556_s14 + $0x8] sm:$0xff] }
0x1089   :  { %17438 = vmatpush3.msra.mxu1 %v10338_v30 }
0x108a   :  { %v10126_v22 = vmul.f32 %v18136_v49, %v10123_v16  ;;  %v10121_v31 = vmul.f32 %v18138_v38, %v10118_v6  ;;  %17439 = vmatprep.subr.mxu1 %v24122_v32  ;;  %v10336_v16 = vld [vmem:[%s23556_s14] sm:$0xff]  ;;  %v18316_v6 = vmov 0  }
0x108b   :  { %17440 = vmatpush3.msra.mxu1 %v10337_v55  ;;  %17843 = vset.pattern.permute.xlu1 %v18316_v6 }
0x108c   :  { %v10129_v63 = vadd.f32 0.2548296, %v10126_v22  ;;  %v10124_v29 = vadd.f32 -0.28449672, %v10121_v31  ;;  %17441 = vmatprep.subr.mxu1 %v24122_v32  ;;  %v29_v22 = vstv %s23557_s16  ;;  %17844 = vset.pattern.permute.xlu0 %v18316_v6 }
0x108d   :  { %17442 = vmatpush3.msra.mxu1 %v10336_v16  ;;  %30 = vst [vmem:[#allocation2] sm:$0x1] %v29_v22 }
0x108e   :  { %v10132_v26 = vmul.f32 %v18136_v49, %v10129_v63  ;;  %v10127_v48 = vmul.f32 %v18138_v38, %v10124_v29  ;;  %17452 = vmatprep.subr.mxu1 %v24122_v32 }
0x1090   :  { %v10147_v18 = vmul.f32 %v18140_v51, %v10132_v26  ;;  %v10130_v5 = vadd.f32 0.2548296, %v10127_v48  ;;  %v16078_v48 = vld [vmem:[%s23554_s12 + $0x1] ss:$0 sm:$0xff] }
0x1092   :  { %v10150_v47 = vsub.f32 1.0, %v10147_v18  ;;  %v10133_v44 = vmul.f32 %v18138_v38, %v10130_v5  ;;  %v16079_v5 = vld [vmem:[%s23555_s13 + $0x1] ss:$0 sm:$0xff] }
0x1094   :  { %v10153_v11 = vmul.f32 %v10150_v47, %v10090_v52  ;;  %v10148_v7 = vmul.f32 %v18142_v2, %v10133_v44  ;;  %v16084_v31 = vld [vmem:[#allocation2] ss:$0 sm:$0xff] }
0x1095   :  { %v21899_v47 = vld [vmem:[%s23822_s25] sm:$0xff] }
0x1096   :  { %v10156_v46 = vadd.f32 1.0, %v10153_v11  ;;  %v10151_v50 = vsub.f32 1.0, %v10148_v7  ;;  %v10330_v52 = vmul.f32 0.2, %v21899_v47 }
0x1098   :  { %v10159_v9 = vmul.f32 %v10156_v46, %v10081_v10  ;;  %v10154_v61 = vmul.f32 %v10151_v50, %v10091_v58  ;;  %v10465_v46 = vld [vmem:[%s23558_s17 + $0x38] sm:$0xff]  ;;  %v10464_v58 = vld [vmem:[%s23558_s17 + $0x30] sm:$0xff] }
0x109a   :  { %17430 = vmatmul.mubr.f32.gmra.mxu0 %v10159_v9  ;;  %v10157_v19 = vadd.f32 1.0, %v10154_v61  ;;  %v10463_v61 = vld [vmem:[%s23558_s17 + $0x28] sm:$0xff] }
0x109b   :  { %17432 = vmatprep.mubr.msk.f32.mxu0 %vm18311_vm0, %v24122_v32 }
0x109c   :  { %v10160_v13 = vmul.f32 %v10157_v19, %v10082_v20 }
0x109e   :  { %17433 = vmatmul.mubr.f32.gmra.mxu0 %v10160_v13 }
0x1141   :  { %v10252_v62 = vpop.f32.mrf.mxu0 }
0x1142   :  { %v10253_v34 = vadd.f32 %v16075_v8, %v10252_v62 }
0x1143   :  { %v17428_v0 = vpop.f32.mrf.mxu0 }
0x1144   :  { %v10266_v54 = vadd.f32 %v10253_v34, %v21744_v4  ;;  %v21924_v34 = vld [vmem:[%s23822_s25 + $0x8] sm:$0xff] }
0x1145   :  { %v10331_v0 = vmul.f32 0.2, %v21924_v34 }
0x1146   :  { %v10273_v37 = vsel %vm103_vm1, %v10266_v54, 0.0 }
0x1147   :  { %10274 = vadd.xlane.f32.xlu1 %v10273_v37 }
0x115a   :  { %v10257_v53 = vpop.f32.mrf.mxu0 }
0x115b   :  { %v10258_v57 = vadd.f32 %v16075_v8, %v10257_v53 }
0x115c   :  { %v17431_v3 = vpop.f32.mrf.mxu0 }
0x115d   :  { %v10267_v36 = vadd.f32 %v10258_v57, %v21750_v25 }
0x115e   :  { %v10262_v27 = vpop.f32.mrf.mxu0 }
0x115f   :  { %v10276_v1 = vsel %vm103_vm1, %v10267_v36, 0.0  ;;  %v10263_v21 = vadd.f32 %v16075_v8, %v10262_v27 }
0x1160   :  { %10277 = vadd.xlane.f32.xlu0 %v10276_v1  ;;  %v17434_v45 = vpop.f32.mrf.mxu0 }
0x1161   :  { %v10268_v28 = vadd.f32 %v10263_v21, %v21756_v39  ;;  %v10462_v45 = vld [vmem:[%s23558_s17 + $0x20] sm:$0xff] }
0x1163   :  { %v10279_v49 = vsel %vm4961_vm5, %v10268_v28, 0.0 }
0x1164   :  { %10280 = vadd.xlane.f32.xlu1 %v10279_v49  ;;  %v10460_v49 = vld [vmem:[%s23558_s17 + $0x10] sm:$0xff] }
0x11d0   :  { %v10275_v4 = vpop.xlane.xlu1 %10274 }
0x11d1   :  { %v10282_v33 = vmul.f32 0.03125, %v10275_v4  ;;  %v10459_v4 = vld [vmem:[%s23558_s17 + $0x8] sm:$0xff] }
0x11d3   :  { %v10285_v12 = vsub.f32 %v10266_v54, %v10282_v33  ;;  %v10458_v33 = vld [vmem:[%s23558_s17] sm:$0xff] }
0x11d5   :  { %v10288_v43 = vmul.f32 %v10285_v12, %v10285_v12 }
0x11d7   :  { %v10291_v42 = vsel %vm103_vm1, %v10288_v43, 0.0 }
0x11d8   :  { %10292 = vadd.xlane.f32.xlu0 %v10291_v42 }
0x11e9   :  { %v10278_v23 = vpop.xlane.xlu0 %10277 }
0x11ea   :  { %v10283_v25 = vmul.f32 0.03125, %v10278_v23 }
0x11ec   :  { %v21861_v40 = vsub.f32 %v10267_v36, %v10283_v25  ;;  %v21933_v36 = vld [vmem:[%s23822_s25 + $0x10] sm:$0xf] }
0x11ed   :  { %v10281_v14 = vpop.xlane.xlu1 %10280  ;;  %v10332_v27 = vmul.f32 0.2, %v21933_v36 }
0x11ee   :  { %v10289_v38 = vmul.f32 %v21861_v40, %v21861_v40  ;;  %v10284_v17 = vmul.f32 0.03125, %v10281_v14 }
0x11f0   :  { %v10294_v39 = vsel %vm103_vm1, %v10289_v38, 0.0  ;;  %v21866_v35 = vsub.f32 %v10268_v28, %v10284_v17  ;;  %v10461_v28 = vld [vmem:[%s23558_s17 + $0x18] sm:$0xff] }
0x11f1   :  { %10295 = vadd.xlane.f32.xlu1 %v10294_v39  ;;  %v16092_v39 = vld [vmem:[%s23821_s27 + $0x58] sm:$0xff] }
0x11f2   :  { %v10290_v24 = vmul.f32 %v21866_v35, %v21866_v35 }
0x11f4   :  { %v10297_v41 = vsel %vm4961_vm5, %v10290_v24, 0.0  ;;  %v16090_v24 = vld [vmem:[%s23821_s27 + $0x48] sm:$0xff] }
0x11f5   :  { %10298 = vadd.xlane.f32.xlu0 %v10297_v41  ;;  %v16089_v41 = vld [vmem:[%s23821_s27 + $0x40] sm:$0xff] }
0x1202   :  { %10449 = vperm.xlu1 %17843, %v16084_v31  }
0x1261   :  { %v10293_v63 = vpop.xlane.xlu0 %10292 }
0x1262   :  { %v10300_v29 = vmul.f32 0.03125, %v10293_v63 }
0x1264   :  { %v10303_v26 = vadd.f32 1e-12, %v10300_v29 }
0x1266   :  { %18143 = vrsqrt.f32 %v10303_v26 }
0x1273   :  { %v18144_v51 = vpop.eup %18143 }
0x1274   :  { %v10309_v18 = vmul.f32 %v18144_v51, %v10285_v12  ;;  %v16080_v12 = vld [vmem:[%s23559_s15] ss:$0 sm:$0xff] }
0x1276   :  { %v10318_v44 = vmul.f32 %v16078_v48, %v10309_v18 }
0x1278   :  { %v10327_v2 = vadd.f32 %v16079_v5, %v10318_v44 }
0x127a   :  { %v10296_v11 = vpop.xlane.xlu1 %10295  ;;  %v21902_v10 = vadd.f32 %v10330_v52, %v10327_v2 }
0x127b   :  { %v10301_v7 = vmul.f32 0.03125, %v10296_v11 }
0x127c   :  { %24127 = vst [vmem:[#allocation78_spill] sm:$0xff] %v21902_v10  ;;  %17444 = vmatmul.mubr.msk.f32.vlgmr.msra.gmra.mxu1 %vm103_vm1, %v21902_v10 }
0x127d   :  { %v10304_v50 = vadd.f32 1e-12, %v10301_v7  ;;  %17446 = vmatprep.mubr.msk.f32.mxu1 %vm18311_vm0, %v24122_v32  ;;  %17453 = vmatpush3.msra.mxu1 %v10465_v46  ;;  %v16094_v46 = vld [vmem:[%s23824_s30 + $0x2] ss:$0 sm:$0xff] }
0x127e   :  { %v10299_v9 = vpop.xlane.xlu0 %10298  ;;  %17454 = vmatprep.subr.mxu1 %v24122_v32  ;;  %v10450_v25 = vpop.permute.xlu1 %10449 }
0x127f   :  { %18145 = vrsqrt.f32 %v10304_v50  ;;  %v10302_v20 = vmul.f32 0.03125, %v10299_v9  ;;  %17455 = vmatpush3.msra.mxu1 %v10464_v58 }
0x1280   :  { %17456 = vmatprep.subr.mxu1 %v24122_v32 }
0x1281   :  { %v10305_v19 = vadd.f32 1e-12, %v10302_v20  ;;  %17457 = vmatpush3.msra.mxu1 %v10463_v61 }
0x1282   :  { %17458 = vmatprep.subr.mxu1 %v24122_v32 }
0x1283   :  { %18147 = vrsqrt.f32 %v10305_v19  ;;  %17459 = vmatpush3.msra.mxu1 %v10462_v45 }
0x1284   :  { %17460 = vmatprep.subr.mxu1 %v24122_v32 }
0x1285   :  { %17461 = vmatpush3.msra.mxu1 %v10461_v28  ;;  %v24135_v28 = vld [vmem:[#allocation8_spill] sm:$0xff] }
0x1286   :  { %17462 = vmatprep.subr.mxu1 %v24122_v32 }
0x1287   :  { %17463 = vmatpush3.msra.mxu1 %v10460_v49 }
0x1288   :  { %17464 = vmatprep.subr.mxu1 %v24122_v32 }
0x1289   :  { %17465 = vmatpush3.msra.mxu1 %v10459_v4  ;;  %v24136_v4 = vld [vmem:[#allocation6_spill] sm:$0xff] }
0x128a   :  { %17466 = vmatprep.subr.mxu1 %v24122_v32 }
0x128b   :  { %17467 = vmatpush3.msra.mxu1 %v10458_v33 }
0x128c   :  { %v18146_v13 = vpop.eup %18145  ;;  %17477 = vmatprep.subr.mxu1 %v24122_v32 }
0x128d   :  { %v10310_v8 = vmul.f32 %v18146_v13, %v21861_v40 }
0x128f   :  { %v10319_v62 = vmul.f32 %v16078_v48, %v10310_v8 }
0x1290   :  { %v18148_v54 = vpop.eup %18147 }
0x1291   :  { %v10328_v37 = vadd.f32 %v16079_v5, %v10319_v62  ;;  %v10311_v53 = vmul.f32 %v18148_v54, %v21866_v35  ;;  %v16091_v35 = vld [vmem:[%s23821_s27 + $0x50] sm:$0xff] }
0x1293   :  { %v21928_v57 = vadd.f32 %v10331_v0, %v10328_v37  ;;  %v10320_v3 = vmul.f32 %v16078_v48, %v10311_v53  ;;  %v24133_v0 = vld [vmem:[#allocation4_spill] sm:$0xff]  ;;  %v24134_v37 = vld [vmem:[#allocation5_spill] sm:$0xff] }
0x1295   :  { %24128 = vst [vmem:[#allocation83_spill] sm:$0xff] %v21928_v57  ;;  %17447 = vmatmul.mubr.msk.f32.gmra.mxu1 %vm103_vm1, %v21928_v57  ;;  %v10329_v1 = vadd.f32 %v16079_v5, %v10320_v3  ;;  %v24165_v57 = vld [vmem:[#allocation55_spill] sm:$0xff] }
0x1296   :  { %17449 = vmatprep.mubr.msk.f32.mxu1 %vm18311_vm0, %v24122_v32 }
0x1297   :  { %v21940_v21 = vadd.f32 %v10332_v27, %v10329_v1 }
0x1299   :  { %24129 = vst [vmem:[#allocation82_spill] sm:$0xff] %v21940_v21  ;;  %17450 = vmatmul.mubr.msk.f32.gmra.mxu1 %vm103_vm1, %v21940_v21 }
0x129a   :  { %17468 = vmatprep.mubr.msk.f32.mxu1 %vm18311_vm0, %v24122_v32 }
0x133c   :  { %v10422_v43 = vpop.f32.mrf.mxu1 }
0x133d   :  { %v10423_v42 = vadd.f32 %v16080_v12, %v10422_v43 }
0x133e   :  { %v17445_v23 = vpop.f32.mrf.mxu1 }
0x133f   :  { %v10440_v40 = vmin.f32 %v10423_v42, 0.0  ;;  %v10436_v14 = vmax.f32 %v10423_v42, 0.0  ;;  %v24138_v42 = vld [vmem:[#allocation7_spill] sm:$0xff] }
0x1341   :  { %v10452_v38 = vmul.f32 %v10450_v25, %v10440_v40 }
0x1343   :  { %v10455_v17 = vadd.f32 %v10452_v38, %v10436_v14 }
0x1345   :  { %17469 = vmatmul.mubr.msk.f32.vlgmr.msra.gmra.mxu1 %vm10473_vm12, %v10455_v17 }
0x1346   :  { %17471 = vmatprep.mubr.msk.f32.mxu1 %vm18311_vm0, %v24122_v32  ;;  %17478 = vmatpush3.msra.mxu1 %v16092_v39  ;;  %v24139_v39 = vld [vmem:[#allocation10_spill] sm:$0xff] }
0x1347   :  { %17479 = vmatprep.subr.mxu1 %v24122_v32 }
0x1348   :  { %17480 = vmatpush3.msra.mxu1 %v16091_v35 }
0x1349   :  { %17481 = vmatprep.subr.mxu1 %v24122_v32 }
0x134a   :  { %17482 = vmatpush3.msra.mxu1 %v16090_v24 }
0x134b   :  { %17483 = vmatprep.subr.mxu1 %v24122_v32 }
0x134c   :  { %17484 = vmatpush3.msra.mxu1 %v16089_v41  ;;  %v24140_v41 = vld [vmem:[#allocation11_spill] sm:$0xff] }
0x1355   :  { %v10427_v56 = vpop.f32.mrf.mxu1 }
0x1356   :  { %v10428_v30 = vadd.f32 %v16080_v12, %v10427_v56 }
0x1357   :  { %v17448_v55 = vpop.f32.mrf.mxu1 }
0x1358   :  { %v10441_v16 = vmin.f32 %v10428_v30, 0.0  ;;  %v10437_v6 = vmax.f32 %v10428_v30, 0.0 }
0x1359   :  { %v10432_v31 = vpop.f32.mrf.mxu1 }
0x135a   :  { %v10453_v22 = vmul.f32 %v10450_v25, %v10441_v16  ;;  %v10433_v63 = vadd.f32 %v16080_v12, %v10432_v31  ;;  %v24137_v12 = vld [vmem:[#allocation9_spill] sm:$0xff] }
0x135b   :  { %v17451_v26 = vpop.f32.mrf.mxu1 }
0x135c   :  { %v10456_v29 = vadd.f32 %v10453_v22, %v10437_v6  ;;  %v10442_v51 = vmin.f32 %v10433_v63, 0.0  ;;  %v10438_v48 = vmax.f32 %v10433_v63, 0.0 }
0x135e   :  { %17472 = vmatmul.mubr.msk.f32.gmra.mxu1 %vm10473_vm12, %v10456_v29  ;;  %v10454_v18 = vmul.f32 %v10450_v25, %v10442_v51 }
0x135f   :  { %17474 = vmatprep.mubr.msk.f32.mxu1 %vm18311_vm0, %v24122_v32 }
0x1360   :  { %v10457_v5 = vadd.f32 %v10454_v18, %v10438_v48 }
0x1362   :  { %17475 = vmatmul.mubr.msk.f32.gmra.mxu1 %vm10473_vm12, %v10457_v5 }
0x1363   :  { %17485 = vmatprep.mubr.msk.f32.mxu1 %vm18311_vm0, %v24122_v32 }
0x1366   :  { %17486 = vmatmul.mubr.msk.f32.vlgmr.msra.gmra.mxu1 %vm103_vm1, %v21899_v47 }
0x1367   :  { %17488 = vmatprep.mubr.msk.f32.mxu1 %vm18311_vm0, %v24122_v32 }
0x136a   :  { %17489 = vmatmul.mubr.msk.f32.gmra.mxu1 %vm103_vm1, %v21924_v34 }
0x136b   :  { %17491 = vmatprep.mubr.msk.f32.mxu1 %vm18311_vm0, %v24122_v32 }
0x136e   :  { %17492 = vmatmul.mubr.msk.f32.gmra.mxu1 %vm103_vm1, %v21933_v36 }
0x1405   :  { %v22003_v52 = vpop.f32.mrf.mxu1 }
0x1406   :  { %24130 = vst [vmem:[#allocation84_spill] sm:$0xff] %v22003_v52 }
0x1407   :  { %v17470_v44 = vpop.f32.mrf.mxu1 }
0x141e   :  { %v22005_v2 = vpop.f32.mrf.mxu1 }
0x141f   :  { %24131 = vst [vmem:[#allocation85_spill] sm:$0xff] %v22005_v2  ;;  %v24164_v2 = vld [vmem:[#allocation60_spill] sm:$0xff] }
0x1420   :  { %v17473_v11 = vpop.f32.mrf.mxu1 }
0x1422   :  { %v22007_v7 = vpop.f32.mrf.mxu1 }
0x1423   :  { %24132 = vst [vmem:[#allocation72_spill] sm:$0xff] %v22007_v7  ;;  %v24163_v7 = vld [vmem:[#allocation62_spill] sm:$0xff] }
0x1424   :  { %v17476_v47 = vpop.f32.mrf.mxu1 }
0x1426   :  { %v10642_v50 = vpop.f32.mrf.mxu1 }
0x1427   :  { %v10643_v58 = vadd.f32 %v16094_v46, %v10642_v50  ;;  %v24141_v50 = vld [vmem:[#allocation38_spill] sm:$0xff] }
0x1428   :  { %v17487_v9 = vpop.f32.mrf.mxu1 }
0x1429   :  { %v10659_v61 = vcombine.high %v10643_v58, %v10643_v58  ;;  %v22013_v20 = vrot.slane %v10643_v58, %v18483_v15 }
0x142a   :  { %v10647_v19 = vpop.f32.mrf.mxu1 }
0x142b   :  { %v22016_v13 = vrot.slane %v10659_v61, %v18483_v15  ;;  %v10648_v8 = vadd.f32 %v16094_v46, %v10647_v19  ;;  %v22020_v62 = vcombine.high %v22013_v20, %v22013_v20  ;;  %v10711_v54 = vmul.f32 %v22013_v20, %v24133_v0  ;;  %v24142_v61 = vld [vmem:[#allocation36_spill] sm:$0xff] }
0x142c   :  { %v17490_v34 = vpop.f32.mrf.mxu1  ;;  %v10721_v53 = vmul.f32 %v22013_v20, %v24134_v37  ;;  %v10791_v9 = vmul.f32 %v22013_v20, %v24141_v50 }
0x142d   :  { %v10676_v3 = vcombine.high %v10648_v8, %v10648_v8  ;;  %v22027_v36 = vrot.slane %v10648_v8, %v18483_v15  ;;  %v22031_v27 = vcombine.high %v22016_v13, %v22016_v13  ;;  %v10900_v1 = vcombine.low %v22013_v20, %v22020_v62 }
0x142e   :  { %v10652_v45 = vpop.f32.mrf.mxu1  ;;  %v10712_v49 = vmul.f32 %v22020_v62, %v24135_v28  ;;  %v10713_v33 = vmul.f32 %v22016_v13, %v24136_v4  ;;  %v10722_v43 = vmul.f32 %v22020_v62, %v24137_v12  ;;  %v10723_v23 = vmul.f32 %v22016_v13, %v24138_v42 }
0x142f   :  { %v22044_v25 = vrot.slane %v10676_v3, %v18483_v15  ;;  %v10653_v40 = vadd.f32 %v16094_v46, %v10652_v45  ;;  %v10923_v14 = vrot.slane %v22027_v36, %v18483_v15  ;;  %v10901_v38 = vcombine.low %v22016_v13, %v22031_v27  ;;  %v24143_v3 = vld [vmem:[#allocation40_spill] sm:$0xff]  ;;  %v24144_v45 = vld [vmem:[#allocation42_spill] sm:$0xff] }
0x1430   :  { %v10908_v17 = vrot.slane %v10900_v1, %v18483_v15  ;;  %v10714_v35 = vmul.f32 %v22031_v27, %v24139_v39  ;;  %v10876_v24 = vcombine.low %v10711_v54, %v10712_v49  ;;  %v10724_v56 = vmul.f32 %v22031_v27, %v24140_v41  ;;  %v17493_v30 = vpop.f32.mrf.mxu1 }
0x1431   :  { %v22056_v55 = vrot.slane %v10653_v40, %v18483_v15  ;;  %10926 = vrot.lane.b32.xlu0 %v10923_v14, %s23955_s0  ;;  %v10915_v16 = vrot.slane %v10901_v38, %v18483_v15  ;;  %v11124_v6 = vcombine.low %v10721_v53, %v10722_v43  ;;  %v22062_v22 = vcombine.high %v22027_v36, %v22027_v36  ;;  %v24145_v43 = vld [vmem:[#allocation44_spill] sm:$0xff]  ;;  %v24146_v14 = vld [vmem:[#allocation39_spill] sm:$0xff] }
0x1432   :  { %v10877_v31 = vcombine.low %v10713_v33, %v10714_v35  ;;  %v11125_v63 = vcombine.low %v10723_v23, %v10724_v56  ;;  %v22066_v29 = vcombine.high %v22044_v25, %v22044_v25  ;;  %v10884_v51 = vrot.slane %v10876_v24, %v18483_v15  ;;  %v24148_v56 = vld [vmem:[#allocation37_spill] sm:$0xff] }
0x1433   :  { %v10916_v26 = vcombine.low %v10908_v17, %v10915_v16  ;;  %v11796_v48 = vcombine.low %v22062_v22, %v22044_v25  ;;  %v22073_v18 = vcombine.high %v22056_v55, %v22056_v55  ;;  %v11132_v44 = vrot.slane %v11124_v6, %v18483_v15  ;;  %v24147_v17 = vld [vmem:[#allocation46_spill] sm:$0xff] }
0x1434   :  { %v10891_v5 = vrot.slane %v10877_v31, %v18483_v15  ;;  %v11139_v11 = vrot.slane %v11125_v63, %v18483_v15  ;;  %v11797_v47 = vcombine.low %v22066_v29, %v22056_v55  ;;  %v10795_v58 = vmul.f32 %v22027_v36, %v24141_v50 }
0x1435   :  { %10924 = vrot.lane.b32.xlu1 %v10916_v26, %s23955_s0  ;;  %v11819_v46 = vrot.slane %v22073_v18, %v18483_v15  ;;  %v10792_v19 = vmul.f32 %v22020_v62, %v24142_v61  ;;  %v11804_v54 = vrot.slane %v11796_v48, %v18483_v15  ;;  %v10793_v1 = vmul.f32 %v22016_v13, %v24143_v3  ;;  %v24149_v48 = vld [vmem:[#allocation50_spill] sm:$0xff] }
0x1436   :  { %v10892_v8 = vcombine.low %v10884_v51, %v10891_v5  ;;  %v11140_v34 = vcombine.low %v11132_v44, %v11139_v11  ;;  %v11811_v53 = vrot.slane %v11797_v47, %v18483_v15  ;;  %v10794_v49 = vmul.f32 %v22031_v27, %v24144_v45  ;;  %v24150_v47 = vld [vmem:[#allocation48_spill] sm:$0xff] }
0x1437   :  { %v13020_v33 = vcombine.low %v10791_v9, %v10792_v19  ;;  %v10797_v23 = vmul.f32 %v22020_v62, %v24145_v43  ;;  %v10798_v38 = vmul.f32 %v22016_v13, %v24146_v14  ;;  %v10799_v35 = vmul.f32 %v22031_v27, %v24147_v17  ;;  %v24151_v9 = vld [vmem:[#allocation43_spill] sm:$0xff] }
0x1438   :  { %17498 = vmatprep.mubr.msk.f32.mxu0 %vm103_vm1, %v10892_v8  ;;  %17512 = vmatprep.mubr.msk.f32.mxu1 %vm103_vm1, %v11140_v34  ;;  %v11812_v40 = vcombine.low %v11804_v54, %v11811_v53  ;;  %v13021_v24 = vcombine.low %v10793_v1, %v10794_v49  ;;  %v10796_v30 = vmul.f32 %v22013_v20, %v24148_v56  ;;  %v24152_v8 = vld [vmem:[#allocation41_spill] sm:$0xff]  ;;  %v24153_v49 = vld [vmem:[#allocation54_spill] sm:$0xff] }
0x1439   :  { %11822 = vrot.lane.b32.xlu1 %v11819_v46, %s23955_s0  ;;  %v13138_v16 = vcombine.low %v10798_v38, %v10799_v35  ;;  %v13028_v6 = vrot.slane %v13020_v33, %v18483_v15  ;;  %v13043_v26 = vrot.slane %v10795_v58, %v18483_v15  ;;  %v10800_v51 = vmul.f32 %v22027_v36, %v24148_v56 }
0x143a   :  { %11820 = vrot.lane.b32.xlu0 %v11812_v40, %s23955_s0  ;;  %v13035_v31 = vrot.slane %v13021_v24, %v18483_v15  ;;  %v13137_v63 = vcombine.low %v10796_v30, %v10797_v23  ;;  %v10804_v5 = vmul.f32 %v22031_v27, %v24149_v48  ;;  %v10802_v46 = vmul.f32 %v22020_v62, %v24150_v47  ;;  %v24154_v40 = vld [vmem:[#allocation45_spill] sm:$0xff]  ;;  %v24155_v24 = vld [vmem:[#allocation52_spill] sm:$0xff]  ;;  %s24249_s0 = sld [smem:[#allocation95_spill]] }
0x143b   :  { %v13152_v11 = vrot.slane %v13138_v16, %v18483_v15  ;;  %v10803_v19 = vmul.f32 %v22016_v13, %v24151_v9  ;;  %v10801_v34 = vmul.f32 %v22013_v20, %v24152_v8  ;;  %v13160_v54 = vrot.slane %v10800_v51, %v18483_v15  ;;  %v24156_v16 = vld [vmem:[#allocation47_spill] sm:$0xff] }
0x143c   :  { %v13036_v44 = vcombine.low %v13028_v6, %v13035_v31  ;;  %v13145_v58 = vrot.slane %v13137_v63, %v18483_v15  ;;  %v10805_v53 = vmul.f32 %v22027_v36, %v24152_v8  ;;  %v10809_v33 = vmul.f32 %v22031_v27, %v24153_v49  ;;  %v24157_v31 = vld [vmem:[#allocation53_spill] sm:$0xff] }
0x143d   :  { %v13255_v1 = vcombine.low %v10803_v19, %v10804_v5  ;;  %v10810_v38 = vmul.f32 %v22027_v36, %v24154_v40  ;;  %v13254_v35 = vcombine.low %v10801_v34, %v10802_v46  ;;  %v10807_v30 = vmul.f32 %v22020_v62, %v24155_v24 }
0x143e   :  { %13046 = vrot.lane.b32.xlu0 %v13043_v26, %s23958_s5  ;;  %13044 = vrot.lane.b32.xlu1 %v13036_v44, %s23958_s5  ;;  %v13153_v23 = vcombine.low %v13145_v58, %v13152_v11  ;;  %v10808_v6 = vmul.f32 %v22016_v13, %v24156_v16  ;;  %v10820_v63 = vmul.f32 %v22027_v36, %v24157_v31  ;;  %v24158_v58 = vld [vmem:[#allocation56_spill] sm:$0xff] }
0x143f   :  { %v13277_v26 = vrot.slane %v10805_v53, %v18483_v15  ;;  %v13269_v51 = vrot.slane %v13255_v1, %v18483_v15  ;;  %v10806_v5 = vmul.f32 %v22013_v20, %v24154_v40  ;;  %v13394_v11 = vrot.slane %v10810_v38, %v18483_v15  ;;  %v24159_v53 = vld [vmem:[#allocation58_spill] sm:$0xff] }
0x1440   :  { %v13372_v44 = vcombine.low %v10808_v6, %v10809_v33  ;;  %v13262_v46 = vrot.slane %v13254_v35, %v18483_v15  ;;  %v10812_v34 = vmul.f32 %v22020_v62, %v24158_v58  ;;  %v10814_v1 = vmul.f32 %v22031_v27, %v24159_v53  ;;  %v24160_v6 = vld [vmem:[#allocation57_spill] sm:$0xff] }
0x1441   :  { %v13371_v19 = vcombine.low %v10806_v5, %v10807_v30  ;;  %v10825_v38 = vmul.f32 %v22027_v36, %v24160_v6  ;;  %v10830_v5 = vmul.f32 %v22027_v36, %v24111_v60  ;;  %v10817_v52 = vmul.f32 %v22020_v62, %v24164_v2 }
0x1442   :  { %13163 = vrot.lane.b32.xlu0 %v13160_v54, %s23958_s5  ;;  %13161 = vrot.lane.b32.xlu1 %v13153_v23, %s23958_s5  ;;  %v13628_v54 = vrot.slane %v10820_v63, %v18483_v15  ;;  %v13270_v23 = vcombine.low %v13262_v46, %v13269_v51  ;;  %v13386_v33 = vrot.slane %v13372_v44, %v18483_v15 }
0x1443   :  { %v10819_v51 = vmul.f32 %v22031_v27, %v24163_v7  ;;  %v13379_v44 = vrot.slane %v13371_v19, %v18483_v15  ;;  %v10818_v10 = vmul.f32 %v22016_v13, %v24165_v57  ;;  %v13745_v32 = vrot.slane %v10825_v38, %v18483_v15  ;;  %v24167_v38 = vld [vmem:[#allocation67_spill] sm:$0xff] }
0x1444   :  { %v10816_v12 = vmul.f32 %v22013_v20, %v24157_v31  ;;  %v13862_v19 = vrot.slane %v10830_v5, %v18483_v15  ;;  %v24168_v5 = vld [vmem:[#allocation63_spill] sm:$0xff] }
0x1445   :  { %v13387_v59 = vcombine.low %v13379_v44, %v13386_v33 }
0x1446   :  { %13280 = vrot.lane.b32.xlu0 %v13277_v26, %s23958_s5  ;;  %13397 = vrot.lane.b32.xlu1 %v13394_v11, %s23958_s5  ;;  %v24161_v26 = vld [vmem:[#allocation49_spill] sm:$0xff]  ;;  %v24162_v11 = vld [vmem:[#allocation51_spill] sm:$0xff]  ;;  %v13605_v33 = vcombine.low %v10816_v12, %v10817_v52  ;;  %v24171_v52 = vld [vmem:[#allocation66_spill] sm:$0xff] }
0x1447   :  { %v10811_v35 = vmul.f32 %v22013_v20, %v24161_v26  ;;  %v10815_v30 = vmul.f32 %v22027_v36, %v24161_v26  ;;  %v10813_v63 = vmul.f32 %v22016_v13, %v24162_v11  ;;  %v10828_v12 = vmul.f32 %v22016_v13, %v24171_v52 }
0x1448   :  { %v10845_v52 = vmul.f32 %v22073_v18, %v24152_v8 }
0x1449   :  { %v13488_v46 = vcombine.low %v10811_v35, %v10812_v34  ;;  %v13489_v21 = vcombine.low %v10813_v63, %v10814_v1  ;;  %v13606_v34 = vcombine.low %v10818_v10, %v10819_v51  ;;  %v24166_v35 = vld [vmem:[#allocation64_spill] sm:$0xff]  ;;  %v10835_v1 = vmul.f32 %v22073_v18, %v24141_v50  ;;  %v24169_v51 = vld [vmem:[#allocation59_spill] sm:$0xff] }
0x144a   :  { %13278 = vrot.lane.b32.xlu0 %v13270_v23, %s23958_s5  ;;  %13631 = vrot.lane.b32.xlu1 %v13628_v54, %s23958_s5  ;;  %v13511_v23 = vrot.slane %v10815_v30, %v18483_v15  ;;  %v10824_v41 = vmul.f32 %v22031_v27, %v24166_v35  ;;  %v10829_v63 = vmul.f32 %v22031_v27, %v24167_v38 }
0x144b   :  { %v13496_v54 = vrot.slane %v13488_v46, %v18483_v15  ;;  %v13503_v30 = vrot.slane %v13489_v21, %v18483_v15  ;;  %v10822_v10 = vmul.f32 %v22020_v62, %v24168_v5  ;;  %v10823_v44 = vmul.f32 %v22016_v13, %v24169_v51 }
0x144c   :  { %v10840_v35 = vmul.f32 %v22073_v18, %v24148_v56  ;;  %v10834_v21 = vmul.f32 %v22056_v55, %v24144_v45  ;;  %v13620_v38 = vrot.slane %v13606_v34, %v18483_v15  ;;  %v10821_v5 = vmul.f32 %v22013_v20, %v24160_v6 }
0x144d   :  { %v13723_v51 = vcombine.low %v10823_v44, %v10824_v41  ;;  %v13840_v42 = vcombine.low %v10828_v12, %v10829_v63  ;;  %v10832_v45 = vmul.f32 %v22044_v25, %v24142_v61  ;;  %v13504_v34 = vcombine.low %v13496_v54, %v13503_v30 }
0x144e   :  { %13395 = vrot.lane.b32.xlu0 %v13387_v59, %s23958_s5  ;;  %13748 = vrot.lane.b32.xlu1 %v13745_v32, %s23958_s5  ;;  %v24170_v59 = vld [vmem:[#allocation65_spill] sm:$0xff]  ;;  %v10833_v32 = vmul.f32 %v22066_v29, %v24143_v3  ;;  %v10831_v3 = vmul.f32 %v22062_v22, %v24141_v50  ;;  %v13722_v6 = vcombine.low %v10821_v5, %v10822_v10 }
0x144f   :  { %v10827_v46 = vmul.f32 %v22020_v62, %v24170_v59  ;;  %v10826_v59 = vmul.f32 %v22013_v20, %v24111_v60  ;;  %v10836_v44 = vmul.f32 %v22062_v22, %v24148_v56  ;;  %v10838_v63 = vmul.f32 %v22066_v29, %v24146_v14 }
0x1450   :  { %v13957_v60 = vcombine.low %v10833_v32, %v10834_v21  ;;  %v10839_v50 = vmul.f32 %v22056_v55, %v24147_v17  ;;  %v13979_v61 = vrot.slane %v10835_v1, %v18483_v15  ;;  %v13737_v54 = vrot.slane %v13723_v51, %v18483_v15 }
0x1451   :  { %v13839_v41 = vcombine.low %v10826_v59, %v10827_v46  ;;  %v10850_v30 = vmul.f32 %v22073_v18, %v24154_v40  ;;  %v13854_v56 = vrot.slane %v13840_v42, %v18483_v15  ;;  %v22231_v14 = vmul.f32 %v22073_v18, %v24161_v26 }
0x1452   :  { %13514 = vrot.lane.b32.xlu0 %v13511_v23, %s23958_s5  ;;  %13865 = vrot.lane.b32.xlu1 %v13862_v19, %s23958_s5  ;;  %v10837_v23 = vmul.f32 %v22044_v25, %v24145_v43  ;;  %v13613_v19 = vrot.slane %v13605_v33, %v18483_v15  ;;  %v13956_v43 = vcombine.low %v10831_v3, %v10832_v45  ;;  %v24172_v3 = vld [vmem:[#allocation12_spill] sm:$0xff] }
0x1453   :  { %v22235_v17 = vmul.f32 %v22073_v18, %v24157_v31  ;;  %v14096_v33 = vrot.slane %v10840_v35, %v18483_v15  ;;  %v13730_v5 = vrot.slane %v13722_v6, %v18483_v15  ;;  %v14213_v10 = vrot.slane %v10845_v52, %v18483_v15  ;;  %v24186_v52 = vld [vmem:[#allocation27_spill] sm:$0xff] }
0x1454   :  { %v13621_v1 = vcombine.low %v13613_v19, %v13620_v38  ;;  %v13847_v42 = vrot.slane %v13839_v41, %v18483_v15  ;;  %v13971_v51 = vrot.slane %v13957_v60, %v18483_v15  ;;  %v14073_v59 = vcombine.low %v10836_v44, %v10837_v23  ;;  %v24175_v19 = vld [vmem:[#allocation16_spill] sm:$0xff] }
0x1455   :  { %v14074_v46 = vcombine.low %v10838_v63, %v10839_v50  ;;  %v13738_v12 = vcombine.low %v13730_v5, %v13737_v54  ;;  %v14330_v32 = vrot.slane %v10850_v30, %v18483_v15  ;;  %v22246_v21 = vmul.f32 %v22062_v22, %v24152_v8 }
0x1456   :  { %13512 = vrot.lane.b32.xlu0 %v13504_v34, %s23958_s5  ;;  %13982 = vrot.lane.b32.xlu1 %v13979_v61, %s23958_s5  ;;  %v22250_v35 = vmul.f32 %v22044_v25, %v24150_v47  ;;  %v13855_v6 = vcombine.low %v13847_v42, %v13854_v56  ;;  %v13964_v38 = vrot.slane %v13956_v43, %v18483_v15  ;;  %v24173_v34 = vld [vmem:[#allocation14_spill] sm:$0xff]  ;;  %v24174_v61 = vld [vmem:[#allocation13_spill] sm:$0xff] }
0x1457   :  { %v14447_v60 = vrot.slane %v22231_v14, %v18483_v15  ;;  %v10843_v8 = vmul.f32 %v22066_v29, %v24151_v9  ;;  %v10844_v47 = vmul.f32 %v22056_v55, %v24149_v48  ;;  %v10716_v45 = vmul.f32 %v22013_v20, %v24172_v3  ;;  %v24176_v43 = vld [vmem:[#allocation18_spill] sm:$0xff] }
0x1458   :  { %v10717_v41 = vmul.f32 %v22020_v62, %v24173_v34  ;;  %v13972_v44 = vcombine.low %v13964_v38, %v13971_v51  ;;  %v14081_v23 = vrot.slane %v14073_v59, %v18483_v15  ;;  %v14088_v63 = vrot.slane %v14074_v46, %v18483_v15  ;;  %v24178_v51 = vld [vmem:[#allocation19_spill] sm:$0xff]  ;;  %v24179_v46 = vld [vmem:[#allocation26_spill] sm:$0xff] }
0x1459   :  { %v22271_v50 = vmul.f32 %v22062_v22, %v24154_v40  ;;  %v14190_v9 = vcombine.low %v22246_v21, %v22250_v35  ;;  %v10718_v48 = vmul.f32 %v22016_v13, %v24174_v61  ;;  %v10719_v54 = vmul.f32 %v22031_v27, %v24175_v19 }
0x145a   :  { %13629 = vrot.lane.b32.xlu0 %v13621_v1, %s23958_s5  ;;  %14099 = vrot.lane.b32.xlu1 %v14096_v33, %s23958_s5  ;;  %v11016_v30 = vcombine.low %v10716_v45, %v10717_v41  ;;  %v22282_v56 = vmul.f32 %v22044_v25, %v24155_v24  ;;  %v10848_v40 = vmul.f32 %v22066_v29, %v24156_v16  ;;  %v24177_v1 = vld [vmem:[#allocation24_spill] sm:$0xff] }
0x145b   :  { %v10731_v14 = vmul.f32 %v22013_v20, %v24176_v43  ;;  %v10732_v33 = vmul.f32 %v22020_v62, %v24177_v1  ;;  %v14191_v5 = vcombine.low %v10843_v8, %v10844_v47  ;;  %v11017_v42 = vcombine.low %v10718_v48, %v10719_v54  ;;  %v24180_v8 = vld [vmem:[#allocation15_spill] sm:$0xff]  ;;  %v24181_v45 = vld [vmem:[#allocation20_spill] sm:$0xff]  ;;  %v24182_v48 = vld [vmem:[#allocation17_spill] sm:$0xff] }
0x145c   :  { %v10733_v59 = vmul.f32 %v22016_v13, %v24178_v51  ;;  %v10734_v24 = vmul.f32 %v22031_v27, %v24179_v46  ;;  %v22299_v16 = vmul.f32 %v22062_v22, %v24161_v26  ;;  %v22302_v21 = vrot.slane %v11016_v30, %v18483_v15  ;;  %v24183_v30 = vld [vmem:[#allocation22_spill] sm:$0xff] }
0x145d   :  { %v11340_v35 = vcombine.low %v10731_v14, %v10732_v33  ;;  %v10726_v47 = vmul.f32 %v22013_v20, %v24180_v8  ;;  %v10727_v41 = vmul.f32 %v22020_v62, %v24181_v45  ;;  %v10728_v54 = vmul.f32 %v22016_v13, %v24182_v48 }
0x145e   :  { %13746 = vrot.lane.b32.xlu0 %v13738_v12, %s23958_s5  ;;  %14216 = vrot.lane.b32.xlu1 %v14213_v10, %s23958_s5  ;;  %v10849_v12 = vmul.f32 %v22056_v55, %v24153_v49  ;;  %v22305_v10 = vrot.slane %v11017_v42, %v18483_v15  ;;  %v11341_v38 = vcombine.low %v10733_v59, %v10734_v24  ;;  %v24185_v24 = vld [vmem:[#allocation32_spill] sm:$0xff] }
0x145f   :  { %v14089_v49 = vcombine.low %v14081_v23, %v14088_v63  ;;  %v22313_v26 = vrot.slane %v11340_v35, %v18483_v15  ;;  %v10729_v14 = vmul.f32 %v22031_v27, %v24183_v30  ;;  %v11232_v59 = vcombine.low %v10726_v47, %v10727_v41  ;;  %v24187_v30 = vld [vmem:[#allocation33_spill] sm:$0xff] }
0x1460   :  { %v22323_v42 = vrot.slane %v11341_v38, %v18483_v15  ;;  %v10742_v35 = vmul.f32 %v22020_v62, %v24185_v24  ;;  %v10743_v45 = vmul.f32 %v22016_v13, %v24186_v52  ;;  %v14205_v48 = vrot.slane %v14191_v5, %v18483_v15  ;;  %v24188_v5 = vld [vmem:[#allocation21_spill] sm:$0xff] }
0x1461   :  { %v11233_v63 = vcombine.low %v10728_v54, %v10729_v14  ;;  %v14308_v33 = vcombine.low %v10848_v40, %v10849_v12  ;;  %v10853_v38 = vmul.f32 %v22066_v29, %v24162_v11  ;;  %v22340_v41 = vrot.slane %v11232_v59, %v18483_v15  ;;  %v24189_v12 = vld [vmem:[#allocation28_spill] sm:$0xff] }
0x1462   :  { %13863 = vrot.lane.b32.xlu0 %v13855_v6, %s23958_s5  ;;  %14333 = vrot.lane.b32.xlu1 %v14330_v32, %s23958_s5  ;;  %v24184_v6 = vld [vmem:[#allocation25_spill] sm:$0xff]  ;;  %v10744_v32 = vmul.f32 %v22031_v27, %v24187_v30  ;;  %v10854_v40 = vmul.f32 %v22056_v55, %v24159_v53  ;;  %v10736_v11 = vmul.f32 %v22013_v20, %v24188_v5 }
0x1463   :  { %v10741_v23 = vmul.f32 %v22013_v20, %v24184_v6  ;;  %v22343_v54 = vrot.slane %v11233_v63, %v18483_v15  ;;  %v10737_v47 = vmul.f32 %v22020_v62, %v24189_v12  ;;  %v10852_v12 = vmul.f32 %v22044_v25, %v24158_v58 }
0x1464   :  { %v11557_v24 = vcombine.low %v10743_v45, %v10744_v32  ;;  %v24191_v45 = vld [vmem:[#allocation30_spill] sm:$0xff]  ;;  %v14307_v32 = vcombine.low %v22271_v50, %v22282_v56  ;;  %v14322_v50 = vrot.slane %v14308_v33, %v18483_v15  ;;  %v14425_v56 = vcombine.low %v10853_v38, %v10854_v40  ;;  %v24195_v38 = vld [vmem:[#allocation31_spill] sm:$0xff] }
0x1465   :  { %v11556_v14 = vcombine.low %v10741_v23, %v10742_v35  ;;  %v10739_v53 = vmul.f32 %v22031_v27, %v24191_v45  ;;  %v14198_v35 = vrot.slane %v14190_v9, %v18483_v15  ;;  %v24192_v9 = vrot.slane %v22235_v17, %v18483_v15 }
0x1466   :  { %13980 = vrot.lane.b32.xlu0 %v13972_v44, %s23958_s5  ;;  %14450 = vrot.lane.b32.xlu1 %v14447_v60, %s23958_s5  ;;  %v24190_v44 = vld [vmem:[#allocation23_spill] sm:$0xff]  ;;  %v22360_v60 = vrot.slane %v11557_v24, %v18483_v15  ;;  %v10859_v58 = vmul.f32 %v22056_v55, %v24163_v7  ;;  %v14424_v33 = vcombine.low %v22299_v16, %v10852_v12 }
0x1467   :  { %v10738_v59 = vmul.f32 %v22016_v13, %v24190_v44  ;;  %v22357_v23 = vrot.slane %v11556_v14, %v18483_v15  ;;  %v11448_v44 = vcombine.low %v10736_v11, %v10737_v47  ;;  %v10858_v14 = vmul.f32 %v22066_v29, %v24165_v57  ;;  %v24193_v47 = vld [vmem:[#allocation29_spill] sm:$0xff]  ;;  %v24196_v7 = vld [vmem:[#allocation35_spill] sm:$0xff] }
0x1468   :  { %v14206_v45 = vcombine.low %v14198_v35, %v14205_v48  ;;  %v10746_v11 = vmul.f32 %v22013_v20, %v24193_v47  ;;  %v14315_v48 = vrot.slane %v14307_v32, %v18483_v15  ;;  %v10748_v40 = vmul.f32 %v22016_v13, %v24195_v38 }
0x1469   :  { %v11572_v24 = vcombine.low %v22357_v23, %v22360_v60  ;;  %v11449_v63 = vcombine.low %v10738_v59, %v10739_v53  ;;  %v24194_v59 = vld [vmem:[#allocation34_spill] sm:$0xff]  ;;  %v10857_v20 = vmul.f32 %v22044_v25, %v24164_v2  ;;  %v14439_v12 = vrot.slane %v14425_v56, %v18483_v15  ;;  %v24201_v60 = vld [vmem:[#allocation11_spill] sm:$0xff] }
0x146a   :  { %14097 = vrot.lane.b32.xlu0 %v14089_v49, %s23958_s5  ;;  %14567 = vrot.lane.b32.xlu1 %v24192_v9, %s23958_s5  ;;  %v22382_v49 = vrot.slane %v11448_v44, %v18483_v15  ;;  %v10747_v17 = vmul.f32 %v22020_v62, %v24194_v59  ;;  %v10749_v44 = vmul.f32 %v22031_v27, %v24196_v7 }
0x146b   :  { %v22385_v57 = vrot.slane %v11449_v63, %v18483_v15  ;;  %v10856_v63 = vmul.f32 %v22062_v22, %v24157_v31  ;;  %v14323_v16 = vcombine.low %v14315_v48, %v14322_v50  ;;  %v14542_v13 = vcombine.low %v10858_v14, %v10859_v58 }
0x146c   :  { %v11664_v53 = vcombine.low %v10746_v11, %v10747_v17  ;;  %v11665_v35 = vcombine.low %v10748_v40, %v10749_v44  ;;  %v14432_v31 = vrot.slane %v14424_v33, %v18483_v15  ;;  %v10715_v11 = vmul.f32 %v22027_v36, %v24133_v0 }
0x146d   :  { %v11464_v62 = vcombine.low %v22382_v49, %v22385_v57  ;;  %v14541_v2 = vcombine.low %v10856_v63, %v10857_v20  ;;  %v14556_v50 = vrot.slane %v14542_v13, %v18483_v15  ;;  %v10725_v17 = vmul.f32 %v22027_v36, %v24134_v37  ;;  %v24200_v13 = vld [vmem:[#allocation7_spill] sm:$0xff] }
0x146e   :  { %14214 = vrot.lane.b32.xlu0 %v14206_v45, %s23958_s5  ;;  %v22406_v32 = vrot.slane %v11664_v53, %v18483_v15  ;;  %v22409_v27 = vrot.slane %v11665_v35, %v18483_v15  ;;  %v14440_v9 = vcombine.low %v14432_v31, %v14439_v12  ;;  %v10899_v33 = vrot.slane %v10715_v11, %v18483_v15 }
0x146f   :  { %v14549_v14 = vrot.slane %v14541_v2, %v18483_v15  ;;  %v11147_v40 = vrot.slane %v10725_v17, %v18483_v15  ;;  %v24197_v44 = vcombine.low %v22302_v21, %v22305_v10  ;;  %v24198_v63 = vcombine.low %v22313_v26, %v22323_v42 }
0x1470   :  { %v11680_v45 = vcombine.low %v22406_v32, %v22409_v27  ;;  %v10720_v20 = vmul.f32 %v22027_v36, %v24172_v3  ;;  %v10735_v21 = vmul.f32 %v22027_v36, %v24176_v43  ;;  %v10753_v10 = vmul.f32 %v22066_v29, %v24136_v4  ;;  %v24203_v32 = vld [vmem:[#allocation17_spill] sm:$0xff] }
0x1471   :  { %v14557_v56 = vcombine.low %v14549_v14, %v14556_v50  ;;  %v10754_v26 = vmul.f32 %v22056_v55, %v24139_v39  ;;  %v10751_v35 = vmul.f32 %v22062_v22, %v24133_v0  ;;  %v10752_v4 = vmul.f32 %v22044_v25, %v24135_v28 }
0x1472   :  { %14331 = vrot.lane.b32.xlu0 %v14323_v16, %s23958_s5  ;;  %v11039_v42 = vrot.slane %v10720_v20, %v18483_v15  ;;  %v11363_v53 = vrot.slane %v10735_v21, %v18483_v15  ;;  %v24199_v16 = vcombine.low %v22340_v41, %v22343_v54  ;;  %v10730_v12 = vmul.f32 %v22027_v36, %v24180_v8 }
0x1473   :  { %v11773_v39 = vcombine.low %v10753_v10, %v10754_v26  ;;  %v10745_v28 = vmul.f32 %v22027_v36, %v24184_v6  ;;  %v11772_v41 = vcombine.low %v10751_v35, %v10752_v4  ;;  %v10763_v23 = vmul.f32 %v22066_v29, %v24200_v13  ;;  %v24205_v13 = vld [vmem:[#allocation20_spill] sm:$0xff] }
0x1474   :  { %v11255_v2 = vrot.slane %v10730_v12, %v18483_v15  ;;  %v10761_v14 = vmul.f32 %v22062_v22, %v24134_v37  ;;  %v10758_v49 = vmul.f32 %v22066_v29, %v24174_v61  ;;  %v10759_v57 = vmul.f32 %v22056_v55, %v24175_v19 }
0x1475   :  { %v11787_v54 = vrot.slane %v11773_v39, %v18483_v15  ;;  %v11780_v50 = vrot.slane %v11772_v41, %v18483_v15  ;;  %v10773_v21 = vmul.f32 %v22066_v29, %v24178_v51  ;;  %v10756_v19 = vmul.f32 %v22062_v22, %v24172_v3 }
0x1476   :  { %14448 = vrot.lane.b32.xlu0 %v14440_v9, %s23958_s5  ;;  %v11579_v9 = vrot.slane %v10745_v28, %v18483_v15  ;;  %v10757_v10 = vmul.f32 %v22044_v25, %v24173_v34  ;;  %v10750_v35 = vmul.f32 %v22027_v36, %v24193_v47  ;;  %v10768_v27 = vmul.f32 %v22066_v29, %v24203_v32 }
0x1477   :  { %v11788_v17 = vcombine.low %v11780_v50, %v11787_v54  ;;  %v10784_v41 = vmul.f32 %v22056_v55, %v24187_v30 }
0x1478   :  { %v11687_v12 = vrot.slane %v10750_v35, %v18483_v15 }
0x147a   :  { %14565 = vrot.lane.b32.xlu0 %v14557_v56, %s23958_s5  ;;  %v24202_v56 = vld [vmem:[#allocation9_spill] sm:$0xff] }
0x147b   :  { %v10762_v11 = vmul.f32 %v22044_v25, %v24202_v56  ;;  %v10760_v56 = vmul.f32 %v22073_v18, %v24172_v3 }
0x147d   :  { %v12020_v20 = vcombine.low %v10761_v14, %v10762_v11 }
0x147f   :  { %v12028_v51 = vrot.slane %v12020_v20, %v18483_v15 }
0x14a3   :  { %v22419_v58 = vpop.permute.xlu0 %10926 }
0x14a4   :  { %17494 = vmatprep.subr.msk.mxu0 %vm103_vm1, %v22419_v58  ;;  %17508 = vmatprep.subr.msk.mxu1 %vm103_vm1, %v22419_v58 }
0x14a5   :  { %17495 = vmatpush3.xpose.msk.msra.mxu0 %vm103_vm1, %v22419_v58  ;;  %17509 = vmatpush3.xpose.msk.msra.mxu1 %vm103_vm1, %v22419_v58 }
0x14a7   :  { %v22433_v48 = vpop.permute.xlu1 %10924 }
0x14a8   :  { %17496 = vmatprep.subr.msk.mxu0 %vm103_vm1, %v22433_v48  ;;  %17510 = vmatprep.subr.msk.mxu1 %vm103_vm1, %v22433_v48 }
0x14a9   :  { %17497 = vmatpush3.xpose.msk.msra.mxu0 %vm103_vm1, %v22433_v48  ;;  %17511 = vmatpush3.xpose.msk.msra.mxu1 %vm103_vm1, %v22433_v48 }
0x14aa   :  { %17501 = vmatprep.subr.msk.mxu0 %vm103_vm1, %v22419_v58  ;;  %17522 = vmatprep.subr.msk.mxu1 %vm103_vm1, %v22419_v58 }
0x14ab   :  { %v22518_v31 = vpop.permute.xlu1 %11822 }
0x14ac   :  { %17499 = vmatmul.mubr.msk.f32.vlgmr.msra.gmra.mxu0 %vm103_vm1, %v10899_v33  ;;  %17513 = vmatmul.mubr.msk.f32.vlgmr.msra.gmra.mxu1 %vm103_vm1, %v11147_v40  ;;  %v10740_v40 = vmul.f32 %v22027_v36, %v24188_v5 }
0x14ad   :  { %17502 = vmatpush3.xpose.msk.msra.mxu0 %vm103_vm1, %v22419_v58  ;;  %17505 = vmatprep.mubr.msk.f32.mxu0 %vm103_vm1, %v24197_v44  ;;  %v22545_v44 = vpop.permute.xlu0 %11820 }
0x14ae   :  { %17523 = vmatpush3.xpose.msk.msra.mxu1 %vm103_vm1, %v22419_v58  ;;  %17526 = vmatprep.mubr.msk.f32.mxu1 %vm103_vm1, %v24198_v63  ;;  %v10755_v63 = vmul.f32 %v22073_v18, %v24133_v0  ;;  %v10774_v0 = vmul.f32 %v22056_v55, %v24179_v46  ;;  %v11471_v61 = vrot.slane %v10740_v40, %v18483_v15 }
0x14af   :  { %17503 = vmatprep.subr.msk.mxu0 %vm103_vm1, %v22433_v48  ;;  %17524 = vmatprep.subr.msk.mxu1 %vm103_vm1, %v22433_v48  ;;  %v10771_v46 = vmul.f32 %v22062_v22, %v24176_v43 }
0x14b0   :  { %v11795_v26 = vrot.slane %v10755_v63, %v18483_v15  ;;  %v12237_v4 = vcombine.low %v10773_v21, %v10774_v0  ;;  %v24207_v63 = vld [vmem:[#allocation23_spill] sm:$0xff]  ;;  %v11935_v21 = vrot.slane %v10760_v56, %v18483_v15 }
0x14b1   :  { %17504 = vmatpush3.xpose.msk.msra.mxu0 %vm103_vm1, %v22433_v48  ;;  %v10778_v20 = vmul.f32 %v22066_v29, %v24207_v63 }
0x14b2   :  { %17525 = vmatpush3.xpose.msk.msra.mxu1 %vm103_vm1, %v22433_v48  ;;  %17515 = vmatprep.subr.msk.mxu0 %vm103_vm1, %v22419_v58  ;;  %v12251_v28 = vrot.slane %v12237_v4, %v18483_v15 }
0x14b3   :  { %17536 = vmatprep.subr.msk.mxu1 %vm103_vm1, %v22419_v58 }
0x14b4   :  { %17506 = vmatmul.mubr.msk.f32.vlgmr.msra.gmra.mxu0 %vm103_vm1, %v11039_v42  ;;  %v10772_v42 = vmul.f32 %v22044_v25, %v24177_v1  ;;  %v11912_v1 = vcombine.low %v10756_v19, %v10757_v10  ;;  %v24209_v19 = vld [vmem:[#allocation28_spill] sm:$0xff] }
0x14b5   :  { %17527 = vmatmul.mubr.msk.f32.vlgmr.msra.gmra.mxu1 %vm103_vm1, %v11363_v53  ;;  %17516 = vmatpush3.xpose.msk.msra.mxu0 %vm103_vm1, %v22419_v58  ;;  %v11913_v53 = vcombine.low %v10758_v49, %v10759_v57  ;;  %v24208_v49 = vld [vmem:[#allocation30_spill] sm:$0xff]  ;;  %v10777_v10 = vmul.f32 %v22044_v25, %v24209_v19 }
0x14b6   :  { %17519 = vmatprep.mubr.msk.f32.mxu0 %vm103_vm1, %v24199_v16  ;;  %17537 = vmatpush3.xpose.msk.msra.mxu1 %vm103_vm1, %v22419_v58  ;;  %v12236_v39 = vcombine.low %v10771_v46, %v10772_v42  ;;  %v11920_v54 = vrot.slane %v11912_v1, %v18483_v15  ;;  %v10779_v57 = vmul.f32 %v22056_v55, %v24208_v49 }
0x14b7   :  { %17540 = vmatprep.mubr.msk.f32.mxu1 %vm103_vm1, %v11572_v24  ;;  %17517 = vmatprep.subr.msk.mxu0 %vm103_vm1, %v22433_v48  ;;  %v10764_v24 = vmul.f32 %v22056_v55, %v24201_v60  ;;  %v11927_v36 = vrot.slane %v11913_v53, %v18483_v15  ;;  %v10781_v60 = vmul.f32 %v22062_v22, %v24184_v6 }
0x14b8   :  { %17538 = vmatprep.subr.msk.mxu1 %vm103_vm1, %v22433_v48  ;;  %v12244_v30 = vrot.slane %v12236_v39, %v18483_v15  ;;  %v12345_v42 = vcombine.low %v10778_v20, %v10779_v57  ;;  %v10785_v1 = vmul.f32 %v22073_v18, %v24184_v6  ;;  %v10789_v39 = vmul.f32 %v22056_v55, %v24196_v7 }
0x14b9   :  { %17518 = vmatpush3.xpose.msk.msra.mxu0 %vm103_vm1, %v22433_v48  ;;  %v12021_v33 = vcombine.low %v10763_v23, %v10764_v24  ;;  %v10767_v23 = vmul.f32 %v22044_v25, %v24205_v13  ;;  %v24206_v24 = vld [vmem:[#allocation32_spill] sm:$0xff]  ;;  %v10787_v6 = vmul.f32 %v22044_v25, %v24194_v59  ;;  %v10790_v13 = vmul.f32 %v22073_v18, %v24193_v47 }
0x14ba   :  { %17539 = vmatpush3.xpose.msk.msra.mxu1 %vm103_vm1, %v22433_v48  ;;  %17529 = vmatprep.subr.msk.mxu0 %vm103_vm1, %v22419_v58  ;;  %v12252_v14 = vcombine.low %v12244_v30, %v12251_v28  ;;  %v12475_v32 = vrot.slane %v10785_v1, %v18483_v15  ;;  %v10780_v28 = vmul.f32 %v22073_v18, %v24188_v5 }
0x14bb   :  { %17550 = vmatprep.subr.msk.mxu1 %vm103_vm1, %v22518_v31 }
0x14bc   :  { %17520 = vmatmul.mubr.msk.f32.vlgmr.msra.gmra.mxu0 %vm103_vm1, %v11255_v2  ;;  %v10782_v2 = vmul.f32 %v22044_v25, %v24206_v24 }
0x14bd   :  { %17541 = vmatmul.mubr.msk.f32.vlgmr.msra.gmra.mxu1 %vm103_vm1, %v11579_v9  ;;  %17530 = vmatpush3.xpose.msk.msra.mxu0 %vm103_vm1, %v22419_v58  ;;  %v11928_v9 = vcombine.low %v11920_v54, %v11927_v36  ;;  %v10786_v36 = vmul.f32 %v22062_v22, %v24193_v47 }
0x14be   :  { %17533 = vmatprep.mubr.msk.f32.mxu0 %vm103_vm1, %v11464_v62  ;;  %17551 = vmatpush3.xpose.msk.msra.mxu1 %vm103_vm1, %v22518_v31  ;;  %v12035_v62 = vrot.slane %v12021_v33, %v18483_v15  ;;  %v10775_v33 = vmul.f32 %v22073_v18, %v24176_v43  ;;  %v12452_v40 = vcombine.low %v10781_v60, %v10782_v2 }
0x14bf   :  { %17554 = vmatprep.mubr.msk.f32.mxu1 %vm103_vm1, %v11788_v17  ;;  %17531 = vmatprep.subr.msk.mxu0 %vm103_vm1, %v22433_v48  ;;  %v12560_v59 = vcombine.low %v10786_v36, %v10787_v6 }
0x14c0   :  { %17552 = vmatprep.subr.msk.mxu1 %vm103_vm1, %v22545_v44  ;;  %v12036_v34 = vcombine.low %v12028_v51, %v12035_v62  ;;  %v13047_v62 = vpop.permute.xlu0 %13046  ;;  %v12460_v51 = vrot.slane %v12452_v40, %v18483_v15 }
0x14c1   :  { %17532 = vmatpush3.xpose.msk.msra.mxu0 %vm103_vm1, %v22433_v48 }
0x14c2   :  { %17553 = vmatpush3.xpose.msk.msra.mxu1 %vm103_vm1, %v22545_v44  ;;  %17543 = vmatprep.subr.msk.mxu0 %vm103_vm1, %v22419_v58 }
0x14c3   :  { %17564 = vmatprep.subr.msk.mxu1 %vm103_vm1, %v22518_v31 }
0x14c4   :  { %17534 = vmatmul.mubr.msk.f32.vlgmr.msra.gmra.mxu0 %vm103_vm1, %v11471_v61  ;;  %v10776_v61 = vmul.f32 %v22062_v22, %v24188_v5  ;;  %v22678_v4 = vpop.permute.xlu0 %13163  ;;  %v12367_v5 = vrot.slane %v10780_v28, %v18483_v15 }
0x14c5   :  { %17555 = vmatmul.mubr.msk.f32.vlgmr.msra.gmra.mxu1 %vm103_vm1, %v11795_v26  ;;  %17544 = vmatpush3.xpose.msk.msra.mxu0 %vm103_vm1, %v22419_v58  ;;  %v10765_v58 = vmul.f32 %v22073_v18, %v24134_v37  ;;  %v10783_v37 = vmul.f32 %v22066_v29, %v24186_v52  ;;  %v12259_v26 = vrot.slane %v10775_v33, %v18483_v15 }
0x14c6   :  { %17547 = vmatprep.mubr.msk.f32.mxu0 %vm103_vm1, %v11680_v45  ;;  %17565 = vmatpush3.xpose.msk.msra.mxu1 %vm103_vm1, %v22518_v31  ;;  %v24204_v45 = vld [vmem:[#allocation22_spill] sm:$0xff]  ;;  %v12344_v35 = vcombine.low %v10776_v61, %v10777_v10 }
0x14c7   :  { %17568 = vmatprep.mubr.msk.f32.mxu1 %vm103_vm1, %v12036_v34  ;;  %17545 = vmatprep.subr.msk.mxu0 %vm103_vm1, %v22433_v48  ;;  %v10769_v16 = vmul.f32 %v22056_v55, %v24204_v45  ;;  %v12043_v52 = vrot.slane %v10765_v58, %v18483_v15  ;;  %v12453_v11 = vcombine.low %v10783_v37, %v10784_v41 }
0x14c8   :  { %17566 = vmatprep.subr.msk.mxu1 %vm103_vm1, %v22545_v44  ;;  %v10770_v34 = vmul.f32 %v22073_v18, %v24180_v8  ;;  %v10788_v58 = vmul.f32 %v22066_v29, %v24195_v38  ;;  %v12352_v7 = vrot.slane %v12344_v35, %v18483_v15  ;;  %v12568_v41 = vrot.slane %v12560_v59, %v18483_v15 }
0x14c9   :  { %17546 = vmatpush3.xpose.msk.msra.mxu0 %vm103_vm1, %v22433_v48  ;;  %v10766_v48 = vmul.f32 %v22062_v22, %v24180_v8  ;;  %v12129_v50 = vcombine.low %v10768_v27, %v10769_v16  ;;  %v12467_v43 = vrot.slane %v12453_v11, %v18483_v15  ;;  %v12359_v8 = vrot.slane %v12345_v42, %v18483_v15  ;;  %v13281_v16 = vpop.permute.xlu0 %13280 }
0x14ca   :  { %17567 = vmatpush3.xpose.msk.msra.mxu1 %vm103_vm1, %v22545_v44  ;;  %17557 = vmatprep.subr.msk.mxu0 %vm103_vm1, %v22518_v31  ;;  %v12151_v38 = vrot.slane %v10770_v34, %v18483_v15  ;;  %v12561_v27 = vcombine.low %v10788_v58, %v10789_v39 }
0x14cb   :  { %17578 = vmatprep.subr.msk.mxu1 %vm103_vm1, %v22518_v31  ;;  %v12128_v17 = vcombine.low %v10766_v48, %v10767_v23  ;;  %v12143_v3 = vrot.slane %v12129_v50, %v18483_v15  ;;  %v12468_v53 = vcombine.low %v12460_v51, %v12467_v43  ;;  %v12360_v45 = vcombine.low %v12352_v7, %v12359_v8 }
0x14cc   :  { %17548 = vmatmul.mubr.msk.f32.vlgmr.msra.gmra.mxu0 %vm103_vm1, %v11687_v12  ;;  %v13045_v12 = vpop.permute.xlu1 %13044  ;;  %v12575_v37 = vrot.slane %v12561_v27, %v18483_v15 }
0x14cd   :  { %17569 = vmatmul.mubr.msk.f32.vlgmr.msra.gmra.mxu1 %vm103_vm1, %v12043_v52  ;;  %17558 = vmatpush3.xpose.msk.msra.mxu0 %vm103_vm1, %v22518_v31  ;;  %v12136_v0 = vrot.slane %v12128_v17, %v18483_v15  ;;  %v13279_v54 = vpop.permute.xlu0 %13278  ;;  %v12583_v52 = vrot.slane %v10790_v13, %v18483_v15 }
0x14ce   :  { %17561 = vmatprep.mubr.msk.f32.mxu0 %vm103_vm1, %v11928_v9  ;;  %17579 = vmatpush3.xpose.msk.msra.mxu1 %vm103_vm1, %v22518_v31  ;;  %v12576_v48 = vcombine.low %v12568_v41, %v12575_v37 }
0x14cf   :  { %17582 = vmatprep.mubr.msk.f32.mxu1 %vm103_vm1, %v12252_v14  ;;  %17559 = vmatprep.subr.msk.mxu0 %vm103_vm1, %v22545_v44  ;;  %v12144_v46 = vcombine.low %v12136_v0, %v12143_v3 }
0x14d0   :  { %17580 = vmatprep.subr.msk.mxu1 %vm103_vm1, %v22545_v44 }
0x14d1   :  { %17560 = vmatpush3.xpose.msk.msra.mxu0 %vm103_vm1, %v22545_v44  ;;  %v22733_v23 = vpop.permute.xlu0 %13395 }
0x14d2   :  { %17581 = vmatpush3.xpose.msk.msra.mxu1 %vm103_vm1, %v22545_v44  ;;  %17571 = vmatprep.subr.msk.mxu0 %vm103_vm1, %v22518_v31 }
0x14d3   :  { %17592 = vmatprep.subr.msk.mxu1 %vm103_vm1, %v22518_v31 }
0x14d4   :  { %17562 = vmatmul.mubr.msk.f32.vlgmr.msra.gmra.mxu0 %vm103_vm1, %v11935_v21 }
0x14d5   :  { %17583 = vmatmul.mubr.msk.f32.vlgmr.msra.gmra.mxu1 %vm103_vm1, %v12259_v26  ;;  %17572 = vmatpush3.xpose.msk.msra.mxu0 %vm103_vm1, %v22518_v31 }
0x14d6   :  { %17575 = vmatprep.mubr.msk.f32.mxu0 %vm103_vm1, %v12144_v46  ;;  %17593 = vmatpush3.xpose.msk.msra.mxu1 %vm103_vm1, %v22518_v31 }
0x14d7   :  { %17596 = vmatprep.mubr.msk.f32.mxu1 %vm103_vm1, %v12468_v53  ;;  %17573 = vmatprep.subr.msk.mxu0 %vm103_vm1, %v22545_v44 }
0x14d8   :  { %17594 = vmatprep.subr.msk.mxu1 %vm103_vm1, %v22545_v44 }
0x14d9   :  { %17574 = vmatpush3.xpose.msk.msra.mxu0 %vm103_vm1, %v22545_v44 }
0x14da   :  { %17595 = vmatpush3.xpose.msk.msra.mxu1 %vm103_vm1, %v22545_v44  ;;  %17585 = vmatprep.subr.msk.mxu0 %vm103_vm1, %v22518_v31 }
0x14db   :  { %17606 = vmatprep.subr.msk.mxu1 %vm2898_vm2, %v13047_v62 }
0x14dc   :  { %17576 = vmatmul.mubr.msk.f32.vlgmr.msra.gmra.mxu0 %vm103_vm1, %v12151_v38 }
0x14dd   :  { %17597 = vmatmul.mubr.msk.f32.vlgmr.msra.gmra.mxu1 %vm103_vm1, %v12475_v32  ;;  %17586 = vmatpush3.xpose.msk.msra.mxu0 %vm103_vm1, %v22518_v31 }
0x14de   :  { %17589 = vmatprep.mubr.msk.f32.mxu0 %vm103_vm1, %v12360_v45  ;;  %17607 = vmatpush3.msk.msra.mxu1 %vm2898_vm2, %v13047_v62 }
0x14df   :  { %17587 = vmatprep.subr.msk.mxu0 %vm103_vm1, %v22545_v44  ;;  %17608 = vmatprep.subr.mxu1 %v13045_v12 }
0x14e0   :  { %17609 = vmatpush3.msra.mxu1 %v13045_v12 }
0x14e1   :  { %17613 = vmatprep.subr.msk.mxu1 %vm2898_vm2, %v22678_v4  ;;  %17588 = vmatpush3.xpose.msk.msra.mxu0 %vm103_vm1, %v22545_v44 }
0x14e2   :  { %17599 = vmatprep.subr.msk.mxu0 %vm103_vm1, %v22518_v31 }
0x14e4   :  { %17590 = vmatmul.mubr.msk.f32.vlgmr.msra.gmra.mxu0 %vm103_vm1, %v12367_v5 }
0x14e5   :  { %17600 = vmatpush3.xpose.msk.msra.mxu0 %vm103_vm1, %v22518_v31  ;;  %17603 = vmatprep.mubr.msk.f32.mxu0 %vm103_vm1, %v12576_v48  ;;  %v22741_v31 = vpop.permute.xlu0 %13514 }
0x14e6   :  { %17601 = vmatprep.subr.msk.mxu0 %vm103_vm1, %v22545_v44 }
0x14e9   :  { %17602 = vmatpush3.xpose.msk.msra.mxu0 %vm103_vm1, %v22545_v44 }
0x14ea   :  { %17620 = vmatprep.subr.msk.mxu0 %vm2898_vm2, %v13281_v16 }
0x14ec   :  { %17604 = vmatmul.mubr.msk.f32.vlgmr.msra.gmra.mxu0 %vm103_vm1, %v12583_v52 }
0x14ed   :  { %17621 = vmatpush3.msk.msra.mxu0 %vm2898_vm2, %v13281_v16 }
0x14ee   :  { %17622 = vmatprep.subr.mxu0 %v13279_v54 }
0x14ef   :  { %17623 = vmatpush3.msra.mxu0 %v13279_v54 }
0x14f0   :  { %17634 = vmatprep.subr.msk.mxu0 %vm2898_vm2, %v22741_v31 }
0x156c   :  { %v22745_v47 = vpop.f32.mrf.mxu0  ;;  %v22747_v30 = vpop.f32.mrf.mxu1 }
0x156d   :  { %v12678_v44 = vsel %vm2508_vm3, %v22747_v30, -inf  ;;  %v12666_v60 = vsel %vm2508_vm3, %v22745_v47, -inf }
0x156e   :  { %12679 = vmax.xlane.f32.xlu1 %v12678_v44  ;;  %v22753_v24 = vpop.f32.mrf.mxu1  ;;  %12667 = vmax.xlane.f32.xlu0 %v12666_v60  ;;  %v22755_v2 = vpop.f32.mrf.mxu0 }
0x156f   :  { %v12675_v9 = vsel %vm2504_vm4, %v22753_v24, -inf  ;;  %v12663_v50 = vsel %vm2504_vm4, %v22755_v2, -inf }
0x1572   :  { %12676 = vmax.xlane.f32.xlu0 %v12675_v9  ;;  %12664 = vmax.xlane.f32.xlu1 %v12663_v50 }
0x1574   :  { %v22761_v14 = vpop.f32.mrf.mxu0 }
0x1575   :  { %v22763_v56 = vpop.f32.mrf.mxu1  ;;  %v12672_v11 = vsel %vm2508_vm3, %v22761_v14, -inf }
0x1576   :  { %12673 = vmax.xlane.f32.xlu1 %v12672_v11  ;;  %v22767_v17 = vpop.f32.mrf.mxu0  ;;  %v12690_v3 = vsel %vm2508_vm3, %v22763_v56, -inf }
0x1577   :  { %v12669_v33 = vsel %vm2504_vm4, %v22767_v17, -inf  ;;  %v22771_v40 = vpop.f32.mrf.mxu1 }
0x1578   :  { %12670 = vmax.xlane.f32.xlu0 %v12669_v33  ;;  %v12687_v63 = vsel %vm2504_vm4, %v22771_v40, -inf }
0x157a   :  { %12691 = vmax.xlane.f32.xlu1 %v12690_v3 }
0x157c   :  { %12688 = vmax.xlane.f32.xlu0 %v12687_v63  ;;  %v22777_v20 = vpop.f32.mrf.mxu0 }
0x157d   :  { %v22779_v49 = vpop.f32.mrf.mxu1  ;;  %v12684_v57 = vsel %vm2508_vm3, %v22777_v20, -inf }
0x157e   :  { %12685 = vmax.xlane.f32.xlu1 %v12684_v57  ;;  %v22783_v62 = vpop.f32.mrf.mxu0  ;;  %v12702_v0 = vsel %vm2508_vm3, %v22779_v49, -inf }
0x157f   :  { %v12681_v21 = vsel %vm2504_vm4, %v22783_v62, -inf  ;;  %v22787_v43 = vpop.f32.mrf.mxu1 }
0x1580   :  { %12682 = vmax.xlane.f32.xlu0 %v12681_v21  ;;  %v12699_v61 = vsel %vm2504_vm4, %v22787_v43, -inf  ;;  %v22873_v21 = vpop.permute.xlu1 %13161 }
0x1582   :  { %12703 = vmax.xlane.f32.xlu1 %v12702_v0  ;;  %v24210_v0 = vld [vmem:[#allocation59_spill] sm:$0xff] }
0x1584   :  { %12700 = vmax.xlane.f32.xlu0 %v12699_v61  ;;  %v22793_v19 = vpop.f32.mrf.mxu0  ;;  %v10863_v61 = vmul.f32 %v22066_v29, %v24210_v0 }
0x1585   :  { %v22795_v10 = vpop.f32.mrf.mxu1  ;;  %v12696_v26 = vsel %vm2508_vm3, %v22793_v19, -inf }
0x1586   :  { %12697 = vmax.xlane.f32.xlu1 %v12696_v26  ;;  %v22799_v51 = vpop.f32.mrf.mxu0  ;;  %v12714_v53 = vsel %vm2508_vm3, %v22795_v10, -inf  ;;  %v24211_v26 = vld [vmem:[#allocation64_spill] sm:$0xff] }
0x1587   :  { %v12693_v46 = vsel %vm2504_vm4, %v22799_v51, -inf  ;;  %v22803_v42 = vpop.f32.mrf.mxu1 }
0x1588   :  { %12694 = vmax.xlane.f32.xlu0 %v12693_v46  ;;  %v12711_v34 = vsel %vm2504_vm4, %v22803_v42, -inf  ;;  %v10864_v46 = vmul.f32 %v22056_v55, %v24211_v26 }
0x158a   :  { %12715 = vmax.xlane.f32.xlu1 %v12714_v53  ;;  %v24212_v53 = vld [vmem:[#allocation57_spill] sm:$0xff] }
0x158c   :  { %12712 = vmax.xlane.f32.xlu0 %v12711_v34  ;;  %v22809_v35 = vpop.f32.mrf.mxu0  ;;  %v10865_v34 = vmul.f32 %v22073_v18, %v24212_v53 }
0x158d   :  { %v22811_v1 = vpop.f32.mrf.mxu1  ;;  %v12708_v58 = vsel %vm2508_vm3, %v22809_v35, -inf }
0x158e   :  { %12709 = vmax.xlane.f32.xlu1 %v12708_v58  ;;  %v22815_v39 = vpop.f32.mrf.mxu0  ;;  %v12726_v6 = vsel %vm2508_vm3, %v22811_v1, -inf  ;;  %v10861_v58 = vmul.f32 %v22062_v22, %v24212_v53 }
0x158f   :  { %v12705_v8 = vsel %vm2504_vm4, %v22815_v39, -inf  ;;  %v22819_v36 = vpop.f32.mrf.mxu1 }
0x1590   :  { %12706 = vmax.xlane.f32.xlu0 %v12705_v8  ;;  %v12723_v38 = vsel %vm2504_vm4, %v22819_v36, -inf  ;;  %v24213_v8 = vld [vmem:[#allocation63_spill] sm:$0xff] }
0x1592   :  { %12727 = vmax.xlane.f32.xlu1 %v12726_v6  ;;  %v10862_v6 = vmul.f32 %v22044_v25, %v24213_v8 }
0x1594   :  { %12724 = vmax.xlane.f32.xlu0 %v12723_v38  ;;  %v22825_v7 = vpop.f32.mrf.mxu0  ;;  %v14659_v38 = vcombine.low %v10863_v61, %v10864_v46 }
0x1595   :  { %v22827_v32 = vpop.f32.mrf.mxu1  ;;  %v12720_v27 = vsel %vm2508_vm3, %v22825_v7, -inf }
0x1596   :  { %12721 = vmax.xlane.f32.xlu1 %v12720_v27  ;;  %v22831_v45 = vpop.f32.mrf.mxu0  ;;  %v12738_v12 = vsel %vm2508_vm3, %v22827_v32, -inf  ;;  %v22885_v27 = vpop.permute.xlu1 %13397 }
0x1597   :  { %v12717_v16 = vsel %vm2504_vm4, %v22831_v45, -inf  ;;  %v22835_v59 = vpop.f32.mrf.mxu1 }
0x1598   :  { %12718 = vmax.xlane.f32.xlu0 %v12717_v16  ;;  %v12735_v28 = vsel %vm2504_vm4, %v22835_v59, -inf  ;;  %v22887_v16 = vpop.permute.xlu0 %13512 }
0x159a   :  { %12739 = vmax.xlane.f32.xlu1 %v12738_v12  ;;  %v14681_v12 = vrot.slane %v10865_v34, %v18483_v15 }
0x159c   :  { %12736 = vmax.xlane.f32.xlu0 %v12735_v28  ;;  %v22841_v37 = vpop.f32.mrf.mxu0  ;;  %v14658_v28 = vcombine.low %v10861_v58, %v10862_v6 }
0x159d   :  { %v22843_v41 = vpop.f32.mrf.mxu1  ;;  %v12732_v5 = vsel %vm2508_vm3, %v22841_v37, -inf }
0x159e   :  { %12733 = vmax.xlane.f32.xlu1 %v12732_v5  ;;  %v22847_v54 = vpop.f32.mrf.mxu0  ;;  %v12750_v52 = vsel %vm2508_vm3, %v22843_v41, -inf  ;;  %v14673_v5 = vrot.slane %v14659_v38, %v18483_v15 }
0x159f   :  { %v12729_v48 = vsel %vm2504_vm4, %v22847_v54, -inf  ;;  %v22851_v13 = vpop.f32.mrf.mxu1 }
0x15a0   :  { %12730 = vmax.xlane.f32.xlu0 %v12729_v48  ;;  %v12747_v44 = vsel %vm2504_vm4, %v22851_v13, -inf  ;;  %v14666_v48 = vrot.slane %v14658_v28, %v18483_v15 }
0x15a2   :  { %12751 = vmax.xlane.f32.xlu1 %v12750_v52  ;;  %v22893_v52 = vpop.permute.xlu1 %13631 }
0x15a4   :  { %12748 = vmax.xlane.f32.xlu0 %v12747_v44  ;;  %v22857_v60 = vpop.f32.mrf.mxu0  ;;  %v22895_v44 = vpop.permute.xlu0 %13629 }
0x15a5   :  { %v12744_v9 = vsel %vm2508_vm3, %v22857_v60, -inf }
0x15a6   :  { %12745 = vmax.xlane.f32.xlu1 %v12744_v9  ;;  %v22861_v50 = vpop.f32.mrf.mxu0  ;;  %v14674_v9 = vcombine.low %v14666_v48, %v14673_v5 }
0x15a7   :  { %v12741_v11 = vsel %vm2504_vm4, %v22861_v50, -inf }
0x15a8   :  { %12742 = vmax.xlane.f32.xlu0 %v12741_v11  ;;  %v22898_v11 = vpop.permute.xlu1 %13748 }
0x15ac   :  { %v22865_v33 = vpop.f32.mrf.mxu0 }
0x15ad   :  { %v12756_v3 = vsel %vm2508_vm3, %v22865_v33, -inf }
0x15ae   :  { %12757 = vmax.xlane.f32.xlu1 %v12756_v3  ;;  %v22869_v63 = vpop.f32.mrf.mxu0  ;;  %v22900_v3 = vpop.permute.xlu0 %13746 }
0x15af   :  { %v12753_v57 = vsel %vm2504_vm4, %v22869_v63, -inf }
0x15b0   :  { %12754 = vmax.xlane.f32.xlu0 %v12753_v57  ;;  %v22902_v57 = vpop.permute.xlu1 %13865 }
0x15b1   :  { %24214 = vst [vmem:[#allocation73_spill] sm:$0xff] %v22902_v57 }
0x15b2   :  { %v22904_v0 = vpop.permute.xlu0 %13863 }
0x15b3   :  { %24215 = vst [vmem:[#allocation76_spill] sm:$0xff] %v22904_v0 }
0x15b4   :  { %v22906_v61 = vpop.permute.xlu1 %13982 }
0x15b6   :  { %v22908_v26 = vpop.permute.xlu0 %13980 }
0x15b7   :  { %24216 = vst [vmem:[#allocation79_spill] sm:$0xff] %v22908_v26 }
0x15b8   :  { %v22910_v46 = vpop.permute.xlu1 %14099 }
0x15b9   :  { %24217 = vst [vmem:[#allocation77_spill] sm:$0xff] %v22910_v46 }
0x15ba   :  { %v22912_v53 = vpop.permute.xlu0 %14097 }
0x15bb   :  { %24218 = vst [vmem:[#allocation71_spill] sm:$0xff] %v22912_v53 }
0x15bc   :  { %v22914_v34 = vpop.permute.xlu1 %14216 }
0x15bd   :  { %24219 = vst [vmem:[#allocation80_spill] sm:$0xff] %v22914_v34 }
0x15be   :  { %v22916_v58 = vpop.permute.xlu0 %14214 }
0x15bf   :  { %14684 = vrot.lane.b32.xlu1 %v14681_v12, %s23958_s5  ;;  %24220 = vst [vmem:[#allocation75_spill] sm:$0xff] %v22916_v58 }
0x15c0   :  { %v22918_v8 = vpop.permute.xlu1 %14333 }
0x15c1   :  { %24221 = vst [vmem:[#allocation81_spill] sm:$0xff] %v22918_v8 }
0x15c2   :  { %v22920_v6 = vpop.permute.xlu0 %14331 }
0x15c3   :  { %24222 = vst [vmem:[#allocation74_spill] sm:$0xff] %v22920_v6 }
0x15c4   :  { %v22922_v38 = vpop.permute.xlu1 %14450 }
0x15c5   :  { %24223 = vst [vmem:[#allocation68_spill] sm:$0xff] %v22922_v38 }
0x15c6   :  { %14682 = vrot.lane.b32.xlu0 %v14674_v9, %s23958_s5  ;;  %v22924_v12 = vpop.permute.xlu0 %14448 }
0x15c7   :  { %24224 = vst [vmem:[#allocation69_spill] sm:$0xff] %v22924_v12 }
0x15c8   :  { %v22926_v28 = vpop.permute.xlu1 %14567 }
0x15c9   :  { %24225 = vst [vmem:[#allocation70_spill] sm:$0xff] %v22926_v28 }
0x15ca   :  { %v22928_v5 = vpop.permute.xlu0 %14565 }
0x15cb   :  { %24226 = vst [vmem:[#allocation4_spill] sm:$0xff] %v22928_v5 }
0x15f7   :  { %v12680_v48 = vpop.xlane.xlu1 %12679  ;;  %v12668_v9 = vpop.xlane.xlu0 %12667 }
0x15f8   :  { %v12764_v53 = vsub.f32 %v22747_v30, %v12680_v48  ;;  %v12760_v46 = vsub.f32 %v22745_v47, %v12668_v9 }
0x15fa   :  { %v12793_v0 = vmul.f32 1.442695, %v12760_v46  ;;  %v12801_v58 = vmul.f32 1.442695, %v12764_v53 }
0x15fb   :  { %v12677_v34 = vpop.xlane.xlu0 %12676  ;;  %v12665_v8 = vpop.xlane.xlu1 %12664 }
0x15fc   :  { %v12763_v6 = vsub.f32 %v22753_v24, %v12677_v34  ;;  %v12759_v38 = vsub.f32 %v22755_v2, %v12665_v8  ;;  %18149 = vpow2.f32 %v12793_v0 }
0x15fd   :  { %18151 = vpow2.f32 %v12801_v58 }
0x15fe   :  { %v12791_v12 = vmul.f32 1.442695, %v12759_v38  ;;  %v12799_v28 = vmul.f32 1.442695, %v12763_v6 }
0x15ff   :  { %v12674_v26 = vpop.xlane.xlu1 %12673 }
0x1600   :  { %v12762_v5 = vsub.f32 %v22761_v14, %v12674_v26  ;;  %18153 = vpow2.f32 %v12791_v12 }
0x1601   :  { %v12671_v57 = vpop.xlane.xlu0 %12670  ;;  %18155 = vpow2.f32 %v12799_v28 }
0x1602   :  { %v12797_v30 = vmul.f32 1.442695, %v12762_v5  ;;  %v12761_v47 = vsub.f32 %v22767_v17, %v12671_v57 }
0x1603   :  { %v12692_v46 = vpop.xlane.xlu1 %12691 }
0x1604   :  { %18157 = vpow2.f32 %v12797_v30  ;;  %v12795_v53 = vmul.f32 1.442695, %v12761_v47  ;;  %v12768_v24 = vsub.f32 %v22763_v56, %v12692_v46 }
0x1605   :  { %v12689_v34 = vpop.xlane.xlu0 %12688 }
0x1606   :  { %v12809_v2 = vmul.f32 1.442695, %v12768_v24  ;;  %v12767_v0 = vsub.f32 %v22771_v40, %v12689_v34  ;;  %18159 = vpow2.f32 %v12795_v53 }
0x1607   :  { %v12686_v58 = vpop.xlane.xlu1 %12685 }
0x1608   :  { %18161 = vpow2.f32 %v12809_v2  ;;  %v12807_v8 = vmul.f32 1.442695, %v12767_v0  ;;  %v12766_v14 = vsub.f32 %v22777_v20, %v12686_v58 }
0x1609   :  { %v12683_v26 = vpop.xlane.xlu0 %12682  ;;  %v22939_v6 = vpop.eup %18149 }
0x160a   :  { %v12805_v17 = vmul.f32 1.442695, %v12766_v14  ;;  %v12765_v57 = vsub.f32 %v22783_v62, %v12683_v26  ;;  %18163 = vpow2.f32 %v12807_v8  ;;  %v12858_v56 = vsel %vm2508_vm3, %v22939_v6, 0.0  ;;  %v22944_v12 = vpop.eup %18151 }
0x160b   :  { %v12704_v38 = vpop.xlane.xlu1 %12703  ;;  %12859 = vadd.xlane.f32.xlu1 %v12858_v56  ;;  %v12870_v30 = vsel %vm2508_vm3, %v22944_v12, 0.0 }
0x160c   :  { %18165 = vpow2.f32 %v12805_v17  ;;  %v12803_v40 = vmul.f32 1.442695, %v12765_v57  ;;  %v12772_v28 = vsub.f32 %v22779_v49, %v12704_v38 }
0x160d   :  { %v12701_v5 = vpop.xlane.xlu0 %12700  ;;  %v22947_v20 = vpop.eup %18153 }
0x160e   :  { %v12817_v48 = vmul.f32 1.442695, %v12772_v28  ;;  %v12771_v9 = vsub.f32 %v22787_v43, %v12701_v5  ;;  %18167 = vpow2.f32 %v12803_v40  ;;  %v12855_v47 = vsel %vm2504_vm4, %v22947_v20, 0.0  ;;  %v22954_v46 = vpop.eup %18155 }
0x160f   :  { %v12698_v62 = vpop.xlane.xlu1 %12697  ;;  %12871 = vadd.xlane.f32.xlu1 %v12870_v30  ;;  %12856 = vadd.xlane.f32.xlu0 %v12855_v47  ;;  %v12867_v8 = vsel %vm2504_vm4, %v22954_v46, 0.0 }
0x1610   :  { %18169 = vpow2.f32 %v12817_v48  ;;  %v12815_v53 = vmul.f32 1.442695, %v12771_v9  ;;  %v12770_v49 = vsub.f32 %v22793_v19, %v12698_v62 }
0x1611   :  { %v22957_v24 = vpop.eup %18157  ;;  %v12695_v34 = vpop.xlane.xlu0 %12694 }
0x1612   :  { %v12813_v43 = vmul.f32 1.442695, %v12770_v49  ;;  %v12769_v2 = vsub.f32 %v22799_v51, %v12695_v34  ;;  %v12864_v0 = vsel %vm2508_vm3, %v22957_v24, 0.0  ;;  %18171 = vpow2.f32 %v12815_v53 }
0x1613   :  { %v12716_v58 = vpop.xlane.xlu1 %12715  ;;  %v22964_v14 = vpop.eup %18159  ;;  %12865 = vadd.xlane.f32.xlu1 %v12864_v0  ;;  %12868 = vadd.xlane.f32.xlu0 %v12867_v8 }
0x1614   :  { %18173 = vpow2.f32 %v12813_v43  ;;  %v12811_v19 = vmul.f32 1.442695, %v12769_v2  ;;  %v12776_v26 = vsub.f32 %v22795_v10, %v12716_v58  ;;  %v12861_v28 = vsel %vm2504_vm4, %v22964_v14, 0.0 }
0x1615   :  { %v22967_v17 = vpop.eup %18161  ;;  %v12713_v57 = vpop.xlane.xlu0 %12712 }
0x1616   :  { %v12825_v51 = vmul.f32 1.442695, %v12776_v26  ;;  %v12775_v38 = vsub.f32 %v22803_v42, %v12713_v57  ;;  %v12882_v56 = vsel %vm2508_vm3, %v22967_v17, 0.0  ;;  %18175 = vpow2.f32 %v12811_v19 }
0x1617   :  { %v12710_v40 = vpop.xlane.xlu1 %12709  ;;  %v22974_v5 = vpop.eup %18163  ;;  %12883 = vadd.xlane.f32.xlu1 %v12882_v56  ;;  %12862 = vadd.xlane.f32.xlu0 %v12861_v28 }
0x1618   :  { %18177 = vpow2.f32 %v12825_v51  ;;  %v12823_v10 = vmul.f32 1.442695, %v12775_v38  ;;  %v12774_v48 = vsub.f32 %v22809_v35, %v12710_v40  ;;  %v12879_v49 = vsel %vm2504_vm4, %v22974_v5, 0.0 }
0x1619   :  { %v22977_v9 = vpop.eup %18165  ;;  %v12707_v62 = vpop.xlane.xlu0 %12706 }
0x161a   :  { %v12821_v42 = vmul.f32 1.442695, %v12774_v48  ;;  %v12773_v30 = vsub.f32 %v22815_v39, %v12707_v62  ;;  %v12876_v47 = vsel %vm2508_vm3, %v22977_v9, 0.0  ;;  %18179 = vpow2.f32 %v12823_v10 }
0x161b   :  { %v12728_v53 = vpop.xlane.xlu1 %12727  ;;  %v22984_v34 = vpop.eup %18167  ;;  %12877 = vadd.xlane.f32.xlu1 %v12876_v47  ;;  %12880 = vadd.xlane.f32.xlu0 %v12879_v49 }
0x161c   :  { %18181 = vpow2.f32 %v12821_v42  ;;  %v12819_v35 = vmul.f32 1.442695, %v12773_v30  ;;  %v12780_v43 = vsub.f32 %v22811_v1, %v12728_v53  ;;  %v12873_v26 = vsel %vm2504_vm4, %v22984_v34, 0.0 }
0x161d   :  { %v22987_v2 = vpop.eup %18169  ;;  %v12725_v0 = vpop.xlane.xlu0 %12724 }
0x161e   :  { %v12833_v39 = vmul.f32 1.442695, %v12780_v43  ;;  %v12779_v58 = vsub.f32 %v22819_v36, %v12725_v0  ;;  %v12894_v8 = vsel %vm2508_vm3, %v22987_v2, 0.0  ;;  %18183 = vpow2.f32 %v12819_v35 }
0x161f   :  { %v12722_v19 = vpop.xlane.xlu1 %12721  ;;  %v22994_v57 = vpop.eup %18171  ;;  %12895 = vadd.xlane.f32.xlu1 %v12894_v8  ;;  %12874 = vadd.xlane.f32.xlu0 %v12873_v26 }
0x1620   :  { %18185 = vpow2.f32 %v12833_v39  ;;  %v12831_v1 = vmul.f32 1.442695, %v12779_v58  ;;  %v12778_v51 = vsub.f32 %v22825_v7, %v12722_v19  ;;  %v12891_v48 = vsel %vm2504_vm4, %v22994_v57, 0.0 }
0x1621   :  { %v22997_v38 = vpop.eup %18173  ;;  %v12719_v56 = vpop.xlane.xlu0 %12718 }
0x1622   :  { %v12829_v36 = vmul.f32 1.442695, %v12778_v51  ;;  %v12777_v40 = vsub.f32 %v22831_v45, %v12719_v56  ;;  %v12888_v28 = vsel %vm2508_vm3, %v22997_v38, 0.0  ;;  %18187 = vpow2.f32 %v12831_v1 }
0x1623   :  { %v12740_v10 = vpop.xlane.xlu1 %12739  ;;  %v23004_v62 = vpop.eup %18175  ;;  %12889 = vadd.xlane.f32.xlu1 %v12888_v28  ;;  %12892 = vadd.xlane.f32.xlu0 %v12891_v48 }
0x1624   :  { %18189 = vpow2.f32 %v12829_v36  ;;  %v12827_v7 = vmul.f32 1.442695, %v12777_v40  ;;  %v12784_v42 = vsub.f32 %v22827_v32, %v12740_v10  ;;  %v12885_v43 = vsel %vm2504_vm4, %v23004_v62, 0.0 }
0x1625   :  { %v23007_v30 = vpop.eup %18177  ;;  %v12737_v47 = vpop.xlane.xlu0 %12736 }
0x1626   :  { %v12841_v45 = vmul.f32 1.442695, %v12784_v42  ;;  %v12783_v53 = vsub.f32 %v22835_v59, %v12737_v47  ;;  %v12906_v49 = vsel %vm2508_vm3, %v23007_v30, 0.0  ;;  %18191 = vpow2.f32 %v12827_v7 }
0x1627   :  { %v12734_v35 = vpop.xlane.xlu1 %12733  ;;  %v23014_v0 = vpop.eup %18179  ;;  %12907 = vadd.xlane.f32.xlu1 %v12906_v49  ;;  %12886 = vadd.xlane.f32.xlu0 %v12885_v43 }
0x1628   :  { %18193 = vpow2.f32 %v12841_v45  ;;  %v12839_v32 = vmul.f32 1.442695, %v12783_v53  ;;  %v12782_v39 = vsub.f32 %v22841_v37, %v12734_v35  ;;  %v12903_v51 = vsel %vm2504_vm4, %v23014_v0, 0.0 }
0x1629   :  { %v23017_v58 = vpop.eup %18181  ;;  %v12731_v8 = vpop.xlane.xlu0 %12730 }
0x162a   :  { %v12781_v59 = vsub.f32 %v22847_v54, %v12731_v8  ;;  %v12900_v19 = vsel %vm2508_vm3, %v23017_v58, 0.0  ;;  %18195 = vpow2.f32 %v12839_v32  ;;  %v12837_v26 = vmul.f32 1.442695, %v12782_v39 }
0x162b   :  { %v12752_v1 = vpop.xlane.xlu1 %12751  ;;  %v23024_v56 = vpop.eup %18183  ;;  %12901 = vadd.xlane.f32.xlu1 %v12900_v19  ;;  %12904 = vadd.xlane.f32.xlu0 %v12903_v51 }
0x162c   :  { %v12835_v36 = vmul.f32 1.442695, %v12781_v59  ;;  %v12788_v37 = vsub.f32 %v22843_v41, %v12752_v1  ;;  %v12897_v7 = vsel %vm2504_vm4, %v23024_v56, 0.0 }
0x162d   :  { %v23027_v40 = vpop.eup %18185  ;;  %v12749_v28 = vpop.xlane.xlu0 %12748 }
0x162e   :  { %18197 = vpow2.f32 %v12835_v36  ;;  %v12918_v54 = vsel %vm2508_vm3, %v23027_v40, 0.0  ;;  %v12849_v10 = vmul.f32 1.442695, %v12788_v37  ;;  %v12787_v48 = vsub.f32 %v22851_v13, %v12749_v28 }
0x162f   :  { %18199 = vpow2.f32 %v12837_v26  ;;  %v23034_v42 = vpop.eup %18187  ;;  %v12746_v47 = vpop.xlane.xlu1 %12745  ;;  %12919 = vadd.xlane.f32.xlu1 %v12918_v54  ;;  %12898 = vadd.xlane.f32.xlu0 %v12897_v7 }
0x1630   :  { %18201 = vpow2.f32 %v12849_v10  ;;  %v12847_v35 = vmul.f32 1.442695, %v12787_v48  ;;  %v12786_v13 = vsub.f32 %v22857_v60, %v12746_v47  ;;  %v12915_v43 = vsel %vm2504_vm4, %v23034_v42, 0.0 }
0x1631   :  { %v23036_v41 = vpop.eup %18189  ;;  %v12743_v45 = vpop.xlane.xlu0 %12742 }
0x1632   :  { %v12785_v53 = vsub.f32 %v22861_v50, %v12743_v45  ;;  %v12912_v49 = vsel %vm2508_vm3, %v23036_v41, 0.0  ;;  %v12845_v59 = vmul.f32 1.442695, %v12786_v13 }
0x1633   :  { %v23044_v32 = vpop.eup %18191  ;;  %12913 = vadd.xlane.f32.xlu1 %v12912_v49  ;;  %12916 = vadd.xlane.f32.xlu0 %v12915_v43 }
0x1634   :  { %v12843_v39 = vmul.f32 1.442695, %v12785_v53  ;;  %v12909_v60 = vsel %vm2504_vm4, %v23044_v32, 0.0 }
0x1635   :  { %v23046_v8 = vpop.eup %18193 }
0x1636   :  { %18203 = vpow2.f32 %v12843_v39  ;;  %v12930_v50 = vsel %vm2508_vm3, %v23046_v8, 0.0 }
0x1637   :  { %18205 = vpow2.f32 %v12847_v35  ;;  %v12758_v19 = vpop.xlane.xlu1 %12757  ;;  %v23052_v26 = vpop.eup %18195  ;;  %12931 = vadd.xlane.f32.xlu1 %v12930_v50  ;;  %12910 = vadd.xlane.f32.xlu0 %v12909_v60  ;;  %v24227_v60 = vld [vmem:[#allocation66_spill] sm:$0xff] }
0x1638   :  { %v12790_v1 = vsub.f32 %v22865_v33, %v12758_v19  ;;  %18207 = vpow2.f32 %v12845_v59  ;;  %v12927_v54 = vsel %vm2504_vm4, %v23052_v26, 0.0 }
0x1639   :  { %v12755_v51 = vpop.xlane.xlu0 %12754 }
0x163a   :  { %v12789_v36 = vsub.f32 %v22869_v63, %v12755_v51  ;;  %v12853_v28 = vmul.f32 1.442695, %v12790_v1  ;;  %v10868_v1 = vmul.f32 %v22066_v29, %v24227_v60  ;;  %v24228_v51 = vld [vmem:[#allocation67_spill] sm:$0xff] }
0x163b   :  { %v23056_v37 = vpop.eup %18197  ;;  %12928 = vadd.xlane.f32.xlu1 %v12927_v54 }
0x163c   :  { %v23060_v10 = vpop.eup %18199  ;;  %v12851_v48 = vmul.f32 1.442695, %v12789_v36  ;;  %v12921_v7 = vsel %vm2504_vm4, %v23056_v37, 0.0  ;;  %v10869_v36 = vmul.f32 %v22056_v55, %v24228_v51 }
0x163d   :  { %12922 = vadd.xlane.f32.xlu0 %v12921_v7  ;;  %v12924_v33 = vsel %vm2508_vm3, %v23060_v10, 0.0  ;;  %v23066_v63 = vpop.eup %18201 }
0x163e   :  { %18209 = vpow2.f32 %v12851_v48  ;;  %v12942_v45 = vsel %vm2508_vm3, %v23066_v63, 0.0  ;;  %v24230_v48 = vld [vmem:[#allocation65_spill] sm:$0xff] }
0x163f   :  { %18211 = vpow2.f32 %v12853_v28  ;;  %12925 = vadd.xlane.f32.xlu1 %v12924_v33  ;;  %v24229_v28 = vld [vmem:[#allocation61_spill] sm:$0xff]  ;;  %v10867_v7 = vmul.f32 %v22044_v25, %v24230_v48  ;;  %v14776_v33 = vcombine.low %v10868_v1, %v10869_v36 }
0x1640   :  { %v10866_v54 = vmul.f32 %v22062_v22, %v24229_v28  ;;  %v23105_v22 = vpop.permute.xlu1 %14684 }
0x1643   :  { %v23068_v47 = vpop.eup %18203  ;;  %12943 = vadd.xlane.f32.xlu1 %v12942_v45  ;;  %v10870_v45 = vmul.f32 %v22073_v18, %v24229_v28 }
0x1644   :  { %v23072_v53 = vpop.eup %18205  ;;  %v12933_v49 = vsel %vm2504_vm4, %v23068_v47, 0.0 }
0x1645   :  { %12934 = vadd.xlane.f32.xlu0 %v12933_v49  ;;  %v12939_v35 = vsel %vm2504_vm4, %v23072_v53, 0.0  ;;  %v23078_v13 = vpop.eup %18207  ;;  %v14775_v49 = vcombine.low %v10866_v54, %v10867_v7 }
0x1646   :  { %v12936_v39 = vsel %vm2508_vm3, %v23078_v13, 0.0 }
0x1647   :  { %12940 = vadd.xlane.f32.xlu1 %v12939_v35  ;;  %v14790_v35 = vrot.slane %v14776_v33, %v18483_v15  ;;  %v14783_v29 = vrot.slane %v14775_v49, %v18483_v15 }
0x1649   :  { %v14791_v55 = vcombine.low %v14783_v29, %v14790_v35 }
0x164b   :  { %v23080_v43 = vpop.eup %18209  ;;  %12937 = vadd.xlane.f32.xlu1 %v12936_v39  ;;  %v14798_v39 = vrot.slane %v10870_v45, %v18483_v15 }
0x164c   :  { %v23084_v50 = vpop.eup %18211  ;;  %v12945_v59 = vsel %vm2504_vm4, %v23080_v43, 0.0 }
0x164d   :  { %12946 = vadd.xlane.f32.xlu0 %v12945_v59  ;;  %v12948_v19 = vsel %vm2508_vm3, %v23084_v50, 0.0  ;;  %v23107_v59 = vpop.permute.xlu0 %14682 }
0x164f   :  { %12949 = vadd.xlane.f32.xlu1 %v12948_v19 }
0x1660   :  { %14801 = vrot.lane.b32.xlu1 %v14798_v39, %s23958_s5 }
0x1663   :  { %14799 = vrot.lane.b32.xlu0 %v14791_v55, %s23958_s5  ;;  %s18317_s5 = smov 4  }
0x1694   :  { %v12860_v25 = vpop.xlane.xlu1 %12859 }
0x1695   :  { %18213 = vrcp.f32 %v12860_v25 }
0x1698   :  { %v12872_v19 = vpop.xlane.xlu1 %12871  ;;  %v12857_v60 = vpop.xlane.xlu0 %12856 }
0x1699   :  { %18215 = vrcp.f32 %v12857_v60 }
0x169a   :  { %18217 = vrcp.f32 %v12872_v19 }
0x169c   :  { %v12866_v18 = vpop.xlane.xlu1 %12865  ;;  %v12869_v1 = vpop.xlane.xlu0 %12868 }
0x169d   :  { %18219 = vrcp.f32 %v12869_v1 }
0x169e   :  { %18221 = vrcp.f32 %v12866_v18 }
0x16a0   :  { %v12884_v51 = vpop.xlane.xlu1 %12883  ;;  %v12863_v36 = vpop.xlane.xlu0 %12862 }
0x16a1   :  { %18223 = vrcp.f32 %v12863_v36 }
0x16a2   :  { %18225 = vrcp.f32 %v12884_v51  ;;  %v18214_v48 = vpop.eup %18213 }
0x16a3   :  { %v12984_v35 = vmul.f32 %v18214_v48, %v22939_v6 }
0x16a4   :  { %v12878_v28 = vpop.xlane.xlu1 %12877  ;;  %v12881_v54 = vpop.xlane.xlu0 %12880 }
0x16a5   :  { %18227 = vrcp.f32 %v12881_v54 }
0x16a6   :  { %v18216_v7 = vpop.eup %18215  ;;  %18229 = vrcp.f32 %v12878_v28 }
0x16a7   :  { %v12983_v49 = vmul.f32 %v18216_v7, %v22947_v20  ;;  %v18218_v39 = vpop.eup %18217 }
0x16a8   :  { %v12896_v33 = vpop.xlane.xlu1 %12895  ;;  %v12875_v45 = vpop.xlane.xlu0 %12874  ;;  %v12988_v60 = vmul.f32 %v18218_v39, %v22944_v12  ;;  %v24233_v39 = vld [vmem:[#allocation80_spill] sm:$0xff] }
0x16a9   :  { %18231 = vrcp.f32 %v12875_v45  ;;  %17610 = vmatprep.mubr.msk.f32.mxu1 %vm2504_vm4, %v12983_v49 }
0x16aa   :  { %v18220_v29 = vpop.eup %18219  ;;  %17611 = vmatmul.mubr.msk.f32.vlgmr.msra.gmra.mxu1 %vm2504_vm4, %v12984_v35  ;;  %18233 = vrcp.f32 %v12896_v33  ;;  %v24231_v33 = vld [vmem:[#allocation73_spill] sm:$0xff] }
0x16ab   :  { %17614 = vmatpush3.msk.msra.mxu1 %vm2898_vm2, %v22678_v4  ;;  %v12987_v19 = vmul.f32 %v18220_v29, %v22954_v46  ;;  %v18222_v6 = vpop.eup %18221  ;;  %v24234_v29 = vld [vmem:[#allocation76_spill] sm:$0xff] }
0x16ac   :  { %v12890_v55 = vpop.xlane.xlu1 %12889  ;;  %v12893_v25 = vpop.xlane.xlu0 %12892  ;;  %17615 = vmatprep.subr.mxu1 %v22873_v21  ;;  %v12986_v18 = vmul.f32 %v18222_v6, %v22957_v24 }
0x16ad   :  { %17616 = vmatpush3.msra.mxu1 %v22873_v21  ;;  %18235 = vrcp.f32 %v12893_v25  ;;  %17624 = vmatprep.mubr.msk.f32.mxu0 %vm2504_vm4, %v12987_v19 }
0x16ae   :  { %v18224_v20 = vpop.eup %18223  ;;  %17627 = vmatprep.subr.msk.mxu1 %vm2898_vm2, %v22885_v27  ;;  %17625 = vmatmul.mubr.msk.f32.vlgmr.msra.gmra.mxu0 %vm2504_vm4, %v12988_v60  ;;  %18237 = vrcp.f32 %v12890_v55  ;;  %v24235_v60 = vld [vmem:[#allocation77_spill] sm:$0xff] }
0x16af   :  { %17635 = vmatpush3.msk.msra.mxu0 %vm2898_vm2, %v22741_v31  ;;  %v12985_v46 = vmul.f32 %v18224_v20, %v22964_v14  ;;  %v18226_v21 = vpop.eup %18225  ;;  %v24236_v20 = vld [vmem:[#allocation75_spill] sm:$0xff] }
0x16b0   :  { %v12908_v4 = vpop.xlane.xlu1 %12907  ;;  %v12887_v12 = vpop.xlane.xlu0 %12886  ;;  %17636 = vmatprep.subr.mxu0 %v22887_v16  ;;  %v12992_v51 = vmul.f32 %v18226_v21, %v22967_v17  ;;  %v24238_v21 = vld [vmem:[#allocation71_spill] sm:$0xff] }
0x16b1   :  { %17637 = vmatpush3.msra.mxu0 %v22887_v16  ;;  %18239 = vrcp.f32 %v12887_v12  ;;  %17617 = vmatprep.mubr.msk.f32.mxu1 %vm2504_vm4, %v12985_v46  ;;  %v24237_v46 = vld [vmem:[#allocation68_spill] sm:$0xff] }
0x16b2   :  { %v18228_v1 = vpop.eup %18227  ;;  %17648 = vmatprep.subr.msk.mxu0 %vm2898_vm2, %v22898_v11  ;;  %17618 = vmatmul.mubr.msk.f32.vlgmr.msra.gmra.mxu1 %vm2504_vm4, %v12986_v18  ;;  %18241 = vrcp.f32 %v12908_v4 }
0x16b3   :  { %17628 = vmatpush3.msk.msra.mxu1 %vm2898_vm2, %v22885_v27  ;;  %v12991_v14 = vmul.f32 %v18228_v1, %v22974_v5  ;;  %v18230_v16 = vpop.eup %18229 }
0x16b4   :  { %v12902_v31 = vpop.xlane.xlu1 %12901  ;;  %v12905_v24 = vpop.xlane.xlu0 %12904  ;;  %17629 = vmatprep.subr.mxu1 %v22733_v23  ;;  %v12990_v28 = vmul.f32 %v18230_v16, %v22977_v9 }
0x16b5   :  { %17630 = vmatpush3.msra.mxu1 %v22733_v23  ;;  %18243 = vrcp.f32 %v12905_v24  ;;  %17638 = vmatprep.mubr.msk.f32.mxu0 %vm2504_vm4, %v12991_v14  ;;  %v24239_v14 = vld [vmem:[#allocation81_spill] sm:$0xff] }
0x16b6   :  { %v18232_v36 = vpop.eup %18231  ;;  %17641 = vmatprep.subr.msk.mxu1 %vm2898_vm2, %v22893_v52  ;;  %17639 = vmatmul.mubr.msk.f32.vlgmr.msra.gmra.mxu0 %vm2504_vm4, %v12992_v51  ;;  %18245 = vrcp.f32 %v12902_v31 }
0x16b7   :  { %17649 = vmatpush3.msk.msra.mxu0 %vm2898_vm2, %v22898_v11  ;;  %v12989_v5 = vmul.f32 %v18232_v36, %v22984_v34  ;;  %v18234_v23 = vpop.eup %18233  ;;  %v24240_v36 = vld [vmem:[#allocation69_spill] sm:$0xff] }
0x16b8   :  { %v12920_v27 = vpop.xlane.xlu1 %12919  ;;  %v12899_v17 = vpop.xlane.xlu0 %12898  ;;  %17650 = vmatprep.subr.mxu0 %v22900_v3  ;;  %v12996_v48 = vmul.f32 %v18234_v23, %v22987_v2  ;;  %v24241_v23 = vld [vmem:[#allocation74_spill] sm:$0xff] }
0x16b9   :  { %17651 = vmatpush3.msra.mxu0 %v22900_v3  ;;  %18247 = vrcp.f32 %v12899_v17  ;;  %17631 = vmatprep.mubr.msk.f32.mxu1 %vm2504_vm4, %v12989_v5 }
0x16ba   :  { %v18236_v54 = vpop.eup %18235  ;;  %17662 = vmatprep.subr.msk.mxu0 %vm2898_vm2, %v22906_v61  ;;  %17632 = vmatmul.mubr.msk.f32.vlgmr.msra.gmra.mxu1 %vm2504_vm4, %v12990_v28  ;;  %18249 = vrcp.f32 %v12920_v27 }
0x16bb   :  { %17642 = vmatpush3.msk.msra.mxu1 %vm2898_vm2, %v22893_v52  ;;  %v12995_v34 = vmul.f32 %v18236_v54, %v22994_v57  ;;  %v18238_v3 = vpop.eup %18237 }
0x16bc   :  { %v12914_v11 = vpop.xlane.xlu1 %12913  ;;  %v12917_v9 = vpop.xlane.xlu0 %12916  ;;  %17643 = vmatprep.subr.mxu1 %v22895_v44  ;;  %v12994_v45 = vmul.f32 %v18238_v3, %v22997_v38 }
0x16bd   :  { %17644 = vmatpush3.msra.mxu1 %v22895_v44  ;;  %18251 = vrcp.f32 %v12917_v9  ;;  %17652 = vmatprep.mubr.msk.f32.mxu0 %vm2504_vm4, %v12995_v34  ;;  %v24232_v44 = vld [vmem:[#allocation79_spill] sm:$0xff]  ;;  %v24244_v34 = vld [vmem:[#allocation4_spill] sm:$0xff] }
0x16be   :  { %v18240_v7 = vpop.eup %18239  ;;  %17655 = vmatprep.subr.msk.mxu1 %vm2898_vm2, %v24231_v33  ;;  %17653 = vmatmul.mubr.msk.f32.vlgmr.msra.gmra.mxu0 %vm2504_vm4, %v12996_v48  ;;  %18253 = vrcp.f32 %v12914_v11 }
0x16bf   :  { %17663 = vmatpush3.msk.msra.mxu0 %vm2898_vm2, %v22906_v61  ;;  %v12993_v57 = vmul.f32 %v18240_v7, %v23004_v62  ;;  %v18242_v49 = vpop.eup %18241 }
0x16c0   :  { %v12932_v52 = vpop.xlane.xlu1 %12931  ;;  %v12911_v2 = vpop.xlane.xlu0 %12910  ;;  %17664 = vmatprep.subr.mxu0 %v24232_v44  ;;  %v13000_v62 = vmul.f32 %v18242_v49, %v23007_v30 }
0x16c1   :  { %17665 = vmatpush3.msra.mxu0 %v24232_v44  ;;  %18255 = vrcp.f32 %v12911_v2  ;;  %17645 = vmatprep.mubr.msk.f32.mxu1 %vm2504_vm4, %v12993_v57 }
0x16c2   :  { %v18244_v35 = vpop.eup %18243  ;;  %17676 = vmatprep.subr.msk.mxu0 %vm2898_vm2, %v24233_v39  ;;  %17646 = vmatmul.mubr.msk.f32.vlgmr.msra.gmra.mxu1 %vm2504_vm4, %v12994_v45  ;;  %18257 = vrcp.f32 %v12932_v52 }
0x16c3   :  { %17656 = vmatpush3.msk.msra.mxu1 %vm2898_vm2, %v24231_v33  ;;  %v12999_v38 = vmul.f32 %v18244_v35, %v23014_v0  ;;  %v18246_v25 = vpop.eup %18245 }
0x16c4   :  { %v12929_v61 = vpop.xlane.xlu1 %12928  ;;  %17657 = vmatprep.subr.mxu1 %v24234_v29  ;;  %v12998_v6 = vmul.f32 %v18246_v25, %v23017_v58 }
0x16c5   :  { %18259 = vrcp.f32 %v12929_v61  ;;  %17658 = vmatpush3.msra.mxu1 %v24234_v29  ;;  %17666 = vmatprep.mubr.msk.f32.mxu0 %vm2504_vm4, %v12999_v38 }
0x16c6   :  { %v12923_v55 = vpop.xlane.xlu0 %12922  ;;  %v18248_v19 = vpop.eup %18247  ;;  %17669 = vmatprep.subr.msk.mxu1 %vm2898_vm2, %v24235_v60  ;;  %17667 = vmatmul.mubr.msk.f32.vlgmr.msra.gmra.mxu0 %vm2504_vm4, %v13000_v62 }
0x16c7   :  { %18261 = vrcp.f32 %v12923_v55  ;;  %17677 = vmatpush3.msk.msra.mxu0 %vm2898_vm2, %v24233_v39  ;;  %v12997_v0 = vmul.f32 %v18248_v19, %v23024_v56  ;;  %v18250_v4 = vpop.eup %18249 }
0x16c8   :  { %v12926_v30 = vpop.xlane.xlu1 %12925  ;;  %17678 = vmatprep.subr.mxu0 %v24236_v20  ;;  %v13004_v18 = vmul.f32 %v18250_v4, %v23027_v40 }
0x16c9   :  { %18263 = vrcp.f32 %v12926_v30  ;;  %17679 = vmatpush3.msra.mxu0 %v24236_v20  ;;  %17659 = vmatprep.mubr.msk.f32.mxu1 %vm2504_vm4, %v12997_v0 }
0x16ca   :  { %v18252_v12 = vpop.eup %18251  ;;  %17690 = vmatprep.subr.msk.mxu0 %vm2898_vm2, %v24237_v46  ;;  %17660 = vmatmul.mubr.msk.f32.vlgmr.msra.gmra.mxu1 %vm2504_vm4, %v12998_v6 }
0x16cb   :  { %17670 = vmatpush3.msk.msra.mxu1 %vm2898_vm2, %v24235_v60  ;;  %v13003_v58 = vmul.f32 %v18252_v12, %v23034_v42  ;;  %v18254_v31 = vpop.eup %18253 }
0x16cc   :  { %v12944_v56 = vpop.xlane.xlu1 %12943  ;;  %17671 = vmatprep.subr.mxu1 %v24238_v21  ;;  %v13002_v16 = vmul.f32 %v18254_v31, %v23036_v41 }
0x16cd   :  { %17672 = vmatpush3.msra.mxu1 %v24238_v21  ;;  %17680 = vmatprep.mubr.msk.f32.mxu0 %vm2504_vm4, %v13003_v58 }
0x16ce   :  { %v12935_v1 = vpop.xlane.xlu0 %12934  ;;  %v18256_v24 = vpop.eup %18255  ;;  %17683 = vmatprep.subr.msk.mxu1 %vm2898_vm2, %v24239_v14  ;;  %17681 = vmatmul.mubr.msk.f32.vlgmr.msra.gmra.mxu0 %vm2504_vm4, %v13004_v18 }
0x16cf   :  { %18265 = vrcp.f32 %v12935_v1  ;;  %17691 = vmatpush3.msk.msra.mxu0 %vm2898_vm2, %v24237_v46  ;;  %v13001_v42 = vmul.f32 %v18256_v24, %v23044_v32  ;;  %v18258_v51 = vpop.eup %18257 }
0x16d0   :  { %18267 = vrcp.f32 %v12944_v56  ;;  %v12941_v40 = vpop.xlane.xlu1 %12940  ;;  %17692 = vmatprep.subr.mxu0 %v24240_v36  ;;  %v13008_v32 = vmul.f32 %v18258_v51, %v23046_v8 }
0x16d1   :  { %18269 = vrcp.f32 %v12941_v40  ;;  %17693 = vmatpush3.msra.mxu0 %v24240_v36  ;;  %17673 = vmatprep.mubr.msk.f32.mxu1 %vm2504_vm4, %v13001_v42 }
0x16d2   :  { %v18260_v27 = vpop.eup %18259  ;;  %17704 = vmatprep.subr.msk.mxu0 %vm2898_vm2, %v23105_v22  ;;  %17674 = vmatmul.mubr.msk.f32.vlgmr.msra.gmra.mxu1 %vm2504_vm4, %v13002_v16 }
0x16d3   :  { %v13007_v5 = vmul.f32 %v18260_v27, %v23052_v26  ;;  %17684 = vmatpush3.msk.msra.mxu1 %vm2898_vm2, %v24239_v14  ;;  %v24242_v26 = vld [vmem:[#allocation70_spill] sm:$0xff] }
0x16d4   :  { %v18262_v17 = vpop.eup %18261  ;;  %v12938_v41 = vpop.xlane.xlu1 %12937  ;;  %17685 = vmatprep.subr.mxu1 %v24241_v23 }
0x16d5   :  { %v13005_v28 = vmul.f32 %v18262_v17, %v23056_v37  ;;  %18271 = vrcp.f32 %v12938_v41  ;;  %17694 = vmatprep.mubr.msk.f32.mxu0 %vm2504_vm4, %v13007_v5  ;;  %17686 = vmatpush3.msra.mxu1 %v24241_v23 }
0x16d6   :  { %v12947_v54 = vpop.xlane.xlu0 %12946  ;;  %v18264_v11 = vpop.eup %18263  ;;  %17695 = vmatmul.mubr.msk.f32.vlgmr.msra.gmra.mxu0 %vm2504_vm4, %v13008_v32  ;;  %17697 = vmatprep.subr.msk.mxu1 %vm2898_vm2, %v24242_v26 }
0x16d7   :  { %18273 = vrcp.f32 %v12947_v54  ;;  %v13006_v8 = vmul.f32 %v18264_v11, %v23060_v10  ;;  %17705 = vmatpush3.msk.msra.mxu0 %vm2898_vm2, %v23105_v22  ;;  %17687 = vmatprep.mubr.msk.f32.mxu1 %vm2504_vm4, %v13005_v28  ;;  %v24243_v10 = vmov 0.0  }
0x16d8   :  { %17706 = vmatprep.subr.mxu0 %v23107_v59  ;;  %v12950_v37 = vpop.xlane.xlu1 %12949 }
0x16d9   :  { %18275 = vrcp.f32 %v12950_v37  ;;  %17707 = vmatpush3.msra.mxu0 %v23107_v59  ;;  %17688 = vmatmul.mubr.msk.f32.vlgmr.msra.gmra.mxu1 %vm2504_vm4, %v13006_v8 }
0x16da   :  { %17698 = vmatpush3.msk.msra.mxu1 %vm2898_vm2, %v24242_v26  ;;  %17718 = vmatprep.subr.mxu0 %v24243_v10  ;;  %v14800_v44 = vpop.permute.xlu0 %14799 }
0x16db   :  { %17699 = vmatprep.subr.mxu1 %v24244_v34 }
0x16dc   :  { %v18266_v9 = vpop.eup %18265  ;;  %17700 = vmatpush3.msra.mxu1 %v24244_v34  ;;  %v14802_v22 = vpop.permute.xlu1 %14801 }
0x16dd   :  { %v13009_v48 = vmul.f32 %v18266_v9, %v23068_v47  ;;  %v18268_v3 = vpop.eup %18267  ;;  %17711 = vmatprep.subr.msk.mxu1 %vm2898_vm2, %v14802_v22 }
0x16de   :  { %v18270_v7 = vpop.eup %18269  ;;  %v13012_v33 = vmul.f32 %v18268_v3, %v23066_v63 }
0x16df   :  { %17701 = vmatprep.mubr.msk.f32.mxu1 %vm2504_vm4, %v13009_v48  ;;  %v13011_v59 = vmul.f32 %v18270_v7, %v23072_v53  ;;  %v16213_v53 = vld [vmem:[%s23935_s28 + $0x58] sm:$0xff] }
0x16e1   :  { %17708 = vmatprep.mubr.msk.f32.mxu0 %vm2504_vm4, %v13011_v59 }
0x16e2   :  { %v18272_v52 = vpop.eup %18271  ;;  %17709 = vmatmul.mubr.msk.f32.vlgmr.msra.gmra.mxu0 %vm2504_vm4, %v13012_v33 }
0x16e3   :  { %v13010_v57 = vmul.f32 %v18272_v52, %v23078_v13  ;;  %17726 = vmatprep.mubr.msk.f32.mxu0 %vm18311_vm0, %v24243_v10  ;;  %v16212_v13 = vld [vmem:[%s23935_s28 + $0x50] sm:$0xff]  ;;  %17719 = vmatpush3.msra.mxu0 %v16213_v53 }
0x16e4   :  { %v18274_v2 = vpop.eup %18273  ;;  %17720 = vmatprep.subr.mxu0 %v24243_v10 }
0x16e5   :  { %v13013_v47 = vmul.f32 %v18274_v2, %v23080_v43  ;;  %17702 = vmatmul.mubr.msk.f32.vlgmr.msra.gmra.mxu1 %vm2504_vm4, %v13010_v57  ;;  %v16211_v43 = vld [vmem:[%s23935_s28 + $0x48] sm:$0xff]  ;;  %17721 = vmatpush3.msra.mxu0 %v16212_v13 }
0x16e6   :  { %v18276_v45 = vpop.eup %18275  ;;  %17712 = vmatpush3.msk.msra.mxu1 %vm2898_vm2, %v14802_v22  ;;  %17722 = vmatprep.subr.mxu0 %v24243_v10  ;;  %vm15772_vm2 = vcmask 60416  }
0x16e7   :  { %17715 = vmatprep.mubr.msk.f32.mxu1 %vm2504_vm4, %v13013_v47  ;;  %v13014_v63 = vmul.f32 %v18276_v45, %v23084_v50  ;;  %17713 = vmatprep.subr.mxu1 %v14800_v44  ;;  %v16210_v50 = vld [vmem:[%s23935_s28 + $0x40] sm:$0xff]  ;;  %s24252_s28 = sld [smem:[#allocation97_spill]] }
0x16e8   :  { %17714 = vmatpush3.msra.mxu1 %v14800_v44  ;;  %17723 = vmatpush3.msra.mxu0 %v16211_v43 }
0x16e9   :  { %17716 = vmatmul.mubr.msk.f32.vlgmr.msra.gmra.mxu1 %vm2504_vm4, %v13014_v63  ;;  %17735 = vmatprep.subr.mxu1 %v24243_v10 }
0x16ea   :  { %17743 = vmatprep.mubr.msk.f32.mxu1 %vm18311_vm0, %v24243_v10  ;;  %17724 = vmatprep.subr.mxu0 %v24243_v10 }
0x16eb   :  { %17725 = vmatpush3.msra.mxu0 %v16210_v50 }
0x16ec   :  { %17752 = vmatprep.subr.mxu0 %v24243_v10 }
0x176a   :  { %v17612_v49 = vpop.f32.mrf.mxu1 }
0x176c   :  { %v13123_v35 = vpop.f32.mrf.mxu1 }
0x176e   :  { %v17626_v38 = vpop.f32.mrf.mxu0 }
0x1770   :  { %v13357_v55 = vpop.f32.mrf.mxu0 }
0x1772   :  { %v17619_v39 = vpop.f32.mrf.mxu1 }
0x1773   :  { %v14888_v5 = vadd.f32 %v17619_v39, %v17612_v49 }
0x1774   :  { %v13240_v61 = vpop.f32.mrf.mxu1 }
0x1775   :  { %v14887_v29 = vadd.f32 %v13240_v61, %v13123_v35  ;;  %v14892_v8 = vadd.f32 %v17626_v38, %v14888_v5 }
0x1776   :  { %v17640_v60 = vpop.f32.mrf.mxu0 }
0x1777   :  { %v14891_v19 = vadd.f32 %v14887_v29, %v13357_v55 }
0x1778   :  { %v13591_v6 = vpop.f32.mrf.mxu0 }
0x177a   :  { %v17633_v62 = vpop.f32.mrf.mxu1 }
0x177b   :  { %v14896_v34 = vadd.f32 %v17633_v62, %v14892_v8 }
0x177c   :  { %v13474_v25 = vpop.f32.mrf.mxu1 }
0x177d   :  { %v14895_v30 = vadd.f32 %v14891_v19, %v13474_v25  ;;  %v14900_v59 = vadd.f32 %v17640_v60, %v14896_v34 }
0x177e   :  { %v17654_v12 = vpop.f32.mrf.mxu0 }
0x177f   :  { %v14899_v4 = vadd.f32 %v14895_v30, %v13591_v6 }
0x1780   :  { %v13825_v56 = vpop.f32.mrf.mxu0 }
0x1782   :  { %v17647_v0 = vpop.f32.mrf.mxu1 }
0x1783   :  { %v14904_v57 = vadd.f32 %v17647_v0, %v14900_v59 }
0x1784   :  { %v13708_v20 = vpop.f32.mrf.mxu1 }
0x1785   :  { %v14903_v46 = vadd.f32 %v14899_v4, %v13708_v20  ;;  %v14908_v13 = vadd.f32 %v17654_v12, %v14904_v57 }
0x1786   :  { %v17668_v42 = vpop.f32.mrf.mxu0 }
0x1787   :  { %v14907_v18 = vadd.f32 %v14903_v46, %v13825_v56 }
0x1788   :  { %v14059_v17 = vpop.f32.mrf.mxu0 }
0x178a   :  { %v17661_v58 = vpop.f32.mrf.mxu1 }
0x178b   :  { %v14912_v39 = vadd.f32 %v17661_v58, %v14908_v13 }
0x178c   :  { %v13942_v21 = vpop.f32.mrf.mxu1 }
0x178d   :  { %v14911_v1 = vadd.f32 %v14907_v18, %v13942_v21  ;;  %v14942_v55 = vrot.slane %v14912_v39, %v18483_v15 }
0x178e   :  { %v17682_v28 = vpop.f32.mrf.mxu0 }
0x178f   :  { %v14919_v31 = vcombine.high %v14911_v1, %v14911_v1  ;;  %v14926_v24 = vrot.slane %v14911_v1, %v18483_v15  ;;  %v16215_v1 = vld [vmem:[%s23936_s26 + $0x2] ss:$0 sm:$0xff] }
0x1790   :  { %v14293_v9 = vpop.f32.mrf.mxu0 }
0x1791   :  { %v14933_v14 = vrot.slane %v14919_v31, %v18483_v15  ;;  %v14934_v40 = vcombine.high %v14926_v24, %v14926_v24 }
0x1792   :  { %v17675_v36 = vpop.f32.mrf.mxu1 }
0x1793   :  { %v14935_v51 = vcombine.high %v14933_v14, %v14933_v14  ;;  %v14980_v16 = vcombine.low %v14926_v24, %v14934_v40  ;;  %v14890_v26 = vadd.f32 %v17675_v36, %v17668_v42  ;;  %v18307_v40 = vld [vmem:[%s23822_s25] sm:$0xff] }
0x1794   :  { %v14176_v23 = vpop.f32.mrf.mxu1 }
0x1795   :  { %v14981_v27 = vcombine.low %v14933_v14, %v14935_v51  ;;  %v14988_v32 = vrot.slane %v14980_v16, %v18483_v15  ;;  %v14889_v37 = vadd.f32 %v14176_v23, %v14059_v17  ;;  %v14894_v3 = vadd.f32 %v17682_v28, %v14890_v26  ;;  %v18309_v23 = vld [vmem:[%s23822_s25 + $0x10] sm:$0xf] }
0x1796   :  { %v17696_v22 = vpop.f32.mrf.mxu0 }
0x1797   :  { %v14995_v41 = vrot.slane %v14981_v27, %v18483_v15  ;;  %v14893_v7 = vadd.f32 %v14889_v37, %v14293_v9  ;;  %v18308_v27 = vld [vmem:[%s23822_s25 + $0x8] sm:$0xff] }
0x1798   :  { %v14527_v2 = vpop.f32.mrf.mxu0 }
0x1799   :  { %v14996_v54 = vcombine.low %v14988_v32, %v14995_v41  ;;  %v17689_v11 = vpop.f32.mrf.mxu1 }
0x179a   :  { %v14898_v33 = vadd.f32 %v17689_v11, %v14894_v3 }
0x179b   :  { %17727 = vmatmul.mubr.msk.f32.vlgmr.msra.gmra.mxu0 %vm103_vm1, %v14996_v54  ;;  %v14410_v48 = vpop.f32.mrf.mxu1 }
0x179c   :  { %17729 = vmatprep.mubr.msk.f32.mxu0 %vm18311_vm0, %v24243_v10  ;;  %v14897_v52 = vadd.f32 %v14893_v7, %v14410_v48  ;;  %v14902_v44 = vadd.f32 %v17696_v22, %v14898_v33 }
0x179e   :  { %v14901_v63 = vadd.f32 %v14897_v52, %v14527_v2 }
0x17a2   :  { %v17710_v47 = vpop.f32.mrf.mxu0 }
0x17a4   :  { %v14761_v49 = vpop.f32.mrf.mxu0 }
0x17a5   :  { %v17703_v45 = vpop.f32.mrf.mxu1 }
0x17a6   :  { %v14906_v43 = vadd.f32 %v17703_v45, %v14902_v44  ;;  %v16225_v45 = vld [vmem:[%s23937_s1 + $0x50] sm:$0xff] }
0x17a7   :  { %v14644_v53 = vpop.f32.mrf.mxu1 }
0x17a8   :  { %v14905_v50 = vadd.f32 %v14901_v63, %v14644_v53  ;;  %v14910_v62 = vadd.f32 %v17710_v47, %v14906_v43  ;;  %v16226_v47 = vld [vmem:[%s23937_s1 + $0x58] sm:$0xff]  ;;  %v16224_v63 = vld [vmem:[%s23937_s1 + $0x48] sm:$0xff]  ;;  %v16223_v53 = vld [vmem:[%s23937_s1 + $0x40] sm:$0xff] }
0x17a9   :  { %v17717_v35 = vpop.f32.mrf.mxu1  ;;  %17736 = vmatpush3.msra.mxu1 %v16226_v47 }
0x17aa   :  { %v14909_v61 = vadd.f32 %v14905_v50, %v14761_v49  ;;  %v14914_v60 = vadd.f32 %v17717_v35, %v14910_v62  ;;  %17737 = vmatprep.subr.mxu1 %v24243_v10  ;;  %v16221_v35 = vld [vmem:[%s23938_s8 + $0x2] ss:$0 sm:$0xff] }
0x17ab   :  { %v14878_v38 = vpop.f32.mrf.mxu1  ;;  %17738 = vmatpush3.msra.mxu1 %v16225_v45 }
0x17ac   :  { %v14913_v29 = vadd.f32 %v14909_v61, %v14878_v38  ;;  %v14966_v12 = vrot.slane %v14914_v60, %v18483_v15  ;;  %17739 = vmatprep.subr.mxu1 %v24243_v10  ;;  %v16222_v61 = vld [vmem:[%s23939_s6 + $0x2] ss:$0 sm:$0xff] }
0x17ad   :  { %17740 = vmatpush3.msra.mxu1 %v16224_v63 }
0x17ae   :  { %v14943_v25 = vcombine.high %v14913_v29, %v14913_v29  ;;  %v14950_v19 = vrot.slane %v14913_v29, %v18483_v15  ;;  %17741 = vmatprep.subr.mxu1 %v24243_v10 }
0x17af   :  { %17742 = vmatpush3.msra.mxu1 %v16223_v53 }
0x17b0   :  { %v14957_v30 = vrot.slane %v14943_v25, %v18483_v15  ;;  %v14958_v0 = vcombine.high %v14950_v19, %v14950_v19  ;;  %v14997_v6 = vcombine.low %v14942_v55, %v14950_v19  ;;  %17793 = vmatprep.subr.mxu1 %v24243_v10 }
0x17b2   :  { %v14959_v20 = vcombine.high %v14957_v30, %v14957_v30  ;;  %v14998_v4 = vcombine.low %v14958_v0, %v14957_v30  ;;  %v15005_v46 = vrot.slane %v14997_v6, %v18483_v15 }
0x17b4   :  { %v15012_v56 = vrot.slane %v14998_v4, %v18483_v15  ;;  %v15014_v18 = vcombine.low %v14959_v20, %v14966_v12 }
0x17b6   :  { %v15013_v58 = vcombine.low %v15005_v46, %v15012_v56  ;;  %v15021_v21 = vrot.slane %v15014_v18, %v18483_v15  ;;  %v16247_v18 = vld [vmem:[%s23551_s10 + $0x178] sm:$0xff] }
0x17b7   :  { %17753 = vmatpush3.msra.mxu0 %v16247_v18 }
0x17b8   :  { %17730 = vmatmul.mubr.msk.f32.gmra.mxu0 %vm103_vm1, %v15013_v58  ;;  %17754 = vmatprep.subr.mxu0 %v24243_v10 }
0x17b9   :  { %17732 = vmatprep.mubr.msk.f32.mxu0 %vm18311_vm0, %v24243_v10 }
0x17bc   :  { %17733 = vmatmul.mubr.msk.f32.gmra.mxu0 %vm103_vm1, %v15021_v21  ;;  %v16246_v21 = vld [vmem:[%s23551_s10 + $0x170] sm:$0xff] }
0x17bd   :  { %17784 = vmatprep.mubr.msk.f32.mxu0 %vm18311_vm0, %v24243_v10  ;;  %17755 = vmatpush3.msra.mxu0 %v16246_v21 }
0x17be   :  { %17756 = vmatprep.subr.mxu0 %v24243_v10 }
0x185b   :  { %v15094_v31 = vpop.f32.mrf.mxu0 }
0x185c   :  { %v15095_v24 = vadd.f32 %v16215_v1, %v15094_v31  ;;  %v16244_v31 = vld [vmem:[%s23551_s10 + $0x160] sm:$0xff] }
0x185d   :  { %v17728_v14 = vpop.f32.mrf.mxu0 }
0x185e   :  { %v15108_v42 = vadd.f32 %v18307_v40, %v15095_v24  ;;  %v16243_v24 = vld [vmem:[%s23551_s10 + $0x158] sm:$0xff]  ;;  %v16242_v14 = vld [vmem:[%s23551_s10 + $0x150] sm:$0xff]  ;;  %v16241_v40 = vld [vmem:[%s23551_s10 + $0x148] sm:$0xff] }
0x1860   :  { %v15115_v51 = vsel %vm103_vm1, %v15108_v42, 0.0 }
0x1861   :  { %15116 = vadd.xlane.f32.xlu1 %v15115_v51  ;;  %v16239_v51 = vld [vmem:[%s23551_s10 + $0x138] sm:$0xff] }
0x1878   :  { %v15099_v15 = vpop.f32.mrf.mxu0 }
0x1879   :  { %v15100_v16 = vadd.f32 %v16215_v1, %v15099_v15  ;;  %v16238_v15 = vld [vmem:[%s23551_s10 + $0x130] sm:$0xff] }
0x187a   :  { %v17731_v36 = vpop.f32.mrf.mxu0 }
0x187b   :  { %v15109_v17 = vadd.f32 %v18308_v27, %v15100_v16  ;;  %v16237_v16 = vld [vmem:[%s23551_s10 + $0x128] sm:$0xff]  ;;  %v16236_v36 = vld [vmem:[%s23551_s10 + $0x120] sm:$0xff]  ;;  %v16235_v27 = vld [vmem:[%s23551_s10 + $0x118] sm:$0xff] }
0x187c   :  { %v15104_v5 = vpop.f32.mrf.mxu0 }
0x187d   :  { %v15105_v32 = vadd.f32 %v16215_v1, %v15104_v5  ;;  %v15118_v41 = vsel %vm103_vm1, %v15109_v17, 0.0  ;;  %v16245_v1 = vld [vmem:[%s23551_s10 + $0x168] sm:$0xff] }
0x187e   :  { %15119 = vadd.xlane.f32.xlu0 %v15118_v41  ;;  %v17734_v28 = vpop.f32.mrf.mxu0  ;;  %17757 = vmatpush3.msra.mxu0 %v16245_v1  ;;  %v16233_v5 = vld [vmem:[%s23551_s10 + $0x108] sm:$0xff]  ;;  %v16228_v41 = vld [vmem:[%s23552_s9 + $0x2] ss:$0 sm:$0xff] }
0x187f   :  { %v15110_v54 = vadd.f32 %v18309_v23, %v15105_v32  ;;  %17758 = vmatprep.subr.mxu0 %v24243_v10  ;;  %v16232_v32 = vld [vmem:[%s23551_s10 + $0x100] sm:$0xff] }
0x1880   :  { %17759 = vmatpush3.msra.mxu0 %v16244_v31 }
0x1881   :  { %v15121_v11 = vsel %vm4961_vm5, %v15110_v54, 0.0  ;;  %17760 = vmatprep.subr.mxu0 %v24243_v10 }
0x1882   :  { %15122 = vadd.xlane.f32.xlu0 %v15121_v11  ;;  %17761 = vmatpush3.msra.mxu0 %v16243_v24 }
0x1883   :  { %17762 = vmatprep.subr.mxu0 %v24243_v10 }
0x1884   :  { %17763 = vmatpush3.msra.mxu0 %v16242_v14 }
0x1885   :  { %17764 = vmatprep.subr.mxu0 %v24243_v10 }
0x1886   :  { %17765 = vmatpush3.msra.mxu0 %v16241_v40 }
0x1887   :  { %17766 = vmatprep.subr.mxu0 %v24243_v10 }
0x18ea   :  { %v15117_v8 = vpop.xlane.xlu1 %15116 }
0x18eb   :  { %v15124_v26 = vmul.f32 0.03125, %v15117_v8 }
0x18ed   :  { %v15127_v37 = vsub.f32 %v15108_v42, %v15124_v26  ;;  %v16240_v42 = vld [vmem:[%s23551_s10 + $0x140] sm:$0xff] }
0x18ee   :  { %17767 = vmatpush3.msra.mxu0 %v16240_v42 }
0x18ef   :  { %v15130_v9 = vmul.f32 %v15127_v37, %v15127_v37  ;;  %17768 = vmatprep.subr.mxu0 %v24243_v10 }
0x18f0   :  { %17769 = vmatpush3.msra.mxu0 %v16239_v51 }
0x18f1   :  { %v15133_v34 = vsel %vm103_vm1, %v15130_v9, 0.0  ;;  %17770 = vmatprep.subr.mxu0 %v24243_v10 }
0x18f2   :  { %15134 = vadd.xlane.f32.xlu1 %v15133_v34  ;;  %17771 = vmatpush3.msra.mxu0 %v16238_v15 }
0x18f3   :  { %17772 = vmatprep.subr.mxu0 %v24243_v10 }
0x18f4   :  { %17773 = vmatpush3.msra.mxu0 %v16237_v16 }
0x18f5   :  { %17774 = vmatprep.subr.mxu0 %v24243_v10 }
0x18f6   :  { %17775 = vmatpush3.msra.mxu0 %v16236_v36 }
0x18f7   :  { %17776 = vmatprep.subr.mxu0 %v24243_v10 }
0x18f8   :  { %17777 = vmatpush3.msra.mxu0 %v16235_v27 }
0x18f9   :  { %17778 = vmatprep.subr.mxu0 %v24243_v10 }
0x1907   :  { %v15120_v22 = vpop.xlane.xlu0 %15119 }
0x1908   :  { %v15125_v48 = vmul.f32 0.03125, %v15120_v22 }
0x190a   :  { %v15128_v3 = vsub.f32 %v15109_v17, %v15125_v48  ;;  %v16234_v17 = vld [vmem:[%s23551_s10 + $0x110] sm:$0xff] }
0x190b   :  { %v15123_v7 = vpop.xlane.xlu0 %15122  ;;  %17779 = vmatpush3.msra.mxu0 %v16234_v17 }
0x190c   :  { %v15126_v59 = vmul.f32 0.03125, %v15123_v7  ;;  %v15131_v33 = vmul.f32 %v15128_v3, %v15128_v3  ;;  %17780 = vmatprep.subr.mxu0 %v24243_v10 }
0x190d   :  { %17781 = vmatpush3.msra.mxu0 %v16233_v5 }
0x190e   :  { %v15129_v52 = vsub.f32 %v15110_v54, %v15126_v59  ;;  %v15136_v2 = vsel %vm103_vm1, %v15131_v33, 0.0  ;;  %17782 = vmatprep.subr.mxu0 %v24243_v10 }
0x190f   :  { %15137 = vadd.xlane.f32.xlu0 %v15136_v2  ;;  %17783 = vmatpush3.msra.mxu0 %v16232_v32 }
0x1910   :  { %v15132_v57 = vmul.f32 %v15129_v52, %v15129_v52 }
0x1912   :  { %v15139_v44 = vsel %vm4961_vm5, %v15132_v57, 0.0 }
0x1913   :  { %15140 = vadd.xlane.f32.xlu1 %v15139_v44 }
0x197b   :  { %v15135_v13 = vpop.xlane.xlu1 %15134 }
0x197c   :  { %v15142_v43 = vmul.f32 0.03125, %v15135_v13 }
0x197e   :  { %v15145_v50 = vadd.f32 1e-12, %v15142_v43 }
0x1980   :  { %18277 = vrsqrt.f32 %v15145_v50 }
0x198d   :  { %v18278_v49 = vpop.eup %18277 }
0x198e   :  { %v15151_v39 = vmul.f32 %v18278_v49, %v15127_v37 }
0x1990   :  { %v15160_v38 = vmul.f32 %v16221_v35, %v15151_v39 }
0x1992   :  { %v23331_v62 = vadd.f32 %v16222_v61, %v15160_v38 }
0x1994   :  { %17744 = vmatmul.mubr.msk.f32.vlgmr.msra.gmra.mxu1 %vm103_vm1, %v23331_v62 }
0x1995   :  { %17746 = vmatprep.mubr.msk.f32.mxu1 %vm18311_vm0, %v24243_v10 }
0x1998   :  { %v15138_v29 = vpop.xlane.xlu0 %15137 }
0x1999   :  { %v15143_v55 = vmul.f32 0.03125, %v15138_v29 }
0x199b   :  { %v15146_v25 = vadd.f32 1e-12, %v15143_v55 }
0x199c   :  { %v15141_v19 = vpop.xlane.xlu1 %15140 }
0x199d   :  { %18279 = vrsqrt.f32 %v15146_v25  ;;  %v15144_v60 = vmul.f32 0.03125, %v15141_v19 }
0x199f   :  { %v15147_v30 = vadd.f32 1e-12, %v15144_v60 }
0x19a1   :  { %18281 = vrsqrt.f32 %v15147_v30 }
0x19aa   :  { %v18280_v0 = vpop.eup %18279 }
0x19ab   :  { %v15152_v6 = vmul.f32 %v18280_v0, %v15128_v3 }
0x19ad   :  { %v15161_v20 = vmul.f32 %v16221_v35, %v15152_v6  ;;  %v24245_v6 = vmov -1.0  }
0x19ae   :  { %v18282_v4 = vpop.eup %18281 }
0x19af   :  { %v15153_v12 = vmul.f32 %v18282_v4, %v15129_v52  ;;  %v23337_v46 = vadd.f32 %v16222_v61, %v15161_v20 }
0x19b1   :  { %17747 = vmatmul.mubr.msk.f32.gmra.mxu1 %vm103_vm1, %v23337_v46  ;;  %v15162_v56 = vmul.f32 %v16221_v35, %v15153_v12 }
0x19b2   :  { %17749 = vmatprep.mubr.msk.f32.mxu1 %vm18311_vm0, %v24243_v10 }
0x19b3   :  { %v23343_v58 = vadd.f32 %v16222_v61, %v15162_v56 }
0x19b5   :  { %17750 = vmatmul.mubr.msk.f32.gmra.mxu1 %vm103_vm1, %v23343_v58 }
0x19b6   :  { %17801 = vmatprep.mubr.msk.f32.mxu1 %vm18311_vm0, %v24243_v10 }
0x1a54   :  { %v15260_v28 = vpop.f32.mrf.mxu1 }
0x1a55   :  { %v15261_v23 = vadd.f32 %v16228_v41, %v15260_v28 }
0x1a56   :  { %v17745_v54 = vpop.f32.mrf.mxu1 }
0x1a57   :  { %v15277_v11 = vmul.f32 0.70710677, %v15261_v23  ;;  %v15274_v12 = vmul.f32 0.5, %v15261_v23 }
0x1a59   :  { %v15286_v8 = vand.u32 2147483647, %v15277_v11  ;;  %vm15280_vm13 = vcmp.ge.f32.partialorder %v15277_v11, 0.0 }
0x1a5a   :  { %v15283_v20 = vsel %vm15280_vm13, 1.0, %v24245_v6 }
0x1a5b   :  { %v15289_v26 = vmul.f32 0.3275911, %v15286_v8  ;;  %v15328_v9 = vsub.f32 0.0, %v15286_v8 }
0x1a5d   :  { %v15292_v37 = vadd.f32 1.0, %v15289_v26  ;;  %v15331_v34 = vmul.f32 %v15328_v9, %v15286_v8 }
0x1a5f   :  { %18283 = vrcp.f32 %v15292_v37  ;;  %v15334_v3 = vmul.f32 1.442695, %v15331_v34 }
0x1a61   :  { %18285 = vpow2.f32 %v15334_v3 }
0x1a6c   :  { %v18284_v22 = vpop.eup %18283 }
0x1a6d   :  { %v15301_v48 = vmul.f32 1.0614054, %v18284_v22 }
0x1a6e   :  { %v18286_v25 = vpop.eup %18285 }
0x1a6f   :  { %v15304_v7 = vadd.f32 -1.4531521, %v15301_v48 }
0x1a71   :  { %v15265_v59 = vpop.f32.mrf.mxu1  ;;  %v15307_v33 = vmul.f32 %v18284_v22, %v15304_v7 }
0x1a72   :  { %v23415_v52 = vadd.f32 %v16228_v41, %v15265_v59 }
0x1a73   :  { %v17748_v2 = vpop.f32.mrf.mxu1  ;;  %v15310_v57 = vadd.f32 1.4214138, %v15307_v33 }
0x1a74   :  { %v15278_v47 = vmul.f32 0.70710677, %v23415_v52 }
0x1a75   :  { %v15270_v45 = vpop.f32.mrf.mxu1  ;;  %v15313_v44 = vmul.f32 %v18284_v22, %v15310_v57  ;;  %v15275_v57 = vmul.f32 0.5, %v23415_v52 }
0x1a76   :  { %v15287_v63 = vand.u32 2147483647, %v15278_v47  ;;  %v23418_v53 = vadd.f32 %v16228_v41, %v15270_v45  ;;  %vm15281_vm14 = vcmp.ge.f32.partialorder %v15278_v47, 0.0 }
0x1a77   :  { %v17751_v13 = vpop.f32.mrf.mxu1  ;;  %v15316_v43 = vadd.f32 -0.28449672, %v15313_v44  ;;  %v15284_v3 = vsel %vm15281_vm14, 1.0, %v24245_v6 }
0x1a78   :  { %v15290_v50 = vmul.f32 0.3275911, %v15287_v63  ;;  %v23421_v49 = vmul.f32 0.70710677, %v23418_v53  ;;  %v15329_v0 = vsub.f32 0.0, %v15287_v63  ;;  %v15276_v47 = vmul.f32 0.5, %v23418_v53 }
0x1a79   :  { %v15319_v35 = vmul.f32 %v18284_v22, %v15316_v43 }
0x1a7a   :  { %v15293_v39 = vadd.f32 1.0, %v15290_v50  ;;  %v15288_v61 = vand.u32 2147483647, %v23421_v49  ;;  %v15332_v18 = vmul.f32 %v15329_v0, %v15287_v63  ;;  %vm15282_vm15 = vcmp.ge.f32.partialorder %v23421_v49, 0.0  ;;  %v16249_v49 = vld [vmem:[%s23553_s11 + $0x2] ss:$0 sm:$0xff] }
0x1a7b   :  { %v15322_v38 = vadd.f32 0.2548296, %v15319_v35  ;;  %v15285_v13 = vsel %vm15282_vm15, 1.0, %v24245_v6 }
0x1a7c   :  { %18287 = vrcp.f32 %v15293_v39  ;;  %v15291_v29 = vmul.f32 0.3275911, %v15288_v61  ;;  %v15330_v21 = vsub.f32 0.0, %v15288_v61  ;;  %v15336_v14 = vmul.f32 1.442695, %v15332_v18 }
0x1a7d   :  { %v15325_v55 = vmul.f32 %v18284_v22, %v15322_v38 }
0x1a7e   :  { %v15294_v19 = vadd.f32 1.0, %v15291_v29  ;;  %v15333_v40 = vmul.f32 %v15330_v21, %v15288_v61 }
0x1a7f   :  { %v15340_v60 = vmul.f32 %v18286_v25, %v15325_v55 }
0x1a80   :  { %18289 = vrcp.f32 %v15294_v19  ;;  %v15338_v36 = vmul.f32 1.442695, %v15333_v40 }
0x1a81   :  { %v15343_v30 = vsub.f32 1.0, %v15340_v60  ;;  %18291 = vpow2.f32 %v15336_v14 }
0x1a82   :  { %18293 = vpow2.f32 %v15338_v36  ;;  %v15529_v36 = vld [vmem:[%s23560_s19 + $0x10] sm:$0xff] }
0x1a83   :  { %v15346_v4 = vmul.f32 %v15343_v30, %v15283_v20 }
0x1a85   :  { %v15349_v56 = vadd.f32 1.0, %v15346_v4 }
0x1a87   :  { %v15352_v1 = vmul.f32 %v15349_v56, %v15274_v12 }
0x1a89   :  { %v18288_v31 = vpop.eup %18287  ;;  %17785 = vmatmul.mubr.f32.vlgmr.msra.gmra.mxu0 %v15352_v1 }
0x1a8a   :  { %v15302_v24 = vmul.f32 1.0614054, %v18288_v31  ;;  %17787 = vmatprep.mubr.msk.f32.mxu0 %vm18311_vm0, %v24243_v10 }
0x1a8c   :  { %v15305_v42 = vadd.f32 -1.4531521, %v15302_v24 }
0x1a8d   :  { %v18290_v51 = vpop.eup %18289 }
0x1a8e   :  { %v15308_v15 = vmul.f32 %v18288_v31, %v15305_v42  ;;  %v15303_v16 = vmul.f32 1.0614054, %v18290_v51  ;;  %v18292_v37 = vpop.eup %18291 }
0x1a8f   :  { %v18294_v59 = vpop.eup %18293 }
0x1a90   :  { %v15311_v27 = vadd.f32 1.4214138, %v15308_v15  ;;  %v15306_v17 = vadd.f32 -1.4531521, %v15303_v16  ;;  %v15530_v16 = vld [vmem:[%s23560_s19 + $0x18] sm:$0xff] }
0x1a91   :  { %17794 = vmatpush3.msra.mxu1 %v15530_v16 }
0x1a92   :  { %v15314_v5 = vmul.f32 %v18288_v31, %v15311_v27  ;;  %v15309_v32 = vmul.f32 %v18290_v51, %v15306_v17  ;;  %17795 = vmatprep.subr.mxu1 %v24243_v10  ;;  %v15528_v27 = vld [vmem:[%s23560_s19 + $0x8] sm:$0xff]  ;;  %v15527_v17 = vld [vmem:[%s23560_s19] sm:$0xff] }
0x1a93   :  { %17796 = vmatpush3.msra.mxu1 %v15529_v36 }
0x1a94   :  { %v15317_v41 = vadd.f32 -0.28449672, %v15314_v5  ;;  %v15312_v28 = vadd.f32 1.4214138, %v15309_v32  ;;  %17797 = vmatprep.subr.mxu1 %v24243_v10  ;;  %v31_v5 = vstv %s23561_s21 }
0x1a95   :  { %17798 = vmatpush3.msra.mxu1 %v15528_v27  ;;  %32 = vst [vmem:[#allocation3] sm:$0x1] %v31_v5 }
0x1a96   :  { %v15320_v23 = vmul.f32 %v18288_v31, %v15317_v41  ;;  %v15315_v54 = vmul.f32 %v18290_v51, %v15312_v28  ;;  %17799 = vmatprep.subr.mxu1 %v24243_v10 }
0x1a97   :  { %17800 = vmatpush3.msra.mxu1 %v15527_v17  ;;  %v16259_v17 = vld [vmem:[%s24249_s0] ss:$0 sm:$0xff] }
0x1a98   :  { %v15323_v11 = vadd.f32 0.2548296, %v15320_v23  ;;  %v15318_v8 = vadd.f32 -0.28449672, %v15315_v54  ;;  %17810 = vmatprep.subr.mxu1 %v24243_v10 }
0x1a9a   :  { %v15326_v26 = vmul.f32 %v18288_v31, %v15323_v11  ;;  %v15321_v9 = vmul.f32 %v18290_v51, %v15318_v8  ;;  %v16252_v11 = vld [vmem:[%s23554_s12 + $0x2] ss:$0 sm:$0xff] }
0x1a9c   :  { %v15341_v34 = vmul.f32 %v18292_v37, %v15326_v26  ;;  %v15324_v22 = vadd.f32 0.2548296, %v15321_v9  ;;  %v16258_v32 = vld [vmem:[#allocation3] ss:$0 sm:$0xff]  ;;  %v16253_v26 = vld [vmem:[%s23555_s13 + $0x2] ss:$0 sm:$0xff] }
0x1a9e   :  { %v15344_v48 = vsub.f32 1.0, %v15341_v34  ;;  %v15327_v7 = vmul.f32 %v18290_v51, %v15324_v22  ;;  %v24246_v34 = vld [vmem:[#allocation78_spill] sm:$0xff] }
0x1aa0   :  { %v15347_v33 = vmul.f32 %v15344_v48, %v15284_v3  ;;  %v15342_v2 = vmul.f32 %v18294_v59, %v15327_v7  ;;  %v15656_v48 = vld [vmem:[%s23562_s22 + $0x38] sm:$0xff]  ;;  %v15655_v3 = vld [vmem:[%s23562_s22 + $0x30] sm:$0xff] }
0x1aa2   :  { %v15350_v45 = vadd.f32 1.0, %v15347_v33  ;;  %v15345_v44 = vsub.f32 1.0, %v15342_v2  ;;  %v15654_v33 = vld [vmem:[%s23562_s22 + $0x28] sm:$0xff] }
0x1aa4   :  { %v15353_v63 = vmul.f32 %v15350_v45, %v15275_v57  ;;  %v15348_v43 = vmul.f32 %v15345_v44, %v15285_v13 }
0x1aa6   :  { %17788 = vmatmul.mubr.f32.gmra.mxu0 %v15353_v63  ;;  %v15351_v50 = vadd.f32 1.0, %v15348_v43 }
0x1aa7   :  { %17790 = vmatprep.mubr.msk.f32.mxu0 %vm18311_vm0, %v24243_v10 }
0x1aa8   :  { %v15354_v35 = vmul.f32 %v15351_v50, %v15276_v47 }
0x1aaa   :  { %17791 = vmatmul.mubr.f32.gmra.mxu0 %v15354_v35 }
0x1b49   :  { %v15446_v52 = vpop.f32.mrf.mxu0 }
0x1b4a   :  { %v15447_v39 = vadd.f32 %v16249_v49, %v15446_v52 }
0x1b4b   :  { %v17786_v61 = vpop.f32.mrf.mxu0 }
0x1b4c   :  { %v15460_v38 = vadd.f32 %v15447_v39, %v23331_v62 }
0x1b4e   :  { %v15467_v29 = vsel %vm103_vm1, %v15460_v38, 0.0 }
0x1b4f   :  { %15468 = vadd.xlane.f32.xlu0 %v15467_v29 }
0x1b66   :  { %v15451_v55 = vpop.f32.mrf.mxu0 }
0x1b67   :  { %v15452_v53 = vadd.f32 %v16249_v49, %v15451_v55  ;;  %v15653_v55 = vld [vmem:[%s23562_s22 + $0x20] sm:$0xff] }
0x1b68   :  { %v17789_v25 = vpop.f32.mrf.mxu0 }
0x1b69   :  { %v15461_v19 = vadd.f32 %v15452_v53, %v23337_v46  ;;  %v15652_v53 = vld [vmem:[%s23562_s22 + $0x18] sm:$0xff]  ;;  %v15651_v25 = vld [vmem:[%s23562_s22 + $0x10] sm:$0xff] }
0x1b6a   :  { %v15456_v60 = vpop.f32.mrf.mxu0 }
0x1b6b   :  { %v15470_v30 = vsel %vm103_vm1, %v15461_v19, 0.0  ;;  %v15457_v0 = vadd.f32 %v16249_v49, %v15456_v60  ;;  %v24247_v49 = vld [vmem:[#allocation83_spill] sm:$0xff] }
0x1b6c   :  { %15471 = vadd.xlane.f32.xlu1 %v15470_v30  ;;  %v17792_v6 = vpop.f32.mrf.mxu0  ;;  %v15649_v60 = vld [vmem:[%s23562_s22] sm:$0xff] }
0x1b6d   :  { %v15462_v20 = vadd.f32 %v15457_v0, %v23343_v58  ;;  %v16254_v30 = vld [vmem:[%s23563_s20] ss:$0 sm:$0xff] }
0x1b6f   :  { %v15473_v4 = vsel %vm4961_vm5, %v15462_v20, 0.0 }
0x1b70   :  { %15474 = vadd.xlane.f32.xlu0 %v15473_v4 }
0x1bd8   :  { %v15469_v62 = vpop.xlane.xlu0 %15468 }
0x1bd9   :  { %v15476_v12 = vmul.f32 0.03125, %v15469_v62 }
0x1bdb   :  { %v15479_v56 = vsub.f32 %v15460_v38, %v15476_v12  ;;  %v24248_v38 = vld [vmem:[#allocation82_spill] sm:$0xff] }
0x1bdd   :  { %v15482_v18 = vmul.f32 %v15479_v56, %v15479_v56 }
0x1bdf   :  { %v15485_v21 = vsel %vm103_vm1, %v15482_v18, 0.0 }
0x1be0   :  { %15486 = vadd.xlane.f32.xlu1 %v15485_v21 }
0x1bf5   :  { %v15472_v1 = vpop.xlane.xlu1 %15471 }
0x1bf6   :  { %v15477_v46 = vmul.f32 0.03125, %v15472_v1 }
0x1bf8   :  { %v15480_v31 = vsub.f32 %v15461_v19, %v15477_v46  ;;  %v15650_v19 = vld [vmem:[%s23562_s22 + $0x8] sm:$0xff] }
0x1bf9   :  { %v15475_v24 = vpop.xlane.xlu0 %15474 }
0x1bfa   :  { %v15483_v14 = vmul.f32 %v15480_v31, %v15480_v31  ;;  %v15478_v40 = vmul.f32 0.03125, %v15475_v24 }
0x1bfc   :  { %v15488_v42 = vsel %vm103_vm1, %v15483_v14, 0.0  ;;  %v15481_v51 = vsub.f32 %v15462_v20, %v15478_v40 }
0x1bfd   :  { %15489 = vadd.xlane.f32.xlu0 %v15488_v42 }
0x1bfe   :  { %v15484_v58 = vmul.f32 %v15481_v51, %v15481_v51 }
0x1c00   :  { %v15491_v15 = vsel %vm4961_vm5, %v15484_v58, 0.0 }
0x1c01   :  { %15492 = vadd.xlane.f32.xlu1 %v15491_v15 }
0x1c13   :  { %15640 = vperm.xlu0 %17844, %v16258_v32  }
0x1c69   :  { %v15487_v41 = vpop.xlane.xlu1 %15486 }
0x1c6a   :  { %v15494_v28 = vmul.f32 0.03125, %v15487_v41 }
0x1c6c   :  { %v15497_v23 = vadd.f32 1e-12, %v15494_v28 }
0x1c6e   :  { %18295 = vrsqrt.f32 %v15497_v23 }
0x1c7b   :  { %v18296_v54 = vpop.eup %18295 }
0x1c7c   :  { %v15503_v8 = vmul.f32 %v18296_v54, %v15479_v56 }
0x1c7e   :  { %v15512_v37 = vmul.f32 %v16252_v11, %v15503_v8 }
0x1c80   :  { %v15521_v9 = vadd.f32 %v16253_v26, %v15512_v37  ;;  %v24251_v37 = vld [vmem:[#allocation84_spill] sm:$0xff] }
0x1c82   :  { %v15524_v22 = vadd.f32 %v15521_v9, %v24246_v34 }
0x1c84   :  { %17802 = vmatmul.mubr.msk.f32.vlgmr.msra.gmra.mxu1 %vm103_vm1, %v15524_v22 }
0x1c85   :  { %17804 = vmatprep.mubr.msk.f32.mxu1 %vm18311_vm0, %v24243_v10  ;;  %17811 = vmatpush3.msra.mxu1 %v15656_v48  ;;  %v24253_v48 = vld [vmem:[#allocation85_spill] sm:$0xff] }
0x1c86   :  { %v15490_v7 = vpop.xlane.xlu0 %15489  ;;  %17812 = vmatprep.subr.mxu1 %v24243_v10 }
0x1c87   :  { %v15495_v59 = vmul.f32 0.03125, %v15490_v7  ;;  %17813 = vmatpush3.msra.mxu1 %v15655_v3 }
0x1c88   :  { %17814 = vmatprep.subr.mxu1 %v24243_v10 }
0x1c89   :  { %v15498_v2 = vadd.f32 1e-12, %v15495_v59  ;;  %17815 = vmatpush3.msra.mxu1 %v15654_v33  ;;  %v24254_v33 = vld [vmem:[#allocation72_spill] sm:$0xff] }
0x1c8a   :  { %v15493_v57 = vpop.xlane.xlu1 %15492  ;;  %17816 = vmatprep.subr.mxu1 %v24243_v10 }
0x1c8b   :  { %18297 = vrsqrt.f32 %v15498_v2  ;;  %v15496_v45 = vmul.f32 0.03125, %v15493_v57  ;;  %17817 = vmatpush3.msra.mxu1 %v15653_v55 }
0x1c8c   :  { %17818 = vmatprep.subr.mxu1 %v24243_v10 }
0x1c8d   :  { %v15499_v44 = vadd.f32 1e-12, %v15496_v45  ;;  %17819 = vmatpush3.msra.mxu1 %v15652_v53 }
0x1c8e   :  { %17820 = vmatprep.subr.mxu1 %v24243_v10  ;;  %v15641_v4 = vpop.permute.xlu0 %15640 }
0x1c8f   :  { %18299 = vrsqrt.f32 %v15499_v44  ;;  %17821 = vmatpush3.msra.mxu1 %v15651_v25 }
0x1c90   :  { %17822 = vmatprep.subr.mxu1 %v24243_v10 }
0x1c91   :  { %17823 = vmatpush3.msra.mxu1 %v15650_v19 }
0x1c92   :  { %17824 = vmatprep.subr.mxu1 %v24243_v10 }
0x1c93   :  { %17825 = vmatpush3.msra.mxu1 %v15649_v60 }
0x1c98   :  { %v18298_v63 = vpop.eup %18297 }
0x1c99   :  { %v15504_v13 = vmul.f32 %v18298_v63, %v15480_v31 }
0x1c9b   :  { %v15513_v43 = vmul.f32 %v16252_v11, %v15504_v13 }
0x1c9c   :  { %v18300_v47 = vpop.eup %18299 }
0x1c9d   :  { %v15522_v50 = vadd.f32 %v16253_v26, %v15513_v43  ;;  %v15505_v35 = vmul.f32 %v18300_v47, %v15481_v51 }
0x1c9f   :  { %v15525_v52 = vadd.f32 %v15522_v50, %v24247_v49  ;;  %v15514_v39 = vmul.f32 %v16252_v11, %v15505_v35 }
0x1ca1   :  { %17805 = vmatmul.mubr.msk.f32.gmra.mxu1 %vm103_vm1, %v15525_v52  ;;  %v15523_v61 = vadd.f32 %v16253_v26, %v15514_v39 }
0x1ca2   :  { %17807 = vmatprep.mubr.msk.f32.mxu1 %vm18311_vm0, %v24243_v10 }
0x1ca3   :  { %v15526_v29 = vadd.f32 %v15523_v61, %v24248_v38 }
0x1ca5   :  { %17808 = vmatmul.mubr.msk.f32.gmra.mxu1 %vm103_vm1, %v15526_v29  ;;  %vm15769_vm1 = vcmask 64512  }
0x1ca6   :  { %17826 = vmatprep.mubr.msk.f32.mxu1 %vm18311_vm0, %v24243_v10 }
0x1d44   :  { %v15613_v0 = vpop.f32.mrf.mxu1 }
0x1d45   :  { %v15614_v6 = vadd.f32 %v16254_v30, %v15613_v0 }
0x1d46   :  { %v17803_v20 = vpop.f32.mrf.mxu1 }
0x1d47   :  { %v15631_v62 = vmin.f32 %v15614_v6, 0.0  ;;  %v15627_v12 = vmax.f32 %v15614_v6, 0.0 }
0x1d49   :  { %v15643_v56 = vmul.f32 %v15641_v4, %v15631_v62 }
0x1d4b   :  { %v15646_v18 = vadd.f32 %v15643_v56, %v15627_v12 }
0x1d4d   :  { %17827 = vmatmul.mubr.msk.f32.vlgmr.msra.gmra.mxu1 %vm10473_vm12, %v15646_v18 }
0x1d4e   :  { %17829 = vmatprep.mubr.msk.f32.mxu1 %vm18311_vm0, %v24243_v10 }
0x1d61   :  { %v15618_v21 = vpop.f32.mrf.mxu1 }
0x1d62   :  { %v15619_v1 = vadd.f32 %v16254_v30, %v15618_v21 }
0x1d63   :  { %v17806_v46 = vpop.f32.mrf.mxu1 }
0x1d64   :  { %v15632_v31 = vmin.f32 %v15619_v1, 0.0  ;;  %v15628_v24 = vmax.f32 %v15619_v1, 0.0 }
0x1d65   :  { %v15623_v40 = vpop.f32.mrf.mxu1 }
0x1d66   :  { %v15644_v14 = vmul.f32 %v15641_v4, %v15632_v31  ;;  %v15624_v42 = vadd.f32 %v16254_v30, %v15623_v40 }
0x1d67   :  { %v17809_v58 = vpop.f32.mrf.mxu1 }
0x1d68   :  { %v15647_v51 = vadd.f32 %v15644_v14, %v15628_v24  ;;  %v15633_v15 = vmin.f32 %v15624_v42, 0.0  ;;  %v15629_v16 = vmax.f32 %v15624_v42, 0.0 }
0x1d6a   :  { %17830 = vmatmul.mubr.msk.f32.gmra.mxu1 %vm10473_vm12, %v15647_v51  ;;  %v15645_v36 = vmul.f32 %v15641_v4, %v15633_v15 }
0x1d6b   :  { %17832 = vmatprep.mubr.msk.f32.mxu1 %vm18311_vm0, %v24243_v10  ;;  %v16085_v10 = vld [vmem:[%s24250_s23] ss:$0 sm:$0xff]  ;;  %vm15765_vm0 = vcmask 31744  }
0x1d6c   :  { %v15648_v27 = vadd.f32 %v15645_v36, %v15629_v16  ;;  %v10550_v9 = vadd.f32 %v16085_v10, %v24251_v37  ;;  %v10555_v3 = vadd.f32 %v16085_v10, %v24253_v48  ;;  %v10560_v2 = vadd.f32 %v16085_v10, %v24254_v33 }
0x1d6e   :  { %17833 = vmatmul.mubr.msk.f32.gmra.mxu1 %vm10473_vm12, %v15648_v27 }
0x1e0d   :  { %v15739_v5 = vpop.f32.mrf.mxu1 }
0x1e0e   :  { %v15740_v32 = vadd.f32 %v16259_v17, %v15739_v5 }
0x1e0f   :  { %v17828_v41 = vpop.f32.mrf.mxu1 }
0x1e10   :  { %15756 = vrot.lane.b32.xlu1 %v15740_v32, %s18317_s5 }
0x1e2a   :  { %v15744_v28 = vpop.f32.mrf.mxu1 }
0x1e2b   :  { %v15745_v23 = vadd.f32 %v16259_v17, %v15744_v28 }
0x1e2c   :  { %v17831_v54 = vpop.f32.mrf.mxu1 }
0x1e2d   :  { %15758 = vrot.lane.b32.xlu1 %v15745_v23, %s18317_s5 }
0x1e2e   :  { %v15749_v11 = vpop.f32.mrf.mxu1 }
0x1e2f   :  { %v15750_v8 = vadd.f32 %v16259_v17, %v15749_v11 }
0x1e30   :  { %v17834_v26 = vpop.f32.mrf.mxu1 }
0x1e31   :  { %15760 = vrot.lane.b32.xlu1 %v15750_v8, %s18317_s5 }
0x1e82   :  { %v15757_v34 = vpop.permute.xlu1 %15756 }
0x1e83   :  { %v15766_v22 = vsel %vm15765_vm0, %v10550_v9, %v15757_v34 }
0x1e84   :  { %15770 = vst.msk [vmem:[%s24252_s28] sm:$0xff] %vm15769_vm1, %v15766_v22 }
0x1e9f   :  { %v15759_v7 = vpop.permute.xlu1 %15758 }
0x1ea0   :  { %v15767_v59 = vsel %vm15765_vm0, %v10555_v3, %v15759_v7 }
0x1ea1   :  { %15771 = vst.msk [vmem:[%s24252_s28 + $0x8] sm:$0xff] %vm15769_vm1, %v15767_v59 }
0x1ea3   :  { %v15761_v57 = vpop.permute.xlu1 %15760 }
0x1ea4   :  { %v15768_v45 = vsel %vm15765_vm0, %v10560_v2, %v15761_v57 }
0x1ea5   :  { %15773 = vst.msk [vmem:[%s24252_s28 + $0x10] sm:$0xf] %vm15772_vm2, %v15768_v45 }

</bundles_post_ra>
